<compile_context>
chip_gen: v7x
topology: tpu7x:2x2x1
jax: 0.10.0
libtpu: 0.0.40
codegen_flags: <defaults>
</compile_context>

<pallas_src>
import functools
import math

import jax
import jax.numpy as jnp
from jax import lax
from jax.experimental import pallas as pl
from jax.experimental.pallas import tpu as pltpu

EMBED_DIM = 32        # embed_dim
NUM_HEADS = 4         # num_heads
NUM_LAYERS = 2        # num_layers (both encoder stacks)
NUM_ACTIONS = 12      # num_actions
GRAPH_FF_HIDDEN = 64  # rl4co encoder feedforward_hidden (512 scaled down)
TF_FF_HIDDEN = 64     # nn.TransformerEncoderLayer dim_feedforward (2048 scaled down)
EPS = 1e-5
NEG_INF = -1e30       # additive key bias for padded positions


def _round_up(x, m):
    return (x + m - 1) // m * m


def _vmem():
    return pl.BlockSpec(memory_space=pltpu.MemorySpace.VMEM)


def _mm(x, w):
    """MXU matmul: bf16 inputs, f32 accumulation (weight matrices are stored bf16)."""
    return jnp.dot(x.astype(jnp.bfloat16), w, preferred_element_type=jnp.float32)


# ------------------------------ fused kernel ------------------------------- #

def fused_forward_kernel(
        locs_ref, onehot_ref, g_bias_ref, t_bias_ref, bn_mask_ref, pool_mask_ref,
        init_w_ref, init_b_ref, action_emb_ref,
        g_wqkv_ref, g_bqkv_ref, g_wo_ref, g_bo_ref, g_norm_ref,
        g_ffw1_ref, g_ffb1_ref, g_ffw2_ref, g_ffb2_ref,
        t_wqkv_ref, t_bqkv_ref, t_wo_ref, t_bo_ref, t_norm_ref,
        t_ffw1_ref, t_ffb1_ref, t_ffw2_ref, t_ffb2_ref,
        rh_w1_ref, rh_b1_ref, rh_w2_ref, rh_b2_ref,
        o_ref,
        *, B, N, S, N_pad, S_pad, num_heads, num_layers):
    D = EMBED_DIM
    T = N + S
    T_pad = N_pad + S_pad
    dh = D // num_heads
    scale = 1.0 / math.sqrt(dh)

    def mha(x, wqkv, bqkv, wo, bo, key_bias, R_pad):
        """Self-attention over per-batch blocks of R_pad (sublane-aligned) rows.

        QKV hoisted to one wide MXU push; attention matmuls in bf16 (f32 acc); per-head
        contexts combined by value concatenation (no masked sub-column ref stores); single
        (D, D) output projection over all B*R_pad rows.
        """
        qkv = (_mm(x, wqkv) + bqkv).astype(jnp.bfloat16)          # (B*R_pad, 3D)
        ctx_rows = []
        for b in range(B):                                        # static unroll (B tiny)
            qkv_b = qkv[b * R_pad:(b + 1) * R_pad, :]             # aligned whole-tile slice
            head_ctx = []
            for h in range(num_heads):                            # static unroll
                qh = qkv_b[:, h * dh:(h + 1) * dh]
                kh = qkv_b[:, D + h * dh:D + (h + 1) * dh]
                vh = qkv_b[:, 2 * D + h * dh:2 * D + (h + 1) * dh]
                s = lax.dot_general(qh, kh, (((1,), (1,)), ((), ())),
                                    preferred_element_type=jnp.float32) * scale
                s = s + key_bias                                  # mask padded key positions
                s = s - jnp.max(s, axis=-1, keepdims=True)
                p = jnp.exp(s)
                p = p * pl.reciprocal(jnp.sum(p, axis=-1, keepdims=True), approx=True)
                head_ctx.append(jnp.dot(p.astype(jnp.bfloat16), vh,
                                        preferred_element_type=jnp.float32))
            ctx_rows.append(jnp.concatenate(head_ctx, axis=-1))   # (R_pad, D)
        ctx = jnp.concatenate(ctx_rows, axis=0)                   # (B*R_pad, D)
        return _mm(ctx, wo) + bo                                  # single (D, D) projection

    # --- AttentionModelEncoder: init embedding Linear(2, D) + graph layers ---
    bn_mask = bn_mask_ref[...]                                    # (B*N_pad, 1) valid-row mask
    inv_cnt = 1.0 / (B * N)

    def add_batchnorm(x, res, gamma, beta):
        """BatchNorm1d(x + res) with masked batch statistics (pad rows excluded)."""
        y = x + res
        mean = jnp.sum(y * bn_mask, axis=0, keepdims=True) * inv_cnt
        d = y - mean
        var = jnp.sum(d * d * bn_mask, axis=0, keepdims=True) * inv_cnt
        return d * lax.rsqrt(var + EPS) * gamma + beta

    g_bias = g_bias_ref[...]                                      # (1, N_pad)
    h = _mm(locs_ref[...], init_w_ref[...]) + init_b_ref[...]     # (B*N_pad, D)
    for l in range(num_layers):
        attn = mha(h, g_wqkv_ref[l], g_bqkv_ref[l], g_wo_ref[l], g_bo_ref[l], g_bias, N_pad)
        norm = g_norm_ref[l]                                      # (4, D)
        h = add_batchnorm(attn, h, norm[0:1], norm[1:2])
        ff = jnp.maximum(_mm(h, g_ffw1_ref[l]) + g_ffb1_ref[l], 0.0)
        ff = _mm(ff, g_ffw2_ref[l]) + g_ffb2_ref[l]
        h = add_batchnorm(ff, h, norm[2:3], norm[3:4])

    # --- action embedding (precomputed one-hot, padding_idx=0 -> zero row) + concat ---
    act_emb = jnp.dot(onehot_ref[...], action_emb_ref[...],
                      preferred_element_type=jnp.float32)         # (B*S_pad, D)
    c = jnp.concatenate(
        [jnp.concatenate([h[b * N_pad:(b + 1) * N_pad, :],
                          act_emb[b * S_pad:(b + 1) * S_pad, :]], axis=0)
         for b in range(B)], axis=0)                              # (B*T_pad, D), aligned blocks

    # --- nn.TransformerEncoder (post-norm layers, pad keys masked via t_bias) ---
    def add_layernorm(x, res, gamma, beta):
        y = x + res
        mean = jnp.mean(y, axis=-1, keepdims=True)
        d = y - mean
        var = jnp.mean(d * d, axis=-1, keepdims=True)
        return d * lax.rsqrt(var + EPS) * gamma + beta

    t_bias = t_bias_ref[...]                                      # (1, T_pad)
    for l in range(num_layers):
        attn = mha(c, t_wqkv_ref[l], t_bqkv_ref[l], t_wo_ref[l], t_bo_ref[l], t_bias, T_pad)
        norm = t_norm_ref[l]
        x1 = add_layernorm(attn, c, norm[0:1], norm[1:2])
        ff = jnp.maximum(_mm(x1, t_ffw1_ref[l]) + t_ffb1_ref[l], 0.0)
        ff = _mm(ff, t_ffw2_ref[l]) + t_ffb2_ref[l]
        c = add_layernorm(ff, x1, norm[2:3], norm[3:4])

    # --- masked mean pool over the (padded) sequence dim + reward head ---
    pool_mask = pool_mask_ref[...]                                # (T_pad, 1) valid-token mask
    pooled = jnp.concatenate(
        [jnp.sum(c[b * T_pad:(b + 1) * T_pad, :] * pool_mask, axis=0, keepdims=True)
         for b in range(B)], axis=0) * (1.0 / T)                  # (B, D)
    hid = jnp.maximum(_mm(pooled, rh_w1_ref[...]) + rh_b1_ref[...], 0.0)
    o_ref[...] = _mm(hid, rh_w2_ref[...]) + rh_b2_ref[...]        # (B, 1)


# ------------------------------ model forward ------------------------------ #

def forward(params, locs, actions):
    B, N, _ = locs.shape
    S = actions.shape[1]
    N_pad = _round_up(N, 8)
    S_pad = _round_up(max(S, 1), 8)
    T_pad = N_pad + S_pad

    # Sublane-aligned padded layouts; pad rows are masked out inside the kernel.
    locs_p = jnp.zeros((B, N_pad, 2), jnp.float32).at[:, :N, :].set(locs.astype(jnp.float32))
    locs_flat = locs_p.reshape(B * N_pad, 2)

    acts_p = jnp.zeros((B, S_pad), jnp.int32).at[:, :S].set(actions.astype(jnp.int32))
    s_valid = jnp.arange(S_pad) < S
    onehot = (jax.nn.one_hot(acts_p, NUM_ACTIONS, dtype=jnp.bfloat16)
              * s_valid.astype(jnp.bfloat16)[None, :, None]).reshape(B * S_pad, NUM_ACTIONS)

    n_valid = jnp.arange(N_pad) < N
    t_valid = jnp.concatenate([n_valid, s_valid])                  # [graph block | action block]
    g_key_bias = jnp.where(n_valid, 0.0, NEG_INF).astype(jnp.float32).reshape(1, N_pad)
    t_key_bias = jnp.where(t_valid, 0.0, NEG_INF).astype(jnp.float32).reshape(1, T_pad)
    bn_mask = jnp.tile(n_valid.astype(jnp.float32), B).reshape(B * N_pad, 1)
    pool_mask = t_valid.astype(jnp.float32).reshape(T_pad, 1)

    kernel = functools.partial(
        fused_forward_kernel, B=B, N=N, S=S, N_pad=N_pad, S_pad=S_pad,
        num_heads=NUM_HEADS, num_layers=NUM_LAYERS)

    args = (
        locs_flat, onehot, g_key_bias, t_key_bias, bn_mask, pool_mask,
        params["init_w"], params["init_b"], params["action_emb"],
        params["g_wqkv"], params["g_bqkv"], params["g_wo"], params["g_bo"], params["g_norm"],
        params["g_ffw1"], params["g_ffb1"], params["g_ffw2"], params["g_ffb2"],
        params["t_wqkv"], params["t_bqkv"], params["t_wo"], params["t_bo"], params["t_norm"],
        params["t_ffw1"], params["t_ffb1"], params["t_ffw2"], params["t_ffb2"],
        params["rh_w1"], params["rh_b1"], params["rh_w2"], params["rh_b2"],
    )

    return pl.pallas_call(
        kernel,
        out_shape=jax.ShapeDtypeStruct((B, 1), jnp.float32),
        in_specs=[_vmem()] * len(args),
        out_specs=_vmem(),
    )(*args)


# ---------------------------- parameter creation ---------------------------- #

def init_params(key):
    D = EMBED_DIM
    L = NUM_LAYERS
    keys = iter(jax.random.split(key, 64))

    def w(shape, scale=0.1):
        # weight matrices stored bf16 (fed straight to the MXU)
        return (jax.random.normal(next(keys), shape, jnp.float32) * scale).astype(jnp.bfloat16)

    def b(shape, scale=0.1):
        # biases / affine params stay f32
        return jax.random.normal(next(keys), shape, jnp.float32) * scale

    def norm_stack():
        # rows per layer: [gamma1, beta1, gamma2, beta2]
        g = jnp.ones((L, 1, D), jnp.float32)
        z = jnp.zeros((L, 1, D), jnp.float32)
        return jnp.concatenate([g, z, g, z], axis=1)       # (L, 4, D)

    return dict(
        init_w=w((2, D)), init_b=b((1, D)),
        action_emb=w((NUM_ACTIONS, D)).at[0].set(0.0),      # padding_idx=0
        # graph encoder (stacked per layer)
        g_wqkv=w((L, D, 3 * D)), g_bqkv=b((L, 1, 3 * D)),
        g_wo=w((L, D, D)), g_bo=b((L, 1, D)), g_norm=norm_stack(),
        g_ffw1=w((L, D, GRAPH_FF_HIDDEN)), g_ffb1=b((L, 1, GRAPH_FF_HIDDEN)),
        g_ffw2=w((L, GRAPH_FF_HIDDEN, D)), g_ffb2=b((L, 1, D)),
        # transformer encoder (stacked per layer)
        t_wqkv=w((L, D, 3 * D)), t_bqkv=b((L, 1, 3 * D)),
        t_wo=w((L, D, D)), t_bo=b((L, 1, D)), t_norm=norm_stack(),
        t_ffw1=w((L, D, TF_FF_HIDDEN)), t_ffb1=b((L, 1, TF_FF_HIDDEN)),
        t_ffw2=w((L, TF_FF_HIDDEN, D)), t_ffb2=b((L, 1, D)),
        # reward head
        rh_w1=w((D, D)), rh_b1=b((1, D)),
        rh_w2=w((D, 1)), rh_b2=b((1, 1)),
    )


if __name__ == "__main__":
    key = jax.random.PRNGKey(0)
    k_params, k_locs, k_actions = jax.random.split(key, 3)

    params = init_params(k_params)

    B, N_NODES, SEQ_LEN = 2, 10, 8
    locs = jax.random.uniform(k_locs, (B, N_NODES, 2), jnp.float32)        # state_td['locs']
    actions = jax.random.randint(k_actions, (B, SEQ_LEN), 0, NUM_ACTIONS)  # (B, seq_len)

    reward = jax.jit(forward)(params, locs, actions)
    reward = jax.block_until_ready(reward)
    assert reward.shape == (B, 1) and reward.dtype == jnp.float32
    print("KERNEL_OK")
</pallas_src>

<mosaic_0001>
module attributes {stable_mosaic.version = 11 : i64} {
  func.func @fused_forward_kernel(%arg0: memref<32x2xf32, #tpu.memory_space<vmem>>, %arg1: memref<16x12xbf16, #tpu.memory_space<vmem>>, %arg2: memref<1x16xf32, #tpu.memory_space<vmem>>, %arg3: memref<1x24xf32, #tpu.memory_space<vmem>>, %arg4: memref<32x1xf32, #tpu.memory_space<vmem>>, %arg5: memref<24x1xf32, #tpu.memory_space<vmem>>, %arg6: memref<2x32xbf16, #tpu.memory_space<vmem>>, %arg7: memref<1x32xf32, #tpu.memory_space<vmem>>, %arg8: memref<12x32xbf16, #tpu.memory_space<vmem>>, %arg9: memref<2x32x96xbf16, #tpu.memory_space<vmem>>, %arg10: memref<2x1x96xf32, #tpu.memory_space<vmem>>, %arg11: memref<2x32x32xbf16, #tpu.memory_space<vmem>>, %arg12: memref<2x1x32xf32, #tpu.memory_space<vmem>>, %arg13: memref<2x4x32xf32, #tpu.memory_space<vmem>>, %arg14: memref<2x32x64xbf16, #tpu.memory_space<vmem>>, %arg15: memref<2x1x64xf32, #tpu.memory_space<vmem>>, %arg16: memref<2x64x32xbf16, #tpu.memory_space<vmem>>, %arg17: memref<2x1x32xf32, #tpu.memory_space<vmem>>, %arg18: memref<2x32x96xbf16, #tpu.memory_space<vmem>>, %arg19: memref<2x1x96xf32, #tpu.memory_space<vmem>>, %arg20: memref<2x32x32xbf16, #tpu.memory_space<vmem>>, %arg21: memref<2x1x32xf32, #tpu.memory_space<vmem>>, %arg22: memref<2x4x32xf32, #tpu.memory_space<vmem>>, %arg23: memref<2x32x64xbf16, #tpu.memory_space<vmem>>, %arg24: memref<2x1x64xf32, #tpu.memory_space<vmem>>, %arg25: memref<2x64x32xbf16, #tpu.memory_space<vmem>>, %arg26: memref<2x1x32xf32, #tpu.memory_space<vmem>>, %arg27: memref<32x32xbf16, #tpu.memory_space<vmem>>, %arg28: memref<1x32xf32, #tpu.memory_space<vmem>>, %arg29: memref<32x1xbf16, #tpu.memory_space<vmem>>, %arg30: memref<1x1xf32, #tpu.memory_space<vmem>>, %arg31: memref<2x1xf32, #tpu.memory_space<vmem>>) attributes {dimension_semantics = [], scalar_prefetch = 0 : i64, scratch_operands = 0 : i64, tpu.core_type = #tpu.core_type<tc>} {
    %c0 = arith.constant 0 : index
    %c0_0 = arith.constant 0 : index
    %0 = vector.load %arg4[%c0, %c0_0] : memref<32x1xf32, #tpu.memory_space<vmem>>, vector<32x1xf32>
    %c0_1 = arith.constant 0 : index
    %c0_2 = arith.constant 0 : index
    %1 = vector.load %arg2[%c0_1, %c0_2] : memref<1x16xf32, #tpu.memory_space<vmem>>, vector<1x16xf32>
    %c0_3 = arith.constant 0 : index
    %c0_4 = arith.constant 0 : index
    %2 = vector.load %arg0[%c0_3, %c0_4] : memref<32x2xf32, #tpu.memory_space<vmem>>, vector<32x2xf32>
    %c0_5 = arith.constant 0 : index
    %c0_6 = arith.constant 0 : index
    %3 = vector.load %arg6[%c0_5, %c0_6] : memref<2x32xbf16, #tpu.memory_space<vmem>>, vector<2x32xbf16>
    %4 = arith.truncf %2 : vector<32x2xf32> to vector<32x2xbf16>
    %cst = arith.constant dense<0.000000e+00> : vector<32x32xf32>
    %5 = tpu.matmul %4, %3, %cst {dimension_numbers = #tpu.dot_dimension_numbers<[1], [0], [0], [1], [0, 0, 1, 1], [], []>} : vector<32x2xbf16>, vector<2x32xbf16>, vector<32x32xf32> -> vector<32x32xf32>
    %c0_7 = arith.constant 0 : index
    %c0_8 = arith.constant 0 : index
    %6 = vector.load %arg7[%c0_7, %c0_8] : memref<1x32xf32, #tpu.memory_space<vmem>>, vector<1x32xf32>
    %7 = vector.broadcast %6 : vector<1x32xf32> to vector<32x32xf32>
    %8 = arith.addf %5, %7 : vector<32x32xf32>
    %c0_9 = arith.constant 0 : index
    %c0_10 = arith.constant 0 : index
    %c0_11 = arith.constant 0 : index
    %9 = vector.load %arg9[%c0_9, %c0_10, %c0_11] : memref<2x32x96xbf16, #tpu.memory_space<vmem>>, vector<1x32x96xbf16>
    %10 = vector.shape_cast %9 : vector<1x32x96xbf16> to vector<32x96xbf16>
    %c0_12 = arith.constant 0 : index
    %c0_13 = arith.constant 0 : index
    %c0_14 = arith.constant 0 : index
    %11 = vector.load %arg10[%c0_12, %c0_13, %c0_14] : memref<2x1x96xf32, #tpu.memory_space<vmem>>, vector<1x1x96xf32>
    %12 = vector.shape_cast %11 : vector<1x1x96xf32> to vector<1x96xf32>
    %c0_15 = arith.constant 0 : index
    %c0_16 = arith.constant 0 : index
    %c0_17 = arith.constant 0 : index
    %13 = vector.load %arg11[%c0_15, %c0_16, %c0_17] : memref<2x32x32xbf16, #tpu.memory_space<vmem>>, vector<1x32x32xbf16>
    %14 = vector.shape_cast %13 : vector<1x32x32xbf16> to vector<32x32xbf16>
    %c0_18 = arith.constant 0 : index
    %c0_19 = arith.constant 0 : index
    %c0_20 = arith.constant 0 : index
    %15 = vector.load %arg12[%c0_18, %c0_19, %c0_20] : memref<2x1x32xf32, #tpu.memory_space<vmem>>, vector<1x1x32xf32>
    %16 = vector.shape_cast %15 : vector<1x1x32xf32> to vector<1x32xf32>
    %17 = arith.truncf %8 : vector<32x32xf32> to vector<32x32xbf16>
    %cst_21 = arith.constant dense<0.000000e+00> : vector<32x96xf32>
    %18 = tpu.matmul %17, %10, %cst_21 {dimension_numbers = #tpu.dot_dimension_numbers<[1], [0], [0], [1], [0, 0, 1, 1], [], []>} : vector<32x32xbf16>, vector<32x96xbf16>, vector<32x96xf32> -> vector<32x96xf32>
    %19 = vector.broadcast %12 : vector<1x96xf32> to vector<32x96xf32>
    %20 = arith.addf %18, %19 : vector<32x96xf32>
    %21 = arith.truncf %20 : vector<32x96xf32> to vector<32x96xbf16>
    %22 = vector.extract_strided_slice %21 {offsets = [0, 0], sizes = [16, 96], strides = [1, 1]} : vector<32x96xbf16> to vector<16x96xbf16>
    %23 = vector.extract_strided_slice %22 {offsets = [0, 0], sizes = [16, 8], strides = [1, 1]} : vector<16x96xbf16> to vector<16x8xbf16>
    %24 = vector.extract_strided_slice %22 {offsets = [0, 32], sizes = [16, 8], strides = [1, 1]} : vector<16x96xbf16> to vector<16x8xbf16>
    %25 = vector.extract_strided_slice %22 {offsets = [0, 64], sizes = [16, 8], strides = [1, 1]} : vector<16x96xbf16> to vector<16x8xbf16>
    %cst_22 = arith.constant dense<0.000000e+00> : vector<16x16xf32>
    %26 = tpu.matmul %23, %24, %cst_22 {dimension_numbers = #tpu.dot_dimension_numbers<[1], [1], [0], [0], [0, 0, 1, 0], [], []>} : vector<16x8xbf16>, vector<16x8xbf16>, vector<16x16xf32> -> vector<16x16xf32>
    %cst_23 = arith.constant 0.353553385 : f32
    %27 = vector.broadcast %cst_23 : f32 to vector<16x16xf32>
    %28 = arith.mulf %26, %27 : vector<16x16xf32>
    %29 = vector.broadcast %1 : vector<1x16xf32> to vector<16x16xf32>
    %30 = arith.addf %28, %29 : vector<16x16xf32>
    %cst_24 = arith.constant dense<0xFF800000> : vector<16xf32>
    %31 = vector.multi_reduction <maximumf>, %30, %cst_24 [1] : vector<16x16xf32> to vector<16xf32>
    %32 = vector.shape_cast %31 : vector<16xf32> to vector<16x1xf32>
    %33 = vector.broadcast %32 : vector<16x1xf32> to vector<16x16xf32>
    %34 = arith.subf %30, %33 : vector<16x16xf32>
    %35 = math.exp %34 : vector<16x16xf32>
    %cst_25 = arith.constant dense<0.000000e+00> : vector<16xf32>
    %36 = vector.multi_reduction <add>, %35, %cst_25 [1] : vector<16x16xf32> to vector<16xf32>
    %37 = vector.shape_cast %36 : vector<16xf32> to vector<16x1xf32>
    %38 = tpu.reciprocal %37 {approx = true} : vector<16x1xf32> -> vector<16x1xf32>
    %39 = vector.broadcast %38 : vector<16x1xf32> to vector<16x16xf32>
    %40 = arith.mulf %35, %39 : vector<16x16xf32>
    %41 = arith.truncf %40 : vector<16x16xf32> to vector<16x16xbf16>
    %cst_26 = arith.constant dense<0.000000e+00> : vector<16x8xf32>
    %42 = tpu.matmul %41, %25, %cst_26 {dimension_numbers = #tpu.dot_dimension_numbers<[1], [0], [0], [1], [0, 0, 1, 1], [], []>} : vector<16x16xbf16>, vector<16x8xbf16>, vector<16x8xf32> -> vector<16x8xf32>
    %43 = vector.extract_strided_slice %22 {offsets = [0, 8], sizes = [16, 8], strides = [1, 1]} : vector<16x96xbf16> to vector<16x8xbf16>
    %44 = vector.extract_strided_slice %22 {offsets = [0, 40], sizes = [16, 8], strides = [1, 1]} : vector<16x96xbf16> to vector<16x8xbf16>
    %45 = vector.extract_strided_slice %22 {offsets = [0, 72], sizes = [16, 8], strides = [1, 1]} : vector<16x96xbf16> to vector<16x8xbf16>
    %cst_27 = arith.constant dense<0.000000e+00> : vector<16x16xf32>
    %46 = tpu.matmul %43, %44, %cst_27 {dimension_numbers = #tpu.dot_dimension_numbers<[1], [1], [0], [0], [0, 0, 1, 0], [], []>} : vector<16x8xbf16>, vector<16x8xbf16>, vector<16x16xf32> -> vector<16x16xf32>
    %cst_28 = arith.constant 0.353553385 : f32
    %47 = vector.broadcast %cst_28 : f32 to vector<16x16xf32>
    %48 = arith.mulf %46, %47 : vector<16x16xf32>
    %49 = vector.broadcast %1 : vector<1x16xf32> to vector<16x16xf32>
    %50 = arith.addf %48, %49 : vector<16x16xf32>
    %cst_29 = arith.constant dense<0xFF800000> : vector<16xf32>
    %51 = vector.multi_reduction <maximumf>, %50, %cst_29 [1] : vector<16x16xf32> to vector<16xf32>
    %52 = vector.shape_cast %51 : vector<16xf32> to vector<16x1xf32>
    %53 = vector.broadcast %52 : vector<16x1xf32> to vector<16x16xf32>
    %54 = arith.subf %50, %53 : vector<16x16xf32>
    %55 = math.exp %54 : vector<16x16xf32>
    %cst_30 = arith.constant dense<0.000000e+00> : vector<16xf32>
    %56 = vector.multi_reduction <add>, %55, %cst_30 [1] : vector<16x16xf32> to vector<16xf32>
    %57 = vector.shape_cast %56 : vector<16xf32> to vector<16x1xf32>
    %58 = tpu.reciprocal %57 {approx = true} : vector<16x1xf32> -> vector<16x1xf32>
    %59 = vector.broadcast %58 : vector<16x1xf32> to vector<16x16xf32>
    %60 = arith.mulf %55, %59 : vector<16x16xf32>
    %61 = arith.truncf %60 : vector<16x16xf32> to vector<16x16xbf16>
    %cst_31 = arith.constant dense<0.000000e+00> : vector<16x8xf32>
    %62 = tpu.matmul %61, %45, %cst_31 {dimension_numbers = #tpu.dot_dimension_numbers<[1], [0], [0], [1], [0, 0, 1, 1], [], []>} : vector<16x16xbf16>, vector<16x8xbf16>, vector<16x8xf32> -> vector<16x8xf32>
    %63 = vector.extract_strided_slice %22 {offsets = [0, 16], sizes = [16, 8], strides = [1, 1]} : vector<16x96xbf16> to vector<16x8xbf16>
    %64 = vector.extract_strided_slice %22 {offsets = [0, 48], sizes = [16, 8], strides = [1, 1]} : vector<16x96xbf16> to vector<16x8xbf16>
    %65 = vector.extract_strided_slice %22 {offsets = [0, 80], sizes = [16, 8], strides = [1, 1]} : vector<16x96xbf16> to vector<16x8xbf16>
    %cst_32 = arith.constant dense<0.000000e+00> : vector<16x16xf32>
    %66 = tpu.matmul %63, %64, %cst_32 {dimension_numbers = #tpu.dot_dimension_numbers<[1], [1], [0], [0], [0, 0, 1, 0], [], []>} : vector<16x8xbf16>, vector<16x8xbf16>, vector<16x16xf32> -> vector<16x16xf32>
    %cst_33 = arith.constant 0.353553385 : f32
    %67 = vector.broadcast %cst_33 : f32 to vector<16x16xf32>
    %68 = arith.mulf %66, %67 : vector<16x16xf32>
    %69 = vector.broadcast %1 : vector<1x16xf32> to vector<16x16xf32>
    %70 = arith.addf %68, %69 : vector<16x16xf32>
    %cst_34 = arith.constant dense<0xFF800000> : vector<16xf32>
    %71 = vector.multi_reduction <maximumf>, %70, %cst_34 [1] : vector<16x16xf32> to vector<16xf32>
    %72 = vector.shape_cast %71 : vector<16xf32> to vector<16x1xf32>
    %73 = vector.broadcast %72 : vector<16x1xf32> to vector<16x16xf32>
    %74 = arith.subf %70, %73 : vector<16x16xf32>
    %75 = math.exp %74 : vector<16x16xf32>
    %cst_35 = arith.constant dense<0.000000e+00> : vector<16xf32>
    %76 = vector.multi_reduction <add>, %75, %cst_35 [1] : vector<16x16xf32> to vector<16xf32>
    %77 = vector.shape_cast %76 : vector<16xf32> to vector<16x1xf32>
    %78 = tpu.reciprocal %77 {approx = true} : vector<16x1xf32> -> vector<16x1xf32>
    %79 = vector.broadcast %78 : vector<16x1xf32> to vector<16x16xf32>
    %80 = arith.mulf %75, %79 : vector<16x16xf32>
    %81 = arith.truncf %80 : vector<16x16xf32> to vector<16x16xbf16>
    %cst_36 = arith.constant dense<0.000000e+00> : vector<16x8xf32>
    %82 = tpu.matmul %81, %65, %cst_36 {dimension_numbers = #tpu.dot_dimension_numbers<[1], [0], [0], [1], [0, 0, 1, 1], [], []>} : vector<16x16xbf16>, vector<16x8xbf16>, vector<16x8xf32> -> vector<16x8xf32>
    %83 = vector.extract_strided_slice %22 {offsets = [0, 24], sizes = [16, 8], strides = [1, 1]} : vector<16x96xbf16> to vector<16x8xbf16>
    %84 = vector.extract_strided_slice %22 {offsets = [0, 56], sizes = [16, 8], strides = [1, 1]} : vector<16x96xbf16> to vector<16x8xbf16>
    %85 = vector.extract_strided_slice %22 {offsets = [0, 88], sizes = [16, 8], strides = [1, 1]} : vector<16x96xbf16> to vector<16x8xbf16>
    %cst_37 = arith.constant dense<0.000000e+00> : vector<16x16xf32>
    %86 = tpu.matmul %83, %84, %cst_37 {dimension_numbers = #tpu.dot_dimension_numbers<[1], [1], [0], [0], [0, 0, 1, 0], [], []>} : vector<16x8xbf16>, vector<16x8xbf16>, vector<16x16xf32> -> vector<16x16xf32>
    %cst_38 = arith.constant 0.353553385 : f32
    %87 = vector.broadcast %cst_38 : f32 to vector<16x16xf32>
    %88 = arith.mulf %86, %87 : vector<16x16xf32>
    %89 = vector.broadcast %1 : vector<1x16xf32> to vector<16x16xf32>
    %90 = arith.addf %88, %89 : vector<16x16xf32>
    %cst_39 = arith.constant dense<0xFF800000> : vector<16xf32>
    %91 = vector.multi_reduction <maximumf>, %90, %cst_39 [1] : vector<16x16xf32> to vector<16xf32>
    %92 = vector.shape_cast %91 : vector<16xf32> to vector<16x1xf32>
    %93 = vector.broadcast %92 : vector<16x1xf32> to vector<16x16xf32>
    %94 = arith.subf %90, %93 : vector<16x16xf32>
    %95 = math.exp %94 : vector<16x16xf32>
    %cst_40 = arith.constant dense<0.000000e+00> : vector<16xf32>
    %96 = vector.multi_reduction <add>, %95, %cst_40 [1] : vector<16x16xf32> to vector<16xf32>
    %97 = vector.shape_cast %96 : vector<16xf32> to vector<16x1xf32>
    %98 = tpu.reciprocal %97 {approx = true} : vector<16x1xf32> -> vector<16x1xf32>
    %99 = vector.broadcast %98 : vector<16x1xf32> to vector<16x16xf32>
    %100 = arith.mulf %95, %99 : vector<16x16xf32>
    %101 = arith.truncf %100 : vector<16x16xf32> to vector<16x16xbf16>
    %cst_41 = arith.constant dense<0.000000e+00> : vector<16x8xf32>
    %102 = tpu.matmul %101, %85, %cst_41 {dimension_numbers = #tpu.dot_dimension_numbers<[1], [0], [0], [1], [0, 0, 1, 1], [], []>} : vector<16x16xbf16>, vector<16x8xbf16>, vector<16x8xf32> -> vector<16x8xf32>
    %103 = tpu.concatenate %42, %62, %82, %102 in 1 : vector<16x8xf32>, vector<16x8xf32>, vector<16x8xf32>, vector<16x8xf32> -> vector<16x32xf32>
    %104 = vector.extract_strided_slice %21 {offsets = [16, 0], sizes = [16, 96], strides = [1, 1]} : vector<32x96xbf16> to vector<16x96xbf16>
    %105 = vector.extract_strided_slice %104 {offsets = [0, 0], sizes = [16, 8], strides = [1, 1]} : vector<16x96xbf16> to vector<16x8xbf16>
    %106 = vector.extract_strided_slice %104 {offsets = [0, 32], sizes = [16, 8], strides = [1, 1]} : vector<16x96xbf16> to vector<16x8xbf16>
    %107 = vector.extract_strided_slice %104 {offsets = [0, 64], sizes = [16, 8], strides = [1, 1]} : vector<16x96xbf16> to vector<16x8xbf16>
    %cst_42 = arith.constant dense<0.000000e+00> : vector<16x16xf32>
    %108 = tpu.matmul %105, %106, %cst_42 {dimension_numbers = #tpu.dot_dimension_numbers<[1], [1], [0], [0], [0, 0, 1, 0], [], []>} : vector<16x8xbf16>, vector<16x8xbf16>, vector<16x16xf32> -> vector<16x16xf32>
    %cst_43 = arith.constant 0.353553385 : f32
    %109 = vector.broadcast %cst_43 : f32 to vector<16x16xf32>
    %110 = arith.mulf %108, %109 : vector<16x16xf32>
    %111 = vector.broadcast %1 : vector<1x16xf32> to vector<16x16xf32>
    %112 = arith.addf %110, %111 : vector<16x16xf32>
    %cst_44 = arith.constant dense<0xFF800000> : vector<16xf32>
    %113 = vector.multi_reduction <maximumf>, %112, %cst_44 [1] : vector<16x16xf32> to vector<16xf32>
    %114 = vector.shape_cast %113 : vector<16xf32> to vector<16x1xf32>
    %115 = vector.broadcast %114 : vector<16x1xf32> to vector<16x16xf32>
    %116 = arith.subf %112, %115 : vector<16x16xf32>
    %117 = math.exp %116 : vector<16x16xf32>
    %cst_45 = arith.constant dense<0.000000e+00> : vector<16xf32>
    %118 = vector.multi_reduction <add>, %117, %cst_45 [1] : vector<16x16xf32> to vector<16xf32>
    %119 = vector.shape_cast %118 : vector<16xf32> to vector<16x1xf32>
    %120 = tpu.reciprocal %119 {approx = true} : vector<16x1xf32> -> vector<16x1xf32>
    %121 = vector.broadcast %120 : vector<16x1xf32> to vector<16x16xf32>
    %122 = arith.mulf %117, %121 : vector<16x16xf32>
    %123 = arith.truncf %122 : vector<16x16xf32> to vector<16x16xbf16>
    %cst_46 = arith.constant dense<0.000000e+00> : vector<16x8xf32>
    %124 = tpu.matmul %123, %107, %cst_46 {dimension_numbers = #tpu.dot_dimension_numbers<[1], [0], [0], [1], [0, 0, 1, 1], [], []>} : vector<16x16xbf16>, vector<16x8xbf16>, vector<16x8xf32> -> vector<16x8xf32>
    %125 = vector.extract_strided_slice %104 {offsets = [0, 8], sizes = [16, 8], strides = [1, 1]} : vector<16x96xbf16> to vector<16x8xbf16>
    %126 = vector.extract_strided_slice %104 {offsets = [0, 40], sizes = [16, 8], strides = [1, 1]} : vector<16x96xbf16> to vector<16x8xbf16>
    %127 = vector.extract_strided_slice %104 {offsets = [0, 72], sizes = [16, 8], strides = [1, 1]} : vector<16x96xbf16> to vector<16x8xbf16>
    %cst_47 = arith.constant dense<0.000000e+00> : vector<16x16xf32>
    %128 = tpu.matmul %125, %126, %cst_47 {dimension_numbers = #tpu.dot_dimension_numbers<[1], [1], [0], [0], [0, 0, 1, 0], [], []>} : vector<16x8xbf16>, vector<16x8xbf16>, vector<16x16xf32> -> vector<16x16xf32>
    %cst_48 = arith.constant 0.353553385 : f32
    %129 = vector.broadcast %cst_48 : f32 to vector<16x16xf32>
    %130 = arith.mulf %128, %129 : vector<16x16xf32>
    %131 = vector.broadcast %1 : vector<1x16xf32> to vector<16x16xf32>
    %132 = arith.addf %130, %131 : vector<16x16xf32>
    %cst_49 = arith.constant dense<0xFF800000> : vector<16xf32>
    %133 = vector.multi_reduction <maximumf>, %132, %cst_49 [1] : vector<16x16xf32> to vector<16xf32>
    %134 = vector.shape_cast %133 : vector<16xf32> to vector<16x1xf32>
    %135 = vector.broadcast %134 : vector<16x1xf32> to vector<16x16xf32>
    %136 = arith.subf %132, %135 : vector<16x16xf32>
    %137 = math.exp %136 : vector<16x16xf32>
    %cst_50 = arith.constant dense<0.000000e+00> : vector<16xf32>
    %138 = vector.multi_reduction <add>, %137, %cst_50 [1] : vector<16x16xf32> to vector<16xf32>
    %139 = vector.shape_cast %138 : vector<16xf32> to vector<16x1xf32>
    %140 = tpu.reciprocal %139 {approx = true} : vector<16x1xf32> -> vector<16x1xf32>
    %141 = vector.broadcast %140 : vector<16x1xf32> to vector<16x16xf32>
    %142 = arith.mulf %137, %141 : vector<16x16xf32>
    %143 = arith.truncf %142 : vector<16x16xf32> to vector<16x16xbf16>
    %cst_51 = arith.constant dense<0.000000e+00> : vector<16x8xf32>
    %144 = tpu.matmul %143, %127, %cst_51 {dimension_numbers = #tpu.dot_dimension_numbers<[1], [0], [0], [1], [0, 0, 1, 1], [], []>} : vector<16x16xbf16>, vector<16x8xbf16>, vector<16x8xf32> -> vector<16x8xf32>
    %145 = vector.extract_strided_slice %104 {offsets = [0, 16], sizes = [16, 8], strides = [1, 1]} : vector<16x96xbf16> to vector<16x8xbf16>
    %146 = vector.extract_strided_slice %104 {offsets = [0, 48], sizes = [16, 8], strides = [1, 1]} : vector<16x96xbf16> to vector<16x8xbf16>
    %147 = vector.extract_strided_slice %104 {offsets = [0, 80], sizes = [16, 8], strides = [1, 1]} : vector<16x96xbf16> to vector<16x8xbf16>
    %cst_52 = arith.constant dense<0.000000e+00> : vector<16x16xf32>
    %148 = tpu.matmul %145, %146, %cst_52 {dimension_numbers = #tpu.dot_dimension_numbers<[1], [1], [0], [0], [0, 0, 1, 0], [], []>} : vector<16x8xbf16>, vector<16x8xbf16>, vector<16x16xf32> -> vector<16x16xf32>
    %cst_53 = arith.constant 0.353553385 : f32
    %149 = vector.broadcast %cst_53 : f32 to vector<16x16xf32>
    %150 = arith.mulf %148, %149 : vector<16x16xf32>
    %151 = vector.broadcast %1 : vector<1x16xf32> to vector<16x16xf32>
    %152 = arith.addf %150, %151 : vector<16x16xf32>
    %cst_54 = arith.constant dense<0xFF800000> : vector<16xf32>
    %153 = vector.multi_reduction <maximumf>, %152, %cst_54 [1] : vector<16x16xf32> to vector<16xf32>
    %154 = vector.shape_cast %153 : vector<16xf32> to vector<16x1xf32>
    %155 = vector.broadcast %154 : vector<16x1xf32> to vector<16x16xf32>
    %156 = arith.subf %152, %155 : vector<16x16xf32>
    %157 = math.exp %156 : vector<16x16xf32>
    %cst_55 = arith.constant dense<0.000000e+00> : vector<16xf32>
    %158 = vector.multi_reduction <add>, %157, %cst_55 [1] : vector<16x16xf32> to vector<16xf32>
    %159 = vector.shape_cast %158 : vector<16xf32> to vector<16x1xf32>
    %160 = tpu.reciprocal %159 {approx = true} : vector<16x1xf32> -> vector<16x1xf32>
    %161 = vector.broadcast %160 : vector<16x1xf32> to vector<16x16xf32>
    %162 = arith.mulf %157, %161 : vector<16x16xf32>
    %163 = arith.truncf %162 : vector<16x16xf32> to vector<16x16xbf16>
    %cst_56 = arith.constant dense<0.000000e+00> : vector<16x8xf32>
    %164 = tpu.matmul %163, %147, %cst_56 {dimension_numbers = #tpu.dot_dimension_numbers<[1], [0], [0], [1], [0, 0, 1, 1], [], []>} : vector<16x16xbf16>, vector<16x8xbf16>, vector<16x8xf32> -> vector<16x8xf32>
    %165 = vector.extract_strided_slice %104 {offsets = [0, 24], sizes = [16, 8], strides = [1, 1]} : vector<16x96xbf16> to vector<16x8xbf16>
    %166 = vector.extract_strided_slice %104 {offsets = [0, 56], sizes = [16, 8], strides = [1, 1]} : vector<16x96xbf16> to vector<16x8xbf16>
    %167 = vector.extract_strided_slice %104 {offsets = [0, 88], sizes = [16, 8], strides = [1, 1]} : vector<16x96xbf16> to vector<16x8xbf16>
    %cst_57 = arith.constant dense<0.000000e+00> : vector<16x16xf32>
    %168 = tpu.matmul %165, %166, %cst_57 {dimension_numbers = #tpu.dot_dimension_numbers<[1], [1], [0], [0], [0, 0, 1, 0], [], []>} : vector<16x8xbf16>, vector<16x8xbf16>, vector<16x16xf32> -> vector<16x16xf32>
    %cst_58 = arith.constant 0.353553385 : f32
    %169 = vector.broadcast %cst_58 : f32 to vector<16x16xf32>
    %170 = arith.mulf %168, %169 : vector<16x16xf32>
    %171 = vector.broadcast %1 : vector<1x16xf32> to vector<16x16xf32>
    %172 = arith.addf %170, %171 : vector<16x16xf32>
    %cst_59 = arith.constant dense<0xFF800000> : vector<16xf32>
    %173 = vector.multi_reduction <maximumf>, %172, %cst_59 [1] : vector<16x16xf32> to vector<16xf32>
    %174 = vector.shape_cast %173 : vector<16xf32> to vector<16x1xf32>
    %175 = vector.broadcast %174 : vector<16x1xf32> to vector<16x16xf32>
    %176 = arith.subf %172, %175 : vector<16x16xf32>
    %177 = math.exp %176 : vector<16x16xf32>
    %cst_60 = arith.constant dense<0.000000e+00> : vector<16xf32>
    %178 = vector.multi_reduction <add>, %177, %cst_60 [1] : vector<16x16xf32> to vector<16xf32>
    %179 = vector.shape_cast %178 : vector<16xf32> to vector<16x1xf32>
    %180 = tpu.reciprocal %179 {approx = true} : vector<16x1xf32> -> vector<16x1xf32>
    %181 = vector.broadcast %180 : vector<16x1xf32> to vector<16x16xf32>
    %182 = arith.mulf %177, %181 : vector<16x16xf32>
    %183 = arith.truncf %182 : vector<16x16xf32> to vector<16x16xbf16>
    %cst_61 = arith.constant dense<0.000000e+00> : vector<16x8xf32>
    %184 = tpu.matmul %183, %167, %cst_61 {dimension_numbers = #tpu.dot_dimension_numbers<[1], [0], [0], [1], [0, 0, 1, 1], [], []>} : vector<16x16xbf16>, vector<16x8xbf16>, vector<16x8xf32> -> vector<16x8xf32>
    %185 = tpu.concatenate %124, %144, %164, %184 in 1 : vector<16x8xf32>, vector<16x8xf32>, vector<16x8xf32>, vector<16x8xf32> -> vector<16x32xf32>
    %186 = tpu.concatenate %103, %185 in 0 : vector<16x32xf32>, vector<16x32xf32> -> vector<32x32xf32>
    %187 = arith.truncf %186 : vector<32x32xf32> to vector<32x32xbf16>
    %cst_62 = arith.constant dense<0.000000e+00> : vector<32x32xf32>
    %188 = tpu.matmul %187, %14, %cst_62 {dimension_numbers = #tpu.dot_dimension_numbers<[1], [0], [0], [1], [0, 0, 1, 1], [], []>} : vector<32x32xbf16>, vector<32x32xbf16>, vector<32x32xf32> -> vector<32x32xf32>
    %189 = vector.broadcast %16 : vector<1x32xf32> to vector<32x32xf32>
    %190 = arith.addf %188, %189 : vector<32x32xf32>
    %c0_63 = arith.constant 0 : index
    %c0_64 = arith.constant 0 : index
    %c0_65 = arith.constant 0 : index
    %191 = vector.load %arg13[%c0_63, %c0_64, %c0_65] : memref<2x4x32xf32, #tpu.memory_space<vmem>>, vector<1x4x32xf32>
    %192 = vector.shape_cast %191 : vector<1x4x32xf32> to vector<4x32xf32>
    %193 = vector.extract_strided_slice %192 {offsets = [0, 0], sizes = [1, 32], strides = [1, 1]} : vector<4x32xf32> to vector<1x32xf32>
    %194 = vector.extract_strided_slice %192 {offsets = [1, 0], sizes = [1, 32], strides = [1, 1]} : vector<4x32xf32> to vector<1x32xf32>
    %195 = arith.addf %190, %8 : vector<32x32xf32>
    %196 = vector.broadcast %0 : vector<32x1xf32> to vector<32x32xf32>
    %197 = arith.mulf %195, %196 : vector<32x32xf32>
    %cst_66 = arith.constant dense<0.000000e+00> : vector<32xf32>
    %198 = vector.multi_reduction <add>, %197, %cst_66 [0] : vector<32x32xf32> to vector<32xf32>
    %199 = vector.shape_cast %198 : vector<32xf32> to vector<1x32xf32>
    %cst_67 = arith.constant 5.000000e-02 : f32
    %200 = vector.broadcast %cst_67 : f32 to vector<1x32xf32>
    %201 = arith.mulf %199, %200 : vector<1x32xf32>
    %202 = vector.broadcast %201 : vector<1x32xf32> to vector<32x32xf32>
    %203 = arith.subf %195, %202 : vector<32x32xf32>
    %204 = arith.mulf %203, %203 : vector<32x32xf32>
    %205 = vector.broadcast %0 : vector<32x1xf32> to vector<32x32xf32>
    %206 = arith.mulf %204, %205 : vector<32x32xf32>
    %cst_68 = arith.constant dense<0.000000e+00> : vector<32xf32>
    %207 = vector.multi_reduction <add>, %206, %cst_68 [0] : vector<32x32xf32> to vector<32xf32>
    %208 = vector.shape_cast %207 : vector<32xf32> to vector<1x32xf32>
    %cst_69 = arith.constant 5.000000e-02 : f32
    %209 = vector.broadcast %cst_69 : f32 to vector<1x32xf32>
    %210 = arith.mulf %208, %209 : vector<1x32xf32>
    %cst_70 = arith.constant 9.99999974E-6 : f32
    %211 = vector.broadcast %cst_70 : f32 to vector<1x32xf32>
    %212 = arith.addf %210, %211 : vector<1x32xf32>
    %213 = math.rsqrt %212 : vector<1x32xf32>
    %214 = vector.broadcast %213 : vector<1x32xf32> to vector<32x32xf32>
    %215 = arith.mulf %203, %214 : vector<32x32xf32>
    %216 = vector.broadcast %193 : vector<1x32xf32> to vector<32x32xf32>
    %217 = arith.mulf %215, %216 : vector<32x32xf32>
    %218 = vector.broadcast %194 : vector<1x32xf32> to vector<32x32xf32>
    %219 = arith.addf %217, %218 : vector<32x32xf32>
    %c0_71 = arith.constant 0 : index
    %c0_72 = arith.constant 0 : index
    %c0_73 = arith.constant 0 : index
    %220 = vector.load %arg14[%c0_71, %c0_72, %c0_73] : memref<2x32x64xbf16, #tpu.memory_space<vmem>>, vector<1x32x64xbf16>
    %221 = vector.shape_cast %220 : vector<1x32x64xbf16> to vector<32x64xbf16>
    %222 = arith.truncf %219 : vector<32x32xf32> to vector<32x32xbf16>
    %cst_74 = arith.constant dense<0.000000e+00> : vector<32x64xf32>
    %223 = tpu.matmul %222, %221, %cst_74 {dimension_numbers = #tpu.dot_dimension_numbers<[1], [0], [0], [1], [0, 0, 1, 1], [], []>} : vector<32x32xbf16>, vector<32x64xbf16>, vector<32x64xf32> -> vector<32x64xf32>
    %c0_75 = arith.constant 0 : index
    %c0_76 = arith.constant 0 : index
    %c0_77 = arith.constant 0 : index
    %224 = vector.load %arg15[%c0_75, %c0_76, %c0_77] : memref<2x1x64xf32, #tpu.memory_space<vmem>>, vector<1x1x64xf32>
    %225 = vector.shape_cast %224 : vector<1x1x64xf32> to vector<1x64xf32>
    %226 = vector.broadcast %225 : vector<1x64xf32> to vector<32x64xf32>
    %227 = arith.addf %223, %226 : vector<32x64xf32>
    %cst_78 = arith.constant 0.000000e+00 : f32
    %228 = vector.broadcast %cst_78 : f32 to vector<32x64xf32>
    %229 = arith.maximumf %227, %228 : vector<32x64xf32>
    %c0_79 = arith.constant 0 : index
    %c0_80 = arith.constant 0 : index
    %c0_81 = arith.constant 0 : index
    %230 = vector.load %arg16[%c0_79, %c0_80, %c0_81] : memref<2x64x32xbf16, #tpu.memory_space<vmem>>, vector<1x64x32xbf16>
    %231 = vector.shape_cast %230 : vector<1x64x32xbf16> to vector<64x32xbf16>
    %232 = arith.truncf %229 : vector<32x64xf32> to vector<32x64xbf16>
    %cst_82 = arith.constant dense<0.000000e+00> : vector<32x32xf32>
    %233 = tpu.matmul %232, %231, %cst_82 {dimension_numbers = #tpu.dot_dimension_numbers<[1], [0], [0], [1], [0, 0, 1, 1], [], []>} : vector<32x64xbf16>, vector<64x32xbf16>, vector<32x32xf32> -> vector<32x32xf32>
    %c0_83 = arith.constant 0 : index
    %c0_84 = arith.constant 0 : index
    %c0_85 = arith.constant 0 : index
    %234 = vector.load %arg17[%c0_83, %c0_84, %c0_85] : memref<2x1x32xf32, #tpu.memory_space<vmem>>, vector<1x1x32xf32>
    %235 = vector.shape_cast %234 : vector<1x1x32xf32> to vector<1x32xf32>
    %236 = vector.broadcast %235 : vector<1x32xf32> to vector<32x32xf32>
    %237 = arith.addf %233, %236 : vector<32x32xf32>
    %238 = vector.extract_strided_slice %192 {offsets = [2, 0], sizes = [1, 32], strides = [1, 1]} : vector<4x32xf32> to vector<1x32xf32>
    %239 = vector.extract_strided_slice %192 {offsets = [3, 0], sizes = [1, 32], strides = [1, 1]} : vector<4x32xf32> to vector<1x32xf32>
    %240 = arith.addf %237, %219 : vector<32x32xf32>
    %241 = vector.broadcast %0 : vector<32x1xf32> to vector<32x32xf32>
    %242 = arith.mulf %240, %241 : vector<32x32xf32>
    %cst_86 = arith.constant dense<0.000000e+00> : vector<32xf32>
    %243 = vector.multi_reduction <add>, %242, %cst_86 [0] : vector<32x32xf32> to vector<32xf32>
    %244 = vector.shape_cast %243 : vector<32xf32> to vector<1x32xf32>
    %cst_87 = arith.constant 5.000000e-02 : f32
    %245 = vector.broadcast %cst_87 : f32 to vector<1x32xf32>
    %246 = arith.mulf %244, %245 : vector<1x32xf32>
    %247 = vector.broadcast %246 : vector<1x32xf32> to vector<32x32xf32>
    %248 = arith.subf %240, %247 : vector<32x32xf32>
    %249 = arith.mulf %248, %248 : vector<32x32xf32>
    %250 = vector.broadcast %0 : vector<32x1xf32> to vector<32x32xf32>
    %251 = arith.mulf %249, %250 : vector<32x32xf32>
    %cst_88 = arith.constant dense<0.000000e+00> : vector<32xf32>
    %252 = vector.multi_reduction <add>, %251, %cst_88 [0] : vector<32x32xf32> to vector<32xf32>
    %253 = vector.shape_cast %252 : vector<32xf32> to vector<1x32xf32>
    %cst_89 = arith.constant 5.000000e-02 : f32
    %254 = vector.broadcast %cst_89 : f32 to vector<1x32xf32>
    %255 = arith.mulf %253, %254 : vector<1x32xf32>
    %cst_90 = arith.constant 9.99999974E-6 : f32
    %256 = vector.broadcast %cst_90 : f32 to vector<1x32xf32>
    %257 = arith.addf %255, %256 : vector<1x32xf32>
    %258 = math.rsqrt %257 : vector<1x32xf32>
    %259 = vector.broadcast %258 : vector<1x32xf32> to vector<32x32xf32>
    %260 = arith.mulf %248, %259 : vector<32x32xf32>
    %261 = vector.broadcast %238 : vector<1x32xf32> to vector<32x32xf32>
    %262 = arith.mulf %260, %261 : vector<32x32xf32>
    %263 = vector.broadcast %239 : vector<1x32xf32> to vector<32x32xf32>
    %264 = arith.addf %262, %263 : vector<32x32xf32>
    %c1 = arith.constant 1 : index
    %c0_91 = arith.constant 0 : index
    %c0_92 = arith.constant 0 : index
    %265 = vector.load %arg9[%c1, %c0_91, %c0_92] : memref<2x32x96xbf16, #tpu.memory_space<vmem>>, vector<1x32x96xbf16>
    %266 = vector.shape_cast %265 : vector<1x32x96xbf16> to vector<32x96xbf16>
    %c1_93 = arith.constant 1 : index
    %c0_94 = arith.constant 0 : index
    %c0_95 = arith.constant 0 : index
    %267 = vector.load %arg10[%c1_93, %c0_94, %c0_95] : memref<2x1x96xf32, #tpu.memory_space<vmem>>, vector<1x1x96xf32>
    %268 = vector.shape_cast %267 : vector<1x1x96xf32> to vector<1x96xf32>
    %c1_96 = arith.constant 1 : index
    %c0_97 = arith.constant 0 : index
    %c0_98 = arith.constant 0 : index
    %269 = vector.load %arg11[%c1_96, %c0_97, %c0_98] : memref<2x32x32xbf16, #tpu.memory_space<vmem>>, vector<1x32x32xbf16>
    %270 = vector.shape_cast %269 : vector<1x32x32xbf16> to vector<32x32xbf16>
    %c1_99 = arith.constant 1 : index
    %c0_100 = arith.constant 0 : index
    %c0_101 = arith.constant 0 : index
    %271 = vector.load %arg12[%c1_99, %c0_100, %c0_101] : memref<2x1x32xf32, #tpu.memory_space<vmem>>, vector<1x1x32xf32>
    %272 = vector.shape_cast %271 : vector<1x1x32xf32> to vector<1x32xf32>
    %273 = arith.truncf %264 : vector<32x32xf32> to vector<32x32xbf16>
    %cst_102 = arith.constant dense<0.000000e+00> : vector<32x96xf32>
    %274 = tpu.matmul %273, %266, %cst_102 {dimension_numbers = #tpu.dot_dimension_numbers<[1], [0], [0], [1], [0, 0, 1, 1], [], []>} : vector<32x32xbf16>, vector<32x96xbf16>, vector<32x96xf32> -> vector<32x96xf32>
    %275 = vector.broadcast %268 : vector<1x96xf32> to vector<32x96xf32>
    %276 = arith.addf %274, %275 : vector<32x96xf32>
    %277 = arith.truncf %276 : vector<32x96xf32> to vector<32x96xbf16>
    %278 = vector.extract_strided_slice %277 {offsets = [0, 0], sizes = [16, 96], strides = [1, 1]} : vector<32x96xbf16> to vector<16x96xbf16>
    %279 = vector.extract_strided_slice %278 {offsets = [0, 0], sizes = [16, 8], strides = [1, 1]} : vector<16x96xbf16> to vector<16x8xbf16>
    %280 = vector.extract_strided_slice %278 {offsets = [0, 32], sizes = [16, 8], strides = [1, 1]} : vector<16x96xbf16> to vector<16x8xbf16>
    %281 = vector.extract_strided_slice %278 {offsets = [0, 64], sizes = [16, 8], strides = [1, 1]} : vector<16x96xbf16> to vector<16x8xbf16>
    %cst_103 = arith.constant dense<0.000000e+00> : vector<16x16xf32>
    %282 = tpu.matmul %279, %280, %cst_103 {dimension_numbers = #tpu.dot_dimension_numbers<[1], [1], [0], [0], [0, 0, 1, 0], [], []>} : vector<16x8xbf16>, vector<16x8xbf16>, vector<16x16xf32> -> vector<16x16xf32>
    %cst_104 = arith.constant 0.353553385 : f32
    %283 = vector.broadcast %cst_104 : f32 to vector<16x16xf32>
    %284 = arith.mulf %282, %283 : vector<16x16xf32>
    %285 = vector.broadcast %1 : vector<1x16xf32> to vector<16x16xf32>
    %286 = arith.addf %284, %285 : vector<16x16xf32>
    %cst_105 = arith.constant dense<0xFF800000> : vector<16xf32>
    %287 = vector.multi_reduction <maximumf>, %286, %cst_105 [1] : vector<16x16xf32> to vector<16xf32>
    %288 = vector.shape_cast %287 : vector<16xf32> to vector<16x1xf32>
    %289 = vector.broadcast %288 : vector<16x1xf32> to vector<16x16xf32>
    %290 = arith.subf %286, %289 : vector<16x16xf32>
    %291 = math.exp %290 : vector<16x16xf32>
    %cst_106 = arith.constant dense<0.000000e+00> : vector<16xf32>
    %292 = vector.multi_reduction <add>, %291, %cst_106 [1] : vector<16x16xf32> to vector<16xf32>
    %293 = vector.shape_cast %292 : vector<16xf32> to vector<16x1xf32>
    %294 = tpu.reciprocal %293 {approx = true} : vector<16x1xf32> -> vector<16x1xf32>
    %295 = vector.broadcast %294 : vector<16x1xf32> to vector<16x16xf32>
    %296 = arith.mulf %291, %295 : vector<16x16xf32>
    %297 = arith.truncf %296 : vector<16x16xf32> to vector<16x16xbf16>
    %cst_107 = arith.constant dense<0.000000e+00> : vector<16x8xf32>
    %298 = tpu.matmul %297, %281, %cst_107 {dimension_numbers = #tpu.dot_dimension_numbers<[1], [0], [0], [1], [0, 0, 1, 1], [], []>} : vector<16x16xbf16>, vector<16x8xbf16>, vector<16x8xf32> -> vector<16x8xf32>
    %299 = vector.extract_strided_slice %278 {offsets = [0, 8], sizes = [16, 8], strides = [1, 1]} : vector<16x96xbf16> to vector<16x8xbf16>
    %300 = vector.extract_strided_slice %278 {offsets = [0, 40], sizes = [16, 8], strides = [1, 1]} : vector<16x96xbf16> to vector<16x8xbf16>
    %301 = vector.extract_strided_slice %278 {offsets = [0, 72], sizes = [16, 8], strides = [1, 1]} : vector<16x96xbf16> to vector<16x8xbf16>
    %cst_108 = arith.constant dense<0.000000e+00> : vector<16x16xf32>
    %302 = tpu.matmul %299, %300, %cst_108 {dimension_numbers = #tpu.dot_dimension_numbers<[1], [1], [0], [0], [0, 0, 1, 0], [], []>} : vector<16x8xbf16>, vector<16x8xbf16>, vector<16x16xf32> -> vector<16x16xf32>
    %cst_109 = arith.constant 0.353553385 : f32
    %303 = vector.broadcast %cst_109 : f32 to vector<16x16xf32>
    %304 = arith.mulf %302, %303 : vector<16x16xf32>
    %305 = vector.broadcast %1 : vector<1x16xf32> to vector<16x16xf32>
    %306 = arith.addf %304, %305 : vector<16x16xf32>
    %cst_110 = arith.constant dense<0xFF800000> : vector<16xf32>
    %307 = vector.multi_reduction <maximumf>, %306, %cst_110 [1] : vector<16x16xf32> to vector<16xf32>
    %308 = vector.shape_cast %307 : vector<16xf32> to vector<16x1xf32>
    %309 = vector.broadcast %308 : vector<16x1xf32> to vector<16x16xf32>
    %310 = arith.subf %306, %309 : vector<16x16xf32>
    %311 = math.exp %310 : vector<16x16xf32>
    %cst_111 = arith.constant dense<0.000000e+00> : vector<16xf32>
    %312 = vector.multi_reduction <add>, %311, %cst_111 [1] : vector<16x16xf32> to vector<16xf32>
    %313 = vector.shape_cast %312 : vector<16xf32> to vector<16x1xf32>
    %314 = tpu.reciprocal %313 {approx = true} : vector<16x1xf32> -> vector<16x1xf32>
    %315 = vector.broadcast %314 : vector<16x1xf32> to vector<16x16xf32>
    %316 = arith.mulf %311, %315 : vector<16x16xf32>
    %317 = arith.truncf %316 : vector<16x16xf32> to vector<16x16xbf16>
    %cst_112 = arith.constant dense<0.000000e+00> : vector<16x8xf32>
    %318 = tpu.matmul %317, %301, %cst_112 {dimension_numbers = #tpu.dot_dimension_numbers<[1], [0], [0], [1], [0, 0, 1, 1], [], []>} : vector<16x16xbf16>, vector<16x8xbf16>, vector<16x8xf32> -> vector<16x8xf32>
    %319 = vector.extract_strided_slice %278 {offsets = [0, 16], sizes = [16, 8], strides = [1, 1]} : vector<16x96xbf16> to vector<16x8xbf16>
    %320 = vector.extract_strided_slice %278 {offsets = [0, 48], sizes = [16, 8], strides = [1, 1]} : vector<16x96xbf16> to vector<16x8xbf16>
    %321 = vector.extract_strided_slice %278 {offsets = [0, 80], sizes = [16, 8], strides = [1, 1]} : vector<16x96xbf16> to vector<16x8xbf16>
    %cst_113 = arith.constant dense<0.000000e+00> : vector<16x16xf32>
    %322 = tpu.matmul %319, %320, %cst_113 {dimension_numbers = #tpu.dot_dimension_numbers<[1], [1], [0], [0], [0, 0, 1, 0], [], []>} : vector<16x8xbf16>, vector<16x8xbf16>, vector<16x16xf32> -> vector<16x16xf32>
    %cst_114 = arith.constant 0.353553385 : f32
    %323 = vector.broadcast %cst_114 : f32 to vector<16x16xf32>
    %324 = arith.mulf %322, %323 : vector<16x16xf32>
    %325 = vector.broadcast %1 : vector<1x16xf32> to vector<16x16xf32>
    %326 = arith.addf %324, %325 : vector<16x16xf32>
    %cst_115 = arith.constant dense<0xFF800000> : vector<16xf32>
    %327 = vector.multi_reduction <maximumf>, %326, %cst_115 [1] : vector<16x16xf32> to vector<16xf32>
    %328 = vector.shape_cast %327 : vector<16xf32> to vector<16x1xf32>
    %329 = vector.broadcast %328 : vector<16x1xf32> to vector<16x16xf32>
    %330 = arith.subf %326, %329 : vector<16x16xf32>
    %331 = math.exp %330 : vector<16x16xf32>
    %cst_116 = arith.constant dense<0.000000e+00> : vector<16xf32>
    %332 = vector.multi_reduction <add>, %331, %cst_116 [1] : vector<16x16xf32> to vector<16xf32>
    %333 = vector.shape_cast %332 : vector<16xf32> to vector<16x1xf32>
    %334 = tpu.reciprocal %333 {approx = true} : vector<16x1xf32> -> vector<16x1xf32>
    %335 = vector.broadcast %334 : vector<16x1xf32> to vector<16x16xf32>
    %336 = arith.mulf %331, %335 : vector<16x16xf32>
    %337 = arith.truncf %336 : vector<16x16xf32> to vector<16x16xbf16>
    %cst_117 = arith.constant dense<0.000000e+00> : vector<16x8xf32>
    %338 = tpu.matmul %337, %321, %cst_117 {dimension_numbers = #tpu.dot_dimension_numbers<[1], [0], [0], [1], [0, 0, 1, 1], [], []>} : vector<16x16xbf16>, vector<16x8xbf16>, vector<16x8xf32> -> vector<16x8xf32>
    %339 = vector.extract_strided_slice %278 {offsets = [0, 24], sizes = [16, 8], strides = [1, 1]} : vector<16x96xbf16> to vector<16x8xbf16>
    %340 = vector.extract_strided_slice %278 {offsets = [0, 56], sizes = [16, 8], strides = [1, 1]} : vector<16x96xbf16> to vector<16x8xbf16>
    %341 = vector.extract_strided_slice %278 {offsets = [0, 88], sizes = [16, 8], strides = [1, 1]} : vector<16x96xbf16> to vector<16x8xbf16>
    %cst_118 = arith.constant dense<0.000000e+00> : vector<16x16xf32>
    %342 = tpu.matmul %339, %340, %cst_118 {dimension_numbers = #tpu.dot_dimension_numbers<[1], [1], [0], [0], [0, 0, 1, 0], [], []>} : vector<16x8xbf16>, vector<16x8xbf16>, vector<16x16xf32> -> vector<16x16xf32>
    %cst_119 = arith.constant 0.353553385 : f32
    %343 = vector.broadcast %cst_119 : f32 to vector<16x16xf32>
    %344 = arith.mulf %342, %343 : vector<16x16xf32>
    %345 = vector.broadcast %1 : vector<1x16xf32> to vector<16x16xf32>
    %346 = arith.addf %344, %345 : vector<16x16xf32>
    %cst_120 = arith.constant dense<0xFF800000> : vector<16xf32>
    %347 = vector.multi_reduction <maximumf>, %346, %cst_120 [1] : vector<16x16xf32> to vector<16xf32>
    %348 = vector.shape_cast %347 : vector<16xf32> to vector<16x1xf32>
    %349 = vector.broadcast %348 : vector<16x1xf32> to vector<16x16xf32>
    %350 = arith.subf %346, %349 : vector<16x16xf32>
    %351 = math.exp %350 : vector<16x16xf32>
    %cst_121 = arith.constant dense<0.000000e+00> : vector<16xf32>
    %352 = vector.multi_reduction <add>, %351, %cst_121 [1] : vector<16x16xf32> to vector<16xf32>
    %353 = vector.shape_cast %352 : vector<16xf32> to vector<16x1xf32>
    %354 = tpu.reciprocal %353 {approx = true} : vector<16x1xf32> -> vector<16x1xf32>
    %355 = vector.broadcast %354 : vector<16x1xf32> to vector<16x16xf32>
    %356 = arith.mulf %351, %355 : vector<16x16xf32>
    %357 = arith.truncf %356 : vector<16x16xf32> to vector<16x16xbf16>
    %cst_122 = arith.constant dense<0.000000e+00> : vector<16x8xf32>
    %358 = tpu.matmul %357, %341, %cst_122 {dimension_numbers = #tpu.dot_dimension_numbers<[1], [0], [0], [1], [0, 0, 1, 1], [], []>} : vector<16x16xbf16>, vector<16x8xbf16>, vector<16x8xf32> -> vector<16x8xf32>
    %359 = tpu.concatenate %298, %318, %338, %358 in 1 : vector<16x8xf32>, vector<16x8xf32>, vector<16x8xf32>, vector<16x8xf32> -> vector<16x32xf32>
    %360 = vector.extract_strided_slice %277 {offsets = [16, 0], sizes = [16, 96], strides = [1, 1]} : vector<32x96xbf16> to vector<16x96xbf16>
    %361 = vector.extract_strided_slice %360 {offsets = [0, 0], sizes = [16, 8], strides = [1, 1]} : vector<16x96xbf16> to vector<16x8xbf16>
    %362 = vector.extract_strided_slice %360 {offsets = [0, 32], sizes = [16, 8], strides = [1, 1]} : vector<16x96xbf16> to vector<16x8xbf16>
    %363 = vector.extract_strided_slice %360 {offsets = [0, 64], sizes = [16, 8], strides = [1, 1]} : vector<16x96xbf16> to vector<16x8xbf16>
    %cst_123 = arith.constant dense<0.000000e+00> : vector<16x16xf32>
    %364 = tpu.matmul %361, %362, %cst_123 {dimension_numbers = #tpu.dot_dimension_numbers<[1], [1], [0], [0], [0, 0, 1, 0], [], []>} : vector<16x8xbf16>, vector<16x8xbf16>, vector<16x16xf32> -> vector<16x16xf32>
    %cst_124 = arith.constant 0.353553385 : f32
    %365 = vector.broadcast %cst_124 : f32 to vector<16x16xf32>
    %366 = arith.mulf %364, %365 : vector<16x16xf32>
    %367 = vector.broadcast %1 : vector<1x16xf32> to vector<16x16xf32>
    %368 = arith.addf %366, %367 : vector<16x16xf32>
    %cst_125 = arith.constant dense<0xFF800000> : vector<16xf32>
    %369 = vector.multi_reduction <maximumf>, %368, %cst_125 [1] : vector<16x16xf32> to vector<16xf32>
    %370 = vector.shape_cast %369 : vector<16xf32> to vector<16x1xf32>
    %371 = vector.broadcast %370 : vector<16x1xf32> to vector<16x16xf32>
    %372 = arith.subf %368, %371 : vector<16x16xf32>
    %373 = math.exp %372 : vector<16x16xf32>
    %cst_126 = arith.constant dense<0.000000e+00> : vector<16xf32>
    %374 = vector.multi_reduction <add>, %373, %cst_126 [1] : vector<16x16xf32> to vector<16xf32>
    %375 = vector.shape_cast %374 : vector<16xf32> to vector<16x1xf32>
    %376 = tpu.reciprocal %375 {approx = true} : vector<16x1xf32> -> vector<16x1xf32>
    %377 = vector.broadcast %376 : vector<16x1xf32> to vector<16x16xf32>
    %378 = arith.mulf %373, %377 : vector<16x16xf32>
    %379 = arith.truncf %378 : vector<16x16xf32> to vector<16x16xbf16>
    %cst_127 = arith.constant dense<0.000000e+00> : vector<16x8xf32>
    %380 = tpu.matmul %379, %363, %cst_127 {dimension_numbers = #tpu.dot_dimension_numbers<[1], [0], [0], [1], [0, 0, 1, 1], [], []>} : vector<16x16xbf16>, vector<16x8xbf16>, vector<16x8xf32> -> vector<16x8xf32>
    %381 = vector.extract_strided_slice %360 {offsets = [0, 8], sizes = [16, 8], strides = [1, 1]} : vector<16x96xbf16> to vector<16x8xbf16>
    %382 = vector.extract_strided_slice %360 {offsets = [0, 40], sizes = [16, 8], strides = [1, 1]} : vector<16x96xbf16> to vector<16x8xbf16>
    %383 = vector.extract_strided_slice %360 {offsets = [0, 72], sizes = [16, 8], strides = [1, 1]} : vector<16x96xbf16> to vector<16x8xbf16>
    %cst_128 = arith.constant dense<0.000000e+00> : vector<16x16xf32>
    %384 = tpu.matmul %381, %382, %cst_128 {dimension_numbers = #tpu.dot_dimension_numbers<[1], [1], [0], [0], [0, 0, 1, 0], [], []>} : vector<16x8xbf16>, vector<16x8xbf16>, vector<16x16xf32> -> vector<16x16xf32>
    %cst_129 = arith.constant 0.353553385 : f32
    %385 = vector.broadcast %cst_129 : f32 to vector<16x16xf32>
    %386 = arith.mulf %384, %385 : vector<16x16xf32>
    %387 = vector.broadcast %1 : vector<1x16xf32> to vector<16x16xf32>
    %388 = arith.addf %386, %387 : vector<16x16xf32>
    %cst_130 = arith.constant dense<0xFF800000> : vector<16xf32>
    %389 = vector.multi_reduction <maximumf>, %388, %cst_130 [1] : vector<16x16xf32> to vector<16xf32>
    %390 = vector.shape_cast %389 : vector<16xf32> to vector<16x1xf32>
    %391 = vector.broadcast %390 : vector<16x1xf32> to vector<16x16xf32>
    %392 = arith.subf %388, %391 : vector<16x16xf32>
    %393 = math.exp %392 : vector<16x16xf32>
    %cst_131 = arith.constant dense<0.000000e+00> : vector<16xf32>
    %394 = vector.multi_reduction <add>, %393, %cst_131 [1] : vector<16x16xf32> to vector<16xf32>
    %395 = vector.shape_cast %394 : vector<16xf32> to vector<16x1xf32>
    %396 = tpu.reciprocal %395 {approx = true} : vector<16x1xf32> -> vector<16x1xf32>
    %397 = vector.broadcast %396 : vector<16x1xf32> to vector<16x16xf32>
    %398 = arith.mulf %393, %397 : vector<16x16xf32>
    %399 = arith.truncf %398 : vector<16x16xf32> to vector<16x16xbf16>
    %cst_132 = arith.constant dense<0.000000e+00> : vector<16x8xf32>
    %400 = tpu.matmul %399, %383, %cst_132 {dimension_numbers = #tpu.dot_dimension_numbers<[1], [0], [0], [1], [0, 0, 1, 1], [], []>} : vector<16x16xbf16>, vector<16x8xbf16>, vector<16x8xf32> -> vector<16x8xf32>
    %401 = vector.extract_strided_slice %360 {offsets = [0, 16], sizes = [16, 8], strides = [1, 1]} : vector<16x96xbf16> to vector<16x8xbf16>
    %402 = vector.extract_strided_slice %360 {offsets = [0, 48], sizes = [16, 8], strides = [1, 1]} : vector<16x96xbf16> to vector<16x8xbf16>
    %403 = vector.extract_strided_slice %360 {offsets = [0, 80], sizes = [16, 8], strides = [1, 1]} : vector<16x96xbf16> to vector<16x8xbf16>
    %cst_133 = arith.constant dense<0.000000e+00> : vector<16x16xf32>
    %404 = tpu.matmul %401, %402, %cst_133 {dimension_numbers = #tpu.dot_dimension_numbers<[1], [1], [0], [0], [0, 0, 1, 0], [], []>} : vector<16x8xbf16>, vector<16x8xbf16>, vector<16x16xf32> -> vector<16x16xf32>
    %cst_134 = arith.constant 0.353553385 : f32
    %405 = vector.broadcast %cst_134 : f32 to vector<16x16xf32>
    %406 = arith.mulf %404, %405 : vector<16x16xf32>
    %407 = vector.broadcast %1 : vector<1x16xf32> to vector<16x16xf32>
    %408 = arith.addf %406, %407 : vector<16x16xf32>
    %cst_135 = arith.constant dense<0xFF800000> : vector<16xf32>
    %409 = vector.multi_reduction <maximumf>, %408, %cst_135 [1] : vector<16x16xf32> to vector<16xf32>
    %410 = vector.shape_cast %409 : vector<16xf32> to vector<16x1xf32>
    %411 = vector.broadcast %410 : vector<16x1xf32> to vector<16x16xf32>
    %412 = arith.subf %408, %411 : vector<16x16xf32>
    %413 = math.exp %412 : vector<16x16xf32>
    %cst_136 = arith.constant dense<0.000000e+00> : vector<16xf32>
    %414 = vector.multi_reduction <add>, %413, %cst_136 [1] : vector<16x16xf32> to vector<16xf32>
    %415 = vector.shape_cast %414 : vector<16xf32> to vector<16x1xf32>
    %416 = tpu.reciprocal %415 {approx = true} : vector<16x1xf32> -> vector<16x1xf32>
    %417 = vector.broadcast %416 : vector<16x1xf32> to vector<16x16xf32>
    %418 = arith.mulf %413, %417 : vector<16x16xf32>
    %419 = arith.truncf %418 : vector<16x16xf32> to vector<16x16xbf16>
    %cst_137 = arith.constant dense<0.000000e+00> : vector<16x8xf32>
    %420 = tpu.matmul %419, %403, %cst_137 {dimension_numbers = #tpu.dot_dimension_numbers<[1], [0], [0], [1], [0, 0, 1, 1], [], []>} : vector<16x16xbf16>, vector<16x8xbf16>, vector<16x8xf32> -> vector<16x8xf32>
    %421 = vector.extract_strided_slice %360 {offsets = [0, 24], sizes = [16, 8], strides = [1, 1]} : vector<16x96xbf16> to vector<16x8xbf16>
    %422 = vector.extract_strided_slice %360 {offsets = [0, 56], sizes = [16, 8], strides = [1, 1]} : vector<16x96xbf16> to vector<16x8xbf16>
    %423 = vector.extract_strided_slice %360 {offsets = [0, 88], sizes = [16, 8], strides = [1, 1]} : vector<16x96xbf16> to vector<16x8xbf16>
    %cst_138 = arith.constant dense<0.000000e+00> : vector<16x16xf32>
    %424 = tpu.matmul %421, %422, %cst_138 {dimension_numbers = #tpu.dot_dimension_numbers<[1], [1], [0], [0], [0, 0, 1, 0], [], []>} : vector<16x8xbf16>, vector<16x8xbf16>, vector<16x16xf32> -> vector<16x16xf32>
    %cst_139 = arith.constant 0.353553385 : f32
    %425 = vector.broadcast %cst_139 : f32 to vector<16x16xf32>
    %426 = arith.mulf %424, %425 : vector<16x16xf32>
    %427 = vector.broadcast %1 : vector<1x16xf32> to vector<16x16xf32>
    %428 = arith.addf %426, %427 : vector<16x16xf32>
    %cst_140 = arith.constant dense<0xFF800000> : vector<16xf32>
    %429 = vector.multi_reduction <maximumf>, %428, %cst_140 [1] : vector<16x16xf32> to vector<16xf32>
    %430 = vector.shape_cast %429 : vector<16xf32> to vector<16x1xf32>
    %431 = vector.broadcast %430 : vector<16x1xf32> to vector<16x16xf32>
    %432 = arith.subf %428, %431 : vector<16x16xf32>
    %433 = math.exp %432 : vector<16x16xf32>
    %cst_141 = arith.constant dense<0.000000e+00> : vector<16xf32>
    %434 = vector.multi_reduction <add>, %433, %cst_141 [1] : vector<16x16xf32> to vector<16xf32>
    %435 = vector.shape_cast %434 : vector<16xf32> to vector<16x1xf32>
    %436 = tpu.reciprocal %435 {approx = true} : vector<16x1xf32> -> vector<16x1xf32>
    %437 = vector.broadcast %436 : vector<16x1xf32> to vector<16x16xf32>
    %438 = arith.mulf %433, %437 : vector<16x16xf32>
    %439 = arith.truncf %438 : vector<16x16xf32> to vector<16x16xbf16>
    %cst_142 = arith.constant dense<0.000000e+00> : vector<16x8xf32>
    %440 = tpu.matmul %439, %423, %cst_142 {dimension_numbers = #tpu.dot_dimension_numbers<[1], [0], [0], [1], [0, 0, 1, 1], [], []>} : vector<16x16xbf16>, vector<16x8xbf16>, vector<16x8xf32> -> vector<16x8xf32>
    %441 = tpu.concatenate %380, %400, %420, %440 in 1 : vector<16x8xf32>, vector<16x8xf32>, vector<16x8xf32>, vector<16x8xf32> -> vector<16x32xf32>
    %442 = tpu.concatenate %359, %441 in 0 : vector<16x32xf32>, vector<16x32xf32> -> vector<32x32xf32>
    %443 = arith.truncf %442 : vector<32x32xf32> to vector<32x32xbf16>
    %cst_143 = arith.constant dense<0.000000e+00> : vector<32x32xf32>
    %444 = tpu.matmul %443, %270, %cst_143 {dimension_numbers = #tpu.dot_dimension_numbers<[1], [0], [0], [1], [0, 0, 1, 1], [], []>} : vector<32x32xbf16>, vector<32x32xbf16>, vector<32x32xf32> -> vector<32x32xf32>
    %445 = vector.broadcast %272 : vector<1x32xf32> to vector<32x32xf32>
    %446 = arith.addf %444, %445 : vector<32x32xf32>
    %c1_144 = arith.constant 1 : index
    %c0_145 = arith.constant 0 : index
    %c0_146 = arith.constant 0 : index
    %447 = vector.load %arg13[%c1_144, %c0_145, %c0_146] : memref<2x4x32xf32, #tpu.memory_space<vmem>>, vector<1x4x32xf32>
    %448 = vector.shape_cast %447 : vector<1x4x32xf32> to vector<4x32xf32>
    %449 = vector.extract_strided_slice %448 {offsets = [0, 0], sizes = [1, 32], strides = [1, 1]} : vector<4x32xf32> to vector<1x32xf32>
    %450 = vector.extract_strided_slice %448 {offsets = [1, 0], sizes = [1, 32], strides = [1, 1]} : vector<4x32xf32> to vector<1x32xf32>
    %451 = arith.addf %446, %264 : vector<32x32xf32>
    %452 = vector.broadcast %0 : vector<32x1xf32> to vector<32x32xf32>
    %453 = arith.mulf %451, %452 : vector<32x32xf32>
    %cst_147 = arith.constant dense<0.000000e+00> : vector<32xf32>
    %454 = vector.multi_reduction <add>, %453, %cst_147 [0] : vector<32x32xf32> to vector<32xf32>
    %455 = vector.shape_cast %454 : vector<32xf32> to vector<1x32xf32>
    %cst_148 = arith.constant 5.000000e-02 : f32
    %456 = vector.broadcast %cst_148 : f32 to vector<1x32xf32>
    %457 = arith.mulf %455, %456 : vector<1x32xf32>
    %458 = vector.broadcast %457 : vector<1x32xf32> to vector<32x32xf32>
    %459 = arith.subf %451, %458 : vector<32x32xf32>
    %460 = arith.mulf %459, %459 : vector<32x32xf32>
    %461 = vector.broadcast %0 : vector<32x1xf32> to vector<32x32xf32>
    %462 = arith.mulf %460, %461 : vector<32x32xf32>
    %cst_149 = arith.constant dense<0.000000e+00> : vector<32xf32>
    %463 = vector.multi_reduction <add>, %462, %cst_149 [0] : vector<32x32xf32> to vector<32xf32>
    %464 = vector.shape_cast %463 : vector<32xf32> to vector<1x32xf32>
    %cst_150 = arith.constant 5.000000e-02 : f32
    %465 = vector.broadcast %cst_150 : f32 to vector<1x32xf32>
    %466 = arith.mulf %464, %465 : vector<1x32xf32>
    %cst_151 = arith.constant 9.99999974E-6 : f32
    %467 = vector.broadcast %cst_151 : f32 to vector<1x32xf32>
    %468 = arith.addf %466, %467 : vector<1x32xf32>
    %469 = math.rsqrt %468 : vector<1x32xf32>
    %470 = vector.broadcast %469 : vector<1x32xf32> to vector<32x32xf32>
    %471 = arith.mulf %459, %470 : vector<32x32xf32>
    %472 = vector.broadcast %449 : vector<1x32xf32> to vector<32x32xf32>
    %473 = arith.mulf %471, %472 : vector<32x32xf32>
    %474 = vector.broadcast %450 : vector<1x32xf32> to vector<32x32xf32>
    %475 = arith.addf %473, %474 : vector<32x32xf32>
    %c1_152 = arith.constant 1 : index
    %c0_153 = arith.constant 0 : index
    %c0_154 = arith.constant 0 : index
    %476 = vector.load %arg14[%c1_152, %c0_153, %c0_154] : memref<2x32x64xbf16, #tpu.memory_space<vmem>>, vector<1x32x64xbf16>
    %477 = vector.shape_cast %476 : vector<1x32x64xbf16> to vector<32x64xbf16>
    %478 = arith.truncf %475 : vector<32x32xf32> to vector<32x32xbf16>
    %cst_155 = arith.constant dense<0.000000e+00> : vector<32x64xf32>
    %479 = tpu.matmul %478, %477, %cst_155 {dimension_numbers = #tpu.dot_dimension_numbers<[1], [0], [0], [1], [0, 0, 1, 1], [], []>} : vector<32x32xbf16>, vector<32x64xbf16>, vector<32x64xf32> -> vector<32x64xf32>
    %c1_156 = arith.constant 1 : index
    %c0_157 = arith.constant 0 : index
    %c0_158 = arith.constant 0 : index
    %480 = vector.load %arg15[%c1_156, %c0_157, %c0_158] : memref<2x1x64xf32, #tpu.memory_space<vmem>>, vector<1x1x64xf32>
    %481 = vector.shape_cast %480 : vector<1x1x64xf32> to vector<1x64xf32>
    %482 = vector.broadcast %481 : vector<1x64xf32> to vector<32x64xf32>
    %483 = arith.addf %479, %482 : vector<32x64xf32>
    %cst_159 = arith.constant 0.000000e+00 : f32
    %484 = vector.broadcast %cst_159 : f32 to vector<32x64xf32>
    %485 = arith.maximumf %483, %484 : vector<32x64xf32>
    %c1_160 = arith.constant 1 : index
    %c0_161 = arith.constant 0 : index
    %c0_162 = arith.constant 0 : index
    %486 = vector.load %arg16[%c1_160, %c0_161, %c0_162] : memref<2x64x32xbf16, #tpu.memory_space<vmem>>, vector<1x64x32xbf16>
    %487 = vector.shape_cast %486 : vector<1x64x32xbf16> to vector<64x32xbf16>
    %488 = arith.truncf %485 : vector<32x64xf32> to vector<32x64xbf16>
    %cst_163 = arith.constant dense<0.000000e+00> : vector<32x32xf32>
    %489 = tpu.matmul %488, %487, %cst_163 {dimension_numbers = #tpu.dot_dimension_numbers<[1], [0], [0], [1], [0, 0, 1, 1], [], []>} : vector<32x64xbf16>, vector<64x32xbf16>, vector<32x32xf32> -> vector<32x32xf32>
    %c1_164 = arith.constant 1 : index
    %c0_165 = arith.constant 0 : index
    %c0_166 = arith.constant 0 : index
    %490 = vector.load %arg17[%c1_164, %c0_165, %c0_166] : memref<2x1x32xf32, #tpu.memory_space<vmem>>, vector<1x1x32xf32>
    %491 = vector.shape_cast %490 : vector<1x1x32xf32> to vector<1x32xf32>
    %492 = vector.broadcast %491 : vector<1x32xf32> to vector<32x32xf32>
    %493 = arith.addf %489, %492 : vector<32x32xf32>
    %494 = vector.extract_strided_slice %448 {offsets = [2, 0], sizes = [1, 32], strides = [1, 1]} : vector<4x32xf32> to vector<1x32xf32>
    %495 = vector.extract_strided_slice %448 {offsets = [3, 0], sizes = [1, 32], strides = [1, 1]} : vector<4x32xf32> to vector<1x32xf32>
    %496 = arith.addf %493, %475 : vector<32x32xf32>
    %497 = vector.broadcast %0 : vector<32x1xf32> to vector<32x32xf32>
    %498 = arith.mulf %496, %497 : vector<32x32xf32>
    %cst_167 = arith.constant dense<0.000000e+00> : vector<32xf32>
    %499 = vector.multi_reduction <add>, %498, %cst_167 [0] : vector<32x32xf32> to vector<32xf32>
    %500 = vector.shape_cast %499 : vector<32xf32> to vector<1x32xf32>
    %cst_168 = arith.constant 5.000000e-02 : f32
    %501 = vector.broadcast %cst_168 : f32 to vector<1x32xf32>
    %502 = arith.mulf %500, %501 : vector<1x32xf32>
    %503 = vector.broadcast %502 : vector<1x32xf32> to vector<32x32xf32>
    %504 = arith.subf %496, %503 : vector<32x32xf32>
    %505 = arith.mulf %504, %504 : vector<32x32xf32>
    %506 = vector.broadcast %0 : vector<32x1xf32> to vector<32x32xf32>
    %507 = arith.mulf %505, %506 : vector<32x32xf32>
    %cst_169 = arith.constant dense<0.000000e+00> : vector<32xf32>
    %508 = vector.multi_reduction <add>, %507, %cst_169 [0] : vector<32x32xf32> to vector<32xf32>
    %509 = vector.shape_cast %508 : vector<32xf32> to vector<1x32xf32>
    %cst_170 = arith.constant 5.000000e-02 : f32
    %510 = vector.broadcast %cst_170 : f32 to vector<1x32xf32>
    %511 = arith.mulf %509, %510 : vector<1x32xf32>
    %cst_171 = arith.constant 9.99999974E-6 : f32
    %512 = vector.broadcast %cst_171 : f32 to vector<1x32xf32>
    %513 = arith.addf %511, %512 : vector<1x32xf32>
    %514 = math.rsqrt %513 : vector<1x32xf32>
    %515 = vector.broadcast %514 : vector<1x32xf32> to vector<32x32xf32>
    %516 = arith.mulf %504, %515 : vector<32x32xf32>
    %517 = vector.broadcast %494 : vector<1x32xf32> to vector<32x32xf32>
    %518 = arith.mulf %516, %517 : vector<32x32xf32>
    %519 = vector.broadcast %495 : vector<1x32xf32> to vector<32x32xf32>
    %520 = arith.addf %518, %519 : vector<32x32xf32>
    %c0_172 = arith.constant 0 : index
    %c0_173 = arith.constant 0 : index
    %521 = vector.load %arg1[%c0_172, %c0_173] : memref<16x12xbf16, #tpu.memory_space<vmem>>, vector<16x12xbf16>
    %c0_174 = arith.constant 0 : index
    %c0_175 = arith.constant 0 : index
    %522 = vector.load %arg8[%c0_174, %c0_175] : memref<12x32xbf16, #tpu.memory_space<vmem>>, vector<12x32xbf16>
    %cst_176 = arith.constant dense<0.000000e+00> : vector<16x32xf32>
    %523 = tpu.matmul %521, %522, %cst_176 {dimension_numbers = #tpu.dot_dimension_numbers<[1], [0], [0], [1], [0, 0, 1, 1], [], []>} : vector<16x12xbf16>, vector<12x32xbf16>, vector<16x32xf32> -> vector<16x32xf32>
    %524 = vector.extract_strided_slice %520 {offsets = [0, 0], sizes = [16, 32], strides = [1, 1]} : vector<32x32xf32> to vector<16x32xf32>
    %525 = vector.extract_strided_slice %523 {offsets = [0, 0], sizes = [8, 32], strides = [1, 1]} : vector<16x32xf32> to vector<8x32xf32>
    %526 = tpu.concatenate %524, %525 in 0 : vector<16x32xf32>, vector<8x32xf32> -> vector<24x32xf32>
    %527 = vector.extract_strided_slice %520 {offsets = [16, 0], sizes = [16, 32], strides = [1, 1]} : vector<32x32xf32> to vector<16x32xf32>
    %528 = vector.extract_strided_slice %523 {offsets = [8, 0], sizes = [8, 32], strides = [1, 1]} : vector<16x32xf32> to vector<8x32xf32>
    %529 = tpu.concatenate %527, %528 in 0 : vector<16x32xf32>, vector<8x32xf32> -> vector<24x32xf32>
    %530 = tpu.concatenate %526, %529 in 0 : vector<24x32xf32>, vector<24x32xf32> -> vector<48x32xf32>
    %c0_177 = arith.constant 0 : index
    %c0_178 = arith.constant 0 : index
    %531 = vector.load %arg3[%c0_177, %c0_178] : memref<1x24xf32, #tpu.memory_space<vmem>>, vector<1x24xf32>
    %c0_179 = arith.constant 0 : index
    %c0_180 = arith.constant 0 : index
    %c0_181 = arith.constant 0 : index
    %532 = vector.load %arg18[%c0_179, %c0_180, %c0_181] : memref<2x32x96xbf16, #tpu.memory_space<vmem>>, vector<1x32x96xbf16>
    %533 = vector.shape_cast %532 : vector<1x32x96xbf16> to vector<32x96xbf16>
    %c0_182 = arith.constant 0 : index
    %c0_183 = arith.constant 0 : index
    %c0_184 = arith.constant 0 : index
    %534 = vector.load %arg19[%c0_182, %c0_183, %c0_184] : memref<2x1x96xf32, #tpu.memory_space<vmem>>, vector<1x1x96xf32>
    %535 = vector.shape_cast %534 : vector<1x1x96xf32> to vector<1x96xf32>
    %c0_185 = arith.constant 0 : index
    %c0_186 = arith.constant 0 : index
    %c0_187 = arith.constant 0 : index
    %536 = vector.load %arg20[%c0_185, %c0_186, %c0_187] : memref<2x32x32xbf16, #tpu.memory_space<vmem>>, vector<1x32x32xbf16>
    %537 = vector.shape_cast %536 : vector<1x32x32xbf16> to vector<32x32xbf16>
    %c0_188 = arith.constant 0 : index
    %c0_189 = arith.constant 0 : index
    %c0_190 = arith.constant 0 : index
    %538 = vector.load %arg21[%c0_188, %c0_189, %c0_190] : memref<2x1x32xf32, #tpu.memory_space<vmem>>, vector<1x1x32xf32>
    %539 = vector.shape_cast %538 : vector<1x1x32xf32> to vector<1x32xf32>
    %540 = arith.truncf %530 : vector<48x32xf32> to vector<48x32xbf16>
    %cst_191 = arith.constant dense<0.000000e+00> : vector<48x96xf32>
    %541 = tpu.matmul %540, %533, %cst_191 {dimension_numbers = #tpu.dot_dimension_numbers<[1], [0], [0], [1], [0, 0, 1, 1], [], []>} : vector<48x32xbf16>, vector<32x96xbf16>, vector<48x96xf32> -> vector<48x96xf32>
    %542 = vector.broadcast %535 : vector<1x96xf32> to vector<48x96xf32>
    %543 = arith.addf %541, %542 : vector<48x96xf32>
    %544 = arith.truncf %543 : vector<48x96xf32> to vector<48x96xbf16>
    %545 = vector.extract_strided_slice %544 {offsets = [0, 0], sizes = [24, 96], strides = [1, 1]} : vector<48x96xbf16> to vector<24x96xbf16>
    %546 = vector.extract_strided_slice %545 {offsets = [0, 0], sizes = [24, 8], strides = [1, 1]} : vector<24x96xbf16> to vector<24x8xbf16>
    %547 = vector.extract_strided_slice %545 {offsets = [0, 32], sizes = [24, 8], strides = [1, 1]} : vector<24x96xbf16> to vector<24x8xbf16>
    %548 = vector.extract_strided_slice %545 {offsets = [0, 64], sizes = [24, 8], strides = [1, 1]} : vector<24x96xbf16> to vector<24x8xbf16>
    %cst_192 = arith.constant dense<0.000000e+00> : vector<24x24xf32>
    %549 = tpu.matmul %546, %547, %cst_192 {dimension_numbers = #tpu.dot_dimension_numbers<[1], [1], [0], [0], [0, 0, 1, 0], [], []>} : vector<24x8xbf16>, vector<24x8xbf16>, vector<24x24xf32> -> vector<24x24xf32>
    %cst_193 = arith.constant 0.353553385 : f32
    %550 = vector.broadcast %cst_193 : f32 to vector<24x24xf32>
    %551 = arith.mulf %549, %550 : vector<24x24xf32>
    %552 = vector.broadcast %531 : vector<1x24xf32> to vector<24x24xf32>
    %553 = arith.addf %551, %552 : vector<24x24xf32>
    %cst_194 = arith.constant dense<0xFF800000> : vector<24xf32>
    %554 = vector.multi_reduction <maximumf>, %553, %cst_194 [1] : vector<24x24xf32> to vector<24xf32>
    %555 = vector.shape_cast %554 : vector<24xf32> to vector<24x1xf32>
    %556 = vector.broadcast %555 : vector<24x1xf32> to vector<24x24xf32>
    %557 = arith.subf %553, %556 : vector<24x24xf32>
    %558 = math.exp %557 : vector<24x24xf32>
    %cst_195 = arith.constant dense<0.000000e+00> : vector<24xf32>
    %559 = vector.multi_reduction <add>, %558, %cst_195 [1] : vector<24x24xf32> to vector<24xf32>
    %560 = vector.shape_cast %559 : vector<24xf32> to vector<24x1xf32>
    %561 = tpu.reciprocal %560 {approx = true} : vector<24x1xf32> -> vector<24x1xf32>
    %562 = vector.broadcast %561 : vector<24x1xf32> to vector<24x24xf32>
    %563 = arith.mulf %558, %562 : vector<24x24xf32>
    %564 = arith.truncf %563 : vector<24x24xf32> to vector<24x24xbf16>
    %cst_196 = arith.constant dense<0.000000e+00> : vector<24x8xf32>
    %565 = tpu.matmul %564, %548, %cst_196 {dimension_numbers = #tpu.dot_dimension_numbers<[1], [0], [0], [1], [0, 0, 1, 1], [], []>} : vector<24x24xbf16>, vector<24x8xbf16>, vector<24x8xf32> -> vector<24x8xf32>
    %566 = vector.extract_strided_slice %545 {offsets = [0, 8], sizes = [24, 8], strides = [1, 1]} : vector<24x96xbf16> to vector<24x8xbf16>
    %567 = vector.extract_strided_slice %545 {offsets = [0, 40], sizes = [24, 8], strides = [1, 1]} : vector<24x96xbf16> to vector<24x8xbf16>
    %568 = vector.extract_strided_slice %545 {offsets = [0, 72], sizes = [24, 8], strides = [1, 1]} : vector<24x96xbf16> to vector<24x8xbf16>
    %cst_197 = arith.constant dense<0.000000e+00> : vector<24x24xf32>
    %569 = tpu.matmul %566, %567, %cst_197 {dimension_numbers = #tpu.dot_dimension_numbers<[1], [1], [0], [0], [0, 0, 1, 0], [], []>} : vector<24x8xbf16>, vector<24x8xbf16>, vector<24x24xf32> -> vector<24x24xf32>
    %cst_198 = arith.constant 0.353553385 : f32
    %570 = vector.broadcast %cst_198 : f32 to vector<24x24xf32>
    %571 = arith.mulf %569, %570 : vector<24x24xf32>
    %572 = vector.broadcast %531 : vector<1x24xf32> to vector<24x24xf32>
    %573 = arith.addf %571, %572 : vector<24x24xf32>
    %cst_199 = arith.constant dense<0xFF800000> : vector<24xf32>
    %574 = vector.multi_reduction <maximumf>, %573, %cst_199 [1] : vector<24x24xf32> to vector<24xf32>
    %575 = vector.shape_cast %574 : vector<24xf32> to vector<24x1xf32>
    %576 = vector.broadcast %575 : vector<24x1xf32> to vector<24x24xf32>
    %577 = arith.subf %573, %576 : vector<24x24xf32>
    %578 = math.exp %577 : vector<24x24xf32>
    %cst_200 = arith.constant dense<0.000000e+00> : vector<24xf32>
    %579 = vector.multi_reduction <add>, %578, %cst_200 [1] : vector<24x24xf32> to vector<24xf32>
    %580 = vector.shape_cast %579 : vector<24xf32> to vector<24x1xf32>
    %581 = tpu.reciprocal %580 {approx = true} : vector<24x1xf32> -> vector<24x1xf32>
    %582 = vector.broadcast %581 : vector<24x1xf32> to vector<24x24xf32>
    %583 = arith.mulf %578, %582 : vector<24x24xf32>
    %584 = arith.truncf %583 : vector<24x24xf32> to vector<24x24xbf16>
    %cst_201 = arith.constant dense<0.000000e+00> : vector<24x8xf32>
    %585 = tpu.matmul %584, %568, %cst_201 {dimension_numbers = #tpu.dot_dimension_numbers<[1], [0], [0], [1], [0, 0, 1, 1], [], []>} : vector<24x24xbf16>, vector<24x8xbf16>, vector<24x8xf32> -> vector<24x8xf32>
    %586 = vector.extract_strided_slice %545 {offsets = [0, 16], sizes = [24, 8], strides = [1, 1]} : vector<24x96xbf16> to vector<24x8xbf16>
    %587 = vector.extract_strided_slice %545 {offsets = [0, 48], sizes = [24, 8], strides = [1, 1]} : vector<24x96xbf16> to vector<24x8xbf16>
    %588 = vector.extract_strided_slice %545 {offsets = [0, 80], sizes = [24, 8], strides = [1, 1]} : vector<24x96xbf16> to vector<24x8xbf16>
    %cst_202 = arith.constant dense<0.000000e+00> : vector<24x24xf32>
    %589 = tpu.matmul %586, %587, %cst_202 {dimension_numbers = #tpu.dot_dimension_numbers<[1], [1], [0], [0], [0, 0, 1, 0], [], []>} : vector<24x8xbf16>, vector<24x8xbf16>, vector<24x24xf32> -> vector<24x24xf32>
    %cst_203 = arith.constant 0.353553385 : f32
    %590 = vector.broadcast %cst_203 : f32 to vector<24x24xf32>
    %591 = arith.mulf %589, %590 : vector<24x24xf32>
    %592 = vector.broadcast %531 : vector<1x24xf32> to vector<24x24xf32>
    %593 = arith.addf %591, %592 : vector<24x24xf32>
    %cst_204 = arith.constant dense<0xFF800000> : vector<24xf32>
    %594 = vector.multi_reduction <maximumf>, %593, %cst_204 [1] : vector<24x24xf32> to vector<24xf32>
    %595 = vector.shape_cast %594 : vector<24xf32> to vector<24x1xf32>
    %596 = vector.broadcast %595 : vector<24x1xf32> to vector<24x24xf32>
    %597 = arith.subf %593, %596 : vector<24x24xf32>
    %598 = math.exp %597 : vector<24x24xf32>
    %cst_205 = arith.constant dense<0.000000e+00> : vector<24xf32>
    %599 = vector.multi_reduction <add>, %598, %cst_205 [1] : vector<24x24xf32> to vector<24xf32>
    %600 = vector.shape_cast %599 : vector<24xf32> to vector<24x1xf32>
    %601 = tpu.reciprocal %600 {approx = true} : vector<24x1xf32> -> vector<24x1xf32>
    %602 = vector.broadcast %601 : vector<24x1xf32> to vector<24x24xf32>
    %603 = arith.mulf %598, %602 : vector<24x24xf32>
    %604 = arith.truncf %603 : vector<24x24xf32> to vector<24x24xbf16>
    %cst_206 = arith.constant dense<0.000000e+00> : vector<24x8xf32>
    %605 = tpu.matmul %604, %588, %cst_206 {dimension_numbers = #tpu.dot_dimension_numbers<[1], [0], [0], [1], [0, 0, 1, 1], [], []>} : vector<24x24xbf16>, vector<24x8xbf16>, vector<24x8xf32> -> vector<24x8xf32>
    %606 = vector.extract_strided_slice %545 {offsets = [0, 24], sizes = [24, 8], strides = [1, 1]} : vector<24x96xbf16> to vector<24x8xbf16>
    %607 = vector.extract_strided_slice %545 {offsets = [0, 56], sizes = [24, 8], strides = [1, 1]} : vector<24x96xbf16> to vector<24x8xbf16>
    %608 = vector.extract_strided_slice %545 {offsets = [0, 88], sizes = [24, 8], strides = [1, 1]} : vector<24x96xbf16> to vector<24x8xbf16>
    %cst_207 = arith.constant dense<0.000000e+00> : vector<24x24xf32>
    %609 = tpu.matmul %606, %607, %cst_207 {dimension_numbers = #tpu.dot_dimension_numbers<[1], [1], [0], [0], [0, 0, 1, 0], [], []>} : vector<24x8xbf16>, vector<24x8xbf16>, vector<24x24xf32> -> vector<24x24xf32>
    %cst_208 = arith.constant 0.353553385 : f32
    %610 = vector.broadcast %cst_208 : f32 to vector<24x24xf32>
    %611 = arith.mulf %609, %610 : vector<24x24xf32>
    %612 = vector.broadcast %531 : vector<1x24xf32> to vector<24x24xf32>
    %613 = arith.addf %611, %612 : vector<24x24xf32>
    %cst_209 = arith.constant dense<0xFF800000> : vector<24xf32>
    %614 = vector.multi_reduction <maximumf>, %613, %cst_209 [1] : vector<24x24xf32> to vector<24xf32>
    %615 = vector.shape_cast %614 : vector<24xf32> to vector<24x1xf32>
    %616 = vector.broadcast %615 : vector<24x1xf32> to vector<24x24xf32>
    %617 = arith.subf %613, %616 : vector<24x24xf32>
    %618 = math.exp %617 : vector<24x24xf32>
    %cst_210 = arith.constant dense<0.000000e+00> : vector<24xf32>
    %619 = vector.multi_reduction <add>, %618, %cst_210 [1] : vector<24x24xf32> to vector<24xf32>
    %620 = vector.shape_cast %619 : vector<24xf32> to vector<24x1xf32>
    %621 = tpu.reciprocal %620 {approx = true} : vector<24x1xf32> -> vector<24x1xf32>
    %622 = vector.broadcast %621 : vector<24x1xf32> to vector<24x24xf32>
    %623 = arith.mulf %618, %622 : vector<24x24xf32>
    %624 = arith.truncf %623 : vector<24x24xf32> to vector<24x24xbf16>
    %cst_211 = arith.constant dense<0.000000e+00> : vector<24x8xf32>
    %625 = tpu.matmul %624, %608, %cst_211 {dimension_numbers = #tpu.dot_dimension_numbers<[1], [0], [0], [1], [0, 0, 1, 1], [], []>} : vector<24x24xbf16>, vector<24x8xbf16>, vector<24x8xf32> -> vector<24x8xf32>
    %626 = tpu.concatenate %565, %585, %605, %625 in 1 : vector<24x8xf32>, vector<24x8xf32>, vector<24x8xf32>, vector<24x8xf32> -> vector<24x32xf32>
    %627 = vector.extract_strided_slice %544 {offsets = [24, 0], sizes = [24, 96], strides = [1, 1]} : vector<48x96xbf16> to vector<24x96xbf16>
    %628 = vector.extract_strided_slice %627 {offsets = [0, 0], sizes = [24, 8], strides = [1, 1]} : vector<24x96xbf16> to vector<24x8xbf16>
    %629 = vector.extract_strided_slice %627 {offsets = [0, 32], sizes = [24, 8], strides = [1, 1]} : vector<24x96xbf16> to vector<24x8xbf16>
    %630 = vector.extract_strided_slice %627 {offsets = [0, 64], sizes = [24, 8], strides = [1, 1]} : vector<24x96xbf16> to vector<24x8xbf16>
    %cst_212 = arith.constant dense<0.000000e+00> : vector<24x24xf32>
    %631 = tpu.matmul %628, %629, %cst_212 {dimension_numbers = #tpu.dot_dimension_numbers<[1], [1], [0], [0], [0, 0, 1, 0], [], []>} : vector<24x8xbf16>, vector<24x8xbf16>, vector<24x24xf32> -> vector<24x24xf32>
    %cst_213 = arith.constant 0.353553385 : f32
    %632 = vector.broadcast %cst_213 : f32 to vector<24x24xf32>
    %633 = arith.mulf %631, %632 : vector<24x24xf32>
    %634 = vector.broadcast %531 : vector<1x24xf32> to vector<24x24xf32>
    %635 = arith.addf %633, %634 : vector<24x24xf32>
    %cst_214 = arith.constant dense<0xFF800000> : vector<24xf32>
    %636 = vector.multi_reduction <maximumf>, %635, %cst_214 [1] : vector<24x24xf32> to vector<24xf32>
    %637 = vector.shape_cast %636 : vector<24xf32> to vector<24x1xf32>
    %638 = vector.broadcast %637 : vector<24x1xf32> to vector<24x24xf32>
    %639 = arith.subf %635, %638 : vector<24x24xf32>
    %640 = math.exp %639 : vector<24x24xf32>
    %cst_215 = arith.constant dense<0.000000e+00> : vector<24xf32>
    %641 = vector.multi_reduction <add>, %640, %cst_215 [1] : vector<24x24xf32> to vector<24xf32>
    %642 = vector.shape_cast %641 : vector<24xf32> to vector<24x1xf32>
    %643 = tpu.reciprocal %642 {approx = true} : vector<24x1xf32> -> vector<24x1xf32>
    %644 = vector.broadcast %643 : vector<24x1xf32> to vector<24x24xf32>
    %645 = arith.mulf %640, %644 : vector<24x24xf32>
    %646 = arith.truncf %645 : vector<24x24xf32> to vector<24x24xbf16>
    %cst_216 = arith.constant dense<0.000000e+00> : vector<24x8xf32>
    %647 = tpu.matmul %646, %630, %cst_216 {dimension_numbers = #tpu.dot_dimension_numbers<[1], [0], [0], [1], [0, 0, 1, 1], [], []>} : vector<24x24xbf16>, vector<24x8xbf16>, vector<24x8xf32> -> vector<24x8xf32>
    %648 = vector.extract_strided_slice %627 {offsets = [0, 8], sizes = [24, 8], strides = [1, 1]} : vector<24x96xbf16> to vector<24x8xbf16>
    %649 = vector.extract_strided_slice %627 {offsets = [0, 40], sizes = [24, 8], strides = [1, 1]} : vector<24x96xbf16> to vector<24x8xbf16>
    %650 = vector.extract_strided_slice %627 {offsets = [0, 72], sizes = [24, 8], strides = [1, 1]} : vector<24x96xbf16> to vector<24x8xbf16>
    %cst_217 = arith.constant dense<0.000000e+00> : vector<24x24xf32>
    %651 = tpu.matmul %648, %649, %cst_217 {dimension_numbers = #tpu.dot_dimension_numbers<[1], [1], [0], [0], [0, 0, 1, 0], [], []>} : vector<24x8xbf16>, vector<24x8xbf16>, vector<24x24xf32> -> vector<24x24xf32>
    %cst_218 = arith.constant 0.353553385 : f32
    %652 = vector.broadcast %cst_218 : f32 to vector<24x24xf32>
    %653 = arith.mulf %651, %652 : vector<24x24xf32>
    %654 = vector.broadcast %531 : vector<1x24xf32> to vector<24x24xf32>
    %655 = arith.addf %653, %654 : vector<24x24xf32>
    %cst_219 = arith.constant dense<0xFF800000> : vector<24xf32>
    %656 = vector.multi_reduction <maximumf>, %655, %cst_219 [1] : vector<24x24xf32> to vector<24xf32>
    %657 = vector.shape_cast %656 : vector<24xf32> to vector<24x1xf32>
    %658 = vector.broadcast %657 : vector<24x1xf32> to vector<24x24xf32>
    %659 = arith.subf %655, %658 : vector<24x24xf32>
    %660 = math.exp %659 : vector<24x24xf32>
    %cst_220 = arith.constant dense<0.000000e+00> : vector<24xf32>
    %661 = vector.multi_reduction <add>, %660, %cst_220 [1] : vector<24x24xf32> to vector<24xf32>
    %662 = vector.shape_cast %661 : vector<24xf32> to vector<24x1xf32>
    %663 = tpu.reciprocal %662 {approx = true} : vector<24x1xf32> -> vector<24x1xf32>
    %664 = vector.broadcast %663 : vector<24x1xf32> to vector<24x24xf32>
    %665 = arith.mulf %660, %664 : vector<24x24xf32>
    %666 = arith.truncf %665 : vector<24x24xf32> to vector<24x24xbf16>
    %cst_221 = arith.constant dense<0.000000e+00> : vector<24x8xf32>
    %667 = tpu.matmul %666, %650, %cst_221 {dimension_numbers = #tpu.dot_dimension_numbers<[1], [0], [0], [1], [0, 0, 1, 1], [], []>} : vector<24x24xbf16>, vector<24x8xbf16>, vector<24x8xf32> -> vector<24x8xf32>
    %668 = vector.extract_strided_slice %627 {offsets = [0, 16], sizes = [24, 8], strides = [1, 1]} : vector<24x96xbf16> to vector<24x8xbf16>
    %669 = vector.extract_strided_slice %627 {offsets = [0, 48], sizes = [24, 8], strides = [1, 1]} : vector<24x96xbf16> to vector<24x8xbf16>
    %670 = vector.extract_strided_slice %627 {offsets = [0, 80], sizes = [24, 8], strides = [1, 1]} : vector<24x96xbf16> to vector<24x8xbf16>
    %cst_222 = arith.constant dense<0.000000e+00> : vector<24x24xf32>
    %671 = tpu.matmul %668, %669, %cst_222 {dimension_numbers = #tpu.dot_dimension_numbers<[1], [1], [0], [0], [0, 0, 1, 0], [], []>} : vector<24x8xbf16>, vector<24x8xbf16>, vector<24x24xf32> -> vector<24x24xf32>
    %cst_223 = arith.constant 0.353553385 : f32
    %672 = vector.broadcast %cst_223 : f32 to vector<24x24xf32>
    %673 = arith.mulf %671, %672 : vector<24x24xf32>
    %674 = vector.broadcast %531 : vector<1x24xf32> to vector<24x24xf32>
    %675 = arith.addf %673, %674 : vector<24x24xf32>
    %cst_224 = arith.constant dense<0xFF800000> : vector<24xf32>
    %676 = vector.multi_reduction <maximumf>, %675, %cst_224 [1] : vector<24x24xf32> to vector<24xf32>
    %677 = vector.shape_cast %676 : vector<24xf32> to vector<24x1xf32>
    %678 = vector.broadcast %677 : vector<24x1xf32> to vector<24x24xf32>
    %679 = arith.subf %675, %678 : vector<24x24xf32>
    %680 = math.exp %679 : vector<24x24xf32>
    %cst_225 = arith.constant dense<0.000000e+00> : vector<24xf32>
    %681 = vector.multi_reduction <add>, %680, %cst_225 [1] : vector<24x24xf32> to vector<24xf32>
    %682 = vector.shape_cast %681 : vector<24xf32> to vector<24x1xf32>
    %683 = tpu.reciprocal %682 {approx = true} : vector<24x1xf32> -> vector<24x1xf32>
    %684 = vector.broadcast %683 : vector<24x1xf32> to vector<24x24xf32>
    %685 = arith.mulf %680, %684 : vector<24x24xf32>
    %686 = arith.truncf %685 : vector<24x24xf32> to vector<24x24xbf16>
    %cst_226 = arith.constant dense<0.000000e+00> : vector<24x8xf32>
    %687 = tpu.matmul %686, %670, %cst_226 {dimension_numbers = #tpu.dot_dimension_numbers<[1], [0], [0], [1], [0, 0, 1, 1], [], []>} : vector<24x24xbf16>, vector<24x8xbf16>, vector<24x8xf32> -> vector<24x8xf32>
    %688 = vector.extract_strided_slice %627 {offsets = [0, 24], sizes = [24, 8], strides = [1, 1]} : vector<24x96xbf16> to vector<24x8xbf16>
    %689 = vector.extract_strided_slice %627 {offsets = [0, 56], sizes = [24, 8], strides = [1, 1]} : vector<24x96xbf16> to vector<24x8xbf16>
    %690 = vector.extract_strided_slice %627 {offsets = [0, 88], sizes = [24, 8], strides = [1, 1]} : vector<24x96xbf16> to vector<24x8xbf16>
    %cst_227 = arith.constant dense<0.000000e+00> : vector<24x24xf32>
    %691 = tpu.matmul %688, %689, %cst_227 {dimension_numbers = #tpu.dot_dimension_numbers<[1], [1], [0], [0], [0, 0, 1, 0], [], []>} : vector<24x8xbf16>, vector<24x8xbf16>, vector<24x24xf32> -> vector<24x24xf32>
    %cst_228 = arith.constant 0.353553385 : f32
    %692 = vector.broadcast %cst_228 : f32 to vector<24x24xf32>
    %693 = arith.mulf %691, %692 : vector<24x24xf32>
    %694 = vector.broadcast %531 : vector<1x24xf32> to vector<24x24xf32>
    %695 = arith.addf %693, %694 : vector<24x24xf32>
    %cst_229 = arith.constant dense<0xFF800000> : vector<24xf32>
    %696 = vector.multi_reduction <maximumf>, %695, %cst_229 [1] : vector<24x24xf32> to vector<24xf32>
    %697 = vector.shape_cast %696 : vector<24xf32> to vector<24x1xf32>
    %698 = vector.broadcast %697 : vector<24x1xf32> to vector<24x24xf32>
    %699 = arith.subf %695, %698 : vector<24x24xf32>
    %700 = math.exp %699 : vector<24x24xf32>
    %cst_230 = arith.constant dense<0.000000e+00> : vector<24xf32>
    %701 = vector.multi_reduction <add>, %700, %cst_230 [1] : vector<24x24xf32> to vector<24xf32>
    %702 = vector.shape_cast %701 : vector<24xf32> to vector<24x1xf32>
    %703 = tpu.reciprocal %702 {approx = true} : vector<24x1xf32> -> vector<24x1xf32>
    %704 = vector.broadcast %703 : vector<24x1xf32> to vector<24x24xf32>
    %705 = arith.mulf %700, %704 : vector<24x24xf32>
    %706 = arith.truncf %705 : vector<24x24xf32> to vector<24x24xbf16>
    %cst_231 = arith.constant dense<0.000000e+00> : vector<24x8xf32>
    %707 = tpu.matmul %706, %690, %cst_231 {dimension_numbers = #tpu.dot_dimension_numbers<[1], [0], [0], [1], [0, 0, 1, 1], [], []>} : vector<24x24xbf16>, vector<24x8xbf16>, vector<24x8xf32> -> vector<24x8xf32>
    %708 = tpu.concatenate %647, %667, %687, %707 in 1 : vector<24x8xf32>, vector<24x8xf32>, vector<24x8xf32>, vector<24x8xf32> -> vector<24x32xf32>
    %709 = tpu.concatenate %626, %708 in 0 : vector<24x32xf32>, vector<24x32xf32> -> vector<48x32xf32>
    %710 = arith.truncf %709 : vector<48x32xf32> to vector<48x32xbf16>
    %cst_232 = arith.constant dense<0.000000e+00> : vector<48x32xf32>
    %711 = tpu.matmul %710, %537, %cst_232 {dimension_numbers = #tpu.dot_dimension_numbers<[1], [0], [0], [1], [0, 0, 1, 1], [], []>} : vector<48x32xbf16>, vector<32x32xbf16>, vector<48x32xf32> -> vector<48x32xf32>
    %712 = vector.broadcast %539 : vector<1x32xf32> to vector<48x32xf32>
    %713 = arith.addf %711, %712 : vector<48x32xf32>
    %c0_233 = arith.constant 0 : index
    %c0_234 = arith.constant 0 : index
    %c0_235 = arith.constant 0 : index
    %714 = vector.load %arg22[%c0_233, %c0_234, %c0_235] : memref<2x4x32xf32, #tpu.memory_space<vmem>>, vector<1x4x32xf32>
    %715 = vector.shape_cast %714 : vector<1x4x32xf32> to vector<4x32xf32>
    %716 = vector.extract_strided_slice %715 {offsets = [0, 0], sizes = [1, 32], strides = [1, 1]} : vector<4x32xf32> to vector<1x32xf32>
    %717 = vector.extract_strided_slice %715 {offsets = [1, 0], sizes = [1, 32], strides = [1, 1]} : vector<4x32xf32> to vector<1x32xf32>
    %718 = arith.addf %713, %530 : vector<48x32xf32>
    %cst_236 = arith.constant dense<0.000000e+00> : vector<48xf32>
    %719 = vector.multi_reduction <add>, %718, %cst_236 [1] : vector<48x32xf32> to vector<48xf32>
    %720 = vector.shape_cast %719 : vector<48xf32> to vector<48x1xf32>
    %cst_237 = arith.constant 3.200000e+01 : f32
    %721 = vector.broadcast %cst_237 : f32 to vector<48x1xf32>
    %722 = arith.divf %720, %721 : vector<48x1xf32>
    %723 = vector.broadcast %722 : vector<48x1xf32> to vector<48x32xf32>
    %724 = arith.subf %718, %723 : vector<48x32xf32>
    %725 = arith.mulf %724, %724 : vector<48x32xf32>
    %cst_238 = arith.constant dense<0.000000e+00> : vector<48xf32>
    %726 = vector.multi_reduction <add>, %725, %cst_238 [1] : vector<48x32xf32> to vector<48xf32>
    %727 = vector.shape_cast %726 : vector<48xf32> to vector<48x1xf32>
    %cst_239 = arith.constant 3.200000e+01 : f32
    %728 = vector.broadcast %cst_239 : f32 to vector<48x1xf32>
    %729 = arith.divf %727, %728 : vector<48x1xf32>
    %cst_240 = arith.constant 9.99999974E-6 : f32
    %730 = vector.broadcast %cst_240 : f32 to vector<48x1xf32>
    %731 = arith.addf %729, %730 : vector<48x1xf32>
    %732 = math.rsqrt %731 : vector<48x1xf32>
    %733 = vector.broadcast %732 : vector<48x1xf32> to vector<48x32xf32>
    %734 = arith.mulf %724, %733 : vector<48x32xf32>
    %735 = vector.broadcast %716 : vector<1x32xf32> to vector<48x32xf32>
    %736 = arith.mulf %734, %735 : vector<48x32xf32>
    %737 = vector.broadcast %717 : vector<1x32xf32> to vector<48x32xf32>
    %738 = arith.addf %736, %737 : vector<48x32xf32>
    %c0_241 = arith.constant 0 : index
    %c0_242 = arith.constant 0 : index
    %c0_243 = arith.constant 0 : index
    %739 = vector.load %arg23[%c0_241, %c0_242, %c0_243] : memref<2x32x64xbf16, #tpu.memory_space<vmem>>, vector<1x32x64xbf16>
    %740 = vector.shape_cast %739 : vector<1x32x64xbf16> to vector<32x64xbf16>
    %741 = arith.truncf %738 : vector<48x32xf32> to vector<48x32xbf16>
    %cst_244 = arith.constant dense<0.000000e+00> : vector<48x64xf32>
    %742 = tpu.matmul %741, %740, %cst_244 {dimension_numbers = #tpu.dot_dimension_numbers<[1], [0], [0], [1], [0, 0, 1, 1], [], []>} : vector<48x32xbf16>, vector<32x64xbf16>, vector<48x64xf32> -> vector<48x64xf32>
    %c0_245 = arith.constant 0 : index
    %c0_246 = arith.constant 0 : index
    %c0_247 = arith.constant 0 : index
    %743 = vector.load %arg24[%c0_245, %c0_246, %c0_247] : memref<2x1x64xf32, #tpu.memory_space<vmem>>, vector<1x1x64xf32>
    %744 = vector.shape_cast %743 : vector<1x1x64xf32> to vector<1x64xf32>
    %745 = vector.broadcast %744 : vector<1x64xf32> to vector<48x64xf32>
    %746 = arith.addf %742, %745 : vector<48x64xf32>
    %cst_248 = arith.constant 0.000000e+00 : f32
    %747 = vector.broadcast %cst_248 : f32 to vector<48x64xf32>
    %748 = arith.maximumf %746, %747 : vector<48x64xf32>
    %c0_249 = arith.constant 0 : index
    %c0_250 = arith.constant 0 : index
    %c0_251 = arith.constant 0 : index
    %749 = vector.load %arg25[%c0_249, %c0_250, %c0_251] : memref<2x64x32xbf16, #tpu.memory_space<vmem>>, vector<1x64x32xbf16>
    %750 = vector.shape_cast %749 : vector<1x64x32xbf16> to vector<64x32xbf16>
    %751 = arith.truncf %748 : vector<48x64xf32> to vector<48x64xbf16>
    %cst_252 = arith.constant dense<0.000000e+00> : vector<48x32xf32>
    %752 = tpu.matmul %751, %750, %cst_252 {dimension_numbers = #tpu.dot_dimension_numbers<[1], [0], [0], [1], [0, 0, 1, 1], [], []>} : vector<48x64xbf16>, vector<64x32xbf16>, vector<48x32xf32> -> vector<48x32xf32>
    %c0_253 = arith.constant 0 : index
    %c0_254 = arith.constant 0 : index
    %c0_255 = arith.constant 0 : index
    %753 = vector.load %arg26[%c0_253, %c0_254, %c0_255] : memref<2x1x32xf32, #tpu.memory_space<vmem>>, vector<1x1x32xf32>
    %754 = vector.shape_cast %753 : vector<1x1x32xf32> to vector<1x32xf32>
    %755 = vector.broadcast %754 : vector<1x32xf32> to vector<48x32xf32>
    %756 = arith.addf %752, %755 : vector<48x32xf32>
    %757 = vector.extract_strided_slice %715 {offsets = [2, 0], sizes = [1, 32], strides = [1, 1]} : vector<4x32xf32> to vector<1x32xf32>
    %758 = vector.extract_strided_slice %715 {offsets = [3, 0], sizes = [1, 32], strides = [1, 1]} : vector<4x32xf32> to vector<1x32xf32>
    %759 = arith.addf %756, %738 : vector<48x32xf32>
    %cst_256 = arith.constant dense<0.000000e+00> : vector<48xf32>
    %760 = vector.multi_reduction <add>, %759, %cst_256 [1] : vector<48x32xf32> to vector<48xf32>
    %761 = vector.shape_cast %760 : vector<48xf32> to vector<48x1xf32>
    %cst_257 = arith.constant 3.200000e+01 : f32
    %762 = vector.broadcast %cst_257 : f32 to vector<48x1xf32>
    %763 = arith.divf %761, %762 : vector<48x1xf32>
    %764 = vector.broadcast %763 : vector<48x1xf32> to vector<48x32xf32>
    %765 = arith.subf %759, %764 : vector<48x32xf32>
    %766 = arith.mulf %765, %765 : vector<48x32xf32>
    %cst_258 = arith.constant dense<0.000000e+00> : vector<48xf32>
    %767 = vector.multi_reduction <add>, %766, %cst_258 [1] : vector<48x32xf32> to vector<48xf32>
    %768 = vector.shape_cast %767 : vector<48xf32> to vector<48x1xf32>
    %cst_259 = arith.constant 3.200000e+01 : f32
    %769 = vector.broadcast %cst_259 : f32 to vector<48x1xf32>
    %770 = arith.divf %768, %769 : vector<48x1xf32>
    %cst_260 = arith.constant 9.99999974E-6 : f32
    %771 = vector.broadcast %cst_260 : f32 to vector<48x1xf32>
    %772 = arith.addf %770, %771 : vector<48x1xf32>
    %773 = math.rsqrt %772 : vector<48x1xf32>
    %774 = vector.broadcast %773 : vector<48x1xf32> to vector<48x32xf32>
    %775 = arith.mulf %765, %774 : vector<48x32xf32>
    %776 = vector.broadcast %757 : vector<1x32xf32> to vector<48x32xf32>
    %777 = arith.mulf %775, %776 : vector<48x32xf32>
    %778 = vector.broadcast %758 : vector<1x32xf32> to vector<48x32xf32>
    %779 = arith.addf %777, %778 : vector<48x32xf32>
    %c1_261 = arith.constant 1 : index
    %c0_262 = arith.constant 0 : index
    %c0_263 = arith.constant 0 : index
    %780 = vector.load %arg18[%c1_261, %c0_262, %c0_263] : memref<2x32x96xbf16, #tpu.memory_space<vmem>>, vector<1x32x96xbf16>
    %781 = vector.shape_cast %780 : vector<1x32x96xbf16> to vector<32x96xbf16>
    %c1_264 = arith.constant 1 : index
    %c0_265 = arith.constant 0 : index
    %c0_266 = arith.constant 0 : index
    %782 = vector.load %arg19[%c1_264, %c0_265, %c0_266] : memref<2x1x96xf32, #tpu.memory_space<vmem>>, vector<1x1x96xf32>
    %783 = vector.shape_cast %782 : vector<1x1x96xf32> to vector<1x96xf32>
    %c1_267 = arith.constant 1 : index
    %c0_268 = arith.constant 0 : index
    %c0_269 = arith.constant 0 : index
    %784 = vector.load %arg20[%c1_267, %c0_268, %c0_269] : memref<2x32x32xbf16, #tpu.memory_space<vmem>>, vector<1x32x32xbf16>
    %785 = vector.shape_cast %784 : vector<1x32x32xbf16> to vector<32x32xbf16>
    %c1_270 = arith.constant 1 : index
    %c0_271 = arith.constant 0 : index
    %c0_272 = arith.constant 0 : index
    %786 = vector.load %arg21[%c1_270, %c0_271, %c0_272] : memref<2x1x32xf32, #tpu.memory_space<vmem>>, vector<1x1x32xf32>
    %787 = vector.shape_cast %786 : vector<1x1x32xf32> to vector<1x32xf32>
    %788 = arith.truncf %779 : vector<48x32xf32> to vector<48x32xbf16>
    %cst_273 = arith.constant dense<0.000000e+00> : vector<48x96xf32>
    %789 = tpu.matmul %788, %781, %cst_273 {dimension_numbers = #tpu.dot_dimension_numbers<[1], [0], [0], [1], [0, 0, 1, 1], [], []>} : vector<48x32xbf16>, vector<32x96xbf16>, vector<48x96xf32> -> vector<48x96xf32>
    %790 = vector.broadcast %783 : vector<1x96xf32> to vector<48x96xf32>
    %791 = arith.addf %789, %790 : vector<48x96xf32>
    %792 = arith.truncf %791 : vector<48x96xf32> to vector<48x96xbf16>
    %793 = vector.extract_strided_slice %792 {offsets = [0, 0], sizes = [24, 96], strides = [1, 1]} : vector<48x96xbf16> to vector<24x96xbf16>
    %794 = vector.extract_strided_slice %793 {offsets = [0, 0], sizes = [24, 8], strides = [1, 1]} : vector<24x96xbf16> to vector<24x8xbf16>
    %795 = vector.extract_strided_slice %793 {offsets = [0, 32], sizes = [24, 8], strides = [1, 1]} : vector<24x96xbf16> to vector<24x8xbf16>
    %796 = vector.extract_strided_slice %793 {offsets = [0, 64], sizes = [24, 8], strides = [1, 1]} : vector<24x96xbf16> to vector<24x8xbf16>
    %cst_274 = arith.constant dense<0.000000e+00> : vector<24x24xf32>
    %797 = tpu.matmul %794, %795, %cst_274 {dimension_numbers = #tpu.dot_dimension_numbers<[1], [1], [0], [0], [0, 0, 1, 0], [], []>} : vector<24x8xbf16>, vector<24x8xbf16>, vector<24x24xf32> -> vector<24x24xf32>
    %cst_275 = arith.constant 0.353553385 : f32
    %798 = vector.broadcast %cst_275 : f32 to vector<24x24xf32>
    %799 = arith.mulf %797, %798 : vector<24x24xf32>
    %800 = vector.broadcast %531 : vector<1x24xf32> to vector<24x24xf32>
    %801 = arith.addf %799, %800 : vector<24x24xf32>
    %cst_276 = arith.constant dense<0xFF800000> : vector<24xf32>
    %802 = vector.multi_reduction <maximumf>, %801, %cst_276 [1] : vector<24x24xf32> to vector<24xf32>
    %803 = vector.shape_cast %802 : vector<24xf32> to vector<24x1xf32>
    %804 = vector.broadcast %803 : vector<24x1xf32> to vector<24x24xf32>
    %805 = arith.subf %801, %804 : vector<24x24xf32>
    %806 = math.exp %805 : vector<24x24xf32>
    %cst_277 = arith.constant dense<0.000000e+00> : vector<24xf32>
    %807 = vector.multi_reduction <add>, %806, %cst_277 [1] : vector<24x24xf32> to vector<24xf32>
    %808 = vector.shape_cast %807 : vector<24xf32> to vector<24x1xf32>
    %809 = tpu.reciprocal %808 {approx = true} : vector<24x1xf32> -> vector<24x1xf32>
    %810 = vector.broadcast %809 : vector<24x1xf32> to vector<24x24xf32>
    %811 = arith.mulf %806, %810 : vector<24x24xf32>
    %812 = arith.truncf %811 : vector<24x24xf32> to vector<24x24xbf16>
    %cst_278 = arith.constant dense<0.000000e+00> : vector<24x8xf32>
    %813 = tpu.matmul %812, %796, %cst_278 {dimension_numbers = #tpu.dot_dimension_numbers<[1], [0], [0], [1], [0, 0, 1, 1], [], []>} : vector<24x24xbf16>, vector<24x8xbf16>, vector<24x8xf32> -> vector<24x8xf32>
    %814 = vector.extract_strided_slice %793 {offsets = [0, 8], sizes = [24, 8], strides = [1, 1]} : vector<24x96xbf16> to vector<24x8xbf16>
    %815 = vector.extract_strided_slice %793 {offsets = [0, 40], sizes = [24, 8], strides = [1, 1]} : vector<24x96xbf16> to vector<24x8xbf16>
    %816 = vector.extract_strided_slice %793 {offsets = [0, 72], sizes = [24, 8], strides = [1, 1]} : vector<24x96xbf16> to vector<24x8xbf16>
    %cst_279 = arith.constant dense<0.000000e+00> : vector<24x24xf32>
    %817 = tpu.matmul %814, %815, %cst_279 {dimension_numbers = #tpu.dot_dimension_numbers<[1], [1], [0], [0], [0, 0, 1, 0], [], []>} : vector<24x8xbf16>, vector<24x8xbf16>, vector<24x24xf32> -> vector<24x24xf32>
    %cst_280 = arith.constant 0.353553385 : f32
    %818 = vector.broadcast %cst_280 : f32 to vector<24x24xf32>
    %819 = arith.mulf %817, %818 : vector<24x24xf32>
    %820 = vector.broadcast %531 : vector<1x24xf32> to vector<24x24xf32>
    %821 = arith.addf %819, %820 : vector<24x24xf32>
    %cst_281 = arith.constant dense<0xFF800000> : vector<24xf32>
    %822 = vector.multi_reduction <maximumf>, %821, %cst_281 [1] : vector<24x24xf32> to vector<24xf32>
    %823 = vector.shape_cast %822 : vector<24xf32> to vector<24x1xf32>
    %824 = vector.broadcast %823 : vector<24x1xf32> to vector<24x24xf32>
    %825 = arith.subf %821, %824 : vector<24x24xf32>
    %826 = math.exp %825 : vector<24x24xf32>
    %cst_282 = arith.constant dense<0.000000e+00> : vector<24xf32>
    %827 = vector.multi_reduction <add>, %826, %cst_282 [1] : vector<24x24xf32> to vector<24xf32>
    %828 = vector.shape_cast %827 : vector<24xf32> to vector<24x1xf32>
    %829 = tpu.reciprocal %828 {approx = true} : vector<24x1xf32> -> vector<24x1xf32>
    %830 = vector.broadcast %829 : vector<24x1xf32> to vector<24x24xf32>
    %831 = arith.mulf %826, %830 : vector<24x24xf32>
    %832 = arith.truncf %831 : vector<24x24xf32> to vector<24x24xbf16>
    %cst_283 = arith.constant dense<0.000000e+00> : vector<24x8xf32>
    %833 = tpu.matmul %832, %816, %cst_283 {dimension_numbers = #tpu.dot_dimension_numbers<[1], [0], [0], [1], [0, 0, 1, 1], [], []>} : vector<24x24xbf16>, vector<24x8xbf16>, vector<24x8xf32> -> vector<24x8xf32>
    %834 = vector.extract_strided_slice %793 {offsets = [0, 16], sizes = [24, 8], strides = [1, 1]} : vector<24x96xbf16> to vector<24x8xbf16>
    %835 = vector.extract_strided_slice %793 {offsets = [0, 48], sizes = [24, 8], strides = [1, 1]} : vector<24x96xbf16> to vector<24x8xbf16>
    %836 = vector.extract_strided_slice %793 {offsets = [0, 80], sizes = [24, 8], strides = [1, 1]} : vector<24x96xbf16> to vector<24x8xbf16>
    %cst_284 = arith.constant dense<0.000000e+00> : vector<24x24xf32>
    %837 = tpu.matmul %834, %835, %cst_284 {dimension_numbers = #tpu.dot_dimension_numbers<[1], [1], [0], [0], [0, 0, 1, 0], [], []>} : vector<24x8xbf16>, vector<24x8xbf16>, vector<24x24xf32> -> vector<24x24xf32>
    %cst_285 = arith.constant 0.353553385 : f32
    %838 = vector.broadcast %cst_285 : f32 to vector<24x24xf32>
    %839 = arith.mulf %837, %838 : vector<24x24xf32>
    %840 = vector.broadcast %531 : vector<1x24xf32> to vector<24x24xf32>
    %841 = arith.addf %839, %840 : vector<24x24xf32>
    %cst_286 = arith.constant dense<0xFF800000> : vector<24xf32>
    %842 = vector.multi_reduction <maximumf>, %841, %cst_286 [1] : vector<24x24xf32> to vector<24xf32>
    %843 = vector.shape_cast %842 : vector<24xf32> to vector<24x1xf32>
    %844 = vector.broadcast %843 : vector<24x1xf32> to vector<24x24xf32>
    %845 = arith.subf %841, %844 : vector<24x24xf32>
    %846 = math.exp %845 : vector<24x24xf32>
    %cst_287 = arith.constant dense<0.000000e+00> : vector<24xf32>
    %847 = vector.multi_reduction <add>, %846, %cst_287 [1] : vector<24x24xf32> to vector<24xf32>
    %848 = vector.shape_cast %847 : vector<24xf32> to vector<24x1xf32>
    %849 = tpu.reciprocal %848 {approx = true} : vector<24x1xf32> -> vector<24x1xf32>
    %850 = vector.broadcast %849 : vector<24x1xf32> to vector<24x24xf32>
    %851 = arith.mulf %846, %850 : vector<24x24xf32>
    %852 = arith.truncf %851 : vector<24x24xf32> to vector<24x24xbf16>
    %cst_288 = arith.constant dense<0.000000e+00> : vector<24x8xf32>
    %853 = tpu.matmul %852, %836, %cst_288 {dimension_numbers = #tpu.dot_dimension_numbers<[1], [0], [0], [1], [0, 0, 1, 1], [], []>} : vector<24x24xbf16>, vector<24x8xbf16>, vector<24x8xf32> -> vector<24x8xf32>
    %854 = vector.extract_strided_slice %793 {offsets = [0, 24], sizes = [24, 8], strides = [1, 1]} : vector<24x96xbf16> to vector<24x8xbf16>
    %855 = vector.extract_strided_slice %793 {offsets = [0, 56], sizes = [24, 8], strides = [1, 1]} : vector<24x96xbf16> to vector<24x8xbf16>
    %856 = vector.extract_strided_slice %793 {offsets = [0, 88], sizes = [24, 8], strides = [1, 1]} : vector<24x96xbf16> to vector<24x8xbf16>
    %cst_289 = arith.constant dense<0.000000e+00> : vector<24x24xf32>
    %857 = tpu.matmul %854, %855, %cst_289 {dimension_numbers = #tpu.dot_dimension_numbers<[1], [1], [0], [0], [0, 0, 1, 0], [], []>} : vector<24x8xbf16>, vector<24x8xbf16>, vector<24x24xf32> -> vector<24x24xf32>
    %cst_290 = arith.constant 0.353553385 : f32
    %858 = vector.broadcast %cst_290 : f32 to vector<24x24xf32>
    %859 = arith.mulf %857, %858 : vector<24x24xf32>
    %860 = vector.broadcast %531 : vector<1x24xf32> to vector<24x24xf32>
    %861 = arith.addf %859, %860 : vector<24x24xf32>
    %cst_291 = arith.constant dense<0xFF800000> : vector<24xf32>
    %862 = vector.multi_reduction <maximumf>, %861, %cst_291 [1] : vector<24x24xf32> to vector<24xf32>
    %863 = vector.shape_cast %862 : vector<24xf32> to vector<24x1xf32>
    %864 = vector.broadcast %863 : vector<24x1xf32> to vector<24x24xf32>
    %865 = arith.subf %861, %864 : vector<24x24xf32>
    %866 = math.exp %865 : vector<24x24xf32>
    %cst_292 = arith.constant dense<0.000000e+00> : vector<24xf32>
    %867 = vector.multi_reduction <add>, %866, %cst_292 [1] : vector<24x24xf32> to vector<24xf32>
    %868 = vector.shape_cast %867 : vector<24xf32> to vector<24x1xf32>
    %869 = tpu.reciprocal %868 {approx = true} : vector<24x1xf32> -> vector<24x1xf32>
    %870 = vector.broadcast %869 : vector<24x1xf32> to vector<24x24xf32>
    %871 = arith.mulf %866, %870 : vector<24x24xf32>
    %872 = arith.truncf %871 : vector<24x24xf32> to vector<24x24xbf16>
    %cst_293 = arith.constant dense<0.000000e+00> : vector<24x8xf32>
    %873 = tpu.matmul %872, %856, %cst_293 {dimension_numbers = #tpu.dot_dimension_numbers<[1], [0], [0], [1], [0, 0, 1, 1], [], []>} : vector<24x24xbf16>, vector<24x8xbf16>, vector<24x8xf32> -> vector<24x8xf32>
    %874 = tpu.concatenate %813, %833, %853, %873 in 1 : vector<24x8xf32>, vector<24x8xf32>, vector<24x8xf32>, vector<24x8xf32> -> vector<24x32xf32>
    %875 = vector.extract_strided_slice %792 {offsets = [24, 0], sizes = [24, 96], strides = [1, 1]} : vector<48x96xbf16> to vector<24x96xbf16>
    %876 = vector.extract_strided_slice %875 {offsets = [0, 0], sizes = [24, 8], strides = [1, 1]} : vector<24x96xbf16> to vector<24x8xbf16>
    %877 = vector.extract_strided_slice %875 {offsets = [0, 32], sizes = [24, 8], strides = [1, 1]} : vector<24x96xbf16> to vector<24x8xbf16>
    %878 = vector.extract_strided_slice %875 {offsets = [0, 64], sizes = [24, 8], strides = [1, 1]} : vector<24x96xbf16> to vector<24x8xbf16>
    %cst_294 = arith.constant dense<0.000000e+00> : vector<24x24xf32>
    %879 = tpu.matmul %876, %877, %cst_294 {dimension_numbers = #tpu.dot_dimension_numbers<[1], [1], [0], [0], [0, 0, 1, 0], [], []>} : vector<24x8xbf16>, vector<24x8xbf16>, vector<24x24xf32> -> vector<24x24xf32>
    %cst_295 = arith.constant 0.353553385 : f32
    %880 = vector.broadcast %cst_295 : f32 to vector<24x24xf32>
    %881 = arith.mulf %879, %880 : vector<24x24xf32>
    %882 = vector.broadcast %531 : vector<1x24xf32> to vector<24x24xf32>
    %883 = arith.addf %881, %882 : vector<24x24xf32>
    %cst_296 = arith.constant dense<0xFF800000> : vector<24xf32>
    %884 = vector.multi_reduction <maximumf>, %883, %cst_296 [1] : vector<24x24xf32> to vector<24xf32>
    %885 = vector.shape_cast %884 : vector<24xf32> to vector<24x1xf32>
    %886 = vector.broadcast %885 : vector<24x1xf32> to vector<24x24xf32>
    %887 = arith.subf %883, %886 : vector<24x24xf32>
    %888 = math.exp %887 : vector<24x24xf32>
    %cst_297 = arith.constant dense<0.000000e+00> : vector<24xf32>
    %889 = vector.multi_reduction <add>, %888, %cst_297 [1] : vector<24x24xf32> to vector<24xf32>
    %890 = vector.shape_cast %889 : vector<24xf32> to vector<24x1xf32>
    %891 = tpu.reciprocal %890 {approx = true} : vector<24x1xf32> -> vector<24x1xf32>
    %892 = vector.broadcast %891 : vector<24x1xf32> to vector<24x24xf32>
    %893 = arith.mulf %888, %892 : vector<24x24xf32>
    %894 = arith.truncf %893 : vector<24x24xf32> to vector<24x24xbf16>
    %cst_298 = arith.constant dense<0.000000e+00> : vector<24x8xf32>
    %895 = tpu.matmul %894, %878, %cst_298 {dimension_numbers = #tpu.dot_dimension_numbers<[1], [0], [0], [1], [0, 0, 1, 1], [], []>} : vector<24x24xbf16>, vector<24x8xbf16>, vector<24x8xf32> -> vector<24x8xf32>
    %896 = vector.extract_strided_slice %875 {offsets = [0, 8], sizes = [24, 8], strides = [1, 1]} : vector<24x96xbf16> to vector<24x8xbf16>
    %897 = vector.extract_strided_slice %875 {offsets = [0, 40], sizes = [24, 8], strides = [1, 1]} : vector<24x96xbf16> to vector<24x8xbf16>
    %898 = vector.extract_strided_slice %875 {offsets = [0, 72], sizes = [24, 8], strides = [1, 1]} : vector<24x96xbf16> to vector<24x8xbf16>
    %cst_299 = arith.constant dense<0.000000e+00> : vector<24x24xf32>
    %899 = tpu.matmul %896, %897, %cst_299 {dimension_numbers = #tpu.dot_dimension_numbers<[1], [1], [0], [0], [0, 0, 1, 0], [], []>} : vector<24x8xbf16>, vector<24x8xbf16>, vector<24x24xf32> -> vector<24x24xf32>
    %cst_300 = arith.constant 0.353553385 : f32
    %900 = vector.broadcast %cst_300 : f32 to vector<24x24xf32>
    %901 = arith.mulf %899, %900 : vector<24x24xf32>
    %902 = vector.broadcast %531 : vector<1x24xf32> to vector<24x24xf32>
    %903 = arith.addf %901, %902 : vector<24x24xf32>
    %cst_301 = arith.constant dense<0xFF800000> : vector<24xf32>
    %904 = vector.multi_reduction <maximumf>, %903, %cst_301 [1] : vector<24x24xf32> to vector<24xf32>
    %905 = vector.shape_cast %904 : vector<24xf32> to vector<24x1xf32>
    %906 = vector.broadcast %905 : vector<24x1xf32> to vector<24x24xf32>
    %907 = arith.subf %903, %906 : vector<24x24xf32>
    %908 = math.exp %907 : vector<24x24xf32>
    %cst_302 = arith.constant dense<0.000000e+00> : vector<24xf32>
    %909 = vector.multi_reduction <add>, %908, %cst_302 [1] : vector<24x24xf32> to vector<24xf32>
    %910 = vector.shape_cast %909 : vector<24xf32> to vector<24x1xf32>
    %911 = tpu.reciprocal %910 {approx = true} : vector<24x1xf32> -> vector<24x1xf32>
    %912 = vector.broadcast %911 : vector<24x1xf32> to vector<24x24xf32>
    %913 = arith.mulf %908, %912 : vector<24x24xf32>
    %914 = arith.truncf %913 : vector<24x24xf32> to vector<24x24xbf16>
    %cst_303 = arith.constant dense<0.000000e+00> : vector<24x8xf32>
    %915 = tpu.matmul %914, %898, %cst_303 {dimension_numbers = #tpu.dot_dimension_numbers<[1], [0], [0], [1], [0, 0, 1, 1], [], []>} : vector<24x24xbf16>, vector<24x8xbf16>, vector<24x8xf32> -> vector<24x8xf32>
    %916 = vector.extract_strided_slice %875 {offsets = [0, 16], sizes = [24, 8], strides = [1, 1]} : vector<24x96xbf16> to vector<24x8xbf16>
    %917 = vector.extract_strided_slice %875 {offsets = [0, 48], sizes = [24, 8], strides = [1, 1]} : vector<24x96xbf16> to vector<24x8xbf16>
    %918 = vector.extract_strided_slice %875 {offsets = [0, 80], sizes = [24, 8], strides = [1, 1]} : vector<24x96xbf16> to vector<24x8xbf16>
    %cst_304 = arith.constant dense<0.000000e+00> : vector<24x24xf32>
    %919 = tpu.matmul %916, %917, %cst_304 {dimension_numbers = #tpu.dot_dimension_numbers<[1], [1], [0], [0], [0, 0, 1, 0], [], []>} : vector<24x8xbf16>, vector<24x8xbf16>, vector<24x24xf32> -> vector<24x24xf32>
    %cst_305 = arith.constant 0.353553385 : f32
    %920 = vector.broadcast %cst_305 : f32 to vector<24x24xf32>
    %921 = arith.mulf %919, %920 : vector<24x24xf32>
    %922 = vector.broadcast %531 : vector<1x24xf32> to vector<24x24xf32>
    %923 = arith.addf %921, %922 : vector<24x24xf32>
    %cst_306 = arith.constant dense<0xFF800000> : vector<24xf32>
    %924 = vector.multi_reduction <maximumf>, %923, %cst_306 [1] : vector<24x24xf32> to vector<24xf32>
    %925 = vector.shape_cast %924 : vector<24xf32> to vector<24x1xf32>
    %926 = vector.broadcast %925 : vector<24x1xf32> to vector<24x24xf32>
    %927 = arith.subf %923, %926 : vector<24x24xf32>
    %928 = math.exp %927 : vector<24x24xf32>
    %cst_307 = arith.constant dense<0.000000e+00> : vector<24xf32>
    %929 = vector.multi_reduction <add>, %928, %cst_307 [1] : vector<24x24xf32> to vector<24xf32>
    %930 = vector.shape_cast %929 : vector<24xf32> to vector<24x1xf32>
    %931 = tpu.reciprocal %930 {approx = true} : vector<24x1xf32> -> vector<24x1xf32>
    %932 = vector.broadcast %931 : vector<24x1xf32> to vector<24x24xf32>
    %933 = arith.mulf %928, %932 : vector<24x24xf32>
    %934 = arith.truncf %933 : vector<24x24xf32> to vector<24x24xbf16>
    %cst_308 = arith.constant dense<0.000000e+00> : vector<24x8xf32>
    %935 = tpu.matmul %934, %918, %cst_308 {dimension_numbers = #tpu.dot_dimension_numbers<[1], [0], [0], [1], [0, 0, 1, 1], [], []>} : vector<24x24xbf16>, vector<24x8xbf16>, vector<24x8xf32> -> vector<24x8xf32>
    %936 = vector.extract_strided_slice %875 {offsets = [0, 24], sizes = [24, 8], strides = [1, 1]} : vector<24x96xbf16> to vector<24x8xbf16>
    %937 = vector.extract_strided_slice %875 {offsets = [0, 56], sizes = [24, 8], strides = [1, 1]} : vector<24x96xbf16> to vector<24x8xbf16>
    %938 = vector.extract_strided_slice %875 {offsets = [0, 88], sizes = [24, 8], strides = [1, 1]} : vector<24x96xbf16> to vector<24x8xbf16>
    %cst_309 = arith.constant dense<0.000000e+00> : vector<24x24xf32>
    %939 = tpu.matmul %936, %937, %cst_309 {dimension_numbers = #tpu.dot_dimension_numbers<[1], [1], [0], [0], [0, 0, 1, 0], [], []>} : vector<24x8xbf16>, vector<24x8xbf16>, vector<24x24xf32> -> vector<24x24xf32>
    %cst_310 = arith.constant 0.353553385 : f32
    %940 = vector.broadcast %cst_310 : f32 to vector<24x24xf32>
    %941 = arith.mulf %939, %940 : vector<24x24xf32>
    %942 = vector.broadcast %531 : vector<1x24xf32> to vector<24x24xf32>
    %943 = arith.addf %941, %942 : vector<24x24xf32>
    %cst_311 = arith.constant dense<0xFF800000> : vector<24xf32>
    %944 = vector.multi_reduction <maximumf>, %943, %cst_311 [1] : vector<24x24xf32> to vector<24xf32>
    %945 = vector.shape_cast %944 : vector<24xf32> to vector<24x1xf32>
    %946 = vector.broadcast %945 : vector<24x1xf32> to vector<24x24xf32>
    %947 = arith.subf %943, %946 : vector<24x24xf32>
    %948 = math.exp %947 : vector<24x24xf32>
    %cst_312 = arith.constant dense<0.000000e+00> : vector<24xf32>
    %949 = vector.multi_reduction <add>, %948, %cst_312 [1] : vector<24x24xf32> to vector<24xf32>
    %950 = vector.shape_cast %949 : vector<24xf32> to vector<24x1xf32>
    %951 = tpu.reciprocal %950 {approx = true} : vector<24x1xf32> -> vector<24x1xf32>
    %952 = vector.broadcast %951 : vector<24x1xf32> to vector<24x24xf32>
    %953 = arith.mulf %948, %952 : vector<24x24xf32>
    %954 = arith.truncf %953 : vector<24x24xf32> to vector<24x24xbf16>
    %cst_313 = arith.constant dense<0.000000e+00> : vector<24x8xf32>
    %955 = tpu.matmul %954, %938, %cst_313 {dimension_numbers = #tpu.dot_dimension_numbers<[1], [0], [0], [1], [0, 0, 1, 1], [], []>} : vector<24x24xbf16>, vector<24x8xbf16>, vector<24x8xf32> -> vector<24x8xf32>
    %956 = tpu.concatenate %895, %915, %935, %955 in 1 : vector<24x8xf32>, vector<24x8xf32>, vector<24x8xf32>, vector<24x8xf32> -> vector<24x32xf32>
    %957 = tpu.concatenate %874, %956 in 0 : vector<24x32xf32>, vector<24x32xf32> -> vector<48x32xf32>
    %958 = arith.truncf %957 : vector<48x32xf32> to vector<48x32xbf16>
    %cst_314 = arith.constant dense<0.000000e+00> : vector<48x32xf32>
    %959 = tpu.matmul %958, %785, %cst_314 {dimension_numbers = #tpu.dot_dimension_numbers<[1], [0], [0], [1], [0, 0, 1, 1], [], []>} : vector<48x32xbf16>, vector<32x32xbf16>, vector<48x32xf32> -> vector<48x32xf32>
    %960 = vector.broadcast %787 : vector<1x32xf32> to vector<48x32xf32>
    %961 = arith.addf %959, %960 : vector<48x32xf32>
    %c1_315 = arith.constant 1 : index
    %c0_316 = arith.constant 0 : index
    %c0_317 = arith.constant 0 : index
    %962 = vector.load %arg22[%c1_315, %c0_316, %c0_317] : memref<2x4x32xf32, #tpu.memory_space<vmem>>, vector<1x4x32xf32>
    %963 = vector.shape_cast %962 : vector<1x4x32xf32> to vector<4x32xf32>
    %964 = vector.extract_strided_slice %963 {offsets = [0, 0], sizes = [1, 32], strides = [1, 1]} : vector<4x32xf32> to vector<1x32xf32>
    %965 = vector.extract_strided_slice %963 {offsets = [1, 0], sizes = [1, 32], strides = [1, 1]} : vector<4x32xf32> to vector<1x32xf32>
    %966 = arith.addf %961, %779 : vector<48x32xf32>
    %cst_318 = arith.constant dense<0.000000e+00> : vector<48xf32>
    %967 = vector.multi_reduction <add>, %966, %cst_318 [1] : vector<48x32xf32> to vector<48xf32>
    %968 = vector.shape_cast %967 : vector<48xf32> to vector<48x1xf32>
    %cst_319 = arith.constant 3.200000e+01 : f32
    %969 = vector.broadcast %cst_319 : f32 to vector<48x1xf32>
    %970 = arith.divf %968, %969 : vector<48x1xf32>
    %971 = vector.broadcast %970 : vector<48x1xf32> to vector<48x32xf32>
    %972 = arith.subf %966, %971 : vector<48x32xf32>
    %973 = arith.mulf %972, %972 : vector<48x32xf32>
    %cst_320 = arith.constant dense<0.000000e+00> : vector<48xf32>
    %974 = vector.multi_reduction <add>, %973, %cst_320 [1] : vector<48x32xf32> to vector<48xf32>
    %975 = vector.shape_cast %974 : vector<48xf32> to vector<48x1xf32>
    %cst_321 = arith.constant 3.200000e+01 : f32
    %976 = vector.broadcast %cst_321 : f32 to vector<48x1xf32>
    %977 = arith.divf %975, %976 : vector<48x1xf32>
    %cst_322 = arith.constant 9.99999974E-6 : f32
    %978 = vector.broadcast %cst_322 : f32 to vector<48x1xf32>
    %979 = arith.addf %977, %978 : vector<48x1xf32>
    %980 = math.rsqrt %979 : vector<48x1xf32>
    %981 = vector.broadcast %980 : vector<48x1xf32> to vector<48x32xf32>
    %982 = arith.mulf %972, %981 : vector<48x32xf32>
    %983 = vector.broadcast %964 : vector<1x32xf32> to vector<48x32xf32>
    %984 = arith.mulf %982, %983 : vector<48x32xf32>
    %985 = vector.broadcast %965 : vector<1x32xf32> to vector<48x32xf32>
    %986 = arith.addf %984, %985 : vector<48x32xf32>
    %c1_323 = arith.constant 1 : index
    %c0_324 = arith.constant 0 : index
    %c0_325 = arith.constant 0 : index
    %987 = vector.load %arg23[%c1_323, %c0_324, %c0_325] : memref<2x32x64xbf16, #tpu.memory_space<vmem>>, vector<1x32x64xbf16>
    %988 = vector.shape_cast %987 : vector<1x32x64xbf16> to vector<32x64xbf16>
    %989 = arith.truncf %986 : vector<48x32xf32> to vector<48x32xbf16>
    %cst_326 = arith.constant dense<0.000000e+00> : vector<48x64xf32>
    %990 = tpu.matmul %989, %988, %cst_326 {dimension_numbers = #tpu.dot_dimension_numbers<[1], [0], [0], [1], [0, 0, 1, 1], [], []>} : vector<48x32xbf16>, vector<32x64xbf16>, vector<48x64xf32> -> vector<48x64xf32>
    %c1_327 = arith.constant 1 : index
    %c0_328 = arith.constant 0 : index
    %c0_329 = arith.constant 0 : index
    %991 = vector.load %arg24[%c1_327, %c0_328, %c0_329] : memref<2x1x64xf32, #tpu.memory_space<vmem>>, vector<1x1x64xf32>
    %992 = vector.shape_cast %991 : vector<1x1x64xf32> to vector<1x64xf32>
    %993 = vector.broadcast %992 : vector<1x64xf32> to vector<48x64xf32>
    %994 = arith.addf %990, %993 : vector<48x64xf32>
    %cst_330 = arith.constant 0.000000e+00 : f32
    %995 = vector.broadcast %cst_330 : f32 to vector<48x64xf32>
    %996 = arith.maximumf %994, %995 : vector<48x64xf32>
    %c1_331 = arith.constant 1 : index
    %c0_332 = arith.constant 0 : index
    %c0_333 = arith.constant 0 : index
    %997 = vector.load %arg25[%c1_331, %c0_332, %c0_333] : memref<2x64x32xbf16, #tpu.memory_space<vmem>>, vector<1x64x32xbf16>
    %998 = vector.shape_cast %997 : vector<1x64x32xbf16> to vector<64x32xbf16>
    %999 = arith.truncf %996 : vector<48x64xf32> to vector<48x64xbf16>
    %cst_334 = arith.constant dense<0.000000e+00> : vector<48x32xf32>
    %1000 = tpu.matmul %999, %998, %cst_334 {dimension_numbers = #tpu.dot_dimension_numbers<[1], [0], [0], [1], [0, 0, 1, 1], [], []>} : vector<48x64xbf16>, vector<64x32xbf16>, vector<48x32xf32> -> vector<48x32xf32>
    %c1_335 = arith.constant 1 : index
    %c0_336 = arith.constant 0 : index
    %c0_337 = arith.constant 0 : index
    %1001 = vector.load %arg26[%c1_335, %c0_336, %c0_337] : memref<2x1x32xf32, #tpu.memory_space<vmem>>, vector<1x1x32xf32>
    %1002 = vector.shape_cast %1001 : vector<1x1x32xf32> to vector<1x32xf32>
    %1003 = vector.broadcast %1002 : vector<1x32xf32> to vector<48x32xf32>
    %1004 = arith.addf %1000, %1003 : vector<48x32xf32>
    %1005 = vector.extract_strided_slice %963 {offsets = [2, 0], sizes = [1, 32], strides = [1, 1]} : vector<4x32xf32> to vector<1x32xf32>
    %1006 = vector.extract_strided_slice %963 {offsets = [3, 0], sizes = [1, 32], strides = [1, 1]} : vector<4x32xf32> to vector<1x32xf32>
    %1007 = arith.addf %1004, %986 : vector<48x32xf32>
    %cst_338 = arith.constant dense<0.000000e+00> : vector<48xf32>
    %1008 = vector.multi_reduction <add>, %1007, %cst_338 [1] : vector<48x32xf32> to vector<48xf32>
    %1009 = vector.shape_cast %1008 : vector<48xf32> to vector<48x1xf32>
    %cst_339 = arith.constant 3.200000e+01 : f32
    %1010 = vector.broadcast %cst_339 : f32 to vector<48x1xf32>
    %1011 = arith.divf %1009, %1010 : vector<48x1xf32>
    %1012 = vector.broadcast %1011 : vector<48x1xf32> to vector<48x32xf32>
    %1013 = arith.subf %1007, %1012 : vector<48x32xf32>
    %1014 = arith.mulf %1013, %1013 : vector<48x32xf32>
    %cst_340 = arith.constant dense<0.000000e+00> : vector<48xf32>
    %1015 = vector.multi_reduction <add>, %1014, %cst_340 [1] : vector<48x32xf32> to vector<48xf32>
    %1016 = vector.shape_cast %1015 : vector<48xf32> to vector<48x1xf32>
    %cst_341 = arith.constant 3.200000e+01 : f32
    %1017 = vector.broadcast %cst_341 : f32 to vector<48x1xf32>
    %1018 = arith.divf %1016, %1017 : vector<48x1xf32>
    %cst_342 = arith.constant 9.99999974E-6 : f32
    %1019 = vector.broadcast %cst_342 : f32 to vector<48x1xf32>
    %1020 = arith.addf %1018, %1019 : vector<48x1xf32>
    %1021 = math.rsqrt %1020 : vector<48x1xf32>
    %1022 = vector.broadcast %1021 : vector<48x1xf32> to vector<48x32xf32>
    %1023 = arith.mulf %1013, %1022 : vector<48x32xf32>
    %1024 = vector.broadcast %1005 : vector<1x32xf32> to vector<48x32xf32>
    %1025 = arith.mulf %1023, %1024 : vector<48x32xf32>
    %1026 = vector.broadcast %1006 : vector<1x32xf32> to vector<48x32xf32>
    %1027 = arith.addf %1025, %1026 : vector<48x32xf32>
    %c0_343 = arith.constant 0 : index
    %c0_344 = arith.constant 0 : index
    %1028 = vector.load %arg5[%c0_343, %c0_344] : memref<24x1xf32, #tpu.memory_space<vmem>>, vector<24x1xf32>
    %1029 = vector.extract_strided_slice %1027 {offsets = [0, 0], sizes = [24, 32], strides = [1, 1]} : vector<48x32xf32> to vector<24x32xf32>
    %1030 = vector.broadcast %1028 : vector<24x1xf32> to vector<24x32xf32>
    %1031 = arith.mulf %1029, %1030 : vector<24x32xf32>
    %cst_345 = arith.constant dense<0.000000e+00> : vector<32xf32>
    %1032 = vector.multi_reduction <add>, %1031, %cst_345 [0] : vector<24x32xf32> to vector<32xf32>
    %1033 = vector.shape_cast %1032 : vector<32xf32> to vector<1x32xf32>
    %1034 = vector.extract_strided_slice %1027 {offsets = [24, 0], sizes = [24, 32], strides = [1, 1]} : vector<48x32xf32> to vector<24x32xf32>
    %1035 = vector.broadcast %1028 : vector<24x1xf32> to vector<24x32xf32>
    %1036 = arith.mulf %1034, %1035 : vector<24x32xf32>
    %cst_346 = arith.constant dense<0.000000e+00> : vector<32xf32>
    %1037 = vector.multi_reduction <add>, %1036, %cst_346 [0] : vector<24x32xf32> to vector<32xf32>
    %1038 = vector.shape_cast %1037 : vector<32xf32> to vector<1x32xf32>
    %1039 = tpu.concatenate %1033, %1038 in 0 : vector<1x32xf32>, vector<1x32xf32> -> vector<2x32xf32>
    %cst_347 = arith.constant 0.055555556 : f32
    %1040 = vector.broadcast %cst_347 : f32 to vector<2x32xf32>
    %1041 = arith.mulf %1039, %1040 : vector<2x32xf32>
    %c0_348 = arith.constant 0 : index
    %c0_349 = arith.constant 0 : index
    %1042 = vector.load %arg27[%c0_348, %c0_349] : memref<32x32xbf16, #tpu.memory_space<vmem>>, vector<32x32xbf16>
    %1043 = arith.truncf %1041 : vector<2x32xf32> to vector<2x32xbf16>
    %cst_350 = arith.constant dense<0.000000e+00> : vector<2x32xf32>
    %1044 = tpu.matmul %1043, %1042, %cst_350 {dimension_numbers = #tpu.dot_dimension_numbers<[1], [0], [0], [1], [0, 0, 1, 1], [], []>} : vector<2x32xbf16>, vector<32x32xbf16>, vector<2x32xf32> -> vector<2x32xf32>
    %c0_351 = arith.constant 0 : index
    %c0_352 = arith.constant 0 : index
    %1045 = vector.load %arg28[%c0_351, %c0_352] : memref<1x32xf32, #tpu.memory_space<vmem>>, vector<1x32xf32>
    %1046 = vector.broadcast %1045 : vector<1x32xf32> to vector<2x32xf32>
    %1047 = arith.addf %1044, %1046 : vector<2x32xf32>
    %cst_353 = arith.constant 0.000000e+00 : f32
    %1048 = vector.broadcast %cst_353 : f32 to vector<2x32xf32>
    %1049 = arith.maximumf %1047, %1048 : vector<2x32xf32>
    %c0_354 = arith.constant 0 : index
    %c0_355 = arith.constant 0 : index
    %1050 = vector.load %arg29[%c0_354, %c0_355] : memref<32x1xbf16, #tpu.memory_space<vmem>>, vector<32x1xbf16>
    %1051 = arith.truncf %1049 : vector<2x32xf32> to vector<2x32xbf16>
    %cst_356 = arith.constant dense<0.000000e+00> : vector<2x1xf32>
    %1052 = tpu.matmul %1051, %1050, %cst_356 {dimension_numbers = #tpu.dot_dimension_numbers<[1], [0], [0], [1], [0, 0, 1, 1], [], []>} : vector<2x32xbf16>, vector<32x1xbf16>, vector<2x1xf32> -> vector<2x1xf32>
    %c0_357 = arith.constant 0 : index
    %c0_358 = arith.constant 0 : index
    %1053 = vector.load %arg30[%c0_357, %c0_358] : memref<1x1xf32, #tpu.memory_space<vmem>>, vector<1x1xf32>
    %1054 = vector.broadcast %1053 : vector<1x1xf32> to vector<2x1xf32>
    %1055 = arith.addf %1052, %1054 : vector<2x1xf32>
    %c0_359 = arith.constant 0 : index
    %c0_360 = arith.constant 0 : index
    %1056 = vector.load %arg31[%c0_359, %c0_360] : memref<2x1xf32, #tpu.memory_space<vmem>>, vector<2x1xf32>
    tpu.vector_store %arg31[%c0_359, %c0_360], %1055 {strides = array<i32>} : memref<2x1xf32, #tpu.memory_space<vmem>>, vector<2x1xf32>,
    return
  }
}

</mosaic_0001>

<bundles_post_ra>
// kernel: tile.8
= control target key start
LH: loop header
LB: loop body
LE: loop exit
PB: predicated region body
PF: predicated region fallthrough
CT: control target
= control target key end

     0   :  { %s22_s0 = inlined_call_operand.vmem [shape: f32[16], index: 0, kind: input, shape index: {}]   ;;  %s23_s1 = inlined_call_operand.vmem [shape: f32[2,16], index: 1, kind: output, shape index: {}]  }
   0x1   :  { %v4_v0 = vld [vmem:[%s22_s0] ss:$0 sm:$0xff] }
   0x2   :  { %5 = vst [vmem:[%s23_s1] sm:$0x3] %v4_v0 }

// kernel: tile.0
= control target key start
LH: loop header
LB: loop body
LE: loop exit
PB: predicated region body
PF: predicated region fallthrough
CT: control target
= control target key end

     0   :  { %s130_s8 = smov 125   ;;  %s131_s9 = smov 126   ;;  %vm7_vm0 = vcmask 7168   ;;  %s221_s0 = inlined_call_operand.vmem [shape: f32[2,16], index: 0, kind: input, shape index: {}]   ;;  %s222_s1 = inlined_call_operand.vmem [shape: f32[32,1], index: 1, kind: output, shape index: {}]  }
   0x1   :  { %v4_v0 = vld [vmem:[%s221_s0] sm:$0x3]  ;;  %s129_s0 = smov 127   ;;  %s132_s10 = smov 124  }
   0x2   :  { %5 = vst [vmem:[#allocation0] sm:$0x3] %v4_v0  ;;  %s133_s11 = smov 123   ;;  %s134_s12 = smov 122  }
   0x3   :  { %s135_s13 = smov 121   ;;  %s136_s14 = smov 120  }
   0x4   :  { %s137_s17 = smov 119   ;;  %s138_s18 = smov 118  }
   0x5   :  { %s139_s19 = smov 117   ;;  %s140_s20 = smov 116  }
   0x6   :  { %s141_s21 = smov 115   ;;  %s142_s22 = smov 114  }
   0x7   :  { %s143_s23 = smov 113  }
   0x9   :  { %v9_v1 = vld [vmem:[#allocation0] sm:$0x3]  }
   0xa   :  { %v21_v2 = vld [vmem:[#allocation0] sm:$0x3]   ;;  %10 = vrot.lane.b32.xlu0 %v9_v1, %s129_s0 }
   0xb   :  { %22 = vrot.lane.b32.xlu1 %v21_v2, %s130_s8  ;;  %v15_v3 = vld [vmem:[#allocation0] sm:$0x3]  }
   0xc   :  { %v27_v4 = vld [vmem:[#allocation0] sm:$0x3]  }
   0xd   :  { %v33_v5 = vld [vmem:[#allocation0] sm:$0x3]  }
   0xe   :  { %16 = vrot.lane.b32.xlu0 %v15_v3, %s131_s9  ;;  %v39_v6 = vld [vmem:[#allocation0] sm:$0x3]  }
   0xf   :  { %28 = vrot.lane.b32.xlu1 %v27_v4, %s132_s10  ;;  %v45_v7 = vld [vmem:[#allocation0] sm:$0x3]  }
  0x10   :  { %v51_v8 = vld [vmem:[#allocation0] sm:$0x3]  }
  0x11   :  { %v57_v9 = vld [vmem:[#allocation0] sm:$0x3]  }
  0x12   :  { %34 = vrot.lane.b32.xlu0 %v33_v5, %s133_s11  ;;  %v63_v10 = vld [vmem:[#allocation0] sm:$0x3]  }
  0x13   :  { %40 = vrot.lane.b32.xlu1 %v39_v6, %s134_s12  ;;  %v6_v11 = vld [vmem:[#allocation0] sm:$0x3]  }
  0x14   :  { %8 = vst.msk [vmem:[%s222_s1] ss:$16 sm:$0x3] %vm7_vm0, %v6_v11   ;;  %v69_v12 = vld [vmem:[#allocation0] sm:$0x3]  }
  0x15   :  { %v75_v13 = vld [vmem:[#allocation0] sm:$0x3]  }
  0x16   :  { %46 = vrot.lane.b32.xlu0 %v45_v7, %s135_s13  ;;  %v81_v14 = vld [vmem:[#allocation0] sm:$0x3]  }
  0x17   :  { %52 = vrot.lane.b32.xlu1 %v51_v8, %s136_s14  ;;  %v87_v15 = vld [vmem:[#allocation0] sm:$0x3]  }
  0x18   :  { %v93_v16 = vld [vmem:[#allocation0] sm:$0x3]  }
  0x1a   :  { %58 = vrot.lane.b32.xlu0 %v57_v9, %s137_s17 }
  0x1b   :  { %64 = vrot.lane.b32.xlu1 %v63_v10, %s138_s18 }
  0x1e   :  { %70 = vrot.lane.b32.xlu0 %v69_v12, %s139_s19 }
  0x1f   :  { %76 = vrot.lane.b32.xlu1 %v75_v13, %s140_s20 }
  0x22   :  { %82 = vrot.lane.b32.xlu0 %v81_v14, %s141_s21 }
  0x23   :  { %88 = vrot.lane.b32.xlu1 %v87_v15, %s142_s22 }
  0x26   :  { %94 = vrot.lane.b32.xlu0 %v93_v16, %s143_s23 }
  0x7c   :  { %v11_v17 = vpop.permute.xlu0 %10  }
  0x7d   :  { %v23_v18 = vpop.permute.xlu1 %22   ;;  %99 = vst.msk [vmem:[%s222_s1 + $0x1] ss:$16 sm:$0x3] %vm7_vm0, %v11_v17  }
  0x7e   :  { %101 = vst.msk [vmem:[%s222_s1 + $0x3] ss:$16 sm:$0x3] %vm7_vm0, %v23_v18  }
  0x80   :  { %v17_v19 = vpop.permute.xlu0 %16  }
  0x81   :  { %v29_v20 = vpop.permute.xlu1 %28   ;;  %100 = vst.msk [vmem:[%s222_s1 + $0x2] ss:$16 sm:$0x3] %vm7_vm0, %v17_v19  }
  0x82   :  { %102 = vst.msk [vmem:[%s222_s1 + $0x4] ss:$16 sm:$0x3] %vm7_vm0, %v29_v20  }
  0x84   :  { %v35_v21 = vpop.permute.xlu0 %34  }
  0x85   :  { %v41_v22 = vpop.permute.xlu1 %40   ;;  %103 = vst.msk [vmem:[%s222_s1 + $0x5] ss:$16 sm:$0x3] %vm7_vm0, %v35_v21  }
  0x86   :  { %104 = vst.msk [vmem:[%s222_s1 + $0x6] ss:$16 sm:$0x3] %vm7_vm0, %v41_v22  }
  0x88   :  { %v47_v23 = vpop.permute.xlu0 %46  }
  0x89   :  { %v53_v24 = vpop.permute.xlu1 %52   ;;  %105 = vst.msk [vmem:[%s222_s1 + $0x7] ss:$16 sm:$0x3] %vm7_vm0, %v47_v23  }
  0x8a   :  { %106 = vst.msk [vmem:[%s222_s1 + $0x8] ss:$16 sm:$0x3] %vm7_vm0, %v53_v24  }
  0x8c   :  { %v59_v25 = vpop.permute.xlu0 %58  }
  0x8d   :  { %v65_v26 = vpop.permute.xlu1 %64   ;;  %107 = vst.msk [vmem:[%s222_s1 + $0x9] ss:$16 sm:$0x3] %vm7_vm0, %v59_v25  }
  0x8e   :  { %108 = vst.msk [vmem:[%s222_s1 + $0xa] ss:$16 sm:$0x3] %vm7_vm0, %v65_v26  }
  0x90   :  { %v71_v27 = vpop.permute.xlu0 %70  }
  0x91   :  { %v77_v28 = vpop.permute.xlu1 %76   ;;  %109 = vst.msk [vmem:[%s222_s1 + $0xb] ss:$16 sm:$0x3] %vm7_vm0, %v71_v27  }
  0x92   :  { %110 = vst.msk [vmem:[%s222_s1 + $0xc] ss:$16 sm:$0x3] %vm7_vm0, %v77_v28  }
  0x94   :  { %v83_v29 = vpop.permute.xlu0 %82  }
  0x95   :  { %v89_v30 = vpop.permute.xlu1 %88   ;;  %111 = vst.msk [vmem:[%s222_s1 + $0xd] ss:$16 sm:$0x3] %vm7_vm0, %v83_v29  }
  0x96   :  { %112 = vst.msk [vmem:[%s222_s1 + $0xe] ss:$16 sm:$0x3] %vm7_vm0, %v89_v30  }
  0x98   :  { %v95_v31 = vpop.permute.xlu0 %94  }
  0x99   :  { %113 = vst.msk [vmem:[%s222_s1 + $0xf] ss:$16 sm:$0x3] %vm7_vm0, %v95_v31  }

// kernel: forward.1
= control target key start
LH: loop header
LB: loop body
LE: loop exit
PB: predicated region body
PF: predicated region fallthrough
CT: control target
= control target key end

     0   :  { %s9649_s3 = smov 6   ;;  %vm159_vm0 = vcmask 1040384   ;;  %vm152_vm1 = vcmask 15360   ;;  %s9650_s10 = smov 9   ;;  %vm242_vm2 = vcmask 261120   ;;  %v9653_v21 = vmov 0.0   ;;  %s11941_s0 = inlined_call_operand.smem [shape: u32[32], index: -1, kind: input, shape index: {}] }
   0x1   :  { %s7726_s6 = sld [smem:[%s11941_s0 + %s9649_s3]]   ;;  %s9651_s14 = smov 7   ;;  %vm9654_vm3 = vmmov 0   ;;  %vm303_vm4 = vcmask 64512   ;;  %vm361_vm5 = vcmask 130048   ;;  %vm835_vm6 = vcmask 195584  }
   0x2   :  { %s1_s9 = sld [smem:[%s11941_s0]]   ;;  %s9652_s18 = smov 10   ;;  %vm1658_vm7 = vcmask 523264   ;;  %vm3352_vm8 = vcmask 1045504   ;;  %vm3348_vm9 = vcmask 97280   ;;  %vm3622_vm10 = vcmask 1043456  }
   0x3   :  { %s9710_s13 = sld [smem:[%s11941_s0 + %s9650_s10]]   ;;  %s9655_s22 = smov 120   ;;  %vm7715_vm11 = vcmask 1024  }
   0x4   :  { %s7727_s17 = sld [smem:[%s11941_s0 + %s9651_s14]]   ;;  %s9656_s23 = smov 96  }
   0x5   :  { %s9734_s21 = sld [smem:[%s11941_s0 + %s9652_s18]]   ;;  %s9657_s24 = smov 80  }
   0x6   :  { %s9658_s25 = smov 88   ;;  %s9659_s26 = smov 72  }
   0x7   :  { %v142_v0 = vld [vmem:[%s7726_s6] sm:$0x1]  ;;  %s9660_s27 = smov 112   ;;  %s9661_s28 = smov 104  }
   0x8   :  { %v138_v1 = vld [vmem:[%s1_s9] sm:$0xff]  ;;  %v139_v2 = vld [vmem:[%s1_s9 + $0x8] sm:$0xff]  ;;  %8977 = vmatprep.subr.msk.bf16.mxu0 %vm159_vm0, %v142_v0  ;;  %v161_v3 = vsel %vm159_vm0, %v142_v0, 0  ;;  %v140_v5 = vld [vmem:[%s1_s9 + $0x10] sm:$0xff]  ;;  %s9662_s29 = smov 64   ;;  %s9663_s30 = smov 2  }
   0x9   :  { %v143_v4 = vpack.c.bf16 %v139_v2, %v138_v1  ;;  %v141_v6 = vld [vmem:[%s1_s9 + $0x18] sm:$0xff]  ;;  %8294 = vmatpush3.bf16.msra.mxu0 %v161_v3  ;;  %v9223_v8 = vld [vmem:[%s9710_s13] sm:$0xff]   ;;  %v9224_v9 = vld [vmem:[%s9710_s13 + $0x8] sm:$0xff]   ;;  %s9820_s3 = sld [smem:[%s11941_s0 + %s9663_s30]]   ;;  %s9664_s4 = smov 48  }
   0xa   :  { %v144_v7 = vpack.c.bf16 %v141_v6, %v140_v5  ;;  %8299 = vmatprep.subr.bf16.mxu1 %v9223_v8  ;;  %v7752_v11 = vld [vmem:[%s7727_s17] ss:$0 sm:$0xff]  ;;  %8307 = vmatprep.subr.bf16.mxu0 %v9653_v21  ;;  %s9665_s5 = smov 56   ;;  %s9666_s6 = smov 40  }
   0xb   :  { %8295 = vmatprep.mubr.msk.bf16.mxu0 %vm152_vm1, %v143_v4  ;;  %8300 = vmatpush3.bf16.msra.mxu1 %v9223_v8  ;;  %v7755_v23 = vld [vmem:[%s9734_s21] ss:$0 sm:$0xff]  ;;  %s9667_s7 = smov 16   ;;  %s9668_s11 = smov 8  }
   0xc   :  { %8296 = vmatmul.mubr.msk.bf16.vlgmr.msra.gmra.mrb[0].mxu0 %vm152_vm1, %v144_v7  ;;  %8301 = vmatprep.subr.bf16.mxu1 %v9224_v9  ;;  %s10047_s10 = sld [smem:[%s11941_s0 + %s9667_s7]]   ;;  %s9669_s12 = smov 24  }
   0xd   :  { %8309 = vmatprep.mubr.msk.bf16.mxu0 %vm9654_vm3, %v9653_v21  ;;  %s9670_s14 = smov 11   ;;  %s9672_s18 = smov 4  }
   0xe   :  { %s10063_s17 = sld [smem:[%s11941_s0 + %s9670_s14]]   ;;  %s9673_s1 = smov 14  }
   0xf   :  { %8302 = vmatpush3.bf16.msra.mxu1 %v9224_v9  ;;  %v9823_v57 = vld [vmem:[%s9820_s3] ss:$0 sm:$0xff]  ;;  %s7724_s30 = sld [smem:[%s11941_s0 + %s9672_s18]]   ;;  %s9674_s14 = smov 12  }
  0x10   :  { %8313 = vmatprep.subr.bf16.mxu1 %v9653_v21  ;;  %s10094_s9 = sld [smem:[%s11941_s0 + %s9673_s1]]   ;;  %s9675_s19 = smov 13  }
  0x11   :  { %s10103_s18 = sld [smem:[%s11941_s0 + %s9674_s14]]   ;;  %s9676_s2 = smov 15  }
  0x12   :  { %s10137_s1 = sld [smem:[%s11941_s0 + %s9675_s19]]   ;;  %s9677_s16 = smov 17  }
  0x13   :  { %s10162_s15 = sld [smem:[%s11941_s0 + %s9676_s2]]  }
  0xdf   :  { %v8297_v10 = vpop.f32.mrb[0].mxu0 }
  0xe0   :  { %v197_v12 = vpop.f32.mrb[1].mxu0  ;;  %v9723_v18 = vadd.f32 %v8297_v10, %v7752_v11 }
  0xe1   :  { %v8298_v13 = vpop.f32.mrb[2].mxu0  ;;  %v9719_v16 = vadd.f32 %v7752_v11, %v197_v12 }
  0xe2   :  { %v9717_v14 = vadd.f32 %v8298_v13, %v7752_v11  ;;  %v200_v15 = vpop.f32.mrb[3].mxu0 }
  0xe3   :  { %v9721_v17 = vadd.f32 %v7752_v11, %v200_v15 }
  0xe4   :  { %v223_v20 = vpack.c.bf16 %v9717_v14, %v9723_v18 }
  0xe5   :  { %v222_v19 = vpack.c.bf16 %v9721_v17, %v9719_v16 }
  0xe7   :  { %8303 = vmatprep.mubr.msk.bf16.mxu1 %vm242_vm2, %v222_v19 }
  0xe8   :  { %8304 = vmatmul.mubr.msk.bf16.vlgmr.msra.gmra.mrb[0].mxu1 %vm242_vm2, %v223_v20 }
  0xe9   :  { %8315 = vmatprep.mubr.msk.bf16.mxu1 %vm9654_vm3, %v9653_v21 }
 0x1bb   :  { %v8305_v22 = vpop.f32.mrb[0].mxu1 }
 0x1bc   :  { %v283_v24 = vpop.f32.mrb[1].mxu1  ;;  %v292_v26 = vadd.f32 %v8305_v22, %v7755_v23 }
 0x1bd   :  { %v8306_v25 = vpop.f32.mrb[2].mxu1  ;;  %v284_v29 = vadd.f32 %v7755_v23, %v283_v24 }
 0x1be   :  { %v295_v27 = vadd.f32 %v8306_v25, %v7755_v23  ;;  %v286_v28 = vpop.f32.mrb[3].mxu1 }
 0x1bf   :  { %v287_v30 = vadd.f32 %v7755_v23, %v286_v28 }
 0x1c0   :  { %v9743_v31 = vpack.c.bf16 %v295_v27, %v292_v26 }
 0x1c1   :  { %v9745_v32 = vpack.c.bf16 %v287_v30, %v284_v29 }
 0x1c3   :  { %432 = vrot.lane.b32.xlu1 %v9745_v32, %s9655_s22  ;;  %301 = vrot.lane.b32.xlu0 %v9745_v32, %s9656_s23 }
 0x1c7   :  { %559 = vrot.lane.b32.xlu1 %v9745_v32, %s9657_s24  ;;  %434 = vrot.lane.b32.xlu0 %v9745_v32, %s9658_s25 }
 0x1cb   :  { %684 = vrot.lane.b32.xlu1 %v9745_v32, %s9659_s26  ;;  %557 = vrot.lane.b32.xlu0 %v9745_v32, %s9660_s27 }
 0x1cf   :  { %839 = vrot.lane.b32.xlu1 %v9743_v31, %s9656_s23  ;;  %682 = vrot.lane.b32.xlu0 %v9745_v32, %s9661_s28 }
 0x1d3   :  { %962 = vrot.lane.b32.xlu1 %v9743_v31, %s9655_s22  ;;  %964 = vrot.lane.b32.xlu0 %v9743_v31, %s9658_s25 }
 0x1d7   :  { %1087 = vrot.lane.b32.xlu1 %v9743_v31, %s9660_s27  ;;  %1089 = vrot.lane.b32.xlu0 %v9743_v31, %s9657_s24 }
 0x1db   :  { %1212 = vrot.lane.b32.xlu1 %v9743_v31, %s9661_s28  ;;  %1214 = vrot.lane.b32.xlu0 %v9743_v31, %s9659_s26 }
 0x1df   :  { %385 = vrot.lane.b32.xlu1 %v9745_v32, %s9662_s29 }
 0x235   :  { %v433_v33 = vpop.permute.xlu1 %432  ;;  %v302_v34 = vpop.permute.xlu0 %301 }
 0x236   :  { %v308_v35 = vsel %vm303_vm4, %v302_v34, 0 }
 0x237   :  { %8308 = vmatpush3.bf16.xpose.msra.mxu0 %v308_v35 }
 0x238   :  { %8319 = vmatprep.subr.bf16.mxu0 %v9653_v21 }
 0x239   :  { %v560_v36 = vpop.permute.xlu1 %559  ;;  %v435_v37 = vpop.permute.xlu0 %434 }
 0x23a   :  { %v440_v39 = vsel %vm303_vm4, %v435_v37, 0  ;;  %v565_v42 = vsel %vm303_vm4, %v560_v36, 0 }
 0x23d   :  { %v685_v38 = vpop.permute.xlu1 %684  ;;  %v558_v44 = vpop.permute.xlu0 %557 }
 0x23e   :  { %8310 = vmatmul.mubr.msk.bf16.vlgmr.msra.gmra.mrb[4].mxu0 %vm303_vm4, %v9745_v32  ;;  %v690_v46 = vsel %vm303_vm4, %v685_v38, 0 }
 0x23f   :  { %8320 = vmatpush3.bf16.xpose.msra.mxu0 %v440_v39  ;;  %8321 = vmatprep.mubr.msk.bf16.mxu0 %vm9654_vm3, %v9653_v21 }
 0x240   :  { %8331 = vmatprep.subr.bf16.mxu0 %v9653_v21 }
 0x241   :  { %v840_v40 = vpop.permute.xlu1 %839  ;;  %v683_v48 = vpop.permute.xlu0 %682 }
 0x242   :  { %v845_v49 = vsel %vm303_vm4, %v840_v40, 0 }
 0x245   :  { %v963_v41 = vpop.permute.xlu1 %962  ;;  %v965_v50 = vpop.permute.xlu0 %964 }
 0x246   :  { %8322 = vmatmul.mubr.msk.bf16.vlgmr.msra.gmra.mrb[8].mxu0 %vm303_vm4, %v433_v33  ;;  %v970_v51 = vsel %vm303_vm4, %v965_v50, 0 }
 0x247   :  { %8332 = vmatpush3.bf16.xpose.msra.mxu0 %v565_v42  ;;  %8333 = vmatprep.mubr.msk.bf16.mxu0 %vm9654_vm3, %v9653_v21 }
 0x248   :  { %8343 = vmatprep.subr.bf16.mxu0 %v9653_v21 }
 0x249   :  { %v1088_v43 = vpop.permute.xlu1 %1087  ;;  %v1090_v52 = vpop.permute.xlu0 %1089 }
 0x24a   :  { %v1095_v53 = vsel %vm303_vm4, %v1090_v52, 0 }
 0x24d   :  { %v1213_v45 = vpop.permute.xlu1 %1212  ;;  %v1215_v54 = vpop.permute.xlu0 %1214 }
 0x24e   :  { %8334 = vmatmul.mubr.msk.bf16.vlgmr.msra.gmra.mrb[12].mxu0 %vm303_vm4, %v558_v44  ;;  %v1220_v55 = vsel %vm303_vm4, %v1215_v54, 0 }
 0x24f   :  { %8344 = vmatpush3.bf16.xpose.msra.mxu0 %v690_v46  ;;  %8345 = vmatprep.mubr.msk.bf16.mxu0 %vm9654_vm3, %v9653_v21 }
 0x250   :  { %8355 = vmatprep.subr.bf16.mxu0 %v9653_v21 }
 0x251   :  { %v386_v47 = vpop.permute.xlu1 %385 }
 0x252   :  { %8314 = vmatpush3.bf16.msra.mxu1 %v386_v47 }
 0x253   :  { %8325 = vmatprep.subr.bf16.mxu1 %v9653_v21 }
 0x256   :  { %8346 = vmatmul.mubr.msk.bf16.vlgmr.msra.gmra.mrb[16].mxu0 %vm303_vm4, %v683_v48 }
 0x257   :  { %8356 = vmatpush3.bf16.xpose.msra.mxu0 %v845_v49  ;;  %8357 = vmatprep.mubr.msk.bf16.mxu0 %vm9654_vm3, %v9653_v21 }
 0x258   :  { %8367 = vmatprep.subr.bf16.mxu0 %v9653_v21 }
 0x25e   :  { %8358 = vmatmul.mubr.msk.bf16.vlgmr.msra.gmra.mrb[20].mxu0 %vm303_vm4, %v9743_v31 }
 0x25f   :  { %8368 = vmatpush3.bf16.xpose.msra.mxu0 %v970_v51  ;;  %8369 = vmatprep.mubr.msk.bf16.mxu0 %vm9654_vm3, %v9653_v21 }
 0x260   :  { %8379 = vmatprep.subr.bf16.mxu0 %v9653_v21 }
 0x266   :  { %8370 = vmatmul.mubr.msk.bf16.vlgmr.msra.gmra.mrb[24].mxu0 %vm303_vm4, %v963_v41 }
 0x267   :  { %8380 = vmatpush3.bf16.xpose.msra.mxu0 %v1095_v53  ;;  %8381 = vmatprep.mubr.msk.bf16.mxu0 %vm9654_vm3, %v9653_v21 }
 0x268   :  { %8391 = vmatprep.subr.bf16.mxu0 %v9653_v21 }
 0x26e   :  { %8382 = vmatmul.mubr.msk.bf16.vlgmr.msra.gmra.mrb[28].mxu0 %vm303_vm4, %v1088_v43 }
 0x26f   :  { %8392 = vmatpush3.bf16.xpose.msra.mxu0 %v1220_v55  ;;  %8393 = vmatprep.mubr.msk.bf16.mxu0 %vm9654_vm3, %v9653_v21 }
 0x276   :  { %8394 = vmatmul.mubr.msk.bf16.vlgmr.msra.gmra.mrb[32].mxu0 %vm303_vm4, %v1213_v45 }
 0x311   :  { %v344_v56 = vpop.f32.mrb[4].mxu0 }
 0x312   :  { %v351_v58 = vmul.f32 0.35355338, %v344_v56  ;;  %v8311_v59 = vpop.f32.mrb[5].mxu0 }
 0x313   :  { %v347_v60 = vpop.f32.mrb[6].mxu0 }
 0x314   :  { %v352_v61 = vmul.f32 0.35355338, %v347_v60  ;;  %v8312_v62 = vpop.f32.mrb[7].mxu0  ;;  %v9826_v63 = vadd.f32 %v9823_v57, %v351_v58 }
 0x316   :  { %v362_v0 = vsel %vm361_vm5, %v9826_v63, -inf  ;;  %v9831_v1 = vadd.f32 %v9823_v57, %v352_v61 }
 0x317   :  { %363 = vmax.xlane.f32.xlu0 %v362_v0 }
 0x318   :  { %v365_v2 = vsel %vm361_vm5, %v9831_v1, -inf }
 0x319   :  { %366 = vmax.xlane.f32.xlu1 %v365_v2  ;;  %v476_v3 = vpop.f32.mrb[8].mxu0 }
 0x31a   :  { %v483_v4 = vmul.f32 0.35355338, %v476_v3  ;;  %v8323_v5 = vpop.f32.mrb[9].mxu0 }
 0x31b   :  { %v479_v6 = vpop.f32.mrb[10].mxu0 }
 0x31c   :  { %v484_v7 = vmul.f32 0.35355338, %v479_v6  ;;  %v8324_v8 = vpop.f32.mrb[11].mxu0  ;;  %v9836_v9 = vadd.f32 %v9823_v57, %v483_v4 }
 0x31e   :  { %v487_v10 = vsel %vm361_vm5, %v9836_v9, -inf  ;;  %v9841_v11 = vadd.f32 %v9823_v57, %v484_v7 }
 0x31f   :  { %488 = vmax.xlane.f32.xlu0 %v487_v10 }
 0x320   :  { %v490_v19 = vsel %vm361_vm5, %v9841_v11, -inf }
 0x321   :  { %v601_v12 = vpop.f32.mrb[12].mxu0 }
 0x322   :  { %v608_v13 = vmul.f32 0.35355338, %v601_v12  ;;  %v8335_v15 = vpop.f32.mrb[13].mxu0 }
 0x323   :  { %491 = vmax.xlane.f32.xlu0 %v490_v19  ;;  %v604_v20 = vpop.f32.mrb[14].mxu0 }
 0x324   :  { %v609_v22 = vmul.f32 0.35355338, %v604_v20  ;;  %v8336_v23 = vpop.f32.mrb[15].mxu0  ;;  %v9846_v24 = vadd.f32 %v9823_v57, %v608_v13 }
 0x326   :  { %v612_v25 = vsel %vm361_vm5, %v9846_v24, -inf  ;;  %v9851_v26 = vadd.f32 %v9823_v57, %v609_v22 }
 0x327   :  { %613 = vmax.xlane.f32.xlu1 %v612_v25 }
 0x328   :  { %v615_v27 = vsel %vm361_vm5, %v9851_v26, -inf }
 0x329   :  { %616 = vmax.xlane.f32.xlu0 %v615_v27  ;;  %v726_v28 = vpop.f32.mrb[16].mxu0 }
 0x32a   :  { %v733_v29 = vmul.f32 0.35355338, %v726_v28  ;;  %v8347_v30 = vpop.f32.mrb[17].mxu0 }
 0x32b   :  { %v729_v33 = vpop.f32.mrb[18].mxu0 }
 0x32c   :  { %v734_v34 = vmul.f32 0.35355338, %v729_v33  ;;  %v8348_v35 = vpop.f32.mrb[19].mxu0  ;;  %v9856_v36 = vadd.f32 %v9823_v57, %v733_v29 }
 0x32e   :  { %v737_v37 = vsel %vm361_vm5, %v9856_v36, -inf  ;;  %v9861_v38 = vadd.f32 %v9823_v57, %v734_v34 }
 0x32f   :  { %738 = vmax.xlane.f32.xlu1 %v737_v37 }
 0x330   :  { %v740_v39 = vsel %vm361_vm5, %v9861_v38, -inf }
 0x331   :  { %741 = vmax.xlane.f32.xlu0 %v740_v39  ;;  %v881_v40 = vpop.f32.mrb[20].mxu0 }
 0x332   :  { %v888_v41 = vmul.f32 0.35355338, %v881_v40  ;;  %v8359_v42 = vpop.f32.mrb[21].mxu0 }
 0x333   :  { %v884_v43 = vpop.f32.mrb[22].mxu0 }
 0x334   :  { %v889_v44 = vmul.f32 0.35355338, %v884_v43  ;;  %v8360_v45 = vpop.f32.mrb[23].mxu0  ;;  %v9866_v46 = vadd.f32 %v9823_v57, %v888_v41 }
 0x336   :  { %v892_v47 = vsel %vm361_vm5, %v9866_v46, -inf  ;;  %v9871_v48 = vadd.f32 %v9823_v57, %v889_v44 }
 0x337   :  { %893 = vmax.xlane.f32.xlu1 %v892_v47 }
 0x338   :  { %v895_v49 = vsel %vm361_vm5, %v9871_v48, -inf }
 0x339   :  { %896 = vmax.xlane.f32.xlu0 %v895_v49  ;;  %v1006_v50 = vpop.f32.mrb[24].mxu0 }
 0x33a   :  { %v1013_v51 = vmul.f32 0.35355338, %v1006_v50  ;;  %v8371_v52 = vpop.f32.mrb[25].mxu0 }
 0x33b   :  { %v1009_v53 = vpop.f32.mrb[26].mxu0 }
 0x33c   :  { %v1014_v54 = vmul.f32 0.35355338, %v1009_v53  ;;  %v8372_v55 = vpop.f32.mrb[27].mxu0  ;;  %v9876_v56 = vadd.f32 %v9823_v57, %v1013_v51 }
 0x33e   :  { %v1017_v58 = vsel %vm361_vm5, %v9876_v56, -inf  ;;  %v9881_v59 = vadd.f32 %v9823_v57, %v1014_v54 }
 0x33f   :  { %1018 = vmax.xlane.f32.xlu1 %v1017_v58 }
 0x340   :  { %v1020_v60 = vsel %vm361_vm5, %v9881_v59, -inf }
 0x341   :  { %1021 = vmax.xlane.f32.xlu0 %v1020_v60  ;;  %v1131_v61 = vpop.f32.mrb[28].mxu0 }
 0x342   :  { %v1138_v62 = vmul.f32 0.35355338, %v1131_v61  ;;  %v8383_v0 = vpop.f32.mrb[29].mxu0 }
 0x343   :  { %v1134_v2 = vpop.f32.mrb[30].mxu0 }
 0x344   :  { %v1139_v3 = vmul.f32 0.35355338, %v1134_v2  ;;  %v8384_v4 = vpop.f32.mrb[31].mxu0  ;;  %v9886_v5 = vadd.f32 %v9823_v57, %v1138_v62 }
 0x346   :  { %v1142_v6 = vsel %vm361_vm5, %v9886_v5, -inf  ;;  %v9891_v7 = vadd.f32 %v9823_v57, %v1139_v3 }
 0x347   :  { %1143 = vmax.xlane.f32.xlu1 %v1142_v6 }
 0x348   :  { %v1145_v8 = vsel %vm361_vm5, %v9891_v7, -inf }
 0x349   :  { %1146 = vmax.xlane.f32.xlu0 %v1145_v8  ;;  %v1256_v10 = vpop.f32.mrb[32].mxu0 }
 0x34a   :  { %v1263_v12 = vmul.f32 0.35355338, %v1256_v10  ;;  %v8395_v13 = vpop.f32.mrb[33].mxu0 }
 0x34b   :  { %v1259_v15 = vpop.f32.mrb[34].mxu0 }
 0x34c   :  { %v1264_v19 = vmul.f32 0.35355338, %v1259_v15  ;;  %v8396_v20 = vpop.f32.mrb[35].mxu0  ;;  %v9896_v22 = vadd.f32 %v9823_v57, %v1263_v12 }
 0x34e   :  { %v1267_v23 = vsel %vm361_vm5, %v9896_v22, -inf  ;;  %v9901_v25 = vadd.f32 %v9823_v57, %v1264_v19 }
 0x34f   :  { %1268 = vmax.xlane.f32.xlu1 %v1267_v23 }
 0x350   :  { %v1270_v27 = vsel %vm361_vm5, %v9901_v25, -inf }
 0x351   :  { %1271 = vmax.xlane.f32.xlu0 %v1270_v27 }
 0x360   :  { %635 = vrot.lane.b32.xlu1 %v9745_v32, %s9664_s4 }
 0x367   :  { %510 = vrot.lane.b32.xlu0 %v9745_v32, %s9665_s5 }
 0x3a4   :  { %v364_v28 = vpop.xlane.xlu0 %363 }
 0x3a5   :  { %v368_v29 = vsub.f32 %v9826_v63, %v364_v28 }
 0x3a6   :  { %v367_v30 = vpop.xlane.xlu1 %366 }
 0x3a7   :  { %v370_v33 = vmul.f32 1.442695, %v368_v29  ;;  %v369_v57 = vsub.f32 %v9831_v1, %v367_v30 }
 0x3a9   :  { %9269 = vpow2.f32 %v370_v33  ;;  %v372_v34 = vmul.f32 1.442695, %v369_v57 }
 0x3ab   :  { %9271 = vpow2.f32 %v372_v34 }
 0x3ac   :  { %v489_v35 = vpop.xlane.xlu0 %488 }
 0x3ad   :  { %v493_v37 = vsub.f32 %v9836_v9, %v489_v35 }
 0x3af   :  { %v495_v39 = vmul.f32 1.442695, %v493_v37 }
 0x3b0   :  { %v492_v40 = vpop.xlane.xlu0 %491 }
 0x3b1   :  { %9273 = vpow2.f32 %v495_v39  ;;  %v494_v41 = vsub.f32 %v9841_v11, %v492_v40 }
 0x3b3   :  { %v9913_v42 = vpop.eup %9269  ;;  %v497_v43 = vmul.f32 1.442695, %v494_v41 }
 0x3b4   :  { %v614_v44 = vpop.xlane.xlu1 %613  ;;  %v374_v63 = vsel %vm361_vm5, %v9913_v42, 0.0 }
 0x3b5   :  { %v9917_v45 = vpop.eup %9271  ;;  %9275 = vpow2.f32 %v497_v43  ;;  %v618_v1 = vsub.f32 %v9846_v24, %v614_v44  ;;  %375 = vadd.xlane.f32.xlu1 %v374_v63 }
 0x3b6   :  { %v617_v47 = vpop.xlane.xlu0 %616  ;;  %v377_v9 = vsel %vm361_vm5, %v9917_v45, 0.0 }
 0x3b7   :  { %v620_v49 = vmul.f32 1.442695, %v618_v1  ;;  %v619_v11 = vsub.f32 %v9851_v26, %v617_v47  ;;  %378 = vadd.xlane.f32.xlu0 %v377_v9 }
 0x3b9   :  { %9277 = vpow2.f32 %v620_v49  ;;  %v622_v50 = vmul.f32 1.442695, %v619_v11 }
 0x3bb   :  { %v9923_v51 = vpop.eup %9273  ;;  %9279 = vpow2.f32 %v622_v50 }
 0x3bc   :  { %v739_v52 = vpop.xlane.xlu1 %738  ;;  %v499_v53 = vsel %vm361_vm5, %v9923_v51, 0.0 }
 0x3bd   :  { %v743_v24 = vsub.f32 %v9856_v36, %v739_v52  ;;  %500 = vadd.xlane.f32.xlu1 %v499_v53 }
 0x3be   :  { %v742_v54 = vpop.xlane.xlu0 %741 }
 0x3bf   :  { %v9928_v55 = vpop.eup %9275  ;;  %v745_v58 = vmul.f32 1.442695, %v743_v24  ;;  %v744_v60 = vsub.f32 %v9861_v38, %v742_v54 }
 0x3c0   :  { %v502_v26 = vsel %vm361_vm5, %v9928_v55, 0.0 }
 0x3c1   :  { %9281 = vpow2.f32 %v745_v58  ;;  %v747_v61 = vmul.f32 1.442695, %v744_v60  ;;  %503 = vadd.xlane.f32.xlu0 %v502_v26 }
 0x3c3   :  { %v9933_v62 = vpop.eup %9277  ;;  %9283 = vpow2.f32 %v747_v61 }
 0x3c4   :  { %v894_v0 = vpop.xlane.xlu1 %893  ;;  %v624_v36 = vsel %vm361_vm5, %v9933_v62, 0.0 }
 0x3c5   :  { %v9937_v2 = vpop.eup %9279  ;;  %v898_v3 = vsub.f32 %v9866_v46, %v894_v0  ;;  %625 = vadd.xlane.f32.xlu1 %v624_v36 }
 0x3c6   :  { %v897_v4 = vpop.xlane.xlu0 %896  ;;  %v627_v38 = vsel %vm361_vm5, %v9937_v2, 0.0 }
 0x3c7   :  { %v900_v6 = vmul.f32 1.442695, %v898_v3  ;;  %v899_v8 = vsub.f32 %v9871_v48, %v897_v4  ;;  %628 = vadd.xlane.f32.xlu0 %v627_v38 }
 0x3c9   :  { %9285 = vpow2.f32 %v900_v6  ;;  %v902_v10 = vmul.f32 1.442695, %v899_v8 }
 0x3cb   :  { %v9943_v12 = vpop.eup %9281  ;;  %9287 = vpow2.f32 %v902_v10 }
 0x3cc   :  { %v1019_v13 = vpop.xlane.xlu1 %1018  ;;  %v749_v15 = vsel %vm361_vm5, %v9943_v12, 0.0 }
 0x3cd   :  { %v9947_v19 = vpop.eup %9283  ;;  %v1023_v46 = vsub.f32 %v9876_v56, %v1019_v13  ;;  %750 = vadd.xlane.f32.xlu1 %v749_v15 }
 0x3ce   :  { %v1022_v20 = vpop.xlane.xlu0 %1021  ;;  %v752_v23 = vsel %vm361_vm5, %v9947_v19, 0.0 }
 0x3cf   :  { %v1025_v48 = vmul.f32 1.442695, %v1023_v46  ;;  %v1024_v27 = vsub.f32 %v9881_v59, %v1022_v20  ;;  %753 = vadd.xlane.f32.xlu0 %v752_v23 }
 0x3d1   :  { %9289 = vpow2.f32 %v1025_v48  ;;  %v1027_v28 = vmul.f32 1.442695, %v1024_v27 }
 0x3d3   :  { %v9953_v29 = vpop.eup %9285  ;;  %9291 = vpow2.f32 %v1027_v28 }
 0x3d4   :  { %v1144_v30 = vpop.xlane.xlu1 %1143  ;;  %v904_v33 = vsel %vm361_vm5, %v9953_v29, 0.0 }
 0x3d5   :  { %v9957_v57 = vpop.eup %9287  ;;  %v1148_v56 = vsub.f32 %v9886_v5, %v1144_v30  ;;  %905 = vadd.xlane.f32.xlu0 %v904_v33 }
 0x3d6   :  { %v1147_v34 = vpop.xlane.xlu0 %1146  ;;  %v907_v59 = vsel %vm361_vm5, %v9957_v57, 0.0 }
 0x3d7   :  { %v1150_v35 = vmul.f32 1.442695, %v1148_v56  ;;  %v1149_v37 = vsub.f32 %v9891_v7, %v1147_v34 }
 0x3d9   :  { %9293 = vpow2.f32 %v1150_v35  ;;  %v1152_v39 = vmul.f32 1.442695, %v1149_v37  ;;  %908 = vadd.xlane.f32.xlu0 %v907_v59 }
 0x3db   :  { %v9963_v40 = vpop.eup %9289  ;;  %9295 = vpow2.f32 %v1152_v39 }
 0x3dc   :  { %v1269_v41 = vpop.xlane.xlu1 %1268  ;;  %v1029_v43 = vsel %vm361_vm5, %v9963_v40, 0.0 }
 0x3dd   :  { %v9967_v44 = vpop.eup %9291  ;;  %v1273_v5 = vsub.f32 %v9896_v22, %v1269_v41  ;;  %1030 = vadd.xlane.f32.xlu1 %v1029_v43 }
 0x3de   :  { %v1032_v7 = vsel %vm361_vm5, %v9967_v44, 0.0  ;;  %v1272_v50 = vpop.xlane.xlu0 %1271 }
 0x3df   :  { %v1275_v63 = vmul.f32 1.442695, %v1273_v5  ;;  %1033 = vadd.xlane.f32.xlu0 %v1032_v7  ;;  %v1274_v52 = vsub.f32 %v9901_v25, %v1272_v50 }
 0x3e0   :  { %v636_v25 = vpop.permute.xlu1 %635 }
 0x3e1   :  { %9297 = vpow2.f32 %v1275_v63  ;;  %v1277_v53 = vmul.f32 1.442695, %v1274_v52 }
 0x3e2   :  { %v511_v54 = vpop.permute.xlu0 %510 }
 0x3e3   :  { %v9972_v1 = vpop.eup %9293  ;;  %9299 = vpow2.f32 %v1277_v53 }
 0x3e4   :  { %v1154_v47 = vsel %vm361_vm5, %v9972_v1, 0.0 }
 0x3e5   :  { %v9976_v9 = vpop.eup %9295  ;;  %1155 = vadd.xlane.f32.xlu0 %v1154_v47 }
 0x3e6   :  { %v1157_v49 = vsel %vm361_vm5, %v9976_v9, 0.0 }
 0x3e9   :  { %1158 = vadd.xlane.f32.xlu0 %v1157_v49 }
 0x3eb   :  { %v9980_v22 = vpop.eup %9297 }
 0x3ec   :  { %v1279_v11 = vsel %vm361_vm5, %v9980_v22, 0.0 }
 0x3ed   :  { %1280 = vadd.xlane.f32.xlu0 %v1279_v11  ;;  %v9993_v24 = vpop.eup %9299 }
 0x3ee   :  { %760 = vrot.lane.b32.xlu1 %v9745_v32, %s9666_s6  ;;  %v1282_v32 = vsel %vm361_vm5, %v9993_v24, 0.0 }
 0x403   :  { %915 = vrot.lane.b32.xlu0 %v9743_v31, %s9662_s29 }
 0x407   :  { %1040 = vrot.lane.b32.xlu0 %v9743_v31, %s9665_s5 }
 0x40b   :  { %1165 = vrot.lane.b32.xlu0 %v9743_v31, %s9664_s4 }
 0x40f   :  { %1290 = vrot.lane.b32.xlu0 %v9743_v31, %s9666_s6 }
 0x412   :  { %1283 = vadd.xlane.f32.xlu1 %v1282_v32 }
 0x442   :  { %v376_v58 = vpop.xlane.xlu1 %375 }
 0x443   :  { %9301 = vrcp.f32 %v376_v58 }
 0x444   :  { %v379_v60 = vpop.xlane.xlu0 %378 }
 0x445   :  { %9303 = vrcp.f32 %v379_v60 }
 0x44a   :  { %v501_v26 = vpop.xlane.xlu1 %500 }
 0x44b   :  { %9305 = vrcp.f32 %v501_v26 }
 0x44d   :  { %v9302_v61 = vpop.eup %9301 }
 0x44e   :  { %v504_v0 = vpop.xlane.xlu0 %503  ;;  %v382_v3 = vmul.f32 %v9302_v61, %v9913_v42 }
 0x44f   :  { %v9304_v36 = vpop.eup %9303  ;;  %9307 = vrcp.f32 %v504_v0 }
 0x450   :  { %v383_v31 = vmul.f32 %v9304_v36, %v9917_v45 }
 0x452   :  { %v626_v4 = vpop.xlane.xlu1 %625  ;;  %v384_v38 = vpack.c.bf16 %v383_v31, %v382_v3 }
 0x453   :  { %9309 = vrcp.f32 %v626_v4 }
 0x454   :  { %8316 = vmatmul.mubr.msk.bf16.vlgmr.msra.gmra.mrb[4].mxu1 %vm361_vm5, %v384_v38  ;;  %v629_v6 = vpop.xlane.xlu0 %628 }
 0x455   :  { %8326 = vmatpush3.bf16.msra.mxu1 %v511_v54  ;;  %9311 = vrcp.f32 %v629_v6  ;;  %8327 = vmatprep.mubr.msk.bf16.mxu1 %vm9654_vm3, %v9653_v21  ;;  %v9306_v8 = vpop.eup %9305 }
 0x456   :  { %8337 = vmatprep.subr.bf16.mxu1 %v9653_v21  ;;  %v507_v13 = vmul.f32 %v9306_v8, %v9923_v51 }
 0x459   :  { %v9308_v10 = vpop.eup %9307 }
 0x45a   :  { %v508_v42 = vmul.f32 %v9308_v10, %v9928_v55  ;;  %v751_v20 = vpop.xlane.xlu1 %750 }
 0x45c   :  { %v754_v45 = vpop.xlane.xlu0 %753  ;;  %v509_v15 = vpack.c.bf16 %v508_v42, %v507_v13 }
 0x45d   :  { %v9310_v46 = vpop.eup %9309  ;;  %9313 = vrcp.f32 %v754_v45 }
 0x45e   :  { %8328 = vmatmul.mubr.msk.bf16.vlgmr.msra.gmra.mrb[8].mxu1 %vm361_vm5, %v509_v15  ;;  %9315 = vrcp.f32 %v751_v20  ;;  %v632_v51 = vmul.f32 %v9310_v46, %v9933_v62 }
 0x45f   :  { %v9312_v23 = vpop.eup %9311  ;;  %8338 = vmatpush3.bf16.msra.mxu1 %v636_v25  ;;  %8339 = vmatprep.mubr.msk.bf16.mxu1 %vm9654_vm3, %v9653_v21 }
 0x460   :  { %v633_v48 = vmul.f32 %v9312_v23, %v9937_v2  ;;  %8349 = vmatprep.subr.bf16.mxu1 %v9653_v21 }
 0x462   :  { %v906_v55 = vpop.xlane.xlu0 %905  ;;  %v634_v27 = vpack.c.bf16 %v633_v48, %v632_v51 }
 0x466   :  { %8340 = vmatmul.mubr.msk.bf16.vlgmr.msra.gmra.mrb[12].mxu1 %vm361_vm5, %v634_v27  ;;  %v909_v30 = vpop.xlane.xlu0 %908 }
 0x467   :  { %8351 = vmatprep.mubr.msk.bf16.mxu1 %vm9654_vm3, %v9653_v21  ;;  %v9314_v28 = vpop.eup %9313  ;;  %9317 = vrcp.f32 %v909_v30 }
 0x468   :  { %v9316_v56 = vpop.eup %9315  ;;  %v758_v34 = vmul.f32 %v9314_v28, %v9947_v19  ;;  %9319 = vrcp.f32 %v906_v55 }
 0x469   :  { %v757_v2 = vmul.f32 %v9316_v56, %v9943_v12 }
 0x46a   :  { %v1031_v33 = vpop.xlane.xlu1 %1030 }
 0x46b   :  { %v759_v62 = vpack.c.bf16 %v758_v34, %v757_v2 }
 0x46c   :  { %v1034_v35 = vpop.xlane.xlu0 %1033 }
 0x46d   :  { %9321 = vrcp.f32 %v1034_v35 }
 0x46e   :  { %v761_v37 = vpop.permute.xlu1 %760  ;;  %9323 = vrcp.f32 %v1031_v33 }
 0x46f   :  { %8350 = vmatpush3.bf16.msra.mxu1 %v761_v37 }
 0x470   :  { %8361 = vmatprep.subr.bf16.mxu1 %v9653_v21 }
 0x471   :  { %v9318_v41 = vpop.eup %9317 }
 0x472   :  { %8352 = vmatmul.mubr.msk.bf16.vlgmr.msra.gmra.mrb[16].mxu1 %vm361_vm5, %v759_v62  ;;  %v1156_v59 = vpop.xlane.xlu0 %1155  ;;  %v9320_v12 = vpop.eup %9319  ;;  %v913_v43 = vmul.f32 %v9318_v41, %v9957_v57  ;;  %v9225_v62 = vld [vmem:[%s10063_s17] sm:$0xff]  }
 0x473   :  { %8363 = vmatprep.mubr.msk.bf16.mxu1 %vm9654_vm3, %v9653_v21  ;;  %v912_v5 = vmul.f32 %v9320_v12, %v9953_v29  ;;  %8403 = vmatprep.subr.bf16.mxu0 %v9225_v62  ;;  %v9671_v12 = vmov 0  }
 0x474   :  { %8404 = vmatpush3.bf16.msra.mxu0 %v9225_v62  ;;  %9101 = vset.pattern.permute.xlu1 %v9671_v12 }
 0x475   :  { %v914_v63 = vpack.c.bf16 %v913_v43, %v912_v5  ;;  %9102 = vset.pattern.permute.xlu0 %v9671_v12 }
 0x476   :  { %v1159_v39 = vpop.xlane.xlu0 %1158 }
 0x477   :  { %9325 = vrcp.f32 %v1159_v39  ;;  %v9322_v47 = vpop.eup %9321 }
 0x478   :  { %9327 = vrcp.f32 %v1156_v59  ;;  %v9324_v11 = vpop.eup %9323  ;;  %v1038_v57 = vmul.f32 %v9322_v47, %v9967_v44 }
 0x479   :  { %v1037_v29 = vmul.f32 %v9324_v11, %v9963_v40  ;;  %v135_v11 = vld [vmem:[%s7724_s30 + $0x10] sm:$0xff] }
 0x47a   :  { %v1281_v19 = vpop.xlane.xlu0 %1280 }
 0x47b   :  { %v1039_v50 = vpack.c.bf16 %v1038_v57, %v1037_v29  ;;  %9329 = vrcp.f32 %v1281_v19  ;;  %v9226_v19 = vld [vmem:[%s10063_s17 + $0x8] sm:$0xff]   ;;  %v136_v29 = vld [vmem:[%s7724_s30 + $0x18] sm:$0xff] }
 0x47c   :  { %8405 = vmatprep.subr.bf16.mxu0 %v9226_v19  ;;  %v134_v57 = vld [vmem:[%s7724_s30 + $0x8] sm:$0xff] }
 0x47d   :  { %8406 = vmatpush3.bf16.msra.mxu0 %v9226_v19 }
 0x47e   :  { %v916_v7 = vpop.permute.xlu0 %915 }
 0x47f   :  { %8362 = vmatpush3.bf16.msra.mxu1 %v916_v7 }
 0x480   :  { %8373 = vmatprep.subr.bf16.mxu1 %v9653_v21 }
 0x481   :  { %v9326_v52 = vpop.eup %9325 }
 0x482   :  { %8364 = vmatmul.mubr.msk.bf16.vlgmr.msra.gmra.mrb[20].mxu1 %vm361_vm5, %v914_v63  ;;  %v1041_v49 = vpop.permute.xlu0 %1040  ;;  %v9328_v32 = vpop.eup %9327  ;;  %v1163_v25 = vmul.f32 %v9326_v52, %v9976_v9 }
 0x483   :  { %8374 = vmatpush3.bf16.msra.mxu1 %v1041_v49  ;;  %8375 = vmatprep.mubr.msk.bf16.mxu1 %vm9654_vm3, %v9653_v21  ;;  %v1162_v44 = vmul.f32 %v9328_v32, %v9972_v1  ;;  %v133_v49 = vld [vmem:[%s7724_s30] sm:$0xff]  ;;  %s10175_s30 = sld [smem:[%s11941_s0 + %s9677_s16]]   ;;  %s9684_s16 = smov 23  }
 0x484   :  { %8385 = vmatprep.subr.bf16.mxu1 %v9653_v21 }
 0x485   :  { %v1164_v54 = vpack.c.bf16 %v1163_v25, %v1162_v44  ;;  %v9330_v60 = vpop.eup %9329 }
 0x486   :  { %v1166_v53 = vpop.permute.xlu0 %1165  ;;  %v1287_v61 = vmul.f32 %v9330_v60, %v9980_v22 }
 0x48a   :  { %8376 = vmatmul.mubr.msk.bf16.vlgmr.msra.gmra.mrb[24].mxu1 %vm361_vm5, %v1039_v50  ;;  %v1291_v58 = vpop.permute.xlu0 %1290 }
 0x48b   :  { %8386 = vmatpush3.bf16.msra.mxu1 %v1166_v53  ;;  %8387 = vmatprep.mubr.msk.bf16.mxu1 %vm9654_vm3, %v9653_v21 }
 0x48c   :  { %8397 = vmatprep.subr.bf16.mxu1 %v9653_v21 }
 0x492   :  { %8388 = vmatmul.mubr.msk.bf16.vlgmr.msra.gmra.mrb[28].mxu1 %vm361_vm5, %v1164_v54 }
 0x493   :  { %8398 = vmatpush3.bf16.msra.mxu1 %v1291_v58  ;;  %8399 = vmatprep.mubr.msk.bf16.mxu1 %vm9654_vm3, %v9653_v21 }
 0x49f   :  { %v1284_v40 = vpop.xlane.xlu1 %1283 }
 0x4a0   :  { %9331 = vrcp.f32 %v1284_v40 }
 0x4aa   :  { %v9332_v26 = vpop.eup %9331 }
 0x4ab   :  { %v1288_v9 = vmul.f32 %v9332_v26, %v9993_v24 }
 0x4ad   :  { %v1289_v0 = vpack.c.bf16 %v1288_v9, %v1287_v61 }
 0x4af   :  { %8400 = vmatmul.mubr.msk.bf16.vlgmr.msra.gmra.mrb[32].mxu1 %vm361_vm5, %v1289_v0 }
 0x527   :  { %v10049_v1 = vpop.f32.mrb[4].mxu1 }
 0x528   :  { %v8317_v36 = vpop.f32.mrb[5].mxu1 }
 0x529   :  { %v10051_v3 = vpop.f32.mrb[6].mxu1 }
 0x52a   :  { %v8318_v31 = vpop.f32.mrb[7].mxu1 }
 0x531   :  { %v550_v4 = vpop.f32.mrb[8].mxu1 }
 0x532   :  { %v8329_v22 = vpop.f32.mrb[9].mxu1 }
 0x533   :  { %v553_v38 = vpop.f32.mrb[10].mxu1 }
 0x534   :  { %v9071_v24 = vpack.i.bf16 %v553_v38, %v550_v4  ;;  %v8330_v6 = vpop.f32.mrb[11].mxu1 }
 0x536   :  { %9072 = vrot.lane.b32.xlu0 %v9071_v24, %s9668_s11 }
 0x539   :  { %v675_v8 = vpop.f32.mrb[12].mxu1 }
 0x53a   :  { %v8341_v10 = vpop.f32.mrb[13].mxu1 }
 0x53b   :  { %v678_v13 = vpop.f32.mrb[14].mxu1 }
 0x53c   :  { %v9076_v42 = vpack.i.bf16 %v678_v13, %v675_v8  ;;  %v8342_v45 = vpop.f32.mrb[15].mxu1 }
 0x53e   :  { %9077 = vrot.lane.b32.xlu1 %v9076_v42, %s9667_s7 }
 0x542   :  { %1449 = vperm.xlu1 %9101, %v133_v49  }
 0x545   :  { %v800_v15 = vpop.f32.mrb[16].mxu1 }
 0x546   :  { %v8353_v46 = vpop.f32.mrb[17].mxu1  ;;  %1459 = vperm.xlu1 %9101, %v135_v11  }
 0x547   :  { %v803_v20 = vpop.f32.mrb[18].mxu1 }
 0x548   :  { %v9081_v23 = vpack.i.bf16 %v803_v20, %v800_v15  ;;  %v8354_v48 = vpop.f32.mrb[19].mxu1 }
 0x549   :  { %v9227_v48 = vld [vmem:[%s10094_s9] sm:$0xff]  }
 0x54a   :  { %9082 = vrot.lane.b32.xlu0 %v9081_v23, %s9669_s12  ;;  %1464 = vperm.xlu1 %9101, %v136_v29  }
 0x54b   :  { %8411 = vmatprep.subr.bf16.mxu1 %v9227_v48 }
 0x54c   :  { %8412 = vmatpush3.bf16.msra.mxu1 %v9227_v48 }
 0x555   :  { %v10056_v51 = vpop.f32.mrb[20].mxu1 }
 0x556   :  { %v8365_v55 = vpop.f32.mrb[21].mxu1 }
 0x557   :  { %v10058_v27 = vpop.f32.mrb[22].mxu1  ;;  %v9229_v55 = vld [vmem:[%s10047_s10] sm:$0xff]  }
 0x558   :  { %v8366_v28 = vpop.f32.mrb[23].mxu1  ;;  %8419 = vmatprep.subr.bf16.mxu0 %v9229_v55 }
 0x55d   :  { %v1080_v30 = vpop.f32.mrb[24].mxu1 }
 0x55e   :  { %v8377_v33 = vpop.f32.mrb[25].mxu1 }
 0x55f   :  { %v1083_v56 = vpop.f32.mrb[26].mxu1 }
 0x560   :  { %v9086_v34 = vpack.i.bf16 %v1083_v56, %v1080_v30  ;;  %v8378_v2 = vpop.f32.mrb[27].mxu1  ;;  %v7777_v30 = vld [vmem:[%s10103_s18] ss:$0 sm:$0xff] }
 0x562   :  { %9087 = vrot.lane.b32.xlu0 %v9086_v34, %s9668_s11 }
 0x565   :  { %v1205_v35 = vpop.f32.mrb[28].mxu1 }
 0x566   :  { %v8389_v37 = vpop.f32.mrb[29].mxu1 }
 0x567   :  { %v1208_v59 = vpop.f32.mrb[30].mxu1 }
 0x568   :  { %v9091_v39 = vpack.i.bf16 %v1208_v59, %v1205_v35  ;;  %v8390_v41 = vpop.f32.mrb[31].mxu1 }
 0x56a   :  { %9092 = vrot.lane.b32.xlu0 %v9091_v39, %s9667_s7 }
 0x582   :  { %v1330_v43 = vpop.f32.mrb[32].mxu1 }
 0x583   :  { %v8401_v5 = vpop.f32.mrb[33].mxu1 }
 0x584   :  { %v1333_v7 = vpop.f32.mrb[34].mxu1 }
 0x585   :  { %v9096_v63 = vpack.i.bf16 %v1333_v7, %v1330_v43  ;;  %v8402_v47 = vpop.f32.mrb[35].mxu1 }
 0x587   :  { %9097 = vrot.lane.b32.xlu0 %v9096_v63, %s9669_s12 }
 0x58b   :  { %1454 = vperm.xlu0 %9102, %v134_v57  }
 0x5a8   :  { %v9073_v50 = vpop.permute.xlu0 %9072 }
 0x5a9   :  { %v9075_v53 = vunpack.i.h.bf16 %v9073_v50  ;;  %v9074_v32 = vunpack.i.l.bf16 %v9073_v50 }
 0x5ab   :  { %v832_v58 = vsel %vm303_vm4, %v10051_v3, %v9075_v53  ;;  %v831_v40 = vsel %vm303_vm4, %v10049_v1, %v9074_v32 }
 0x5b0   :  { %v9078_v52 = vpop.permute.xlu1 %9077 }
 0x5b1   :  { %v9080_v25 = vunpack.i.h.bf16 %v9078_v52  ;;  %v9079_v44 = vunpack.i.l.bf16 %v9078_v52 }
 0x5b3   :  { %v833_v61 = vsel %vm361_vm5, %v831_v40, %v9079_v44  ;;  %v834_v9 = vsel %vm361_vm5, %v832_v58, %v9080_v25 }
 0x5bc   :  { %v9083_v54 = vpop.permute.xlu0 %9082 }
 0x5bd   :  { %v9085_v60 = vunpack.i.h.bf16 %v9083_v54  ;;  %v9084_v26 = vunpack.i.l.bf16 %v9083_v54 }
 0x5bf   :  { %v836_v0 = vsel %vm835_vm6, %v833_v61, %v9084_v26  ;;  %v837_v36 = vsel %vm835_vm6, %v834_v9, %v9085_v60 }
 0x5c0   :  { %v1367_v31 = vpack.c.bf16 %v837_v36, %v836_v0 }
 0x5c1   :  { %v10105_v28 = vpop.permute.xlu1 %1449 }
 0x5c2   :  { %8407 = vmatprep.mubr.msk.bf16.mxu0 %vm242_vm2, %v1367_v31 }
 0x5c5   :  { %v10108_v37 = vpop.permute.xlu1 %1459 }
 0x5c9   :  { %v10119_v49 = vpop.permute.xlu1 %1464 }
 0x5d4   :  { %v9088_v4 = vpop.permute.xlu0 %9087 }
 0x5d5   :  { %v9090_v38 = vunpack.i.h.bf16 %v9088_v4  ;;  %v9089_v3 = vunpack.i.l.bf16 %v9088_v4 }
 0x5d7   :  { %v1362_v8 = vsel %vm303_vm4, %v10058_v27, %v9090_v38  ;;  %v1361_v10 = vsel %vm303_vm4, %v10056_v51, %v9089_v3  ;;  %v9228_v51 = vld [vmem:[%s10094_s9 + $0x8] sm:$0xff]  }
 0x5d8   :  { %8413 = vmatprep.subr.bf16.mxu1 %v9228_v51  ;;  %v9230_v27 = vld [vmem:[%s10047_s10 + $0x8] sm:$0xff]  }
 0x5d9   :  { %8414 = vmatpush3.bf16.msra.mxu1 %v9228_v51 }
 0x5dc   :  { %v9093_v22 = vpop.permute.xlu0 %9092 }
 0x5dd   :  { %v9095_v24 = vunpack.i.h.bf16 %v9093_v22  ;;  %v9094_v6 = vunpack.i.l.bf16 %v9093_v22 }
 0x5df   :  { %v1363_v45 = vsel %vm361_vm5, %v1361_v10, %v9094_v6  ;;  %v1364_v15 = vsel %vm361_vm5, %v1362_v8, %v9095_v24 }
 0x5f9   :  { %v9098_v1 = vpop.permute.xlu0 %9097 }
 0x5fa   :  { %v9100_v13 = vunpack.i.h.bf16 %v9098_v1  ;;  %v9099_v42 = vunpack.i.l.bf16 %v9098_v1 }
 0x5fc   :  { %v1365_v46 = vsel %vm835_vm6, %v1363_v45, %v9099_v42  ;;  %v1366_v20 = vsel %vm835_vm6, %v1364_v15, %v9100_v13 }
 0x5fd   :  { %v1368_v23 = vpack.c.bf16 %v1366_v20, %v1365_v46 }
 0x5ff   :  { %8408 = vmatmul.mubr.msk.bf16.vlgmr.msra.gmra.mrb[36].mxu0 %vm242_vm2, %v1368_v23 }
 0x600   :  { %8420 = vmatpush3.bf16.msra.mxu0 %v9229_v55  ;;  %v1517_v55 = vlaneseq }
 0x601   :  { %8421 = vmatprep.subr.bf16.mxu0 %v9230_v27 }
 0x604   :  { %8422 = vmatpush3.bf16.msra.mxu0 %v9230_v27 }
 0x60a   :  { %v10112_v12 = vpop.permute.xlu0 %1454 }
 0x6d2   :  { %v8409_v33 = vpop.f32.mrb[36].mxu0 }
 0x6d3   :  { %v1436_v56 = vadd.f32 %v8409_v33, %v7777_v30  ;;  %v1427_v34 = vpop.f32.mrb[37].mxu0 }
 0x6d4   :  { %v1428_v2 = vadd.f32 %v7777_v30, %v1427_v34  ;;  %v8410_v35 = vpop.f32.mrb[38].mxu0 }
 0x6d5   :  { %v1439_v62 = vadd.f32 %v8410_v35, %v7777_v30  ;;  %v1430_v59 = vpop.f32.mrb[39].mxu0  ;;  %v1445_v39 = vadd.f32 %v1436_v56, %v9723_v18  ;;  %v10145_v56 = vld [vmem:[%s10137_s1] sm:$0xf] }
 0x6d6   :  { %v1443_v41 = vadd.f32 %v1428_v2, %v9719_v16  ;;  %v1431_v19 = vadd.f32 %v7777_v30, %v1430_v59  ;;  %v10139_v30 = vshrl.u32 %v1517_v55, 7 }
 0x6d7   :  { %v1446_v5 = vadd.f32 %v1439_v62, %v9717_v14  ;;  %v1469_v63 = vmul.f32 %v10108_v37, %v1445_v39 }
 0x6d8   :  { %v1467_v43 = vmul.f32 %v10105_v28, %v1443_v41  ;;  %v1444_v7 = vadd.f32 %v1431_v19, %v9721_v17  ;;  %v10142_v33 = vsub.s32 0, %v10139_v30  ;;  %v10148_v34 = vsub.s32 1, %v10139_v30 }
 0x6d9   :  { %v1470_v18 = vmul.f32 %v10119_v49, %v1446_v5  ;;  %v1474_v29 = vsel %vm242_vm2, %v1469_v63, 0.0 }
 0x6da   :  { %v1468_v47 = vmul.f32 %v10112_v12, %v1444_v7  ;;  %v1471_v11 = vsel %vm242_vm2, %v1467_v43, 0.0  ;;  %v1520_v2 = vrot.slane %v10145_v56, %v10142_v33  ;;  %v1528_v62 = vrot.slane %v10145_v56, %v10148_v34 }
 0x6db   :  { %v1476_v14 = vsel %vm242_vm2, %v1470_v18, 0.0 }
 0x6dc   :  { %v1472_v16 = vsel %vm242_vm2, %v1468_v47, 0.0 }
 0x6dd   :  { %v1473_v57 = vadd.f32 %v1472_v16, %v1471_v11 }
 0x6df   :  { %v1475_v50 = vadd.f32 %v1474_v29, %v1473_v57 }
 0x6e1   :  { %v1477_v52 = vadd.f32 %v1476_v14, %v1475_v50  ;;  %v9231_v50 = vld [vmem:[%s10047_s10 + $0x10] sm:$0xff]   ;;  %v9232_v14 = vld [vmem:[%s10047_s10 + $0x18] sm:$0xff]  }
 0x6e2   :  { %8423 = vmatprep.subr.bf16.mxu0 %v9231_v50 }
 0x6e3   :  { %v1478_v17 = vrot.slane %v1477_v52, 4  ;;  %8424 = vmatpush3.bf16.msra.mxu0 %v9231_v50 }
 0x6e4   :  { %8425 = vmatprep.subr.bf16.mxu0 %v9232_v14 }
 0x6e5   :  { %v1479_v53 = vadd.f32 %v1478_v17, %v1477_v52  ;;  %v7782_v52 = vld [vmem:[%s10162_s15] ss:$0 sm:$0xff] }
 0x6e7   :  { %v1480_v32 = vrot.slane %v1479_v53, 2  ;;  %8426 = vmatpush3.bf16.msra.mxu0 %v9232_v14 }
 0x6e8   :  { %8445 = vmatprep.subr.bf16.mxu0 %v9653_v21 }
 0x6e9   :  { %v1481_v25 = vadd.f32 %v1480_v32, %v1479_v53 }
 0x6eb   :  { %v1482_v44 = vrot.slane %v1481_v25, 1 }
 0x6ed   :  { %v1483_v54 = vadd.f32 %v1482_v44, %v1481_v25 }
 0x6ef   :  { %v1484_v58 = vmul.f32 0.05, %v1483_v54 }
 0x6f1   :  { %v1485_v40 = vsub.f32 %v1443_v41, %v1484_v58  ;;  %v1486_v60 = vsub.f32 %v1444_v7, %v1484_v58  ;;  %v1487_v26 = vsub.f32 %v1445_v39, %v1484_v58  ;;  %v1488_v61 = vsub.f32 %v1446_v5, %v1484_v58 }
 0x6f3   :  { %v1489_v9 = vmul.f32 %v1485_v40, %v1485_v40  ;;  %v1490_v0 = vmul.f32 %v1486_v60, %v1486_v60  ;;  %v1491_v36 = vmul.f32 %v1487_v26, %v1487_v26  ;;  %v1492_v31 = vmul.f32 %v1488_v61, %v1488_v61 }
 0x6f5   :  { %v1493_v4 = vmul.f32 %v1489_v9, %v10105_v28  ;;  %v1494_v22 = vmul.f32 %v1490_v0, %v10112_v12  ;;  %v1495_v38 = vmul.f32 %v1491_v36, %v10108_v37  ;;  %v1496_v3 = vmul.f32 %v1492_v31, %v10119_v49  ;;  %v9233_v31 = vld [vmem:[%s9710_s13 + $0x10] sm:$0xff]  }
 0x6f6   :  { %8431 = vmatprep.subr.bf16.mxu1 %v9233_v31 }
 0x6f7   :  { %v1497_v24 = vsel %vm242_vm2, %v1493_v4, 0.0  ;;  %v1498_v6 = vsel %vm242_vm2, %v1494_v22, 0.0  ;;  %v1500_v8 = vsel %vm242_vm2, %v1495_v38, 0.0  ;;  %v1502_v13 = vsel %vm242_vm2, %v1496_v3, 0.0  ;;  %v9234_v4 = vld [vmem:[%s9710_s13 + $0x18] sm:$0xff]   ;;  %s11096_s13 = sld [smem:[%s11941_s0 + %s9684_s16]]  }
 0x6f8   :  { %v1499_v1 = vadd.f32 %v1498_v6, %v1497_v24  ;;  %v7787_v22 = vld [vmem:[%s10175_s30] ss:$0 sm:$0xff] }
 0x6fa   :  { %v1501_v10 = vadd.f32 %v1500_v8, %v1499_v1 }
 0x6fc   :  { %v1503_v42 = vadd.f32 %v1502_v13, %v1501_v10 }
 0x6fe   :  { %v1504_v45 = vrot.slane %v1503_v42, 4 }
 0x700   :  { %v1505_v15 = vadd.f32 %v1504_v45, %v1503_v42 }
 0x702   :  { %v1506_v46 = vrot.slane %v1505_v15, 2 }
 0x704   :  { %v1507_v20 = vadd.f32 %v1506_v46, %v1505_v15 }
 0x706   :  { %v1508_v23 = vrot.slane %v1507_v20, 1 }
 0x708   :  { %v1509_v48 = vadd.f32 %v1508_v23, %v1507_v20 }
 0x70a   :  { %v1510_v51 = vmul.f32 0.05, %v1509_v48 }
 0x70c   :  { %v1511_v27 = vadd.f32 1e-05, %v1510_v51 }
 0x70e   :  { %9333 = vrsqrt.f32 %v1511_v27 }
 0x718   :  { %v9334_v35 = vpop.eup %9333 }
 0x719   :  { %v1513_v59 = vmul.f32 %v9334_v35, %v1485_v40  ;;  %v1514_v39 = vmul.f32 %v9334_v35, %v1486_v60  ;;  %v1515_v41 = vmul.f32 %v9334_v35, %v1487_v26  ;;  %v1516_v19 = vmul.f32 %v9334_v35, %v1488_v61 }
 0x71b   :  { %v1521_v43 = vmul.f32 %v1520_v2, %v1513_v59  ;;  %v1522_v5 = vmul.f32 %v1520_v2, %v1514_v39  ;;  %v1523_v7 = vmul.f32 %v1520_v2, %v1515_v41  ;;  %v1524_v63 = vmul.f32 %v1520_v2, %v1516_v19 }
 0x71d   :  { %v1529_v47 = vadd.f32 %v1528_v62, %v1521_v43  ;;  %v1530_v11 = vadd.f32 %v1528_v62, %v1522_v5  ;;  %v1531_v18 = vadd.f32 %v1528_v62, %v1523_v7  ;;  %v1532_v16 = vadd.f32 %v1528_v62, %v1524_v63 }
 0x71f   :  { %v1537_v57 = vpack.c.bf16 %v1530_v11, %v1529_v47  ;;  %v1538_v29 = vpack.c.bf16 %v1532_v16, %v1531_v18 }
 0x721   :  { %8415 = vmatprep.mubr.msk.bf16.mxu1 %vm242_vm2, %v1537_v57 }
 0x722   :  { %8416 = vmatmul.mubr.msk.bf16.vlgmr.msra.gmra.mrb[36].mxu1 %vm242_vm2, %v1538_v29 }
 0x723   :  { %8432 = vmatpush3.bf16.msra.mxu1 %v9233_v31 }
 0x724   :  { %8433 = vmatprep.subr.bf16.mxu1 %v9234_v4 }
 0x727   :  { %8434 = vmatpush3.bf16.msra.mxu1 %v9234_v4 }
 0x728   :  { %8439 = vmatprep.subr.bf16.mxu1 %v9653_v21 }
 0x7f5   :  { %v8417_v17 = vpop.f32.mrb[36].mxu1 }
 0x7f6   :  { %v1607_v53 = vadd.f32 %v8417_v17, %v7782_v52  ;;  %v1598_v32 = vpop.f32.mrb[37].mxu1 }
 0x7f7   :  { %v1599_v25 = vadd.f32 %v7782_v52, %v1598_v32  ;;  %v8418_v44 = vpop.f32.mrb[38].mxu1 }
 0x7f8   :  { %v1610_v54 = vadd.f32 %v8418_v44, %v7782_v52  ;;  %v1601_v58 = vpop.f32.mrb[39].mxu1  ;;  %v1615_v60 = vmax.f32 %v1607_v53, 0.0 }
 0x7f9   :  { %v1602_v40 = vadd.f32 %v7782_v52, %v1601_v58  ;;  %v1613_v61 = vmax.f32 %v1599_v25, 0.0 }
 0x7fa   :  { %v1616_v26 = vmax.f32 %v1610_v54, 0.0 }
 0x7fb   :  { %v1614_v9 = vmax.f32 %v1602_v40, 0.0 }
 0x7fc   :  { %v1626_v0 = vpack.c.bf16 %v1616_v26, %v1615_v60 }
 0x7fd   :  { %v1625_v36 = vpack.c.bf16 %v1614_v9, %v1613_v61 }
 0x7ff   :  { %8427 = vmatprep.mubr.msk.bf16.mxu0 %vm1658_vm7, %v1625_v36 }
 0x800   :  { %8428 = vmatmul.mubr.msk.bf16.vlgmr.msra.gmra.mrb[40].mxu0 %vm1658_vm7, %v1626_v0 }
 0x801   :  { %8447 = vmatprep.mubr.msk.bf16.mxu0 %vm9654_vm3, %v9653_v21 }
 0x8d3   :  { %v8429_v38 = vpop.f32.mrb[40].mxu0 }
 0x8d4   :  { %v1708_v3 = vadd.f32 %v8429_v38, %v7787_v22  ;;  %v1699_v24 = vpop.f32.mrb[41].mxu0 }
 0x8d5   :  { %v1700_v6 = vadd.f32 %v7787_v22, %v1699_v24  ;;  %v8430_v1 = vpop.f32.mrb[42].mxu0  ;;  %v10195_v24 = vsub.s32 2, %v10139_v30 }
 0x8d6   :  { %v1711_v8 = vadd.f32 %v8430_v1, %v7787_v22  ;;  %v1702_v10 = vpop.f32.mrb[43].mxu0  ;;  %v1716_v13 = vadd.f32 %v1708_v3, %v1531_v18 }
 0x8d7   :  { %v1714_v42 = vadd.f32 %v1700_v6, %v1529_v47  ;;  %v1703_v45 = vadd.f32 %v7787_v22, %v1702_v10  ;;  %v10198_v6 = vsub.s32 3, %v10139_v30  ;;  %v1771_v1 = vrot.slane %v10145_v56, %v10195_v24 }
 0x8d8   :  { %v1717_v46 = vadd.f32 %v1711_v8, %v1532_v16  ;;  %v1720_v23 = vmul.f32 %v1716_v13, %v10108_v37 }
 0x8d9   :  { %v1718_v15 = vmul.f32 %v1714_v42, %v10105_v28  ;;  %v1715_v20 = vadd.f32 %v1703_v45, %v1530_v11  ;;  %v1779_v10 = vrot.slane %v10145_v56, %v10198_v6 }
 0x8da   :  { %v1721_v55 = vmul.f32 %v1717_v46, %v10119_v49  ;;  %v1725_v35 = vsel %vm242_vm2, %v1720_v23, 0.0 }
 0x8db   :  { %v1719_v48 = vmul.f32 %v1715_v20, %v10112_v12  ;;  %v1722_v51 = vsel %vm242_vm2, %v1718_v15, 0.0 }
 0x8dc   :  { %v1727_v59 = vsel %vm242_vm2, %v1721_v55, 0.0 }
 0x8dd   :  { %v1723_v27 = vsel %vm242_vm2, %v1719_v48, 0.0 }
 0x8de   :  { %v1724_v2 = vadd.f32 %v1723_v27, %v1722_v51 }
 0x8e0   :  { %v1726_v62 = vadd.f32 %v1725_v35, %v1724_v2 }
 0x8e2   :  { %v1728_v39 = vadd.f32 %v1727_v59, %v1726_v62  ;;  %v7804_v62 = vld [vmem:[%s9734_s21 + $0x1] ss:$0 sm:$0xff]  ;;  %s9685_s21 = smov 22  }
 0x8e4   :  { %v1729_v41 = vrot.slane %v1728_v39, 4 }
 0x8e6   :  { %v1730_v19 = vadd.f32 %v1729_v41, %v1728_v39 }
 0x8e8   :  { %v1731_v43 = vrot.slane %v1730_v19, 2 }
 0x8ea   :  { %v1732_v5 = vadd.f32 %v1731_v43, %v1730_v19 }
 0x8ec   :  { %v1733_v7 = vrot.slane %v1732_v5, 1 }
 0x8ee   :  { %v1734_v63 = vadd.f32 %v1733_v7, %v1732_v5 }
 0x8f0   :  { %v1735_v47 = vmul.f32 0.05, %v1734_v63 }
 0x8f2   :  { %v1736_v11 = vsub.f32 %v1714_v42, %v1735_v47  ;;  %v1737_v18 = vsub.f32 %v1715_v20, %v1735_v47  ;;  %v1738_v16 = vsub.f32 %v1716_v13, %v1735_v47  ;;  %v1739_v57 = vsub.f32 %v1717_v46, %v1735_v47 }
 0x8f4   :  { %v1740_v29 = vmul.f32 %v1736_v11, %v1736_v11  ;;  %v1741_v50 = vmul.f32 %v1737_v18, %v1737_v18  ;;  %v1742_v14 = vmul.f32 %v1738_v16, %v1738_v16  ;;  %v1743_v52 = vmul.f32 %v1739_v57, %v1739_v57 }
 0x8f6   :  { %v1744_v17 = vmul.f32 %v1740_v29, %v10105_v28  ;;  %v1745_v53 = vmul.f32 %v1741_v50, %v10112_v12  ;;  %v1746_v32 = vmul.f32 %v1742_v14, %v10108_v37  ;;  %v1747_v25 = vmul.f32 %v1743_v52, %v10119_v49 }
 0x8f8   :  { %v1748_v44 = vsel %vm242_vm2, %v1744_v17, 0.0  ;;  %v1749_v54 = vsel %vm242_vm2, %v1745_v53, 0.0  ;;  %v1751_v40 = vsel %vm242_vm2, %v1746_v32, 0.0  ;;  %v1753_v26 = vsel %vm242_vm2, %v1747_v25, 0.0 }
 0x8f9   :  { %v1750_v58 = vadd.f32 %v1749_v54, %v1748_v44 }
 0x8fb   :  { %v1752_v60 = vadd.f32 %v1751_v40, %v1750_v58 }
 0x8fd   :  { %v1754_v61 = vadd.f32 %v1753_v26, %v1752_v60 }
 0x8ff   :  { %v1755_v9 = vrot.slane %v1754_v61, 4 }
 0x901   :  { %v1756_v0 = vadd.f32 %v1755_v9, %v1754_v61 }
 0x903   :  { %v1757_v36 = vrot.slane %v1756_v0, 2 }
 0x905   :  { %v1758_v31 = vadd.f32 %v1757_v36, %v1756_v0 }
 0x907   :  { %v1759_v4 = vrot.slane %v1758_v31, 1 }
 0x909   :  { %v1760_v22 = vadd.f32 %v1759_v4, %v1758_v31 }
 0x90b   :  { %v1761_v38 = vmul.f32 0.05, %v1760_v22 }
 0x90d   :  { %v1762_v3 = vadd.f32 1e-05, %v1761_v38 }
 0x90f   :  { %9335 = vrsqrt.f32 %v1762_v3 }
 0x919   :  { %v9336_v8 = vpop.eup %9335 }
 0x91a   :  { %v1765_v13 = vmul.f32 %v9336_v8, %v1737_v18  ;;  %v1764_v42 = vmul.f32 %v9336_v8, %v1736_v11  ;;  %v1766_v45 = vmul.f32 %v9336_v8, %v1738_v16  ;;  %v1767_v15 = vmul.f32 %v9336_v8, %v1739_v57 }
 0x91c   :  { %v1773_v46 = vmul.f32 %v1771_v1, %v1765_v13  ;;  %v1772_v20 = vmul.f32 %v1771_v1, %v1764_v42  ;;  %v1774_v23 = vmul.f32 %v1771_v1, %v1766_v45  ;;  %v1775_v48 = vmul.f32 %v1771_v1, %v1767_v15 }
 0x91e   :  { %v10204_v51 = vadd.f32 %v1779_v10, %v1772_v20  ;;  %v10206_v30 = vadd.f32 %v1779_v10, %v1773_v46  ;;  %v10208_v55 = vadd.f32 %v1779_v10, %v1774_v23  ;;  %v10210_v27 = vadd.f32 %v1779_v10, %v1775_v48  ;;  %v10296_v10 = vld [vmem:[%s9820_s3] ss:$0 sm:$0xff]  ;;  %s7728_s3 = sld [smem:[%s11941_s0 + %s9668_s11]]  }
 0x920   :  { %v1798_v56 = vpack.c.bf16 %v10206_v30, %v10204_v51  ;;  %v1799_v2 = vpack.c.bf16 %v10210_v27, %v10208_v55 }
 0x922   :  { %8435 = vmatprep.mubr.msk.bf16.mxu1 %vm242_vm2, %v1798_v56 }
 0x923   :  { %8436 = vmatmul.mubr.msk.bf16.vlgmr.msra.gmra.mrb[40].mxu1 %vm242_vm2, %v1799_v2 }
 0x924   :  { %8441 = vmatprep.mubr.msk.bf16.mxu1 %vm9654_vm3, %v9653_v21 }
 0x9f6   :  { %v8437_v35 = vpop.f32.mrb[40].mxu1 }
 0x9f7   :  { %v1858_v59 = vpop.f32.mrb[41].mxu1  ;;  %v1867_v41 = vadd.f32 %v8437_v35, %v7804_v62 }
 0x9f8   :  { %v8438_v39 = vpop.f32.mrb[42].mxu1  ;;  %v1859_v5 = vadd.f32 %v7804_v62, %v1858_v59 }
 0x9f9   :  { %v1870_v19 = vadd.f32 %v8438_v39, %v7804_v62  ;;  %v1861_v43 = vpop.f32.mrb[43].mxu1 }
 0x9fa   :  { %v1862_v7 = vadd.f32 %v7804_v62, %v1861_v43 }
 0x9fb   :  { %v10221_v63 = vpack.c.bf16 %v1870_v19, %v1867_v41 }
 0x9fc   :  { %v10223_v47 = vpack.c.bf16 %v1862_v7, %v1859_v5 }
 0x9fe   :  { %2001 = vrot.lane.b32.xlu1 %v10223_v47, %s9658_s25  ;;  %1876 = vrot.lane.b32.xlu0 %v10223_v47, %s9656_s23 }
 0xa02   :  { %2126 = vrot.lane.b32.xlu1 %v10223_v47, %s9657_s24  ;;  %1999 = vrot.lane.b32.xlu0 %v10223_v47, %s9655_s22 }
 0xa06   :  { %2251 = vrot.lane.b32.xlu1 %v10223_v47, %s9659_s26  ;;  %2124 = vrot.lane.b32.xlu0 %v10223_v47, %s9660_s27 }
 0xa0a   :  { %2405 = vrot.lane.b32.xlu1 %v10221_v63, %s9656_s23  ;;  %2249 = vrot.lane.b32.xlu0 %v10223_v47, %s9661_s28 }
 0xa0e   :  { %2528 = vrot.lane.b32.xlu1 %v10221_v63, %s9655_s22  ;;  %2530 = vrot.lane.b32.xlu0 %v10221_v63, %s9658_s25 }
 0xa12   :  { %2653 = vrot.lane.b32.xlu1 %v10221_v63, %s9660_s27  ;;  %2655 = vrot.lane.b32.xlu0 %v10221_v63, %s9657_s24 }
 0xa16   :  { %2778 = vrot.lane.b32.xlu1 %v10221_v63, %s9661_s28  ;;  %2780 = vrot.lane.b32.xlu0 %v10221_v63, %s9659_s26 }
 0xa1a   :  { %1952 = vrot.lane.b32.xlu1 %v10223_v47, %s9662_s29 }
 0xa70   :  { %v2002_v11 = vpop.permute.xlu1 %2001  ;;  %v1877_v18 = vpop.permute.xlu0 %1876 }
 0xa71   :  { %v1882_v16 = vsel %vm303_vm4, %v1877_v18, 0  ;;  %v2007_v50 = vsel %vm303_vm4, %v2002_v11, 0 }
 0xa72   :  { %8440 = vmatpush3.bf16.xpose.msra.mxu1 %v1882_v16 }
 0xa73   :  { %8451 = vmatprep.subr.bf16.mxu1 %v9653_v21 }
 0xa74   :  { %v2127_v57 = vpop.permute.xlu1 %2126  ;;  %v2000_v52 = vpop.permute.xlu0 %1999 }
 0xa75   :  { %v2132_v53 = vsel %vm303_vm4, %v2127_v57, 0 }
 0xa78   :  { %v2252_v29 = vpop.permute.xlu1 %2251  ;;  %v2125_v25 = vpop.permute.xlu0 %2124 }
 0xa79   :  { %8442 = vmatmul.mubr.msk.bf16.vlgmr.msra.gmra.mrb[44].mxu1 %vm303_vm4, %v10223_v47  ;;  %v2257_v54 = vsel %vm303_vm4, %v2252_v29, 0 }
 0xa7a   :  { %8452 = vmatpush3.bf16.xpose.msra.mxu1 %v2007_v50  ;;  %8453 = vmatprep.mubr.msk.bf16.mxu1 %vm9654_vm3, %v9653_v21 }
 0xa7b   :  { %8463 = vmatprep.subr.bf16.mxu1 %v9653_v21 }
 0xa7c   :  { %v2406_v14 = vpop.permute.xlu1 %2405  ;;  %v2250_v40 = vpop.permute.xlu0 %2249 }
 0xa7d   :  { %v2411_v60 = vsel %vm303_vm4, %v2406_v14, 0 }
 0xa80   :  { %v2529_v17 = vpop.permute.xlu1 %2528  ;;  %v2531_v26 = vpop.permute.xlu0 %2530 }
 0xa81   :  { %8454 = vmatmul.mubr.msk.bf16.vlgmr.msra.gmra.mrb[48].mxu1 %vm303_vm4, %v2000_v52  ;;  %v2536_v61 = vsel %vm303_vm4, %v2531_v26, 0 }
 0xa82   :  { %8464 = vmatpush3.bf16.xpose.msra.mxu1 %v2132_v53  ;;  %8465 = vmatprep.mubr.msk.bf16.mxu1 %vm9654_vm3, %v9653_v21 }
 0xa83   :  { %8475 = vmatprep.subr.bf16.mxu1 %v9653_v21 }
 0xa84   :  { %v2654_v32 = vpop.permute.xlu1 %2653  ;;  %v2656_v9 = vpop.permute.xlu0 %2655 }
 0xa85   :  { %v2661_v0 = vsel %vm303_vm4, %v2656_v9, 0 }
 0xa88   :  { %v2779_v44 = vpop.permute.xlu1 %2778  ;;  %v2781_v36 = vpop.permute.xlu0 %2780 }
 0xa89   :  { %8466 = vmatmul.mubr.msk.bf16.vlgmr.msra.gmra.mrb[52].mxu1 %vm303_vm4, %v2125_v25  ;;  %v2786_v31 = vsel %vm303_vm4, %v2781_v36, 0 }
 0xa8a   :  { %8476 = vmatpush3.bf16.xpose.msra.mxu1 %v2257_v54  ;;  %8477 = vmatprep.mubr.msk.bf16.mxu1 %vm9654_vm3, %v9653_v21 }
 0xa8b   :  { %8487 = vmatprep.subr.bf16.mxu1 %v9653_v21 }
 0xa8c   :  { %v1953_v58 = vpop.permute.xlu1 %1952 }
 0xa8d   :  { %8446 = vmatpush3.bf16.msra.mxu0 %v1953_v58 }
 0xa8e   :  { %8457 = vmatprep.subr.bf16.mxu0 %v9653_v21 }
 0xa91   :  { %8478 = vmatmul.mubr.msk.bf16.vlgmr.msra.gmra.mrb[56].mxu1 %vm303_vm4, %v2250_v40 }
 0xa92   :  { %8488 = vmatpush3.bf16.xpose.msra.mxu1 %v2411_v60  ;;  %8489 = vmatprep.mubr.msk.bf16.mxu1 %vm9654_vm3, %v9653_v21 }
 0xa93   :  { %8499 = vmatprep.subr.bf16.mxu1 %v9653_v21 }
 0xa99   :  { %8490 = vmatmul.mubr.msk.bf16.vlgmr.msra.gmra.mrb[60].mxu1 %vm303_vm4, %v10221_v63 }
 0xa9a   :  { %8500 = vmatpush3.bf16.xpose.msra.mxu1 %v2536_v61  ;;  %8501 = vmatprep.mubr.msk.bf16.mxu1 %vm9654_vm3, %v9653_v21 }
 0xa9b   :  { %8511 = vmatprep.subr.bf16.mxu1 %v9653_v21 }
 0xaa1   :  { %8502 = vmatmul.mubr.msk.bf16.vlgmr.msra.gmra.mrb[64].mxu1 %vm303_vm4, %v2529_v17 }
 0xaa2   :  { %8512 = vmatpush3.bf16.xpose.msra.mxu1 %v2661_v0  ;;  %8513 = vmatprep.mubr.msk.bf16.mxu1 %vm9654_vm3, %v9653_v21 }
 0xaa3   :  { %8523 = vmatprep.subr.bf16.mxu1 %v9653_v21 }
 0xaa9   :  { %8514 = vmatmul.mubr.msk.bf16.vlgmr.msra.gmra.mrb[68].mxu1 %vm303_vm4, %v2654_v32 }
 0xaaa   :  { %8524 = vmatpush3.bf16.xpose.msra.mxu1 %v2786_v31  ;;  %8525 = vmatprep.mubr.msk.bf16.mxu1 %vm9654_vm3, %v9653_v21 }
 0xab1   :  { %8526 = vmatmul.mubr.msk.bf16.vlgmr.msra.gmra.mrb[72].mxu1 %vm303_vm4, %v2779_v44 }
 0xb4c   :  { %v1918_v4 = vpop.f32.mrb[44].mxu1 }
 0xb4d   :  { %v1925_v22 = vmul.f32 0.35355338, %v1918_v4  ;;  %v8443_v38 = vpop.f32.mrb[45].mxu1 }
 0xb4e   :  { %v1921_v3 = vpop.f32.mrb[46].mxu1 }
 0xb4f   :  { %v1926_v1 = vmul.f32 0.35355338, %v1921_v3  ;;  %v8444_v8 = vpop.f32.mrb[47].mxu1  ;;  %v10299_v13 = vadd.f32 %v10296_v10, %v1925_v22 }
 0xb51   :  { %v1929_v42 = vsel %vm361_vm5, %v10299_v13, -inf  ;;  %v10304_v45 = vadd.f32 %v10296_v10, %v1926_v1 }
 0xb52   :  { %1930 = vmax.xlane.f32.xlu0 %v1929_v42 }
 0xb53   :  { %v1932_v15 = vsel %vm361_vm5, %v10304_v45, -inf }
 0xb54   :  { %1933 = vmax.xlane.f32.xlu1 %v1932_v15  ;;  %v2043_v46 = vpop.f32.mrb[48].mxu1 }
 0xb55   :  { %v2050_v20 = vmul.f32 0.35355338, %v2043_v46  ;;  %v8455_v23 = vpop.f32.mrb[49].mxu1 }
 0xb56   :  { %v2046_v48 = vpop.f32.mrb[50].mxu1 }
 0xb57   :  { %v2051_v56 = vmul.f32 0.35355338, %v2046_v48  ;;  %v8456_v2 = vpop.f32.mrb[51].mxu1  ;;  %v10309_v35 = vadd.f32 %v10296_v10, %v2050_v20 }
 0xb59   :  { %v2054_v62 = vsel %vm361_vm5, %v10309_v35, -inf  ;;  %v10314_v59 = vadd.f32 %v10296_v10, %v2051_v56 }
 0xb5a   :  { %2055 = vmax.xlane.f32.xlu0 %v2054_v62 }
 0xb5b   :  { %v2057_v43 = vsel %vm361_vm5, %v10314_v59, -inf }
 0xb5c   :  { %v2168_v39 = vpop.f32.mrb[52].mxu1 }
 0xb5d   :  { %v2175_v41 = vmul.f32 0.35355338, %v2168_v39  ;;  %v8467_v19 = vpop.f32.mrb[53].mxu1 }
 0xb5e   :  { %2058 = vmax.xlane.f32.xlu0 %v2057_v43  ;;  %v2171_v5 = vpop.f32.mrb[54].mxu1 }
 0xb5f   :  { %v2176_v7 = vmul.f32 0.35355338, %v2171_v5  ;;  %v8468_v11 = vpop.f32.mrb[55].mxu1  ;;  %v10319_v18 = vadd.f32 %v10296_v10, %v2175_v41 }
 0xb61   :  { %v2179_v16 = vsel %vm361_vm5, %v10319_v18, -inf  ;;  %v10324_v57 = vadd.f32 %v10296_v10, %v2176_v7 }
 0xb62   :  { %2180 = vmax.xlane.f32.xlu1 %v2179_v16 }
 0xb63   :  { %v2182_v29 = vsel %vm361_vm5, %v10324_v57, -inf }
 0xb64   :  { %2183 = vmax.xlane.f32.xlu0 %v2182_v29  ;;  %v2293_v50 = vpop.f32.mrb[56].mxu1 }
 0xb65   :  { %v2300_v14 = vmul.f32 0.35355338, %v2293_v50  ;;  %v8479_v52 = vpop.f32.mrb[57].mxu1 }
 0xb66   :  { %v2296_v17 = vpop.f32.mrb[58].mxu1 }
 0xb67   :  { %v2301_v53 = vmul.f32 0.35355338, %v2296_v17  ;;  %v8480_v32 = vpop.f32.mrb[59].mxu1  ;;  %v10329_v25 = vadd.f32 %v10296_v10, %v2300_v14 }
 0xb69   :  { %v2304_v44 = vsel %vm361_vm5, %v10329_v25, -inf  ;;  %v10334_v54 = vadd.f32 %v10296_v10, %v2301_v53 }
 0xb6a   :  { %2305 = vmax.xlane.f32.xlu1 %v2304_v44 }
 0xb6b   :  { %v2307_v58 = vsel %vm361_vm5, %v10334_v54, -inf }
 0xb6c   :  { %2308 = vmax.xlane.f32.xlu0 %v2307_v58  ;;  %v2447_v40 = vpop.f32.mrb[60].mxu1 }
 0xb6d   :  { %v2454_v60 = vmul.f32 0.35355338, %v2447_v40  ;;  %v8491_v26 = vpop.f32.mrb[61].mxu1 }
 0xb6e   :  { %v2450_v61 = vpop.f32.mrb[62].mxu1 }
 0xb6f   :  { %v2455_v9 = vmul.f32 0.35355338, %v2450_v61  ;;  %v8492_v0 = vpop.f32.mrb[63].mxu1  ;;  %v10339_v36 = vadd.f32 %v10296_v10, %v2454_v60 }
 0xb71   :  { %v10342_v31 = vadd.f32 %v10296_v10, %v2455_v9  ;;  %v2458_v4 = vsel %vm361_vm5, %v10339_v36, -inf }
 0xb72   :  { %2459 = vmax.xlane.f32.xlu1 %v2458_v4 }
 0xb73   :  { %v2461_v22 = vsel %vm361_vm5, %v10342_v31, -inf }
 0xb74   :  { %2462 = vmax.xlane.f32.xlu0 %v2461_v22  ;;  %v2572_v38 = vpop.f32.mrb[64].mxu1 }
 0xb75   :  { %v2579_v3 = vmul.f32 0.35355338, %v2572_v38  ;;  %v8503_v1 = vpop.f32.mrb[65].mxu1 }
 0xb76   :  { %v2575_v8 = vpop.f32.mrb[66].mxu1 }
 0xb77   :  { %v2580_v42 = vmul.f32 0.35355338, %v2575_v8  ;;  %v8504_v15 = vpop.f32.mrb[67].mxu1  ;;  %v10349_v46 = vadd.f32 %v10296_v10, %v2579_v3 }
 0xb79   :  { %v10352_v20 = vadd.f32 %v10296_v10, %v2580_v42  ;;  %v2583_v23 = vsel %vm361_vm5, %v10349_v46, -inf }
 0xb7a   :  { %2584 = vmax.xlane.f32.xlu1 %v2583_v23 }
 0xb7b   :  { %v2586_v48 = vsel %vm361_vm5, %v10352_v20, -inf }
 0xb7c   :  { %2587 = vmax.xlane.f32.xlu0 %v2586_v48  ;;  %v2697_v56 = vpop.f32.mrb[68].mxu1 }
 0xb7d   :  { %v2704_v2 = vmul.f32 0.35355338, %v2697_v56  ;;  %v8515_v62 = vpop.f32.mrb[69].mxu1 }
 0xb7e   :  { %v2700_v39 = vpop.f32.mrb[70].mxu1 }
 0xb7f   :  { %v2705_v41 = vmul.f32 0.35355338, %v2700_v39  ;;  %v8516_v19 = vpop.f32.mrb[71].mxu1  ;;  %v10359_v43 = vadd.f32 %v10296_v10, %v2704_v2 }
 0xb81   :  { %v10362_v5 = vadd.f32 %v10296_v10, %v2705_v41  ;;  %v2708_v7 = vsel %vm361_vm5, %v10359_v43, -inf }
 0xb82   :  { %2709 = vmax.xlane.f32.xlu1 %v2708_v7 }
 0xb83   :  { %v2711_v11 = vsel %vm361_vm5, %v10362_v5, -inf }
 0xb84   :  { %2712 = vmax.xlane.f32.xlu0 %v2711_v11  ;;  %v2822_v16 = vpop.f32.mrb[72].mxu1 }
 0xb85   :  { %v2829_v29 = vmul.f32 0.35355338, %v2822_v16  ;;  %v8527_v50 = vpop.f32.mrb[73].mxu1 }
 0xb86   :  { %v2825_v14 = vpop.f32.mrb[74].mxu1 }
 0xb87   :  { %v2830_v52 = vmul.f32 0.35355338, %v2825_v14  ;;  %v8528_v17 = vpop.f32.mrb[75].mxu1  ;;  %v10369_v53 = vadd.f32 %v10296_v10, %v2829_v29 }
 0xb89   :  { %v10372_v32 = vadd.f32 %v10296_v10, %v2830_v52  ;;  %v2833_v44 = vsel %vm361_vm5, %v10369_v53, -inf }
 0xb8a   :  { %2834 = vmax.xlane.f32.xlu1 %v2833_v44 }
 0xb8b   :  { %v2836_v58 = vsel %vm361_vm5, %v10372_v32, -inf }
 0xb8c   :  { %2837 = vmax.xlane.f32.xlu0 %v2836_v58 }
 0xb9b   :  { %2202 = vrot.lane.b32.xlu1 %v10223_v47, %s9664_s4 }
 0xba2   :  { %2077 = vrot.lane.b32.xlu0 %v10223_v47, %s9665_s5 }
 0xbdf   :  { %v1931_v40 = vpop.xlane.xlu0 %1930 }
 0xbe0   :  { %v1935_v60 = vsub.f32 %v10299_v13, %v1931_v40 }
 0xbe1   :  { %v1934_v26 = vpop.xlane.xlu1 %1933 }
 0xbe2   :  { %v1937_v10 = vmul.f32 1.442695, %v1935_v60  ;;  %v1936_v61 = vsub.f32 %v10304_v45, %v1934_v26 }
 0xbe4   :  { %9337 = vpow2.f32 %v1937_v10  ;;  %v1939_v9 = vmul.f32 1.442695, %v1936_v61 }
 0xbe6   :  { %9339 = vpow2.f32 %v1939_v9 }
 0xbe7   :  { %v2056_v0 = vpop.xlane.xlu0 %2055 }
 0xbe8   :  { %v2060_v4 = vsub.f32 %v10309_v35, %v2056_v0 }
 0xbea   :  { %v2062_v22 = vmul.f32 1.442695, %v2060_v4 }
 0xbeb   :  { %v2059_v38 = vpop.xlane.xlu0 %2058 }
 0xbec   :  { %9341 = vpow2.f32 %v2062_v22  ;;  %v2061_v3 = vsub.f32 %v10314_v59, %v2059_v38 }
 0xbee   :  { %v10386_v1 = vpop.eup %9337  ;;  %v2064_v8 = vmul.f32 1.442695, %v2061_v3 }
 0xbef   :  { %v2181_v42 = vpop.xlane.xlu1 %2180  ;;  %v1941_v13 = vsel %vm361_vm5, %v10386_v1, 0.0 }
 0xbf0   :  { %v10390_v15 = vpop.eup %9339  ;;  %9343 = vpow2.f32 %v2064_v8  ;;  %v2185_v45 = vsub.f32 %v10319_v18, %v2181_v42  ;;  %1942 = vadd.xlane.f32.xlu1 %v1941_v13 }
 0xbf1   :  { %v2184_v23 = vpop.xlane.xlu0 %2183  ;;  %v1944_v35 = vsel %vm361_vm5, %v10390_v15, 0.0 }
 0xbf2   :  { %v2187_v48 = vmul.f32 1.442695, %v2185_v45  ;;  %v2186_v59 = vsub.f32 %v10324_v57, %v2184_v23  ;;  %1945 = vadd.xlane.f32.xlu0 %v1944_v35 }
 0xbf4   :  { %9345 = vpow2.f32 %v2187_v48  ;;  %v2189_v56 = vmul.f32 1.442695, %v2186_v59 }
 0xbf6   :  { %v10396_v2 = vpop.eup %9341  ;;  %9347 = vpow2.f32 %v2189_v56 }
 0xbf7   :  { %v2306_v62 = vpop.xlane.xlu1 %2305  ;;  %v2066_v39 = vsel %vm361_vm5, %v10396_v2, 0.0 }
 0xbf8   :  { %v2310_v18 = vsub.f32 %v10329_v25, %v2306_v62  ;;  %2067 = vadd.xlane.f32.xlu1 %v2066_v39 }
 0xbf9   :  { %v2309_v41 = vpop.xlane.xlu0 %2308 }
 0xbfa   :  { %v10401_v19 = vpop.eup %9343  ;;  %v2312_v7 = vmul.f32 1.442695, %v2310_v18  ;;  %v2311_v11 = vsub.f32 %v10334_v54, %v2309_v41 }
 0xbfb   :  { %v2069_v57 = vsel %vm361_vm5, %v10401_v19, 0.0 }
 0xbfc   :  { %9349 = vpow2.f32 %v2312_v7  ;;  %v2314_v16 = vmul.f32 1.442695, %v2311_v11  ;;  %2070 = vadd.xlane.f32.xlu0 %v2069_v57 }
 0xbfe   :  { %v10406_v29 = vpop.eup %9345  ;;  %9351 = vpow2.f32 %v2314_v16 }
 0xbff   :  { %v2460_v50 = vpop.xlane.xlu1 %2459  ;;  %v2191_v25 = vsel %vm361_vm5, %v10406_v29, 0.0 }
 0xc00   :  { %v10410_v14 = vpop.eup %9347  ;;  %v2464_v52 = vsub.f32 %v10339_v36, %v2460_v50  ;;  %2192 = vadd.xlane.f32.xlu1 %v2191_v25 }
 0xc01   :  { %v2463_v17 = vpop.xlane.xlu0 %2462  ;;  %v2194_v54 = vsel %vm361_vm5, %v10410_v14, 0.0 }
 0xc02   :  { %v2466_v44 = vmul.f32 1.442695, %v2464_v52  ;;  %v2465_v58 = vsub.f32 %v10342_v31, %v2463_v17  ;;  %2195 = vadd.xlane.f32.xlu0 %v2194_v54 }
 0xc04   :  { %9353 = vpow2.f32 %v2466_v44  ;;  %v2468_v40 = vmul.f32 1.442695, %v2465_v58 }
 0xc06   :  { %v10416_v60 = vpop.eup %9349  ;;  %9355 = vpow2.f32 %v2468_v40 }
 0xc07   :  { %v2585_v26 = vpop.xlane.xlu1 %2584  ;;  %v2316_v10 = vsel %vm361_vm5, %v10416_v60, 0.0 }
 0xc08   :  { %v10420_v61 = vpop.eup %9351  ;;  %v2589_v36 = vsub.f32 %v10349_v46, %v2585_v26  ;;  %2317 = vadd.xlane.f32.xlu1 %v2316_v10 }
 0xc09   :  { %v2588_v9 = vpop.xlane.xlu0 %2587  ;;  %v2319_v0 = vsel %vm361_vm5, %v10420_v61, 0.0 }
 0xc0a   :  { %v2591_v31 = vmul.f32 1.442695, %v2589_v36  ;;  %v2590_v4 = vsub.f32 %v10352_v20, %v2588_v9  ;;  %2320 = vadd.xlane.f32.xlu0 %v2319_v0 }
 0xc0c   :  { %9357 = vpow2.f32 %v2591_v31  ;;  %v2593_v22 = vmul.f32 1.442695, %v2590_v4 }
 0xc0e   :  { %v10426_v38 = vpop.eup %9353  ;;  %9359 = vpow2.f32 %v2593_v22 }
 0xc0f   :  { %v2710_v3 = vpop.xlane.xlu1 %2709  ;;  %v2470_v8 = vsel %vm361_vm5, %v10426_v38, 0.0 }
 0xc10   :  { %v10430_v42 = vpop.eup %9355  ;;  %v2714_v46 = vsub.f32 %v10359_v43, %v2710_v3  ;;  %2471 = vadd.xlane.f32.xlu0 %v2470_v8 }
 0xc11   :  { %v2713_v13 = vpop.xlane.xlu0 %2712  ;;  %v2473_v20 = vsel %vm361_vm5, %v10430_v42, 0.0 }
 0xc12   :  { %v2716_v45 = vmul.f32 1.442695, %v2714_v46  ;;  %v2715_v23 = vsub.f32 %v10362_v5, %v2713_v13 }
 0xc14   :  { %9361 = vpow2.f32 %v2716_v45  ;;  %v2718_v35 = vmul.f32 1.442695, %v2715_v23  ;;  %2474 = vadd.xlane.f32.xlu0 %v2473_v20 }
 0xc16   :  { %v10436_v48 = vpop.eup %9357  ;;  %9363 = vpow2.f32 %v2718_v35 }
 0xc17   :  { %v2835_v59 = vpop.xlane.xlu1 %2834  ;;  %v2595_v56 = vsel %vm361_vm5, %v10436_v48, 0.0 }
 0xc18   :  { %v10440_v62 = vpop.eup %9359  ;;  %v2839_v43 = vsub.f32 %v10369_v53, %v2835_v59  ;;  %2596 = vadd.xlane.f32.xlu1 %v2595_v56 }
 0xc19   :  { %v2598_v5 = vsel %vm361_vm5, %v10440_v62, 0.0  ;;  %v2838_v16 = vpop.xlane.xlu0 %2837 }
 0xc1a   :  { %v2841_v39 = vmul.f32 1.442695, %v2839_v43  ;;  %2599 = vadd.xlane.f32.xlu0 %v2598_v5  ;;  %v2840_v50 = vsub.f32 %v10372_v32, %v2838_v16 }
 0xc1b   :  { %v2203_v32 = vpop.permute.xlu1 %2202 }
 0xc1c   :  { %9365 = vpow2.f32 %v2841_v39  ;;  %v2843_v25 = vmul.f32 1.442695, %v2840_v50 }
 0xc1d   :  { %v2078_v17 = vpop.permute.xlu0 %2077 }
 0xc1e   :  { %v10445_v18 = vpop.eup %9361  ;;  %9367 = vpow2.f32 %v2843_v25 }
 0xc1f   :  { %v2720_v41 = vsel %vm361_vm5, %v10445_v18, 0.0 }
 0xc20   :  { %v10449_v7 = vpop.eup %9363  ;;  %2721 = vadd.xlane.f32.xlu0 %v2720_v41 }
 0xc21   :  { %v2723_v11 = vsel %vm361_vm5, %v10449_v7, 0.0 }
 0xc24   :  { %2724 = vadd.xlane.f32.xlu0 %v2723_v11 }
 0xc26   :  { %v10453_v53 = vpop.eup %9365 }
 0xc27   :  { %v2845_v57 = vsel %vm361_vm5, %v10453_v53, 0.0 }
 0xc28   :  { %2846 = vadd.xlane.f32.xlu0 %v2845_v57  ;;  %v10466_v52 = vpop.eup %9367 }
 0xc29   :  { %2327 = vrot.lane.b32.xlu1 %v10223_v47, %s9666_s6  ;;  %v2848_v47 = vsel %vm361_vm5, %v10466_v52, 0.0 }
 0xc3e   :  { %2481 = vrot.lane.b32.xlu0 %v10221_v63, %s9662_s29 }
 0xc42   :  { %2606 = vrot.lane.b32.xlu0 %v10221_v63, %s9665_s5 }
 0xc46   :  { %2731 = vrot.lane.b32.xlu0 %v10221_v63, %s9664_s4 }
 0xc4a   :  { %2856 = vrot.lane.b32.xlu0 %v10221_v63, %s9666_s6 }
 0xc4d   :  { %2849 = vadd.xlane.f32.xlu1 %v2848_v47 }
 0xc7d   :  { %v1943_v54 = vpop.xlane.xlu1 %1942 }
 0xc7e   :  { %9369 = vrcp.f32 %v1943_v54 }
 0xc7f   :  { %v1946_v44 = vpop.xlane.xlu0 %1945 }
 0xc80   :  { %9371 = vrcp.f32 %v1946_v44 }
 0xc85   :  { %v2068_v58 = vpop.xlane.xlu1 %2067 }
 0xc86   :  { %9373 = vrcp.f32 %v2068_v58 }
 0xc88   :  { %v9370_v40 = vpop.eup %9369 }
 0xc89   :  { %v2071_v26 = vpop.xlane.xlu0 %2070  ;;  %v1949_v36 = vmul.f32 %v9370_v40, %v10386_v1 }
 0xc8a   :  { %v9372_v10 = vpop.eup %9371  ;;  %9375 = vrcp.f32 %v2071_v26 }
 0xc8b   :  { %v1950_v63 = vmul.f32 %v9372_v10, %v10390_v15 }
 0xc8d   :  { %v2193_v9 = vpop.xlane.xlu1 %2192  ;;  %v1951_v0 = vpack.c.bf16 %v1950_v63, %v1949_v36 }
 0xc8e   :  { %9377 = vrcp.f32 %v2193_v9 }
 0xc8f   :  { %8448 = vmatmul.mubr.msk.bf16.vlgmr.msra.gmra.mrb[44].mxu0 %vm361_vm5, %v1951_v0  ;;  %v2196_v31 = vpop.xlane.xlu0 %2195 }
 0xc90   :  { %8458 = vmatpush3.bf16.msra.mxu0 %v2078_v17  ;;  %9379 = vrcp.f32 %v2196_v31  ;;  %8459 = vmatprep.mubr.msk.bf16.mxu0 %vm9654_vm3, %v9653_v21  ;;  %v9374_v4 = vpop.eup %9373 }
 0xc91   :  { %8469 = vmatprep.subr.bf16.mxu0 %v9653_v21  ;;  %v2074_v3 = vmul.f32 %v9374_v4, %v10396_v2 }
 0xc94   :  { %v9376_v22 = vpop.eup %9375 }
 0xc95   :  { %v2075_v1 = vmul.f32 %v9376_v22, %v10401_v19  ;;  %v2318_v13 = vpop.xlane.xlu1 %2317 }
 0xc97   :  { %v2321_v15 = vpop.xlane.xlu0 %2320  ;;  %v2076_v8 = vpack.c.bf16 %v2075_v1, %v2074_v3 }
 0xc98   :  { %v9378_v46 = vpop.eup %9377  ;;  %9381 = vrcp.f32 %v2321_v15 }
 0xc99   :  { %8460 = vmatmul.mubr.msk.bf16.vlgmr.msra.gmra.mrb[48].mxu0 %vm361_vm5, %v2076_v8  ;;  %9383 = vrcp.f32 %v2318_v13  ;;  %v2199_v2 = vmul.f32 %v9378_v46, %v10406_v29 }
 0xc9a   :  { %v9380_v45 = vpop.eup %9379  ;;  %8470 = vmatpush3.bf16.msra.mxu0 %v2203_v32  ;;  %8471 = vmatprep.mubr.msk.bf16.mxu0 %vm9654_vm3, %v9653_v21 }
 0xc9b   :  { %v2200_v23 = vmul.f32 %v9380_v45, %v10410_v14  ;;  %8481 = vmatprep.subr.bf16.mxu0 %v9653_v21 }
 0xc9d   :  { %v2472_v19 = vpop.xlane.xlu0 %2471  ;;  %v2201_v20 = vpack.c.bf16 %v2200_v23, %v2199_v2 }
 0xca1   :  { %8472 = vmatmul.mubr.msk.bf16.vlgmr.msra.gmra.mrb[52].mxu0 %vm361_vm5, %v2201_v20  ;;  %v2475_v59 = vpop.xlane.xlu0 %2474 }
 0xca2   :  { %8483 = vmatprep.mubr.msk.bf16.mxu0 %vm9654_vm3, %v9653_v21  ;;  %v9382_v35 = vpop.eup %9381  ;;  %9385 = vrcp.f32 %v2475_v59 }
 0xca3   :  { %v9384_v43 = vpop.eup %9383  ;;  %v2325_v5 = vmul.f32 %v9382_v35, %v10420_v61  ;;  %9387 = vrcp.f32 %v2472_v19 }
 0xca4   :  { %v2324_v14 = vmul.f32 %v9384_v43, %v10416_v60 }
 0xca5   :  { %v2597_v56 = vpop.xlane.xlu1 %2596 }
 0xca6   :  { %v2326_v29 = vpack.c.bf16 %v2325_v5, %v2324_v14 }
 0xca7   :  { %v2600_v39 = vpop.xlane.xlu0 %2599 }
 0xca8   :  { %9389 = vrcp.f32 %v2600_v39 }
 0xca9   :  { %v2328_v41 = vpop.permute.xlu1 %2327  ;;  %9391 = vrcp.f32 %v2597_v56 }
 0xcaa   :  { %8482 = vmatpush3.bf16.msra.mxu0 %v2328_v41 }
 0xcab   :  { %8493 = vmatprep.subr.bf16.mxu0 %v9653_v21 }
 0xcac   :  { %v9386_v16 = vpop.eup %9385 }
 0xcad   :  { %8484 = vmatmul.mubr.msk.bf16.vlgmr.msra.gmra.mrb[56].mxu0 %vm361_vm5, %v2326_v29  ;;  %v2722_v11 = vpop.xlane.xlu0 %2721  ;;  %v9388_v60 = vpop.eup %9387  ;;  %v2479_v50 = vmul.f32 %v9386_v16, %v10430_v42 }
 0xcae   :  { %8495 = vmatprep.mubr.msk.bf16.mxu0 %vm9654_vm3, %v9653_v21  ;;  %v2478_v25 = vmul.f32 %v9388_v60, %v10426_v38 }
 0xcb0   :  { %v2480_v32 = vpack.c.bf16 %v2479_v50, %v2478_v25 }
 0xcb1   :  { %v2725_v57 = vpop.xlane.xlu0 %2724 }
 0xcb2   :  { %9393 = vrcp.f32 %v2725_v57  ;;  %v9390_v17 = vpop.eup %9389 }
 0xcb3   :  { %9395 = vrcp.f32 %v2722_v11  ;;  %v9392_v44 = vpop.eup %9391  ;;  %v2604_v42 = vmul.f32 %v9390_v17, %v10440_v62 }
 0xcb4   :  { %v2603_v38 = vmul.f32 %v9392_v44, %v10436_v48  ;;  %v9236_v44 = vld [vmem:[%s10063_s17 + $0x18] sm:$0xff]  }
 0xcb5   :  { %v2847_v61 = vpop.xlane.xlu0 %2846 }
 0xcb6   :  { %v2605_v58 = vpack.c.bf16 %v2604_v42, %v2603_v38  ;;  %9397 = vrcp.f32 %v2847_v61  ;;  %v9235_v61 = vld [vmem:[%s10063_s17 + $0x10] sm:$0xff]   ;;  %s9678_s17 = smov 1  }
 0xcb7   :  { %8535 = vmatprep.subr.bf16.mxu1 %v9235_v61 }
 0xcb8   :  { %8536 = vmatpush3.bf16.msra.mxu1 %v9235_v61 }
 0xcb9   :  { %v2482_v47 = vpop.permute.xlu0 %2481  ;;  %8537 = vmatprep.subr.bf16.mxu1 %v9236_v44 }
 0xcba   :  { %8494 = vmatpush3.bf16.msra.mxu0 %v2482_v47 }
 0xcbb   :  { %8505 = vmatprep.subr.bf16.mxu0 %v9653_v21 }
 0xcbc   :  { %v9394_v40 = vpop.eup %9393  ;;  %8538 = vmatpush3.bf16.msra.mxu1 %v9236_v44 }
 0xcbd   :  { %8496 = vmatmul.mubr.msk.bf16.vlgmr.msra.gmra.mrb[60].mxu0 %vm361_vm5, %v2480_v32  ;;  %v2607_v54 = vpop.permute.xlu0 %2606  ;;  %v9396_v10 = vpop.eup %9395  ;;  %v2729_v36 = vmul.f32 %v9394_v40, %v10449_v7 }
 0xcbe   :  { %8506 = vmatpush3.bf16.msra.mxu0 %v2607_v54  ;;  %8507 = vmatprep.mubr.msk.bf16.mxu0 %vm9654_vm3, %v9653_v21  ;;  %v2728_v62 = vmul.f32 %v9396_v10, %v10445_v18 }
 0xcbf   :  { %8517 = vmatprep.subr.bf16.mxu0 %v9653_v21 }
 0xcc0   :  { %v2730_v63 = vpack.c.bf16 %v2729_v36, %v2728_v62  ;;  %v9398_v0 = vpop.eup %9397 }
 0xcc1   :  { %v2732_v26 = vpop.permute.xlu0 %2731  ;;  %v2853_v4 = vmul.f32 %v9398_v0, %v10453_v53 }
 0xcc5   :  { %8508 = vmatmul.mubr.msk.bf16.vlgmr.msra.gmra.mrb[64].mxu0 %vm361_vm5, %v2605_v58  ;;  %v2857_v9 = vpop.permute.xlu0 %2856 }
 0xcc6   :  { %8518 = vmatpush3.bf16.msra.mxu0 %v2732_v26  ;;  %8519 = vmatprep.mubr.msk.bf16.mxu0 %vm9654_vm3, %v9653_v21 }
 0xcc7   :  { %8529 = vmatprep.subr.bf16.mxu0 %v9653_v21 }
 0xccd   :  { %8520 = vmatmul.mubr.msk.bf16.vlgmr.msra.gmra.mrb[68].mxu0 %vm361_vm5, %v2730_v63 }
 0xcce   :  { %8530 = vmatpush3.bf16.msra.mxu0 %v2857_v9  ;;  %8531 = vmatprep.mubr.msk.bf16.mxu0 %vm9654_vm3, %v9653_v21 }
 0xcda   :  { %v2850_v48 = vpop.xlane.xlu1 %2849 }
 0xcdb   :  { %9399 = vrcp.f32 %v2850_v48 }
 0xce5   :  { %v9400_v31 = vpop.eup %9399 }
 0xce6   :  { %v2854_v7 = vmul.f32 %v9400_v31, %v10466_v52 }
 0xce8   :  { %v2855_v22 = vpack.c.bf16 %v2854_v7, %v2853_v4 }
 0xcea   :  { %8532 = vmatmul.mubr.msk.bf16.vlgmr.msra.gmra.mrb[72].mxu0 %vm361_vm5, %v2855_v22 }
 0xd62   :  { %v1992_v18 = vpop.f32.mrb[44].mxu0 }
 0xd63   :  { %v8449_v3 = vpop.f32.mrb[45].mxu0 }
 0xd64   :  { %v1995_v1 = vpop.f32.mrb[46].mxu0 }
 0xd65   :  { %v8450_v15 = vpop.f32.mrb[47].mxu0 }
 0xd6c   :  { %v2117_v8 = vpop.f32.mrb[48].mxu0 }
 0xd6d   :  { %v8461_v46 = vpop.f32.mrb[49].mxu0 }
 0xd6e   :  { %v2120_v13 = vpop.f32.mrb[50].mxu0 }
 0xd6f   :  { %v9103_v45 = vpack.i.bf16 %v2120_v13, %v2117_v8  ;;  %v8462_v23 = vpop.f32.mrb[51].mxu0 }
 0xd71   :  { %9104 = vrot.lane.b32.xlu0 %v9103_v45, %s9668_s11 }
 0xd74   :  { %v2242_v2 = vpop.f32.mrb[52].mxu0 }
 0xd75   :  { %v8473_v19 = vpop.f32.mrb[53].mxu0 }
 0xd76   :  { %v2245_v20 = vpop.f32.mrb[54].mxu0 }
 0xd77   :  { %v9108_v53 = vpack.i.bf16 %v2245_v20, %v2242_v2  ;;  %v8474_v52 = vpop.f32.mrb[55].mxu0 }
 0xd79   :  { %9109 = vrot.lane.b32.xlu1 %v9108_v53, %s9667_s7 }
 0xd80   :  { %v2367_v35 = vpop.f32.mrb[56].mxu0 }
 0xd81   :  { %v8485_v59 = vpop.f32.mrb[57].mxu0 }
 0xd82   :  { %v2370_v56 = vpop.f32.mrb[58].mxu0 }
 0xd83   :  { %v9113_v43 = vpack.i.bf16 %v2370_v56, %v2367_v35  ;;  %v8486_v5 = vpop.f32.mrb[59].mxu0 }
 0xd85   :  { %9114 = vrot.lane.b32.xlu0 %v9113_v43, %s9669_s12 }
 0xd90   :  { %v2521_v14 = vpop.f32.mrb[60].mxu0 }
 0xd91   :  { %v8497_v39 = vpop.f32.mrb[61].mxu0 }
 0xd92   :  { %v2524_v41 = vpop.f32.mrb[62].mxu0 }
 0xd93   :  { %v8498_v29 = vpop.f32.mrb[63].mxu0 }
 0xd98   :  { %v2646_v11 = vpop.f32.mrb[64].mxu0 }
 0xd99   :  { %v8509_v57 = vpop.f32.mrb[65].mxu0 }
 0xd9a   :  { %v2649_v16 = vpop.f32.mrb[66].mxu0  ;;  %v9240_v57 = vld [vmem:[%s10047_s10 + $0x28] sm:$0xff]  }
 0xd9b   :  { %v9118_v60 = vpack.i.bf16 %v2649_v16, %v2646_v11  ;;  %v8510_v50 = vpop.f32.mrb[67].mxu0  ;;  %v9237_v11 = vld [vmem:[%s10094_s9 + $0x10] sm:$0xff]   ;;  %v7825_v16 = vld [vmem:[%s10103_s18 + $0x1] ss:$0 sm:$0xff]  ;;  %s11111_s18 = sld [smem:[%s11941_s0 + %s9685_s21]]  }
 0xd9c   :  { %8543 = vmatprep.subr.bf16.mxu0 %v9237_v11  ;;  %s11195_s21 = sld [smem:[%s11941_s0 + %s9669_s12]]  }
 0xd9d   :  { %9119 = vrot.lane.b32.xlu0 %v9118_v60, %s9668_s11  ;;  %8544 = vmatpush3.bf16.msra.mxu0 %v9237_v11 }
 0xda0   :  { %v2771_v25 = vpop.f32.mrb[68].mxu0 }
 0xda1   :  { %v8521_v47 = vpop.f32.mrb[69].mxu0 }
 0xda2   :  { %v2774_v32 = vpop.f32.mrb[70].mxu0 }
 0xda3   :  { %v9123_v17 = vpack.i.bf16 %v2774_v32, %v2771_v25  ;;  %v8522_v54 = vpop.f32.mrb[71].mxu0 }
 0xda5   :  { %9124 = vrot.lane.b32.xlu0 %v9123_v17, %s9667_s7 }
 0xdbd   :  { %v2896_v42 = vpop.f32.mrb[72].mxu0 }
 0xdbe   :  { %v8533_v38 = vpop.f32.mrb[73].mxu0 }
 0xdbf   :  { %v2899_v58 = vpop.f32.mrb[74].mxu0 }
 0xdc0   :  { %v9128_v40 = vpack.i.bf16 %v2899_v58, %v2896_v42  ;;  %v8534_v26 = vpop.f32.mrb[75].mxu0 }
 0xdc2   :  { %9129 = vrot.lane.b32.xlu0 %v9128_v40, %s9669_s12 }
 0xde3   :  { %v9105_v10 = vpop.permute.xlu0 %9104 }
 0xde4   :  { %v9107_v62 = vunpack.i.h.bf16 %v9105_v10  ;;  %v9106_v63 = vunpack.i.l.bf16 %v9105_v10 }
 0xde6   :  { %v2399_v31 = vsel %vm303_vm4, %v1995_v1, %v9107_v62  ;;  %v2398_v4 = vsel %vm303_vm4, %v1992_v18, %v9106_v63 }
 0xdeb   :  { %v9110_v36 = vpop.permute.xlu1 %9109 }
 0xdec   :  { %v9112_v9 = vunpack.i.h.bf16 %v9110_v36  ;;  %v9111_v48 = vunpack.i.l.bf16 %v9110_v36 }
 0xdee   :  { %v2400_v3 = vsel %vm361_vm5, %v2398_v4, %v9111_v48  ;;  %v2401_v15 = vsel %vm361_vm5, %v2399_v31, %v9112_v9 }
 0xdf7   :  { %v9115_v0 = vpop.permute.xlu0 %9114 }
 0xdf8   :  { %v9117_v7 = vunpack.i.h.bf16 %v9115_v0  ;;  %v9116_v22 = vunpack.i.l.bf16 %v9115_v0 }
 0xdfa   :  { %v2402_v8 = vsel %vm835_vm6, %v2400_v3, %v9116_v22  ;;  %v2403_v46 = vsel %vm835_vm6, %v2401_v15, %v9117_v7 }
 0xdfb   :  { %v2933_v13 = vpack.c.bf16 %v2403_v46, %v2402_v8 }
 0xdfd   :  { %8539 = vmatprep.mubr.msk.bf16.mxu1 %vm242_vm2, %v2933_v13 }
 0xe0f   :  { %v9120_v45 = vpop.permute.xlu0 %9119 }
 0xe10   :  { %v9122_v2 = vunpack.i.h.bf16 %v9120_v45  ;;  %v9121_v1 = vunpack.i.l.bf16 %v9120_v45 }
 0xe12   :  { %v2928_v53 = vsel %vm303_vm4, %v2524_v41, %v9122_v2  ;;  %v2927_v52 = vsel %vm303_vm4, %v2521_v14, %v9121_v1  ;;  %v9238_v41 = vld [vmem:[%s10094_s9 + $0x18] sm:$0xff]   ;;  %v9239_v14 = vld [vmem:[%s10047_s10 + $0x20] sm:$0xff]  }
 0xe13   :  { %8545 = vmatprep.subr.bf16.mxu0 %v9238_v41  ;;  %8551 = vmatprep.subr.bf16.mxu1 %v9239_v14 }
 0xe14   :  { %8546 = vmatpush3.bf16.msra.mxu0 %v9238_v41 }
 0xe15   :  { %8563 = vmatprep.subr.bf16.mxu0 %v9653_v21 }
 0xe17   :  { %v9125_v23 = vpop.permute.xlu0 %9124 }
 0xe18   :  { %v9127_v18 = vunpack.i.h.bf16 %v9125_v23  ;;  %v9126_v19 = vunpack.i.l.bf16 %v9125_v23 }
 0xe1a   :  { %v2929_v56 = vsel %vm361_vm5, %v2927_v52, %v9126_v19  ;;  %v2930_v43 = vsel %vm361_vm5, %v2928_v53, %v9127_v18 }
 0xe34   :  { %v9130_v20 = vpop.permute.xlu0 %9129 }
 0xe35   :  { %v9132_v35 = vunpack.i.h.bf16 %v9130_v20  ;;  %v9131_v59 = vunpack.i.l.bf16 %v9130_v20 }
 0xe37   :  { %v2931_v5 = vsel %vm835_vm6, %v2929_v56, %v9131_v59  ;;  %v2932_v39 = vsel %vm835_vm6, %v2930_v43, %v9132_v35 }
 0xe38   :  { %v2934_v29 = vpack.c.bf16 %v2932_v39, %v2931_v5 }
 0xe3a   :  { %8540 = vmatmul.mubr.msk.bf16.vlgmr.msra.gmra.mrb[76].mxu1 %vm242_vm2, %v2934_v29 }
 0xe3b   :  { %8552 = vmatpush3.bf16.msra.mxu1 %v9239_v14 }
 0xe3c   :  { %8553 = vmatprep.subr.bf16.mxu1 %v9240_v57 }
 0xe3f   :  { %8554 = vmatpush3.bf16.msra.mxu1 %v9240_v57 }
 0xf0d   :  { %v8541_v61 = vpop.f32.mrb[76].mxu1 }
 0xf0e   :  { %v3002_v60 = vadd.f32 %v8541_v61, %v7825_v16  ;;  %v2993_v50 = vpop.f32.mrb[77].mxu1 }
 0xf0f   :  { %v2994_v25 = vadd.f32 %v7825_v16, %v2993_v50  ;;  %v8542_v47 = vpop.f32.mrb[78].mxu1  ;;  %v10565_v50 = vld [vmem:[%s10137_s1 + $0x4] sm:$0xf]  ;;  %s7721_s1 = sld [smem:[%s11941_s0 + %s9678_s17]]   ;;  %s9682_s17 = smov 20  }
 0xf10   :  { %v3005_v32 = vadd.f32 %v8542_v47, %v7825_v16  ;;  %v2996_v17 = vpop.f32.mrb[79].mxu1  ;;  %v3012_v54 = vadd.f32 %v3002_v60, %v10208_v55 }
 0xf11   :  { %v3010_v44 = vadd.f32 %v2994_v25, %v10204_v51  ;;  %v2997_v42 = vadd.f32 %v7825_v16, %v2996_v17  ;;  %v3067_v25 = vrot.slane %v10565_v50, %v10142_v33 }
 0xf12   :  { %v3013_v58 = vadd.f32 %v3005_v32, %v10210_v27  ;;  %v3016_v26 = vmul.f32 %v3012_v54, %v10108_v37  ;;  %v3075_v32 = vrot.slane %v10565_v50, %v10148_v34 }
 0xf13   :  { %v3014_v38 = vmul.f32 %v3010_v44, %v10105_v28  ;;  %v3011_v40 = vadd.f32 %v2997_v42, %v10206_v30 }
 0xf14   :  { %v3017_v62 = vmul.f32 %v3013_v58, %v10119_v49  ;;  %v3021_v51 = vsel %vm242_vm2, %v3016_v26, 0.0 }
 0xf15   :  { %v3015_v10 = vmul.f32 %v3011_v40, %v10112_v12  ;;  %v3018_v36 = vsel %vm242_vm2, %v3014_v38, 0.0 }
 0xf16   :  { %v3023_v48 = vsel %vm242_vm2, %v3017_v62, 0.0 }
 0xf17   :  { %v3019_v63 = vsel %vm242_vm2, %v3015_v10, 0.0 }
 0xf18   :  { %v3020_v55 = vadd.f32 %v3019_v63, %v3018_v36 }
 0xf1a   :  { %v3022_v9 = vadd.f32 %v3021_v51, %v3020_v55 }
 0xf1c   :  { %v3024_v0 = vadd.f32 %v3023_v48, %v3022_v9  ;;  %v9241_v9 = vld [vmem:[%s10047_s10 + $0x30] sm:$0xff]   ;;  %v9242_v48 = vld [vmem:[%s10047_s10 + $0x38] sm:$0xff]   ;;  %s9679_s10 = smov 18  }
 0xf1d   :  { %8555 = vmatprep.subr.bf16.mxu1 %v9241_v9  ;;  %s10602_s14 = sld [smem:[%s11941_s0 + %s9679_s10]]   ;;  %s9683_s10 = smov 21  }
 0xf1e   :  { %v3025_v27 = vrot.slane %v3024_v0, 4  ;;  %8556 = vmatpush3.bf16.msra.mxu1 %v9241_v9 }
 0xf1f   :  { %8557 = vmatprep.subr.bf16.mxu1 %v9242_v48 }
 0xf20   :  { %v3026_v31 = vadd.f32 %v3025_v27, %v3024_v0  ;;  %v9243_v0 = vld [vmem:[%s7728_s3] sm:$0x3f]  }
 0xf21   :  { %v3354_v27 = vsel %vm3352_vm8, %v9243_v0, 0 }
 0xf22   :  { %v3027_v30 = vrot.slane %v3026_v31, 2  ;;  %8558 = vmatpush3.bf16.msra.mxu1 %v9242_v48 }
 0xf24   :  { %v3028_v4 = vadd.f32 %v3027_v30, %v3026_v31  ;;  %v9244_v31 = vld [vmem:[%s7721_s1] sm:$0xff]   ;;  %s11023_s1 = sld [smem:[%s11941_s0 + %s9682_s17]]   ;;  %s9687_s17 = smov 26  }
 0xf25   :  { %v7836_v30 = vld [vmem:[%s10162_s15 + $0x1] ss:$0 sm:$0xff]  ;;  %s9680_s15 = smov 19   ;;  %s11219_s2 = sld [smem:[%s11941_s0 + %s9687_s17]]  }
 0xf26   :  { %v3029_v7 = vrot.slane %v3028_v4, 1  ;;  %s10659_s20 = sld [smem:[%s11941_s0 + %s9680_s15]]  }
 0xf27   :  { %s11055_s15 = sld [smem:[%s11941_s0 + %s9683_s10]]   ;;  %s9686_s10 = smov 25  }
 0xf28   :  { %v3030_v22 = vadd.f32 %v3029_v7, %v3028_v4  ;;  %s11156_s16 = sld [smem:[%s11941_s0 + %s9686_s10]]  }
 0xf2a   :  { %v3031_v3 = vmul.f32 0.05, %v3030_v22 }
 0xf2c   :  { %v3032_v15 = vsub.f32 %v3010_v44, %v3031_v3  ;;  %v3033_v8 = vsub.f32 %v3011_v40, %v3031_v3  ;;  %v3034_v46 = vsub.f32 %v3012_v54, %v3031_v3  ;;  %v3035_v13 = vsub.f32 %v3013_v58, %v3031_v3 }
 0xf2e   :  { %v3036_v45 = vmul.f32 %v3032_v15, %v3032_v15  ;;  %v3037_v23 = vmul.f32 %v3033_v8, %v3033_v8  ;;  %v3038_v2 = vmul.f32 %v3034_v46, %v3034_v46  ;;  %v3039_v1 = vmul.f32 %v3035_v13, %v3035_v13 }
 0xf30   :  { %v3040_v18 = vmul.f32 %v3036_v45, %v10105_v28  ;;  %v3041_v19 = vmul.f32 %v3037_v23, %v10112_v12  ;;  %v3042_v20 = vmul.f32 %v3038_v2, %v10108_v37  ;;  %v3043_v53 = vmul.f32 %v3039_v1, %v10119_v49 }
 0xf32   :  { %v3044_v52 = vsel %vm242_vm2, %v3040_v18, 0.0  ;;  %v3045_v35 = vsel %vm242_vm2, %v3041_v19, 0.0  ;;  %v3047_v56 = vsel %vm242_vm2, %v3042_v20, 0.0  ;;  %v3049_v5 = vsel %vm242_vm2, %v3043_v53, 0.0  ;;  %v9245_v20 = vld [vmem:[%s10602_s14] sm:$0xff]  }
 0xf33   :  { %v3046_v59 = vadd.f32 %v3045_v35, %v3044_v52  ;;  %v9246_v52 = vld [vmem:[%s10602_s14 + $0x8] sm:$0xff]  }
 0xf35   :  { %v3048_v43 = vadd.f32 %v3047_v56, %v3046_v59 }
 0xf37   :  { %v3050_v39 = vadd.f32 %v3049_v5, %v3048_v43  ;;  %v7850_v43 = vld [vmem:[%s10175_s30 + $0x1] ss:$0 sm:$0xff]  ;;  %s9681_s30 = smov 3  }
 0xf38   :  { %s10715_s3 = sld [smem:[%s11941_s0 + %s9681_s30]]  }
 0xf39   :  { %v3051_v29 = vrot.slane %v3050_v39, 4 }
 0xf3b   :  { %v3052_v11 = vadd.f32 %v3051_v29, %v3050_v39 }
 0xf3d   :  { %v3053_v41 = vrot.slane %v3052_v11, 2 }
 0xf3f   :  { %v3054_v14 = vadd.f32 %v3053_v41, %v3052_v11 }
 0xf41   :  { %v3055_v57 = vrot.slane %v3054_v14, 1 }
 0xf43   :  { %v3056_v16 = vadd.f32 %v3055_v57, %v3054_v14 }
 0xf45   :  { %v3057_v61 = vmul.f32 0.05, %v3056_v16 }
 0xf47   :  { %v3058_v60 = vadd.f32 1e-05, %v3057_v61 }
 0xf49   :  { %9401 = vrsqrt.f32 %v3058_v60 }
 0xf53   :  { %v9402_v47 = vpop.eup %9401 }
 0xf54   :  { %v3061_v17 = vmul.f32 %v9402_v47, %v3033_v8  ;;  %v3060_v54 = vmul.f32 %v9402_v47, %v3032_v15  ;;  %v3062_v44 = vmul.f32 %v9402_v47, %v3034_v46  ;;  %v3063_v42 = vmul.f32 %v9402_v47, %v3035_v13 }
 0xf56   :  { %v3069_v38 = vmul.f32 %v3067_v25, %v3061_v17  ;;  %v3068_v58 = vmul.f32 %v3067_v25, %v3060_v54  ;;  %v3070_v40 = vmul.f32 %v3067_v25, %v3062_v44  ;;  %v3071_v26 = vmul.f32 %v3067_v25, %v3063_v42 }
 0xf58   :  { %v10571_v10 = vadd.f32 %v3075_v32, %v3068_v58  ;;  %v10573_v36 = vadd.f32 %v3075_v32, %v3069_v38  ;;  %v3078_v62 = vadd.f32 %v3075_v32, %v3070_v40  ;;  %v10575_v63 = vadd.f32 %v3075_v32, %v3071_v26 }
 0xf5a   :  { %v3085_v55 = vpack.c.bf16 %v10573_v36, %v10571_v10  ;;  %v3086_v51 = vpack.c.bf16 %v10575_v63, %v3078_v62 }
 0xf5c   :  { %8547 = vmatprep.mubr.msk.bf16.mxu0 %vm242_vm2, %v3085_v55 }
 0xf5d   :  { %8548 = vmatmul.mubr.msk.bf16.vlgmr.msra.gmra.mrb[76].mxu0 %vm242_vm2, %v3086_v51 }
 0xf5e   :  { %8565 = vmatprep.mubr.msk.bf16.mxu0 %vm9654_vm3, %v9653_v21  ;;  %8564 = vmatpush3.bf16.msra.mxu0 %v3354_v27 }
 0xf5f   :  { %8569 = vmatprep.subr.bf16.mxu0 %v9653_v21 }
 0xf65   :  { %8566 = vmatmul.mubr.msk.bf16.vlgmr.msra.gmra.mrb[80].mxu0 %vm3348_vm9, %v9244_v31 }
 0xf66   :  { %8573 = vmatprep.mubr.msk.bf16.mxu0 %vm9654_vm3, %v9653_v21  ;;  %8570 = vmatpush3.bf16.msra.mxu0 %v9245_v20 }
 0xf67   :  { %8571 = vmatprep.subr.bf16.mxu0 %v9653_v21 }
 0xf6a   :  { %8572 = vmatpush3.bf16.msra.mxu0 %v9246_v52 }
0x1030   :  { %v8549_v4 = vpop.f32.mrb[76].mxu0 }
0x1031   :  { %v3156_v7 = vadd.f32 %v8549_v4, %v7836_v30  ;;  %v3147_v22 = vpop.f32.mrb[77].mxu0 }
0x1032   :  { %v3148_v3 = vadd.f32 %v7836_v30, %v3147_v22  ;;  %v8550_v15 = vpop.f32.mrb[78].mxu0 }
0x1033   :  { %v3159_v8 = vadd.f32 %v8550_v15, %v7836_v30  ;;  %v3150_v46 = vpop.f32.mrb[79].mxu0  ;;  %v3164_v45 = vmax.f32 %v3156_v7, 0.0 }
0x1034   :  { %v3151_v13 = vadd.f32 %v7836_v30, %v3150_v46  ;;  %v3162_v2 = vmax.f32 %v3148_v3, 0.0 }
0x1035   :  { %v3165_v23 = vmax.f32 %v3159_v8, 0.0 }
0x1036   :  { %v3163_v1 = vmax.f32 %v3151_v13, 0.0 }
0x1037   :  { %v3176_v18 = vpack.c.bf16 %v3165_v23, %v3164_v45 }
0x1038   :  { %v3175_v19 = vpack.c.bf16 %v3163_v1, %v3162_v2  ;;  %v10606_v53 = vpop.f32.mrb[80].mxu0 }
0x1039   :  { %v8567_v35 = vpop.f32.mrb[81].mxu0 }
0x103a   :  { %8559 = vmatprep.mubr.msk.bf16.mxu1 %vm1658_vm7, %v3175_v19  ;;  %v10609_v59 = vpop.f32.mrb[82].mxu0 }
0x103b   :  { %8560 = vmatmul.mubr.msk.bf16.vlgmr.msra.gmra.mrb[80].mxu1 %vm1658_vm7, %v3176_v18  ;;  %v8568_v56 = vpop.f32.mrb[83].mxu0 }
0x110e   :  { %v8561_v5 = vpop.f32.mrb[80].mxu1 }
0x110f   :  { %v3258_v39 = vadd.f32 %v8561_v5, %v7850_v43  ;;  %v3249_v29 = vpop.f32.mrb[81].mxu1 }
0x1110   :  { %v3250_v11 = vadd.f32 %v7850_v43, %v3249_v29  ;;  %v8562_v41 = vpop.f32.mrb[82].mxu1 }
0x1111   :  { %v3261_v14 = vadd.f32 %v8562_v41, %v7850_v43  ;;  %v3252_v57 = vpop.f32.mrb[83].mxu1  ;;  %v3266_v16 = vadd.f32 %v3258_v39, %v3078_v62 }
0x1112   :  { %v3264_v61 = vadd.f32 %v3250_v11, %v10571_v10  ;;  %v3253_v60 = vadd.f32 %v7850_v43, %v3252_v57  ;;  %v3329_v11 = vrot.slane %v10565_v50, %v10198_v6 }
0x1113   :  { %v3267_v47 = vadd.f32 %v3261_v14, %v10575_v63  ;;  %v3270_v17 = vmul.f32 %v3266_v16, %v10108_v37 }
0x1114   :  { %v3268_v25 = vmul.f32 %v3264_v61, %v10105_v28  ;;  %v3265_v32 = vadd.f32 %v3253_v60, %v10573_v36 }
0x1115   :  { %v3271_v42 = vmul.f32 %v3267_v47, %v10119_v49  ;;  %v3275_v40 = vsel %vm242_vm2, %v3270_v17, 0.0 }
0x1116   :  { %v3269_v54 = vmul.f32 %v3265_v32, %v10112_v12  ;;  %v3272_v44 = vsel %vm242_vm2, %v3268_v25, 0.0 }
0x1117   :  { %v3277_v10 = vsel %vm242_vm2, %v3271_v42, 0.0 }
0x1118   :  { %v3273_v38 = vsel %vm242_vm2, %v3269_v54, 0.0 }
0x1119   :  { %v3274_v58 = vadd.f32 %v3273_v38, %v3272_v44 }
0x111b   :  { %v3276_v26 = vadd.f32 %v3275_v40, %v3274_v58  ;;  %v7860_v58 = vld [vmem:[%s10659_s20] ss:$0 sm:$0xff] }
0x111d   :  { %v3278_v62 = vadd.f32 %v3277_v10, %v3276_v26 }
0x111f   :  { %v3279_v63 = vrot.slane %v3278_v62, 4 }
0x1121   :  { %v3280_v55 = vadd.f32 %v3279_v63, %v3278_v62 }
0x1123   :  { %v3281_v36 = vrot.slane %v3280_v55, 2 }
0x1125   :  { %v3282_v51 = vadd.f32 %v3281_v36, %v3280_v55 }
0x1127   :  { %v3283_v9 = vrot.slane %v3282_v51, 1 }
0x1129   :  { %v3284_v48 = vadd.f32 %v3283_v9, %v3282_v51 }
0x112b   :  { %v3285_v0 = vmul.f32 0.05, %v3284_v48 }
0x112d   :  { %v3286_v27 = vsub.f32 %v3264_v61, %v3285_v0  ;;  %v3287_v31 = vsub.f32 %v3265_v32, %v3285_v0  ;;  %v3288_v30 = vsub.f32 %v3266_v16, %v3285_v0  ;;  %v3289_v4 = vsub.f32 %v3267_v47, %v3285_v0 }
0x112f   :  { %v3290_v7 = vmul.f32 %v3286_v27, %v3286_v27  ;;  %v3291_v22 = vmul.f32 %v3287_v31, %v3287_v31  ;;  %v3292_v3 = vmul.f32 %v3288_v30, %v3288_v30  ;;  %v3293_v15 = vmul.f32 %v3289_v4, %v3289_v4 }
0x1131   :  { %v3294_v8 = vmul.f32 %v3290_v7, %v10105_v28  ;;  %v3295_v46 = vmul.f32 %v3291_v22, %v10112_v12  ;;  %v3296_v13 = vmul.f32 %v3292_v3, %v10108_v37  ;;  %v3297_v45 = vmul.f32 %v3293_v15, %v10119_v49 }
0x1132   :  { %v3321_v49 = vrot.slane %v10565_v50, %v10195_v24 }
0x1133   :  { %v3298_v23 = vsel %vm242_vm2, %v3294_v8, 0.0  ;;  %v3299_v2 = vsel %vm242_vm2, %v3295_v46, 0.0  ;;  %v3301_v18 = vsel %vm242_vm2, %v3296_v13, 0.0  ;;  %v3303_v20 = vsel %vm242_vm2, %v3297_v45, 0.0 }
0x1134   :  { %v3300_v1 = vadd.f32 %v3299_v2, %v3298_v23 }
0x1136   :  { %v3302_v19 = vadd.f32 %v3301_v18, %v3300_v1 }
0x1138   :  { %v3304_v52 = vadd.f32 %v3303_v20, %v3302_v19 }
0x113a   :  { %v3305_v35 = vrot.slane %v3304_v52, 4 }
0x113c   :  { %v3306_v56 = vadd.f32 %v3305_v35, %v3304_v52 }
0x113e   :  { %v3307_v28 = vrot.slane %v3306_v56, 2 }
0x1140   :  { %v3308_v43 = vadd.f32 %v3307_v28, %v3306_v56 }
0x1142   :  { %v3309_v12 = vrot.slane %v3308_v43, 1 }
0x1144   :  { %v3310_v5 = vadd.f32 %v3309_v12, %v3308_v43 }
0x1146   :  { %v3311_v37 = vmul.f32 0.05, %v3310_v5 }
0x1148   :  { %v3312_v39 = vadd.f32 1e-05, %v3311_v37 }
0x114a   :  { %9403 = vrsqrt.f32 %v3312_v39 }
0x1154   :  { %v9404_v29 = vpop.eup %9403 }
0x1155   :  { %v3315_v41 = vmul.f32 %v9404_v29, %v3287_v31  ;;  %v3316_v14 = vmul.f32 %v9404_v29, %v3288_v30  ;;  %v3317_v57 = vmul.f32 %v9404_v29, %v3289_v4  ;;  %v3314_v16 = vmul.f32 %v9404_v29, %v3286_v27  ;;  %v10718_v29 = vld [vmem:[%s10715_s3] ss:$0 sm:$0xff] }
0x1157   :  { %v3323_v61 = vmul.f32 %v3321_v49, %v3315_v41  ;;  %v3322_v60 = vmul.f32 %v3321_v49, %v3314_v16  ;;  %v3324_v32 = vmul.f32 %v3321_v49, %v3316_v14  ;;  %v3325_v44 = vmul.f32 %v3321_v49, %v3317_v57 }
0x1159   :  { %v10635_v25 = vadd.f32 %v3329_v11, %v3323_v61  ;;  %v10637_v47 = vadd.f32 %v3329_v11, %v3322_v60  ;;  %v10644_v50 = vadd.f32 %v3329_v11, %v3324_v32  ;;  %v10651_v42 = vadd.f32 %v3329_v11, %v3325_v44 }
0x115b   :  { %v3408_v17 = vpack.c.bf16 %v10635_v25, %v10637_v47  ;;  %v3409_v54 = vpack.c.bf16 %v10644_v50, %v10606_v53  ;;  %v3410_v38 = vpack.c.bf16 %v10609_v59, %v10651_v42 }
0x115d   :  { %8574 = vmatmul.mubr.msk.bf16.vlgmr.msra.gmra.mrb[84].mxu0 %vm242_vm2, %v3408_v17 }
0x115e   :  { %8577 = vmatprep.mubr.msk.bf16.mxu0 %vm9654_vm3, %v9653_v21 }
0x1165   :  { %8578 = vmatmul.mubr.msk.bf16.gmra.mrb[88].mxu0 %vm242_vm2, %v3409_v54 }
0x1166   :  { %8581 = vmatprep.mubr.msk.bf16.mxu0 %vm9654_vm3, %v9653_v21 }
0x116d   :  { %8582 = vmatmul.mubr.msk.bf16.gmra.mrb[92].mxu0 %vm242_vm2, %v3410_v38 }
0x1230   :  { %v3472_v40 = vpop.f32.mrb[84].mxu0 }
0x1231   :  { %v8575_v26 = vpop.f32.mrb[85].mxu0  ;;  %v3473_v62 = vadd.f32 %v7860_v58, %v3472_v40 }
0x1232   :  { %v3475_v10 = vpop.f32.mrb[86].mxu0 }
0x1233   :  { %v3476_v63 = vadd.f32 %v7860_v58, %v3475_v10  ;;  %v8576_v55 = vpop.f32.mrb[87].mxu0 }
0x1235   :  { %v10662_v36 = vpack.c.bf16 %v3476_v63, %v3473_v62 }
0x1237   :  { %3678 = vrot.lane.b32.xlu0 %v10662_v36, %s9658_s25  ;;  %3500 = vrot.lane.b32.xlu1 %v10662_v36, %s9656_s23 }
0x1238   :  { %8589 = vmatprep.mubr.msk.bf16.mxu1 %vm303_vm4, %v10662_v36  ;;  %v3480_v51 = vpop.f32.mrb[88].mxu0 }
0x1239   :  { %v8579_v9 = vpop.f32.mrb[89].mxu0  ;;  %v3481_v0 = vadd.f32 %v7860_v58, %v3480_v51 }
0x123a   :  { %v3483_v48 = vpop.f32.mrb[90].mxu0 }
0x123b   :  { %v3484_v27 = vadd.f32 %v7860_v58, %v3483_v48  ;;  %v8580_v31 = vpop.f32.mrb[91].mxu0 }
0x123d   :  { %v10670_v30 = vpack.c.bf16 %v3484_v27, %v3481_v0 }
0x123f   :  { %3680 = vrot.lane.b32.xlu0 %v10670_v30, %s9658_s25  ;;  %3502 = vrot.lane.b32.xlu1 %v10670_v30, %s9656_s23 }
0x1240   :  { %v3488_v4 = vpop.f32.mrb[92].mxu0 }
0x1241   :  { %v10676_v7 = vadd.f32 %v7860_v58, %v3488_v4  ;;  %v8583_v22 = vpop.f32.mrb[93].mxu0 }
0x1242   :  { %v3491_v3 = vpop.f32.mrb[94].mxu0 }
0x1243   :  { %v10678_v15 = vadd.f32 %v7860_v58, %v3491_v3  ;;  %3849 = vrot.lane.b32.xlu0 %v10662_v36, %s9657_s24  ;;  %3674 = vrot.lane.b32.xlu1 %v10662_v36, %s9655_s22  ;;  %v8584_v8 = vpop.f32.mrb[95].mxu0 }
0x1245   :  { %v3497_v46 = vpack.c.bf16 %v10678_v15, %v10676_v7 }
0x1247   :  { %3851 = vrot.lane.b32.xlu0 %v10670_v30, %s9657_s24  ;;  %3676 = vrot.lane.b32.xlu1 %v10670_v30, %s9655_s22 }
0x124b   :  { %3847 = vrot.lane.b32.xlu0 %v10670_v30, %s9660_s27  ;;  %3845 = vrot.lane.b32.xlu1 %v10662_v36, %s9660_s27 }
0x12a9   :  { %v3679_v13 = vpop.permute.xlu0 %3678  ;;  %v3501_v45 = vpop.permute.xlu1 %3500 }
0x12aa   :  { %8978 = vmatprep.subr.msk.bf16.mxu1 %vm303_vm4, %v3501_v45  ;;  %8981 = vmatprep.subr.msk.bf16.mxu0 %vm303_vm4, %v3679_v13  ;;  %v3511_v23 = vsel %vm303_vm4, %v3501_v45, 0  ;;  %v3689_v2 = vsel %vm303_vm4, %v3679_v13, 0 }
0x12ab   :  { %8586 = vmatpush3.bf16.xpose.msra.mxu1 %v3511_v23  ;;  %8602 = vmatpush3.bf16.xpose.msra.mxu0 %v3689_v2 }
0x12b1   :  { %v3681_v1 = vpop.permute.xlu0 %3680  ;;  %v3503_v18 = vpop.permute.xlu1 %3502 }
0x12b2   :  { %8979 = vmatprep.subr.msk.bf16.mxu1 %vm303_vm4, %v3503_v18  ;;  %8982 = vmatprep.subr.msk.bf16.mxu0 %vm303_vm4, %v3681_v1  ;;  %v3514_v19 = vsel %vm303_vm4, %v3503_v18, 0  ;;  %v3692_v20 = vsel %vm303_vm4, %v3681_v1, 0 }
0x12b3   :  { %8588 = vmatpush3.bf16.xpose.msra.mxu1 %v3514_v19  ;;  %8604 = vmatpush3.bf16.xpose.msra.mxu0 %v3692_v20 }
0x12b5   :  { %v3850_v52 = vpop.permute.xlu0 %3849  ;;  %v3675_v35 = vpop.permute.xlu1 %3674 }
0x12b6   :  { %8605 = vmatprep.mubr.msk.bf16.mxu0 %vm303_vm4, %v3675_v35  ;;  %8984 = vmatprep.subr.msk.bf16.mxu0 %vm303_vm4, %v3850_v52  ;;  %v3860_v28 = vsel %vm303_vm4, %v3850_v52, 0 }
0x12b9   :  { %v3677_v56 = vpop.permute.xlu1 %3676  ;;  %v3852_v43 = vpop.permute.xlu0 %3851 }
0x12ba   :  { %8590 = vmatmul.mubr.msk.bf16.vlgmr.msra.gmra.mrb[84].mxu1 %vm303_vm4, %v10670_v30  ;;  %8606 = vmatmul.mubr.msk.bf16.vlgmr.msra.gmra.mrb[96].mxu0 %vm303_vm4, %v3677_v56  ;;  %v3863_v5 = vsel %vm303_vm4, %v3852_v43, 0 }
0x12bb   :  { %8618 = vmatpush3.bf16.xpose.msra.mxu0 %v3860_v28 }
0x12bc   :  { %8985 = vmatprep.subr.msk.bf16.mxu0 %vm303_vm4, %v3852_v43 }
0x12bd   :  { %v3846_v12 = vpop.permute.xlu1 %3845  ;;  %v3848_v37 = vpop.permute.xlu0 %3847 }
0x12be   :  { %8621 = vmatprep.mubr.msk.bf16.mxu0 %vm303_vm4, %v3846_v12 }
0x12c3   :  { %8620 = vmatpush3.bf16.xpose.msra.mxu0 %v3863_v5 }
0x12ca   :  { %8622 = vmatmul.mubr.msk.bf16.vlgmr.msra.gmra.mrb[100].mxu0 %vm303_vm4, %v3848_v37 }
0x138d   :  { %v8591_v39 = vpop.f32.mrb[84].mxu1  ;;  %v8607_v49 = vpop.f32.mrb[96].mxu0 }
0x138e   :  { %v3550_v11 = vpop.f32.mrb[85].mxu1  ;;  %v3728_v41 = vpop.f32.mrb[97].mxu0  ;;  %v3566_v17 = vmul.f32 0.35355338, %v8591_v39  ;;  %v3744_v38 = vmul.f32 0.35355338, %v8607_v49 }
0x138f   :  { %v3564_v14 = vmul.f32 0.35355338, %v3550_v11  ;;  %v3742_v57 = vmul.f32 0.35355338, %v3728_v41  ;;  %v8592_v16 = vpop.f32.mrb[86].mxu1  ;;  %v8608_v61 = vpop.f32.mrb[98].mxu0 }
0x1390   :  { %v3553_v60 = vpop.f32.mrb[87].mxu1  ;;  %v3731_v32 = vpop.f32.mrb[99].mxu0  ;;  %v3575_v10 = vadd.f32 %v10718_v29, %v3566_v17  ;;  %v3747_v55 = vadd.f32 %v10718_v29, %v3744_v38 }
0x1391   :  { %v3573_v54 = vadd.f32 %v10718_v29, %v3564_v14  ;;  %v3565_v44 = vmul.f32 0.35355338, %v3553_v60  ;;  %v3745_v58 = vadd.f32 %v10718_v29, %v3742_v57  ;;  %v3743_v62 = vmul.f32 0.35355338, %v3731_v32 }
0x1392   :  { %v3582_v48 = vsel %vm835_vm6, %v3575_v10, -inf  ;;  %v3754_v0 = vsel %vm835_vm6, %v3747_v55, -inf }
0x1393   :  { %v3574_v40 = vadd.f32 %v10718_v29, %v3565_v44  ;;  %v3576_v26 = vsel %vm835_vm6, %v3573_v54, -inf  ;;  %v3748_v51 = vsel %vm835_vm6, %v3745_v58, -inf  ;;  %v3746_v9 = vadd.f32 %v10718_v29, %v3743_v62 }
0x1394   :  { %3577 = vmax.xlane.f32.xlu1 %v3576_v26 }
0x1395   :  { %v3579_v63 = vsel %vm835_vm6, %v3574_v40, -inf  ;;  %v3751_v31 = vsel %vm835_vm6, %v3746_v9, -inf }
0x1396   :  { %3580 = vmax.xlane.f32.xlu0 %v3579_v63 }
0x1398   :  { %3749 = vmax.xlane.f32.xlu1 %v3748_v51 }
0x139a   :  { %3583 = vmax.xlane.f32.xlu0 %v3582_v48 }
0x139c   :  { %3755 = vmax.xlane.f32.xlu1 %v3754_v0 }
0x139d   :  { %v8623_v27 = vpop.f32.mrb[100].mxu0 }
0x139e   :  { %v3899_v4 = vpop.f32.mrb[101].mxu0  ;;  %3752 = vmax.xlane.f32.xlu0 %v3751_v31  ;;  %v3915_v22 = vmul.f32 0.35355338, %v8623_v27 }
0x139f   :  { %v3913_v3 = vmul.f32 0.35355338, %v3899_v4  ;;  %v8624_v8 = vpop.f32.mrb[102].mxu0 }
0x13a0   :  { %v3902_v13 = vpop.f32.mrb[103].mxu0  ;;  %v3918_v2 = vadd.f32 %v10718_v29, %v3915_v22 }
0x13a1   :  { %v3916_v45 = vadd.f32 %v10718_v29, %v3913_v3  ;;  %v3914_v23 = vmul.f32 0.35355338, %v3902_v13 }
0x13a2   :  { %v3925_v20 = vsel %vm835_vm6, %v3918_v2, -inf }
0x13a3   :  { %v3917_v1 = vadd.f32 %v10718_v29, %v3914_v23  ;;  %v3919_v18 = vsel %vm835_vm6, %v3916_v45, -inf }
0x13a4   :  { %3920 = vmax.xlane.f32.xlu0 %v3919_v18 }
0x13a5   :  { %v3922_v19 = vsel %vm835_vm6, %v3917_v1, -inf }
0x13a6   :  { %3923 = vmax.xlane.f32.xlu1 %v3922_v19 }
0x13a8   :  { %3926 = vmax.xlane.f32.xlu0 %v3925_v20 }
0x13b7   :  { %3611 = vrot.lane.b32.xlu1 %v10662_v36, %s9662_s29 }
0x1421   :  { %v3578_v52 = vpop.xlane.xlu1 %3577 }
0x1422   :  { %v3585_v56 = vsub.f32 %v3573_v54, %v3578_v52 }
0x1423   :  { %v3581_v35 = vpop.xlane.xlu0 %3580 }
0x1424   :  { %v3588_v37 = vmul.f32 1.442695, %v3585_v56  ;;  %v3586_v41 = vsub.f32 %v3574_v40, %v3581_v35 }
0x1425   :  { %v3750_v28 = vpop.xlane.xlu1 %3749 }
0x1426   :  { %v3757_v12 = vsub.f32 %v3745_v58, %v3750_v28  ;;  %v3590_v32 = vmul.f32 1.442695, %v3586_v41 }
0x1427   :  { %v3584_v43 = vpop.xlane.xlu0 %3583 }
0x1428   :  { %v3587_v5 = vsub.f32 %v3575_v10, %v3584_v43  ;;  %v3760_v57 = vmul.f32 1.442695, %v3757_v12 }
0x1429   :  { %v3756_v39 = vpop.xlane.xlu1 %3755 }
0x142a   :  { %v3592_v49 = vmul.f32 1.442695, %v3587_v5  ;;  %v3759_v11 = vsub.f32 %v3747_v55, %v3756_v39 }
0x142b   :  { %v3753_v14 = vpop.xlane.xlu0 %3752 }
0x142c   :  { %9405 = vpow2.f32 %v3592_v49  ;;  %v3764_v16 = vmul.f32 1.442695, %v3759_v11  ;;  %v3758_v61 = vsub.f32 %v3746_v9, %v3753_v14 }
0x142d   :  { %9407 = vpow2.f32 %v3588_v37 }
0x142e   :  { %9409 = vpow2.f32 %v3764_v16  ;;  %v3762_v60 = vmul.f32 1.442695, %v3758_v61 }
0x142f   :  { %9411 = vpow2.f32 %v3760_v57 }
0x1430   :  { %9413 = vpow2.f32 %v3762_v60 }
0x1431   :  { %v3921_v17 = vpop.xlane.xlu0 %3920  ;;  %9415 = vpow2.f32 %v3590_v32 }
0x1432   :  { %v3928_v44 = vsub.f32 %v3916_v45, %v3921_v17 }
0x1433   :  { %v3924_v54 = vpop.xlane.xlu1 %3923 }
0x1434   :  { %v3931_v55 = vmul.f32 1.442695, %v3928_v44  ;;  %v3929_v51 = vsub.f32 %v3917_v1, %v3924_v54 }
0x1435   :  { %v3927_v38 = vpop.xlane.xlu0 %3926 }
0x1436   :  { %v10740_v58 = vpop.eup %9405  ;;  %v3930_v26 = vsub.f32 %v3918_v2, %v3927_v38  ;;  %v3933_v4 = vmul.f32 1.442695, %v3929_v51 }
0x1437   :  { %v10742_v40 = vpop.eup %9407  ;;  %v3612_v10 = vpop.permute.xlu1 %3611  ;;  %v3600_v62 = vsel %vm835_vm6, %v10740_v58, 0.0 }
0x1438   :  { %v10746_v63 = vpop.eup %9409  ;;  %v3935_v9 = vmul.f32 1.442695, %v3930_v26  ;;  %3601 = vadd.xlane.f32.xlu1 %v3600_v62  ;;  %8593 = vmatprep.subr.bf16.mxu1 %v3612_v10  ;;  %v3594_v27 = vsel %vm835_vm6, %v10742_v40, 0.0 }
0x1439   :  { %8594 = vmatpush3.bf16.msra.mxu1 %v3612_v10  ;;  %v3772_v48 = vsel %vm835_vm6, %v10746_v63, 0.0  ;;  %v10750_v0 = vpop.eup %9411 }
0x143a   :  { %9417 = vpow2.f32 %v3935_v9  ;;  %3773 = vadd.xlane.f32.xlu0 %v3772_v48  ;;  %v9414_v31 = vpop.eup %9413  ;;  %v3766_v22 = vsel %vm835_vm6, %v10750_v0, 0.0 }
0x143b   :  { %9419 = vpow2.f32 %v3931_v55  ;;  %v9416_v3 = vpop.eup %9415  ;;  %v3769_v8 = vsel %vm835_vm6, %v9414_v31, 0.0 }
0x143c   :  { %3595 = vadd.xlane.f32.xlu1 %v3594_v27  ;;  %9421 = vpow2.f32 %v3933_v4  ;;  %v3597_v13 = vsel %vm835_vm6, %v9416_v3, 0.0 }
0x143e   :  { %3767 = vadd.xlane.f32.xlu0 %v3766_v22 }
0x1440   :  { %3770 = vadd.xlane.f32.xlu1 %v3769_v8 }
0x1442   :  { %3598 = vadd.xlane.f32.xlu0 %v3597_v13 }
0x1444   :  { %v10758_v45 = vpop.eup %9417 }
0x1445   :  { %v3943_v23 = vsel %vm835_vm6, %v10758_v45, 0.0  ;;  %v10762_v2 = vpop.eup %9419 }
0x1446   :  { %3944 = vadd.xlane.f32.xlu0 %v3943_v23  ;;  %v3937_v1 = vsel %vm835_vm6, %v10762_v2, 0.0  ;;  %v9422_v18 = vpop.eup %9421 }
0x1447   :  { %v3940_v19 = vsel %vm835_vm6, %v9422_v18, 0.0 }
0x144a   :  { %3938 = vadd.xlane.f32.xlu0 %v3937_v1 }
0x144e   :  { %3941 = vadd.xlane.f32.xlu0 %v3940_v19 }
0x1451   :  { %3783 = vrot.lane.b32.xlu1 %v10662_v36, %s9665_s5 }
0x1455   :  { %3785 = vrot.lane.b32.xlu1 %v10670_v30, %s9665_s5 }
0x1459   :  { %3954 = vrot.lane.b32.xlu1 %v10662_v36, %s9664_s4 }
0x145d   :  { %3956 = vrot.lane.b32.xlu1 %v10670_v30, %s9664_s4 }
0x1461   :  { %4020 = vrot.lane.b32.xlu1 %v10662_v36, %s9659_s26 }
0x1464   :  { %3613 = vrot.lane.b32.xlu0 %v10670_v30, %s9662_s29 }
0x1465   :  { %4016 = vrot.lane.b32.xlu1 %v10662_v36, %s9661_s28 }
0x1468   :  { %4022 = vrot.lane.b32.xlu0 %v10670_v30, %s9659_s26 }
0x146c   :  { %4018 = vrot.lane.b32.xlu0 %v10670_v30, %s9661_s28 }
0x14c5   :  { %v3602_v20 = vpop.xlane.xlu1 %3601 }
0x14c7   :  { %v3774_v52 = vpop.xlane.xlu0 %3773 }
0x14c9   :  { %v3596_v35 = vpop.xlane.xlu1 %3595 }
0x14ca   :  { %9423 = vrcp.f32 %v3596_v35 }
0x14cb   :  { %v3768_v56 = vpop.xlane.xlu0 %3767 }
0x14cd   :  { %v3771_v28 = vpop.xlane.xlu1 %3770 }
0x14cf   :  { %v3599_v43 = vpop.xlane.xlu0 %3598 }
0x14d0   :  { %9425 = vrcp.f32 %v3599_v43 }
0x14d1   :  { %9427 = vrcp.f32 %v3602_v20  ;;  %v3784_v5 = vpop.permute.xlu1 %3783 }
0x14d2   :  { %9429 = vrcp.f32 %v3771_v28 }
0x14d3   :  { %v3945_v12 = vpop.xlane.xlu0 %3944  ;;  %9431 = vrcp.f32 %v3768_v56 }
0x14d4   :  { %v9424_v39 = vpop.eup %9423  ;;  %9433 = vrcp.f32 %v3774_v52 }
0x14d5   :  { %v3606_v14 = vmul.f32 %v9424_v39, %v10742_v40  ;;  %v3786_v61 = vpop.permute.xlu1 %3785 }
0x14d7   :  { %v3939_v37 = vpop.xlane.xlu0 %3938 }
0x14d8   :  { %9435 = vrcp.f32 %v3939_v37 }
0x14d9   :  { %v3955_v40 = vpop.permute.xlu1 %3954 }
0x14da   :  { %v9426_v49 = vpop.eup %9425 }
0x14db   :  { %v9428_v11 = vpop.eup %9427  ;;  %v3942_v41 = vpop.xlane.xlu0 %3941  ;;  %v3607_v57 = vmul.f32 %v9426_v49, %v9416_v3 }
0x14dc   :  { %v9430_v16 = vpop.eup %9429  ;;  %9437 = vrcp.f32 %v3942_v41  ;;  %v3608_v17 = vmul.f32 %v9428_v11, %v10740_v58 }
0x14dd   :  { %v3609_v60 = vpack.c.bf16 %v3607_v57, %v3606_v14  ;;  %v9432_v32 = vpop.eup %9431  ;;  %v3779_v44 = vmul.f32 %v9430_v16, %v9414_v31  ;;  %9439 = vrcp.f32 %v3945_v12  ;;  %v3957_v27 = vpop.permute.xlu1 %3956 }
0x14de   :  { %v3778_v26 = vmul.f32 %v9432_v32, %v10750_v0  ;;  %v3610_v10 = vpack.c.bf16 %v3608_v17, %v3608_v17  ;;  %v9434_v62 = vpop.eup %9433  ;;  %v3795_v0 = vsel %vm3622_vm10, %v3786_v61, 0  ;;  %v3966_v13 = vsel %vm3622_vm10, %v3957_v27, 0 }
0x14df   :  { %8597 = vmatprep.mubr.msk.bf16.mxu1 %vm835_vm6, %v3609_v60  ;;  %v3614_v54 = vpop.permute.xlu0 %3613  ;;  %v3780_v9 = vmul.f32 %v9434_v62, %v10746_v63 }
0x14e0   :  { %8980 = vmatprep.subr.msk.bf16.mxu1 %vm3622_vm10, %v3614_v54  ;;  %v3624_v38 = vsel %vm3622_vm10, %v3614_v54, 0  ;;  %v3781_v55 = vpack.c.bf16 %v3779_v44, %v3778_v26 }
0x14e1   :  { %8596 = vmatpush3.bf16.msra.mxu1 %v3624_v38  ;;  %v3782_v4 = vpack.c.bf16 %v3780_v9, %v3780_v9  ;;  %v4021_v8 = vpop.permute.xlu1 %4020 }
0x14e2   :  { %8609 = vmatprep.subr.bf16.mxu1 %v3784_v5  ;;  %v9436_v58 = vpop.eup %9435  ;;  %v4031_v1 = vsel %vm303_vm4, %v4021_v8, 0 }
0x14e3   :  { %v3949_v31 = vmul.f32 %v9436_v58, %v10762_v2 }
0x14e4   :  { %8598 = vmatmul.mubr.msk.bf16.vlgmr.msra.gmra.mrb[88].mxu1 %vm835_vm6, %v3610_v10 }
0x14e5   :  { %8610 = vmatpush3.bf16.msra.mxu1 %v3784_v5  ;;  %8613 = vmatprep.mubr.msk.bf16.mxu1 %vm835_vm6, %v3781_v55  ;;  %v4017_v2 = vpop.permute.xlu1 %4016 }
0x14e6   :  { %v9438_v51 = vpop.eup %9437  ;;  %8983 = vmatprep.subr.msk.bf16.mxu1 %vm3622_vm10, %v3786_v61 }
0x14e7   :  { %v3950_v48 = vmul.f32 %v9438_v51, %v9422_v18  ;;  %v9440_v22 = vpop.eup %9439  ;;  %v4023_v18 = vpop.permute.xlu0 %4022 }
0x14e8   :  { %v3951_v63 = vmul.f32 %v9440_v22, %v10758_v45  ;;  %v4034_v19 = vsel %vm303_vm4, %v4023_v18, 0 }
0x14e9   :  { %8612 = vmatpush3.bf16.msra.mxu1 %v3795_v0  ;;  %v3952_v3 = vpack.c.bf16 %v3950_v48, %v3949_v31 }
0x14ea   :  { %8625 = vmatprep.subr.bf16.mxu1 %v3955_v40  ;;  %v3953_v23 = vpack.c.bf16 %v3951_v63, %v3951_v63 }
0x14eb   :  { %v4019_v45 = vpop.permute.xlu0 %4018 }
0x14ec   :  { %8614 = vmatmul.mubr.msk.bf16.vlgmr.msra.gmra.mrb[92].mxu1 %vm835_vm6, %v3782_v4 }
0x14ed   :  { %8626 = vmatpush3.bf16.msra.mxu1 %v3955_v40  ;;  %8629 = vmatprep.mubr.msk.bf16.mxu1 %vm835_vm6, %v3952_v3 }
0x14ee   :  { %8986 = vmatprep.subr.msk.bf16.mxu1 %vm3622_vm10, %v3957_v27 }
0x14f1   :  { %8628 = vmatpush3.bf16.msra.mxu1 %v3966_v13 }
0x14f2   :  { %8987 = vmatprep.subr.msk.bf16.mxu1 %vm303_vm4, %v4021_v8 }
0x14f4   :  { %8630 = vmatmul.mubr.msk.bf16.vlgmr.msra.gmra.mrb[96].mxu1 %vm835_vm6, %v3953_v23 }
0x14f5   :  { %8637 = vmatprep.mubr.msk.bf16.mxu1 %vm303_vm4, %v4017_v2  ;;  %v10845_v2 = vrot.slane %v3497_v46, 4 }
0x14fa   :  { %8634 = vmatpush3.bf16.xpose.msra.mxu1 %v4031_v1  ;;  %v4234_v1 = vrot.slane %v10670_v30, 4 }
0x14fb   :  { %8988 = vmatprep.subr.msk.bf16.mxu1 %vm303_vm4, %v4023_v18 }
0x14fc   :  { %v10854_v18 = vsel %vm3622_vm10, %v4234_v1, %v10845_v2 }
0x1502   :  { %8636 = vmatpush3.bf16.xpose.msra.mxu1 %v4034_v19 }
0x1509   :  { %8638 = vmatmul.mubr.msk.bf16.vlgmr.msra.gmra.mrb[100].mxu1 %vm303_vm4, %v4019_v45 }
0x15b7   :  { %v10809_v20 = vpop.f32.mrb[88].mxu1 }
0x15b8   :  { %v10811_v52 = vpop.f32.mrb[89].mxu1 }
0x15b9   :  { %v8600_v35 = vpop.f32.mrb[90].mxu1 }
0x15ba   :  { %v10813_v56 = vpop.f32.mrb[91].mxu1 }
0x15bf   :  { %v10815_v28 = vpop.f32.mrb[92].mxu1 }
0x15c0   :  { %v10817_v43 = vpop.f32.mrb[93].mxu1 }
0x15c1   :  { %v8616_v12 = vpop.f32.mrb[94].mxu1 }
0x15c2   :  { %v10819_v5 = vpop.f32.mrb[95].mxu1 }
0x15c3   :  { %v9133_v37 = vpack.i.bf16 %v10819_v5, %v10817_v43 }
0x15c7   :  { %v10823_v39 = vpop.f32.mrb[96].mxu1 }
0x15c8   :  { %v10825_v49 = vpop.f32.mrb[97].mxu1 }
0x15c9   :  { %v8632_v11 = vpop.f32.mrb[98].mxu1 }
0x15ca   :  { %v10827_v41 = vpop.f32.mrb[99].mxu1 }
0x15cb   :  { %v9138_v14 = vpack.i.bf16 %v10827_v41, %v10825_v49 }
0x15dc   :  { %v8639_v57 = vpop.f32.mrb[100].mxu1 }
0x15dd   :  { %v4070_v16 = vpop.f32.mrb[101].mxu1  ;;  %v4086_v17 = vmul.f32 0.35355338, %v8639_v57 }
0x15de   :  { %v4084_v61 = vmul.f32 0.35355338, %v4070_v16  ;;  %v8640_v60 = vpop.f32.mrb[102].mxu1 }
0x15df   :  { %v4073_v32 = vpop.f32.mrb[103].mxu1  ;;  %v4089_v40 = vadd.f32 %v10718_v29, %v4086_v17 }
0x15e0   :  { %v4087_v54 = vadd.f32 %v10718_v29, %v4084_v61  ;;  %v4085_v44 = vmul.f32 0.35355338, %v4073_v32 }
0x15e1   :  { %v4096_v62 = vsel %vm835_vm6, %v4089_v40, -inf }
0x15e2   :  { %v4088_v38 = vadd.f32 %v10718_v29, %v4085_v44  ;;  %v4090_v26 = vsel %vm835_vm6, %v4087_v54, -inf }
0x15e3   :  { %4091 = vmax.xlane.f32.xlu1 %v4090_v26 }
0x15e4   :  { %v4093_v10 = vsel %vm835_vm6, %v4088_v38, -inf }
0x15e5   :  { %4094 = vmax.xlane.f32.xlu0 %v4093_v10 }
0x15e9   :  { %4097 = vmax.xlane.f32.xlu0 %v4096_v62 }
0x1670   :  { %v4092_v55 = vpop.xlane.xlu1 %4091 }
0x1671   :  { %v4099_v9 = vsub.f32 %v4087_v54, %v4092_v55 }
0x1672   :  { %v4095_v58 = vpop.xlane.xlu0 %4094 }
0x1673   :  { %v4100_v51 = vsub.f32 %v4088_v38, %v4095_v58  ;;  %v4102_v31 = vmul.f32 1.442695, %v4099_v9 }
0x1675   :  { %v4104_v48 = vmul.f32 1.442695, %v4100_v51 }
0x1676   :  { %v4098_v27 = vpop.xlane.xlu0 %4097 }
0x1677   :  { %9441 = vpow2.f32 %v4104_v48  ;;  %v4101_v0 = vsub.f32 %v4089_v40, %v4098_v27 }
0x1679   :  { %v4106_v4 = vmul.f32 1.442695, %v4101_v0 }
0x167b   :  { %9443 = vpow2.f32 %v4106_v4 }
0x167c   :  { %9445 = vpow2.f32 %v4102_v31 }
0x1681   :  { %v9442_v22 = vpop.eup %9441 }
0x1682   :  { %v4111_v3 = vsel %vm835_vm6, %v9442_v22, 0.0 }
0x1683   :  { %4112 = vadd.xlane.f32.xlu0 %v4111_v3 }
0x1685   :  { %v9444_v8 = vpop.eup %9443 }
0x1686   :  { %v4114_v63 = vsel %vm835_vm6, %v9444_v8, 0.0  ;;  %v9446_v13 = vpop.eup %9445 }
0x1687   :  { %4115 = vadd.xlane.f32.xlu1 %v4114_v63  ;;  %v4108_v23 = vsel %vm835_vm6, %v9446_v13, 0.0 }
0x168b   :  { %4109 = vadd.xlane.f32.xlu1 %v4108_v23 }
0x1699   :  { %4125 = vrot.lane.b32.xlu0 %v10662_v36, %s9666_s6 }
0x169c   :  { %4127 = vrot.lane.b32.xlu1 %v10670_v30, %s9666_s6 }
0x169d   :  { %4239 = vrot.lane.b32.xlu0 %v10845_v2, %s9656_s23 }
0x16a0   :  { %4237 = vrot.lane.b32.xlu1 %v10854_v18, %s9656_s23 }
0x1710   :  { %v4113_v36 = vpop.xlane.xlu0 %4112 }
0x1714   :  { %v4116_v19 = vpop.xlane.xlu1 %4115  ;;  %v4126_v7 = vpop.permute.xlu0 %4125 }
0x1715   :  { %8641 = vmatprep.subr.bf16.mxu0 %v4126_v7  ;;  %9447 = vrcp.f32 %v4116_v19 }
0x1716   :  { %8642 = vmatpush3.bf16.msra.mxu0 %v4126_v7  ;;  %9449 = vrcp.f32 %v4113_v36 }
0x1718   :  { %v4110_v15 = vpop.xlane.xlu1 %4109  ;;  %v4240_v54 = vpop.permute.xlu0 %4239 }
0x1719   :  { %9451 = vrcp.f32 %v4110_v15  ;;  %v4251_v44 = vsel %vm303_vm4, %v4240_v54, 0 }
0x171c   :  { %v4128_v46 = vpop.permute.xlu1 %4127 }
0x171d   :  { %8989 = vmatprep.subr.msk.bf16.mxu0 %vm3622_vm10, %v4128_v46  ;;  %v4137_v30 = vsel %vm3622_vm10, %v4128_v46, 0 }
0x171e   :  { %8644 = vmatpush3.bf16.msra.mxu0 %v4137_v30 }
0x171f   :  { %v9448_v45 = vpop.eup %9447 }
0x1720   :  { %v4238_v35 = vpop.permute.xlu1 %4237  ;;  %v9450_v12 = vpop.eup %9449  ;;  %v4122_v57 = vmul.f32 %v9448_v45, %v9444_v8 }
0x1721   :  { %8990 = vmatprep.subr.msk.bf16.mxu0 %vm303_vm4, %v4238_v35  ;;  %v4121_v61 = vmul.f32 %v9450_v12, %v9442_v22  ;;  %v4248_v17 = vsel %vm303_vm4, %v4238_v35, 0 }
0x1722   :  { %v4124_v32 = vpack.c.bf16 %v4122_v57, %v4122_v57 }
0x1723   :  { %v9452_v11 = vpop.eup %9451 }
0x1724   :  { %v4120_v16 = vmul.f32 %v9452_v11, %v9446_v13 }
0x1726   :  { %v4123_v60 = vpack.c.bf16 %v4121_v61, %v4120_v16 }
0x1728   :  { %8645 = vmatprep.mubr.msk.bf16.mxu0 %vm835_vm6, %v4123_v60 }
0x1729   :  { %8646 = vmatmul.mubr.msk.bf16.vlgmr.msra.gmra.mrb[104].mxu0 %vm835_vm6, %v4124_v32 }
0x172a   :  { %8650 = vmatpush3.bf16.xpose.msra.mxu0 %v4248_v17  ;;  %8653 = vmatprep.mubr.msk.bf16.mxu0 %vm303_vm4, %v10854_v18 }
0x172b   :  { %8991 = vmatprep.subr.msk.bf16.mxu0 %vm303_vm4, %v4240_v54 }
0x1732   :  { %8652 = vmatpush3.bf16.xpose.msra.mxu0 %v4251_v44 }
0x1739   :  { %8654 = vmatmul.mubr.msk.bf16.vlgmr.msra.gmra.mrb[108].mxu0 %vm303_vm4, %v10845_v2 }
0x17fc   :  { %v10870_v38 = vpop.f32.mrb[104].mxu0 }
0x17fd   :  { %v10872_v26 = vpop.f32.mrb[105].mxu0 }
0x17fe   :  { %v8648_v40 = vpop.f32.mrb[106].mxu0 }
0x17ff   :  { %v10874_v10 = vpop.f32.mrb[107].mxu0 }
0x1800   :  { %v9143_v62 = vpack.i.bf16 %v10874_v10, %v10872_v26 }
0x180c   :  { %v8655_v55 = vpop.f32.mrb[108].mxu0 }
0x180d   :  { %v4287_v58 = vpop.f32.mrb[109].mxu0  ;;  %v4303_v27 = vmul.f32 0.35355338, %v8655_v55 }
0x180e   :  { %v4301_v51 = vmul.f32 0.35355338, %v4287_v58  ;;  %v8656_v9 = vpop.f32.mrb[110].mxu0 }
0x180f   :  { %v4290_v48 = vpop.f32.mrb[111].mxu0  ;;  %v4306_v3 = vadd.f32 %v10718_v29, %v4303_v27 }
0x1810   :  { %v4304_v0 = vadd.f32 %v10718_v29, %v4301_v51  ;;  %v4302_v31 = vmul.f32 0.35355338, %v4290_v48 }
0x1811   :  { %v4313_v63 = vsel %vm835_vm6, %v4306_v3, -inf }
0x1812   :  { %v4305_v4 = vadd.f32 %v10718_v29, %v4302_v31  ;;  %v4307_v22 = vsel %vm835_vm6, %v4304_v0, -inf }
0x1813   :  { %4308 = vmax.xlane.f32.xlu1 %v4307_v22 }
0x1814   :  { %v4310_v8 = vsel %vm835_vm6, %v4305_v4, -inf }
0x1815   :  { %4311 = vmax.xlane.f32.xlu0 %v4310_v8 }
0x1819   :  { %4314 = vmax.xlane.f32.xlu0 %v4313_v63 }
0x18a0   :  { %v4309_v13 = vpop.xlane.xlu1 %4308 }
0x18a1   :  { %v4316_v36 = vsub.f32 %v4304_v0, %v4309_v13 }
0x18a2   :  { %v4312_v23 = vpop.xlane.xlu0 %4311 }
0x18a3   :  { %v4317_v1 = vsub.f32 %v4305_v4, %v4312_v23  ;;  %v4319_v46 = vmul.f32 1.442695, %v4316_v36 }
0x18a5   :  { %v4321_v19 = vmul.f32 1.442695, %v4317_v1 }
0x18a6   :  { %v4315_v7 = vpop.xlane.xlu0 %4314 }
0x18a7   :  { %9453 = vpow2.f32 %v4321_v19  ;;  %v4318_v15 = vsub.f32 %v4306_v3, %v4315_v7 }
0x18a9   :  { %v4323_v30 = vmul.f32 1.442695, %v4318_v15 }
0x18ab   :  { %9455 = vpow2.f32 %v4323_v30 }
0x18ac   :  { %9457 = vpow2.f32 %v4319_v46 }
0x18b1   :  { %v9454_v45 = vpop.eup %9453 }
0x18b2   :  { %v4328_v35 = vsel %vm835_vm6, %v9454_v45, 0.0 }
0x18b3   :  { %4329 = vadd.xlane.f32.xlu0 %v4328_v35 }
0x18b5   :  { %v9456_v12 = vpop.eup %9455 }
0x18b6   :  { %v4331_v11 = vsel %vm835_vm6, %v9456_v12, 0.0  ;;  %v9458_v57 = vpop.eup %9457 }
0x18b7   :  { %4332 = vadd.xlane.f32.xlu1 %v4331_v11  ;;  %v4325_v16 = vsel %vm835_vm6, %v9458_v57, 0.0 }
0x18bb   :  { %4326 = vadd.xlane.f32.xlu1 %v4325_v16 }
0x18c9   :  { %4342 = vrot.lane.b32.xlu0 %v10854_v18, %s9662_s29 }
0x18cc   :  { %4344 = vrot.lane.b32.xlu1 %v10845_v2, %s9662_s29 }
0x18cd   :  { %4410 = vrot.lane.b32.xlu0 %v10845_v2, %s9658_s25 }
0x18d0   :  { %4408 = vrot.lane.b32.xlu1 %v10854_v18, %s9658_s25 }
0x18d1   :  { %4406 = vrot.lane.b32.xlu0 %v10845_v2, %s9655_s22 }
0x18d4   :  { %4404 = vrot.lane.b32.xlu1 %v10854_v18, %s9655_s22 }
0x1940   :  { %v4330_v61 = vpop.xlane.xlu0 %4329 }
0x1944   :  { %v4333_v60 = vpop.xlane.xlu1 %4332  ;;  %v4343_v32 = vpop.permute.xlu0 %4342 }
0x1945   :  { %8657 = vmatprep.subr.bf16.mxu1 %v4343_v32  ;;  %9459 = vrcp.f32 %v4333_v60 }
0x1946   :  { %8658 = vmatpush3.bf16.msra.mxu1 %v4343_v32  ;;  %9461 = vrcp.f32 %v4330_v61 }
0x1948   :  { %v4327_v17 = vpop.xlane.xlu1 %4326  ;;  %v4411_v3 = vpop.permute.xlu0 %4410 }
0x1949   :  { %9463 = vrcp.f32 %v4327_v17  ;;  %v4422_v8 = vsel %vm303_vm4, %v4411_v3, 0 }
0x194c   :  { %v4345_v54 = vpop.permute.xlu1 %4344  ;;  %v4407_v63 = vpop.permute.xlu0 %4406 }
0x194d   :  { %8992 = vmatprep.subr.msk.bf16.mxu1 %vm3622_vm10, %v4345_v54  ;;  %v4354_v44 = vsel %vm3622_vm10, %v4345_v54, 0 }
0x194e   :  { %8660 = vmatpush3.bf16.msra.mxu1 %v4354_v44 }
0x194f   :  { %v9460_v40 = vpop.eup %9459 }
0x1950   :  { %v4409_v55 = vpop.permute.xlu1 %4408  ;;  %v9462_v58 = vpop.eup %9461  ;;  %v4339_v9 = vmul.f32 %v9460_v40, %v9456_v12 }
0x1951   :  { %8993 = vmatprep.subr.msk.bf16.mxu1 %vm303_vm4, %v4409_v55  ;;  %v4338_v27 = vmul.f32 %v9462_v58, %v9454_v45  ;;  %v4419_v22 = vsel %vm303_vm4, %v4409_v55, 0 }
0x1952   :  { %v4341_v31 = vpack.c.bf16 %v4339_v9, %v4339_v9 }
0x1953   :  { %v9464_v51 = vpop.eup %9463 }
0x1954   :  { %v4337_v48 = vmul.f32 %v9464_v51, %v9458_v57  ;;  %v4405_v4 = vpop.permute.xlu1 %4404 }
0x1956   :  { %v4340_v0 = vpack.c.bf16 %v4338_v27, %v4337_v48 }
0x1958   :  { %8661 = vmatprep.mubr.msk.bf16.mxu1 %vm835_vm6, %v4340_v0 }
0x1959   :  { %8662 = vmatmul.mubr.msk.bf16.vlgmr.msra.gmra.mrb[104].mxu1 %vm835_vm6, %v4341_v31 }
0x195a   :  { %8666 = vmatpush3.bf16.xpose.msra.mxu1 %v4419_v22  ;;  %8669 = vmatprep.mubr.msk.bf16.mxu1 %vm303_vm4, %v4405_v4 }
0x195b   :  { %8994 = vmatprep.subr.msk.bf16.mxu1 %vm303_vm4, %v4411_v3 }
0x1962   :  { %8668 = vmatpush3.bf16.xpose.msra.mxu1 %v4422_v8 }
0x1969   :  { %8670 = vmatmul.mubr.msk.bf16.vlgmr.msra.gmra.mrb[108].mxu1 %vm303_vm4, %v4407_v63 }
0x1a2c   :  { %v10909_v13 = vpop.f32.mrb[104].mxu1 }
0x1a2d   :  { %v10911_v23 = vpop.f32.mrb[105].mxu1 }
0x1a2e   :  { %v8664_v1 = vpop.f32.mrb[106].mxu1 }
0x1a2f   :  { %v10913_v36 = vpop.f32.mrb[107].mxu1 }
0x1a3c   :  { %v8671_v19 = vpop.f32.mrb[108].mxu1 }
0x1a3d   :  { %v4458_v7 = vpop.f32.mrb[109].mxu1  ;;  %v4474_v45 = vmul.f32 0.35355338, %v8671_v19 }
0x1a3e   :  { %v4472_v15 = vmul.f32 0.35355338, %v4458_v7  ;;  %v8672_v46 = vpop.f32.mrb[110].mxu1 }
0x1a3f   :  { %v4461_v30 = vpop.f32.mrb[111].mxu1  ;;  %v4477_v16 = vadd.f32 %v10718_v29, %v4474_v45 }
0x1a40   :  { %v4475_v35 = vadd.f32 %v10718_v29, %v4472_v15  ;;  %v4473_v12 = vmul.f32 0.35355338, %v4461_v30 }
0x1a41   :  { %v4484_v60 = vsel %vm835_vm6, %v4477_v16, -inf }
0x1a42   :  { %v4476_v11 = vadd.f32 %v10718_v29, %v4473_v12  ;;  %v4478_v57 = vsel %vm835_vm6, %v4475_v35, -inf }
0x1a43   :  { %4479 = vmax.xlane.f32.xlu1 %v4478_v57 }
0x1a44   :  { %v4481_v61 = vsel %vm835_vm6, %v4476_v11, -inf }
0x1a45   :  { %4482 = vmax.xlane.f32.xlu0 %v4481_v61 }
0x1a49   :  { %4485 = vmax.xlane.f32.xlu0 %v4484_v60 }
0x1ad0   :  { %v4480_v32 = vpop.xlane.xlu1 %4479 }
0x1ad1   :  { %v4487_v44 = vsub.f32 %v4475_v35, %v4480_v32 }
0x1ad2   :  { %v4483_v17 = vpop.xlane.xlu0 %4482 }
0x1ad3   :  { %v4488_v54 = vsub.f32 %v4476_v11, %v4483_v17  ;;  %v4490_v51 = vmul.f32 1.442695, %v4487_v44 }
0x1ad5   :  { %v4492_v40 = vmul.f32 1.442695, %v4488_v54 }
0x1ad6   :  { %v4486_v55 = vpop.xlane.xlu0 %4485 }
0x1ad7   :  { %9465 = vpow2.f32 %v4492_v40  ;;  %v4489_v58 = vsub.f32 %v4477_v16, %v4486_v55 }
0x1ad9   :  { %v4494_v9 = vmul.f32 1.442695, %v4489_v58 }
0x1adb   :  { %9467 = vpow2.f32 %v4494_v9 }
0x1adc   :  { %9469 = vpow2.f32 %v4490_v51 }
0x1ae1   :  { %v9466_v48 = vpop.eup %9465 }
0x1ae2   :  { %v4499_v27 = vsel %vm835_vm6, %v9466_v48, 0.0 }
0x1ae3   :  { %4500 = vadd.xlane.f32.xlu0 %v4499_v27 }
0x1ae5   :  { %v9468_v0 = vpop.eup %9467 }
0x1ae6   :  { %v4502_v31 = vsel %vm835_vm6, %v9468_v0, 0.0  ;;  %v9470_v4 = vpop.eup %9469 }
0x1ae7   :  { %4503 = vadd.xlane.f32.xlu1 %v4502_v31  ;;  %v4496_v22 = vsel %vm835_vm6, %v9470_v4, 0.0 }
0x1aeb   :  { %4497 = vadd.xlane.f32.xlu1 %v4496_v22 }
0x1af9   :  { %4513 = vrot.lane.b32.xlu0 %v10854_v18, %s9665_s5 }
0x1afc   :  { %4515 = vrot.lane.b32.xlu1 %v10845_v2, %s9665_s5 }
0x1afd   :  { %4581 = vrot.lane.b32.xlu0 %v10845_v2, %s9657_s24 }
0x1b00   :  { %4579 = vrot.lane.b32.xlu1 %v10854_v18, %s9657_s24 }
0x1b01   :  { %4577 = vrot.lane.b32.xlu0 %v10845_v2, %s9660_s27 }
0x1b04   :  { %4575 = vrot.lane.b32.xlu1 %v10854_v18, %s9660_s27 }
0x1b70   :  { %v4501_v3 = vpop.xlane.xlu0 %4500 }
0x1b74   :  { %v4504_v8 = vpop.xlane.xlu1 %4503  ;;  %v4514_v63 = vpop.permute.xlu0 %4513 }
0x1b75   :  { %8673 = vmatprep.subr.bf16.mxu0 %v4514_v63  ;;  %9471 = vrcp.f32 %v4504_v8 }
0x1b76   :  { %8674 = vmatpush3.bf16.msra.mxu0 %v4514_v63  ;;  %9473 = vrcp.f32 %v4501_v3 }
0x1b78   :  { %v4498_v1 = vpop.xlane.xlu1 %4497  ;;  %v4582_v32 = vpop.permute.xlu0 %4581 }
0x1b79   :  { %9475 = vrcp.f32 %v4498_v1  ;;  %v4593_v17 = vsel %vm303_vm4, %v4582_v32, 0 }
0x1b7c   :  { %v4516_v19 = vpop.permute.xlu1 %4515  ;;  %v4578_v54 = vpop.permute.xlu0 %4577 }
0x1b7d   :  { %8995 = vmatprep.subr.msk.bf16.mxu0 %vm3622_vm10, %v4516_v19  ;;  %v4525_v7 = vsel %vm3622_vm10, %v4516_v19, 0 }
0x1b7e   :  { %8676 = vmatpush3.bf16.msra.mxu0 %v4525_v7 }
0x1b7f   :  { %v9472_v15 = vpop.eup %9471 }
0x1b80   :  { %v4580_v46 = vpop.permute.xlu1 %4579  ;;  %v9474_v30 = vpop.eup %9473  ;;  %v4510_v35 = vmul.f32 %v9472_v15, %v9468_v0 }
0x1b81   :  { %8996 = vmatprep.subr.msk.bf16.mxu0 %vm303_vm4, %v4580_v46  ;;  %v4509_v11 = vmul.f32 %v9474_v30, %v9466_v48  ;;  %v4590_v60 = vsel %vm303_vm4, %v4580_v46, 0 }
0x1b82   :  { %v4512_v16 = vpack.c.bf16 %v4510_v35, %v4510_v35 }
0x1b83   :  { %v9476_v45 = vpop.eup %9475 }
0x1b84   :  { %v4508_v12 = vmul.f32 %v9476_v45, %v9470_v4  ;;  %v4576_v61 = vpop.permute.xlu1 %4575 }
0x1b86   :  { %v4511_v57 = vpack.c.bf16 %v4509_v11, %v4508_v12 }
0x1b88   :  { %8677 = vmatprep.mubr.msk.bf16.mxu0 %vm835_vm6, %v4511_v57 }
0x1b89   :  { %8678 = vmatmul.mubr.msk.bf16.vlgmr.msra.gmra.mrb[112].mxu0 %vm835_vm6, %v4512_v16 }
0x1b8a   :  { %8682 = vmatpush3.bf16.xpose.msra.mxu0 %v4590_v60  ;;  %8685 = vmatprep.mubr.msk.bf16.mxu0 %vm303_vm4, %v4576_v61 }
0x1b8b   :  { %8997 = vmatprep.subr.msk.bf16.mxu0 %vm303_vm4, %v4582_v32 }
0x1b92   :  { %8684 = vmatpush3.bf16.xpose.msra.mxu0 %v4593_v17 }
0x1b99   :  { %8686 = vmatmul.mubr.msk.bf16.vlgmr.msra.gmra.mrb[116].mxu0 %vm303_vm4, %v4578_v54 }
0x1c5c   :  { %v10946_v44 = vpop.f32.mrb[112].mxu0 }
0x1c5d   :  { %v10948_v40 = vpop.f32.mrb[113].mxu0 }
0x1c5e   :  { %v9148_v55 = vpack.i.bf16 %v10948_v40, %v10815_v28  ;;  %v8680_v58 = vpop.f32.mrb[114].mxu0 }
0x1c5f   :  { %v10952_v51 = vpop.f32.mrb[115].mxu0 }
0x1c60   :  { %v9163_v9 = vpack.i.bf16 %v10946_v44, %v10952_v51  ;;  %v9251_v44 = vld [vmem:[%s11156_s16] sm:$0xff]   ;;  %v9252_v51 = vld [vmem:[%s11156_s16 + $0x8] sm:$0xff]  }
0x1c6c   :  { %v8687_v48 = vpop.f32.mrb[116].mxu0 }
0x1c6d   :  { %v4629_v27 = vpop.f32.mrb[117].mxu0  ;;  %v4645_v22 = vmul.f32 0.35355338, %v8687_v48 }
0x1c6e   :  { %v4643_v0 = vmul.f32 0.35355338, %v4629_v27  ;;  %v8688_v31 = vpop.f32.mrb[118].mxu0 }
0x1c6f   :  { %v4632_v4 = vpop.f32.mrb[119].mxu0  ;;  %v4648_v19 = vadd.f32 %v10718_v29, %v4645_v22 }
0x1c70   :  { %v4646_v3 = vadd.f32 %v10718_v29, %v4643_v0  ;;  %v4644_v8 = vmul.f32 0.35355338, %v4632_v4 }
0x1c71   :  { %v4655_v15 = vsel %vm835_vm6, %v4648_v19, -inf }
0x1c72   :  { %v4647_v63 = vadd.f32 %v10718_v29, %v4644_v8  ;;  %v4649_v1 = vsel %vm835_vm6, %v4646_v3, -inf }
0x1c73   :  { %4650 = vmax.xlane.f32.xlu1 %v4649_v1 }
0x1c74   :  { %v4652_v7 = vsel %vm835_vm6, %v4647_v63, -inf }
0x1c75   :  { %4653 = vmax.xlane.f32.xlu0 %v4652_v7 }
0x1c79   :  { %4656 = vmax.xlane.f32.xlu0 %v4655_v15 }
0x1d00   :  { %v4651_v46 = vpop.xlane.xlu1 %4650 }
0x1d01   :  { %v4658_v35 = vsub.f32 %v4646_v3, %v4651_v46 }
0x1d02   :  { %v4654_v30 = vpop.xlane.xlu0 %4653 }
0x1d03   :  { %v4659_v45 = vsub.f32 %v4647_v63, %v4654_v30  ;;  %v4661_v16 = vmul.f32 1.442695, %v4658_v35 }
0x1d05   :  { %v4663_v12 = vmul.f32 1.442695, %v4659_v45 }
0x1d06   :  { %v4657_v11 = vpop.xlane.xlu0 %4656 }
0x1d07   :  { %9477 = vpow2.f32 %v4663_v12  ;;  %v4660_v57 = vsub.f32 %v4648_v19, %v4657_v11 }
0x1d09   :  { %v4665_v61 = vmul.f32 1.442695, %v4660_v57 }
0x1d0b   :  { %9479 = vpow2.f32 %v4665_v61 }
0x1d0c   :  { %9481 = vpow2.f32 %v4661_v16 }
0x1d11   :  { %v9478_v60 = vpop.eup %9477 }
0x1d12   :  { %v4670_v29 = vsel %vm835_vm6, %v9478_v60, 0.0 }
0x1d13   :  { %4671 = vadd.xlane.f32.xlu0 %v4670_v29 }
0x1d15   :  { %v9480_v32 = vpop.eup %9479 }
0x1d16   :  { %v4673_v17 = vsel %vm835_vm6, %v9480_v32, 0.0  ;;  %v9482_v54 = vpop.eup %9481 }
0x1d17   :  { %4674 = vadd.xlane.f32.xlu1 %v4673_v17  ;;  %v4667_v58 = vsel %vm835_vm6, %v9482_v54, 0.0 }
0x1d1b   :  { %4668 = vadd.xlane.f32.xlu1 %v4667_v58 }
0x1d29   :  { %4684 = vrot.lane.b32.xlu0 %v10854_v18, %s9664_s4 }
0x1d2c   :  { %4686 = vrot.lane.b32.xlu1 %v10845_v2, %s9664_s4 }
0x1d2d   :  { %4752 = vrot.lane.b32.xlu0 %v10845_v2, %s9659_s26 }
0x1d30   :  { %4750 = vrot.lane.b32.xlu1 %v10854_v18, %s9659_s26 }
0x1d31   :  { %4748 = vrot.lane.b32.xlu0 %v10845_v2, %s9661_s28 }
0x1d34   :  { %4746 = vrot.lane.b32.xlu1 %v10854_v18, %s9661_s28 }
0x1da0   :  { %v4672_v48 = vpop.xlane.xlu0 %4671 }
0x1da4   :  { %v4675_v27 = vpop.xlane.xlu1 %4674  ;;  %v4685_v0 = vpop.permute.xlu0 %4684 }
0x1da5   :  { %8689 = vmatprep.subr.bf16.mxu1 %v4685_v0  ;;  %9483 = vrcp.f32 %v4675_v27 }
0x1da6   :  { %8690 = vmatpush3.bf16.msra.mxu1 %v4685_v0  ;;  %9485 = vrcp.f32 %v4672_v48 }
0x1da8   :  { %v4669_v31 = vpop.xlane.xlu1 %4668  ;;  %v4753_v12 = vpop.permute.xlu0 %4752 }
0x1da9   :  { %9487 = vrcp.f32 %v4669_v31  ;;  %v4764_v11 = vsel %vm303_vm4, %v4753_v12, 0 }
0x1dac   :  { %v4687_v4 = vpop.permute.xlu1 %4686  ;;  %v4749_v57 = vpop.permute.xlu0 %4748 }
0x1dad   :  { %8998 = vmatprep.subr.msk.bf16.mxu1 %vm3622_vm10, %v4687_v4  ;;  %v4696_v22 = vsel %vm3622_vm10, %v4687_v4, 0  ;;  %v9646_v4 = vld [vmem:[%s10715_s3] ss:$0 sm:$0xff] }
0x1dae   :  { %8692 = vmatpush3.bf16.msra.mxu1 %v4696_v22 }
0x1daf   :  { %v9484_v3 = vpop.eup %9483 }
0x1db0   :  { %v4751_v8 = vpop.permute.xlu1 %4750  ;;  %v9486_v63 = vpop.eup %9485  ;;  %v4681_v19 = vmul.f32 %v9484_v3, %v9480_v32 }
0x1db1   :  { %8999 = vmatprep.subr.msk.bf16.mxu1 %vm303_vm4, %v4751_v8  ;;  %v4680_v15 = vmul.f32 %v9486_v63, %v9478_v60  ;;  %v4761_v35 = vsel %vm303_vm4, %v4751_v8, 0 }
0x1db2   :  { %v4683_v30 = vpack.c.bf16 %v4681_v19, %v4681_v19 }
0x1db3   :  { %v9488_v1 = vpop.eup %9487 }
0x1db4   :  { %v4679_v7 = vmul.f32 %v9488_v1, %v9482_v54  ;;  %v4747_v45 = vpop.permute.xlu1 %4746 }
0x1db6   :  { %v4682_v46 = vpack.c.bf16 %v4680_v15, %v4679_v7 }
0x1db8   :  { %8693 = vmatprep.mubr.msk.bf16.mxu1 %vm835_vm6, %v4682_v46 }
0x1db9   :  { %8694 = vmatmul.mubr.msk.bf16.vlgmr.msra.gmra.mrb[112].mxu1 %vm835_vm6, %v4683_v30 }
0x1dba   :  { %8698 = vmatpush3.bf16.xpose.msra.mxu1 %v4761_v35  ;;  %8701 = vmatprep.mubr.msk.bf16.mxu1 %vm303_vm4, %v4747_v45 }
0x1dbb   :  { %9000 = vmatprep.subr.msk.bf16.mxu1 %vm303_vm4, %v4753_v12 }
0x1dc2   :  { %8700 = vmatpush3.bf16.xpose.msra.mxu1 %v4764_v11 }
0x1dc3   :  { %8729 = vmatprep.subr.bf16.mxu1 %v9653_v21 }
0x1dc9   :  { %8702 = vmatmul.mubr.msk.bf16.vlgmr.msra.gmra.mrb[116].mxu1 %vm303_vm4, %v4749_v57 }
0x1dca   :  { %8733 = vmatprep.mubr.msk.bf16.mxu1 %vm9654_vm3, %v9653_v21 }
0x1e8c   :  { %v10990_v16 = vpop.f32.mrb[112].mxu1 }
0x1e8d   :  { %v4732_v61 = vpop.f32.mrb[113].mxu1 }
0x1e8e   :  { %v9153_v60 = vpack.i.bf16 %v4732_v61, %v10823_v39  ;;  %v8696_v29 = vpop.f32.mrb[114].mxu1 }
0x1e8f   :  { %v10993_v32 = vpop.f32.mrb[115].mxu1 }
0x1e90   :  { %v9168_v17 = vpack.i.bf16 %v10990_v16, %v10993_v32  ;;  %v9254_v16 = vld [vmem:[%s11156_s16 + $0x18] sm:$0xff]  }
0x1e9c   :  { %v8703_v54 = vpop.f32.mrb[116].mxu1 }
0x1e9d   :  { %v4800_v58 = vpop.f32.mrb[117].mxu1  ;;  %v4816_v31 = vmul.f32 0.35355338, %v8703_v54 }
0x1e9e   :  { %v4814_v48 = vmul.f32 0.35355338, %v4800_v58  ;;  %v8704_v27 = vpop.f32.mrb[118].mxu1 }
0x1e9f   :  { %v4803_v0 = vpop.f32.mrb[119].mxu1  ;;  %v4819_v39 = vadd.f32 %v9646_v4, %v4816_v31 }
0x1ea0   :  { %v4817_v22 = vadd.f32 %v9646_v4, %v4814_v48  ;;  %v4815_v3 = vmul.f32 0.35355338, %v4803_v0 }
0x1ea1   :  { %v4826_v19 = vsel %vm835_vm6, %v4819_v39, -inf }
0x1ea2   :  { %v4818_v8 = vadd.f32 %v9646_v4, %v4815_v3  ;;  %v4820_v63 = vsel %vm835_vm6, %v4817_v22, -inf }
0x1ea3   :  { %4821 = vmax.xlane.f32.xlu1 %v4820_v63 }
0x1ea4   :  { %v4823_v1 = vsel %vm835_vm6, %v4818_v8, -inf }
0x1ea5   :  { %4824 = vmax.xlane.f32.xlu0 %v4823_v1 }
0x1ea9   :  { %4827 = vmax.xlane.f32.xlu0 %v4826_v19 }
0x1f30   :  { %v4822_v7 = vpop.xlane.xlu1 %4821 }
0x1f31   :  { %v4829_v30 = vsub.f32 %v4817_v22, %v4822_v7 }
0x1f32   :  { %v4825_v15 = vpop.xlane.xlu0 %4824 }
0x1f33   :  { %v4830_v46 = vsub.f32 %v4818_v8, %v4825_v15  ;;  %v4832_v11 = vmul.f32 1.442695, %v4829_v30  ;;  %v9247_v15 = vld [vmem:[%s11023_s1] sm:$0xff]  }
0x1f35   :  { %v4834_v45 = vmul.f32 1.442695, %v4830_v46 }
0x1f36   :  { %v4828_v35 = vpop.xlane.xlu0 %4827 }
0x1f37   :  { %9489 = vpow2.f32 %v4834_v45  ;;  %v4831_v12 = vsub.f32 %v4819_v39, %v4828_v35  ;;  %v9248_v45 = vld [vmem:[%s11023_s1 + $0x8] sm:$0xff]  }
0x1f39   :  { %v4836_v57 = vmul.f32 1.442695, %v4831_v12 }
0x1f3b   :  { %9491 = vpow2.f32 %v4836_v57 }
0x1f3c   :  { %9493 = vpow2.f32 %v4832_v11 }
0x1f41   :  { %v9490_v61 = vpop.eup %9489 }
0x1f42   :  { %v4841_v29 = vsel %vm835_vm6, %v9490_v61, 0.0 }
0x1f43   :  { %4842 = vadd.xlane.f32.xlu0 %v4841_v29 }
0x1f45   :  { %v9492_v54 = vpop.eup %9491 }
0x1f46   :  { %v4844_v58 = vsel %vm835_vm6, %v9492_v54, 0.0  ;;  %v9494_v48 = vpop.eup %9493 }
0x1f47   :  { %4845 = vadd.xlane.f32.xlu1 %v4844_v58  ;;  %v4838_v27 = vsel %vm835_vm6, %v9494_v48, 0.0 }
0x1f4b   :  { %4839 = vadd.xlane.f32.xlu1 %v4838_v27 }
0x1f59   :  { %4855 = vrot.lane.b32.xlu0 %v10854_v18, %s9666_s6 }
0x1f5c   :  { %4857 = vrot.lane.b32.xlu1 %v10845_v2, %s9666_s6 }
0x1f5d   :  { %9139 = vrot.lane.b32.xlu0 %v9138_v14, %s9667_s7 }
0x1f60   :  { %9134 = vrot.lane.b32.xlu1 %v9133_v37, %s9668_s11 }
0x1f61   :  { %9149 = vrot.lane.b32.xlu0 %v9148_v55, %s9668_s11 }
0x1f64   :  { %9144 = vrot.lane.b32.xlu1 %v9143_v62, %s9669_s12 }
0x1f68   :  { %9154 = vrot.lane.b32.xlu1 %v9153_v60, %s9667_s7 }
0x1fd0   :  { %v4843_v43 = vpop.xlane.xlu0 %4842 }
0x1fd4   :  { %v4846_v5 = vpop.xlane.xlu1 %4845  ;;  %v4856_v37 = vpop.permute.xlu0 %4855 }
0x1fd5   :  { %8705 = vmatprep.subr.bf16.mxu0 %v4856_v37  ;;  %9495 = vrcp.f32 %v4846_v5 }
0x1fd6   :  { %8706 = vmatpush3.bf16.msra.mxu0 %v4856_v37  ;;  %9497 = vrcp.f32 %v4843_v43 }
0x1fd8   :  { %v4840_v28 = vpop.xlane.xlu1 %4839  ;;  %v9140_v26 = vpop.permute.xlu0 %9139 }
0x1fd9   :  { %9499 = vrcp.f32 %v4840_v28  ;;  %v9142_v31 = vunpack.i.h.bf16 %v9140_v26  ;;  %v9141_v4 = vunpack.i.l.bf16 %v9140_v26 }
0x1fdc   :  { %v4858_v49 = vpop.permute.xlu1 %4857 }
0x1fdd   :  { %9001 = vmatprep.subr.msk.bf16.mxu0 %vm3622_vm10, %v4858_v49  ;;  %v4867_v41 = vsel %vm3622_vm10, %v4858_v49, 0 }
0x1fde   :  { %8708 = vmatpush3.bf16.msra.mxu0 %v4867_v41 }
0x1fdf   :  { %8713 = vmatprep.subr.bf16.mxu0 %v9653_v21  ;;  %v9496_v14 = vpop.eup %9495 }
0x1fe0   :  { %v9135_v2 = vpop.permute.xlu1 %9134  ;;  %v9498_v18 = vpop.eup %9497  ;;  %v4852_v0 = vmul.f32 %v9496_v14, %v9492_v54  ;;  %v11066_v54 = vld [vmem:[%s11055_s15] ss:$0 sm:$0xff] }
0x1fe1   :  { %v9137_v10 = vunpack.i.h.bf16 %v9135_v2  ;;  %v9136_v62 = vunpack.i.l.bf16 %v9135_v2  ;;  %v4851_v8 = vmul.f32 %v9498_v18, %v9490_v61  ;;  %v9150_v14 = vpop.permute.xlu0 %9149 }
0x1fe2   :  { %v9152_v18 = vunpack.i.h.bf16 %v9150_v14  ;;  %v9151_v26 = vunpack.i.l.bf16 %v9150_v14 }
0x1fe3   :  { %v9500_v40 = vpop.eup %9499  ;;  %v4224_v55 = vsel %vm303_vm4, %v10813_v56, %v9137_v10  ;;  %v4223_v60 = vsel %vm303_vm4, %v10811_v52, %v9136_v62  ;;  %v4854_v52 = vpack.c.bf16 %v4852_v0, %v4852_v0 }
0x1fe4   :  { %v9145_v22 = vpop.permute.xlu1 %9144  ;;  %v4850_v3 = vmul.f32 %v9500_v40, %v9494_v48  ;;  %v4226_v1 = vsel %vm361_vm5, %v4223_v60, %v9141_v4  ;;  %v4227_v19 = vsel %vm361_vm5, %v4224_v55, %v9142_v31  ;;  %v4225_v55 = vsel %vm303_vm4, %v10809_v20, %v9151_v26 }
0x1fe5   :  { %v9147_v63 = vunpack.i.h.bf16 %v9145_v22  ;;  %v9146_v39 = vunpack.i.l.bf16 %v9145_v22 }
0x1fe6   :  { %v4853_v7 = vpack.c.bf16 %v4851_v8, %v4850_v3 }
0x1fe7   :  { %v4229_v56 = vsel %vm835_vm6, %v4226_v1, %v9146_v39  ;;  %v4230_v46 = vsel %vm835_vm6, %v4227_v19, %v9147_v63 }
0x1fe8   :  { %v4962_v30 = vpack.c.bf16 %v4230_v46, %v4229_v56  ;;  %8709 = vmatprep.mubr.msk.bf16.mxu0 %vm835_vm6, %v4853_v7  ;;  %v9155_v2 = vpop.permute.xlu1 %9154 }
0x1fe9   :  { %8710 = vmatmul.mubr.msk.bf16.vlgmr.msra.gmra.mrb[120].mxu0 %vm835_vm6, %v4854_v52  ;;  %v9157_v10 = vunpack.i.h.bf16 %v9155_v2  ;;  %v9156_v62 = vunpack.i.l.bf16 %v9155_v2 }
0x1fea   :  { %8714 = vmatpush3.bf16.msra.mxu0 %v9247_v15  ;;  %8717 = vmatprep.mubr.msk.bf16.mxu0 %vm9654_vm3, %v9653_v21 }
0x1feb   :  { %8715 = vmatprep.subr.bf16.mxu0 %v9653_v21 }
0x1fee   :  { %8716 = vmatpush3.bf16.msra.mxu0 %v9248_v45 }
0x1fef   :  { %8745 = vmatprep.subr.bf16.mxu0 %v9653_v21 }
0x1ff1   :  { %8718 = vmatmul.mubr.msk.bf16.vlgmr.msra.gmra.mrb[124].mxu0 %vm242_vm2, %v4962_v30 }
0x1ff2   :  { %8721 = vmatprep.mubr.msk.bf16.mxu0 %vm9654_vm3, %v9653_v21  ;;  %8746 = vmatpush3.bf16.msra.mxu0 %v9251_v44 }
0x1ff3   :  { %8747 = vmatprep.subr.bf16.mxu0 %v9653_v21 }
0x1ff6   :  { %8748 = vmatpush3.bf16.msra.mxu0 %v9252_v51 }
0x1ff7   :  { %8749 = vmatprep.subr.bf16.mxu0 %v9653_v21 }
0x20bc   :  { %v11057_v35 = vpop.f32.mrb[120].mxu0 }
0x20bd   :  { %v4903_v12 = vpop.f32.mrb[121].mxu0 }
0x20be   :  { %v9158_v11 = vpack.i.bf16 %v4903_v12, %v10870_v38  ;;  %v8712_v57 = vpop.f32.mrb[122].mxu0 }
0x20bf   :  { %v11060_v61 = vpop.f32.mrb[123].mxu0 }
0x20c0   :  { %v9173_v29 = vpack.i.bf16 %v11057_v35, %v11060_v61  ;;  %9159 = vrot.lane.b32.xlu0 %v9158_v11, %s9669_s12 }
0x20c4   :  { %v5026_v58 = vpop.f32.mrb[124].mxu0 }
0x20c5   :  { %v5027_v48 = vadd.f32 %v11066_v54, %v5026_v58  ;;  %v8719_v27 = vpop.f32.mrb[125].mxu0 }
0x20c6   :  { %v5029_v43 = vpop.f32.mrb[126].mxu0 }
0x20c7   :  { %v5050_v5 = vadd.f32 %v5027_v48, %v10637_v47  ;;  %v8720_v37 = vpop.f32.mrb[127].mxu0  ;;  %v5030_v28 = vadd.f32 %v11066_v54, %v5029_v43  ;;  %v4953_v47 = vsel %vm303_vm4, %v10911_v23, %v9152_v18 }
0x20c8   :  { %v4956_v31 = vsel %vm361_vm5, %v4953_v47, %v9157_v10 }
0x20c9   :  { %v5056_v38 = vsel %vm242_vm2, %v5050_v5, 0.0  ;;  %v5051_v49 = vadd.f32 %v5030_v28, %v10635_v25  ;;  %v4228_v25 = vsel %vm361_vm5, %v4225_v55, %v9156_v62 }
0x20ca   :  { %5057 = vadd.xlane.f32.xlu1 %v5056_v38 }
0x20cb   :  { %v5059_v41 = vsel %vm242_vm2, %v5051_v49, 0.0 }
0x20df   :  { %5060 = vadd.xlane.f32.xlu0 %v5059_v41 }
0x2132   :  { %v9160_v40 = vpop.permute.xlu0 %9159 }
0x2133   :  { %v9162_v60 = vunpack.i.h.bf16 %v9160_v40  ;;  %v9161_v0 = vunpack.i.l.bf16 %v9160_v40 }
0x2135   :  { %v4231_v4 = vsel %vm835_vm6, %v4228_v25, %v9161_v0  ;;  %v4959_v22 = vsel %vm835_vm6, %v4956_v31, %v9162_v60  ;;  %v11118_v60 = vld [vmem:[%s11111_s18] sm:$0xf] }
0x2136   :  { %v4963_v3 = vpack.c.bf16 %v4959_v22, %v4231_v4  ;;  %v11122_v0 = vrot.slane %v11118_v60, %v10142_v33 }
0x2138   :  { %8722 = vmatmul.mubr.msk.bf16.gmra.mrb[128].mxu0 %vm242_vm2, %v4963_v3 }
0x2139   :  { %8725 = vmatprep.mubr.msk.bf16.mxu0 %vm9654_vm3, %v9653_v21 }
0x2157   :  { %v5058_v23 = vpop.xlane.xlu1 %5057 }
0x2158   :  { %v5075_v63 = vmul.f32 0.03125, %v5058_v23  ;;  %v11127_v23 = vrot.slane %v11118_v60, %v10148_v34 }
0x215a   :  { %v5081_v1 = vsub.f32 %v5050_v5, %v5075_v63 }
0x215c   :  { %v5087_v11 = vmul.f32 %v5081_v1, %v5081_v1 }
0x215e   :  { %v5093_v48 = vsel %vm242_vm2, %v5087_v11, 0.0 }
0x216c   :  { %v5061_v8 = vpop.xlane.xlu0 %5060 }
0x216d   :  { %v5076_v20 = vmul.f32 0.03125, %v5061_v8 }
0x216f   :  { %v5082_v56 = vsub.f32 %v5051_v49, %v5076_v20 }
0x2171   :  { %v5088_v58 = vmul.f32 %v5082_v56, %v5082_v56 }
0x2173   :  { %v5096_v27 = vsel %vm242_vm2, %v5088_v58, 0.0 }
0x220b   :  { %v5034_v39 = vpop.f32.mrb[128].mxu0 }
0x220c   :  { %v5035_v19 = vadd.f32 %v11066_v54, %v5034_v39  ;;  %v8723_v7 = vpop.f32.mrb[129].mxu0 }
0x220d   :  { %v5037_v15 = vpop.f32.mrb[130].mxu0 }
0x220e   :  { %v5052_v46 = vadd.f32 %v5035_v19, %v10606_v53  ;;  %v5038_v52 = vadd.f32 %v11066_v54, %v5037_v15  ;;  %v8724_v30 = vpop.f32.mrb[131].mxu0  ;;  %v9249_v53 = vld [vmem:[%s11096_s13] sm:$0xff]  }
0x220f   :  { %8730 = vmatpush3.bf16.msra.mxu1 %v9249_v53 }
0x2210   :  { %v5053_v45 = vadd.f32 %v5038_v52, %v10644_v50  ;;  %v5062_v12 = vsel %vm242_vm2, %v5052_v46, 0.0  ;;  %8731 = vmatprep.subr.bf16.mxu1 %v9653_v21  ;;  %v9250_v50 = vld [vmem:[%s11096_s13 + $0x8] sm:$0xff]  }
0x2211   :  { %5063 = vadd.xlane.f32.xlu0 %v5062_v12 }
0x2212   :  { %v5065_v57 = vsel %vm242_vm2, %v5053_v45, 0.0 }
0x2213   :  { %5066 = vadd.xlane.f32.xlu1 %v5065_v57  ;;  %8732 = vmatpush3.bf16.msra.mxu1 %v9250_v50 }
0x2214   :  { %8765 = vmatprep.subr.bf16.mxu1 %v9653_v21 }
0x2215   :  { %5094 = vadd.xlane.f32.xlu0 %v5093_v48 }
0x2217   :  { %5097 = vadd.xlane.f32.xlu1 %v5096_v27 }
0x229e   :  { %v5064_v43 = vpop.xlane.xlu0 %5063 }
0x229f   :  { %v5077_v5 = vmul.f32 0.03125, %v5064_v43 }
0x22a0   :  { %v5067_v37 = vpop.xlane.xlu1 %5066 }
0x22a1   :  { %v11102_v38 = vsub.f32 %v5052_v46, %v5077_v5  ;;  %v5078_v28 = vmul.f32 0.03125, %v5067_v37 }
0x22a2   :  { %v5095_v49 = vpop.xlane.xlu0 %5094 }
0x22a3   :  { %v11104_v41 = vsub.f32 %v5053_v45, %v5078_v28  ;;  %v5111_v14 = vmul.f32 0.03125, %v5095_v49  ;;  %v5089_v2 = vmul.f32 %v11102_v38, %v11102_v38 }
0x22a4   :  { %v5098_v18 = vpop.xlane.xlu1 %5097 }
0x22a5   :  { %v5117_v26 = vadd.f32 1e-05, %v5111_v14  ;;  %v5112_v10 = vmul.f32 0.03125, %v5098_v18  ;;  %v5099_v62 = vsel %vm242_vm2, %v5089_v2, 0.0  ;;  %v5090_v40 = vmul.f32 %v11104_v41, %v11104_v41 }
0x22a6   :  { %5100 = vadd.xlane.f32.xlu0 %v5099_v62 }
0x22a7   :  { %9501 = vrsqrt.f32 %v5117_v26  ;;  %v5118_v47 = vadd.f32 1e-05, %v5112_v10  ;;  %v5102_v55 = vsel %vm242_vm2, %v5090_v40, 0.0 }
0x22a8   :  { %5103 = vadd.xlane.f32.xlu1 %v5102_v55 }
0x22a9   :  { %9503 = vrsqrt.f32 %v5118_v47 }
0x22b1   :  { %v9502_v25 = vpop.eup %9501 }
0x22b2   :  { %v5129_v31 = vmul.f32 %v9502_v25, %v5081_v1 }
0x22b3   :  { %v9504_v4 = vpop.eup %9503 }
0x22b4   :  { %v5139_v22 = vmul.f32 %v11122_v0, %v5129_v31  ;;  %v5130_v3 = vmul.f32 %v9504_v4, %v5082_v56 }
0x22b6   :  { %v5140_v8 = vmul.f32 %v11122_v0, %v5130_v3  ;;  %v11131_v63 = vadd.f32 %v11127_v23, %v5139_v22 }
0x22b8   :  { %v11134_v20 = vadd.f32 %v11127_v23, %v5140_v8 }
0x22b9   :  { %9169 = vrot.lane.b32.xlu1 %v9168_v17, %s9667_s7 }
0x22ba   :  { %v5159_v39 = vpack.c.bf16 %v11134_v20, %v11131_v63 }
0x22bc   :  { %9164 = vrot.lane.b32.xlu0 %v9163_v9, %s9668_s11  ;;  %8734 = vmatmul.mubr.msk.bf16.vlgmr.msra.gmra.mrb[120].mxu1 %vm242_vm2, %v5159_v39  ;;  %v9253_v9 = vld [vmem:[%s11156_s16 + $0x10] sm:$0xff]  }
0x22bd   :  { %9174 = vrot.lane.b32.xlu1 %v9173_v29, %s9669_s12  ;;  %8737 = vmatprep.mubr.msk.bf16.mxu1 %vm9654_vm3, %v9653_v21 }
0x22be   :  { %8750 = vmatpush3.bf16.msra.mxu0 %v9253_v9 }
0x22bf   :  { %8751 = vmatprep.subr.bf16.mxu0 %v9653_v21 }
0x22c2   :  { %8752 = vmatpush3.bf16.msra.mxu0 %v9254_v16 }
0x2333   :  { %v5101_v32 = vpop.xlane.xlu0 %5100 }
0x2334   :  { %v5113_v17 = vmul.f32 0.03125, %v5101_v32 }
0x2335   :  { %v5104_v35 = vpop.xlane.xlu1 %5103 }
0x2336   :  { %v5119_v61 = vadd.f32 1e-05, %v5113_v17  ;;  %v5114_v29 = vmul.f32 0.03125, %v5104_v35 }
0x2337   :  { %v9165_v1 = vpop.permute.xlu0 %9164 }
0x2338   :  { %9505 = vrsqrt.f32 %v5119_v61  ;;  %v5120_v19 = vadd.f32 1e-05, %v5114_v29  ;;  %v9167_v7 = vunpack.i.h.bf16 %v9165_v1  ;;  %v9166_v15 = vunpack.i.l.bf16 %v9165_v1 }
0x2339   :  { %v9170_v56 = vpop.permute.xlu1 %9169 }
0x233a   :  { %9507 = vrsqrt.f32 %v5120_v19  ;;  %v9172_v46 = vunpack.i.h.bf16 %v9170_v56  ;;  %v9171_v52 = vunpack.i.l.bf16 %v9170_v56  ;;  %v4955_v30 = vsel %vm303_vm4, %v10909_v13, %v9167_v7 }
0x233b   :  { %v4954_v45 = vsel %vm303_vm4, %v10913_v36, %v9166_v15 }
0x233c   :  { %v4958_v58 = vsel %vm361_vm5, %v4955_v30, %v9172_v46  ;;  %v4957_v48 = vsel %vm361_vm5, %v4954_v45, %v9171_v52 }
0x233d   :  { %v9175_v12 = vpop.permute.xlu1 %9174 }
0x233e   :  { %v9177_v11 = vunpack.i.h.bf16 %v9175_v12  ;;  %v9176_v57 = vunpack.i.l.bf16 %v9175_v12 }
0x2340   :  { %v4960_v27 = vsel %vm835_vm6, %v4957_v48, %v9176_v57  ;;  %v4961_v53 = vsel %vm835_vm6, %v4958_v58, %v9177_v11 }
0x2341   :  { %v4964_v50 = vpack.c.bf16 %v4961_v53, %v4960_v27 }
0x2342   :  { %v9506_v43 = vpop.eup %9505 }
0x2343   :  { %8726 = vmatmul.mubr.msk.bf16.gmra.mrb[132].mxu0 %vm242_vm2, %v4964_v50  ;;  %v5131_v13 = vmul.f32 %v9506_v43, %v11102_v38  ;;  %v11198_v38 = vld [vmem:[%s11195_s21] ss:$0 sm:$0xff] }
0x2344   :  { %v9508_v5 = vpop.eup %9507  ;;  %8753 = vmatprep.mubr.msk.bf16.mxu0 %vm9654_vm3, %v9653_v21 }
0x2345   :  { %v5132_v36 = vmul.f32 %v9508_v5, %v11104_v41  ;;  %v5141_v37 = vmul.f32 %v11122_v0, %v5131_v13 }
0x2347   :  { %v5142_v28 = vmul.f32 %v11122_v0, %v5132_v36  ;;  %v11181_v49 = vadd.f32 %v11127_v23, %v5141_v37 }
0x2349   :  { %v11184_v14 = vadd.f32 %v11127_v23, %v5142_v28 }
0x234b   :  { %v5160_v2 = vpack.c.bf16 %v11184_v14, %v11181_v49 }
0x234d   :  { %8738 = vmatmul.mubr.msk.bf16.gmra.mrb[124].mxu1 %vm242_vm2, %v5160_v2 }
0x234e   :  { %8741 = vmatprep.mubr.msk.bf16.mxu1 %vm9654_vm3, %v9653_v21 }
0x238f   :  { %v5224_v41 = vpop.f32.mrb[120].mxu1 }
0x2390   :  { %v5225_v18 = vadd.f32 %v11198_v38, %v5224_v41  ;;  %v8735_v26 = vpop.f32.mrb[121].mxu1 }
0x2391   :  { %v5227_v10 = vpop.f32.mrb[122].mxu1 }
0x2392   :  { %v5228_v62 = vadd.f32 %v11198_v38, %v5227_v10  ;;  %v8736_v40 = vpop.f32.mrb[123].mxu1  ;;  %v5247_v47 = vmax.f32 %v5225_v18, 0.0 }
0x2394   :  { %v5248_v55 = vmax.f32 %v5228_v62, 0.0 }
0x2396   :  { %v5261_v25 = vpack.c.bf16 %v5248_v55, %v5247_v47 }
0x2398   :  { %8754 = vmatmul.mubr.msk.bf16.vlgmr.msra.gmra.mrb[136].mxu0 %vm1658_vm7, %v5261_v25 }
0x2399   :  { %8757 = vmatprep.mubr.msk.bf16.mxu0 %vm9654_vm3, %v9653_v21 }
0x2416   :  { %v5042_v31 = vpop.f32.mrb[132].mxu0 }
0x2417   :  { %v5043_v4 = vadd.f32 %v11066_v54, %v5042_v31  ;;  %v8727_v22 = vpop.f32.mrb[133].mxu0 }
0x2418   :  { %v5045_v3 = vpop.f32.mrb[134].mxu0 }
0x2419   :  { %v5054_v8 = vadd.f32 %v5043_v4, %v10651_v42  ;;  %v5046_v39 = vadd.f32 %v11066_v54, %v5045_v3  ;;  %v8728_v44 = vpop.f32.mrb[135].mxu0 }
0x241a   :  { %v9256_v44 = vld [vmem:[%s10602_s14 + $0x18] sm:$0xff]  }
0x241b   :  { %v5055_v51 = vadd.f32 %v5046_v39, %v10609_v59  ;;  %v5068_v9 = vsel %vm242_vm2, %v5054_v8, 0.0  ;;  %v11222_v59 = vld [vmem:[%s11219_s2] ss:$0 sm:$0xff]  ;;  %v9255_v39 = vld [vmem:[%s10602_s14 + $0x10] sm:$0xff]  }
0x241c   :  { %5069 = vadd.xlane.f32.xlu0 %v5068_v9  ;;  %8766 = vmatpush3.bf16.msra.mxu1 %v9255_v39 }
0x241d   :  { %v5071_v16 = vsel %vm242_vm2, %v5055_v51, 0.0  ;;  %8767 = vmatprep.subr.bf16.mxu1 %v9653_v21 }
0x241e   :  { %5072 = vadd.xlane.f32.xlu1 %v5071_v16 }
0x2420   :  { %v5232_v32 = vpop.f32.mrb[124].mxu1  ;;  %8768 = vmatpush3.bf16.msra.mxu1 %v9256_v44 }
0x2421   :  { %v5233_v17 = vadd.f32 %v11198_v38, %v5232_v32  ;;  %v8739_v35 = vpop.f32.mrb[125].mxu1 }
0x2422   :  { %v5235_v61 = vpop.f32.mrb[126].mxu1 }
0x2423   :  { %v5236_v29 = vadd.f32 %v11198_v38, %v5235_v61  ;;  %v8740_v1 = vpop.f32.mrb[127].mxu1  ;;  %v5249_v42 = vmax.f32 %v5233_v17, 0.0 }
0x2425   :  { %v5250_v19 = vmax.f32 %v5236_v29, 0.0 }
0x2427   :  { %v5262_v54 = vpack.c.bf16 %v5250_v19, %v5249_v42 }
0x2429   :  { %8758 = vmatmul.mubr.msk.bf16.gmra.mrb[140].mxu0 %vm1658_vm7, %v5262_v54 }
0x242a   :  { %8761 = vmatprep.mubr.msk.bf16.mxu0 %vm9654_vm3, %v9653_v21 }
0x246b   :  { %v5338_v7 = vpop.f32.mrb[136].mxu0 }
0x246c   :  { %v5339_v15 = vadd.f32 %v11222_v59, %v5338_v7  ;;  %v8755_v56 = vpop.f32.mrb[137].mxu0 }
0x246d   :  { %v5341_v46 = vpop.f32.mrb[138].mxu0 }
0x246e   :  { %v5361_v52 = vadd.f32 %v5339_v15, %v11131_v63  ;;  %v5342_v30 = vadd.f32 %v11222_v59, %v5341_v46  ;;  %v8756_v45 = vpop.f32.mrb[139].mxu0 }
0x2470   :  { %v5362_v12 = vadd.f32 %v5342_v30, %v11134_v20  ;;  %v5367_v11 = vsel %vm242_vm2, %v5361_v52, 0.0 }
0x2471   :  { %5368 = vadd.xlane.f32.xlu0 %v5367_v11 }
0x2472   :  { %v5370_v57 = vsel %vm242_vm2, %v5362_v12, 0.0 }
0x2475   :  { %5371 = vadd.xlane.f32.xlu0 %v5370_v57 }
0x24a9   :  { %v5070_v58 = vpop.xlane.xlu0 %5069 }
0x24aa   :  { %v5079_v27 = vmul.f32 0.03125, %v5070_v58 }
0x24ab   :  { %v5073_v48 = vpop.xlane.xlu1 %5072 }
0x24ac   :  { %v5080_v53 = vmul.f32 0.03125, %v5073_v48  ;;  %v11230_v43 = vsub.f32 %v5054_v8, %v5079_v27 }
0x24ae   :  { %v5086_v37 = vsub.f32 %v5055_v51, %v5080_v53  ;;  %v5091_v62 = vmul.f32 %v11230_v43, %v11230_v43 }
0x24b0   :  { %v5105_v31 = vsel %vm242_vm2, %v5091_v62, 0.0 }
0x24fc   :  { %v5346_v50 = vpop.f32.mrb[140].mxu0 }
0x24fd   :  { %v5347_v63 = vadd.f32 %v11222_v59, %v5346_v50  ;;  %v8759_v13 = vpop.f32.mrb[141].mxu0 }
0x24fe   :  { %v5369_v5 = vpop.xlane.xlu0 %5368  ;;  %v5349_v36 = vpop.f32.mrb[142].mxu0 }
0x24ff   :  { %v5363_v20 = vadd.f32 %v5347_v63, %v11181_v49  ;;  %v5385_v28 = vmul.f32 0.03125, %v5369_v5  ;;  %v5350_v2 = vadd.f32 %v11222_v59, %v5349_v36  ;;  %v8760_v41 = vpop.f32.mrb[143].mxu0  ;;  %v5092_v49 = vmul.f32 %v5086_v37, %v5086_v37 }
0x2500   :  { %v11258_v36 = vrot.slane %v11118_v60, %v10195_v24 }
0x2501   :  { %v11235_v18 = vsub.f32 %v5361_v52, %v5385_v28  ;;  %v5364_v26 = vadd.f32 %v5350_v2, %v11184_v14  ;;  %v5373_v10 = vsel %vm242_vm2, %v5363_v20, 0.0  ;;  %v5108_v4 = vsel %vm242_vm2, %v5092_v49, 0.0 }
0x2502   :  { %v5372_v40 = vpop.xlane.xlu0 %5371  ;;  %5374 = vadd.xlane.f32.xlu1 %v5373_v10 }
0x2503   :  { %v5386_v47 = vmul.f32 0.03125, %v5372_v40  ;;  %v5376_v55 = vsel %vm242_vm2, %v5364_v26, 0.0  ;;  %v5397_v14 = vmul.f32 %v11235_v18, %v11235_v18 }
0x2504   :  { %5377 = vadd.xlane.f32.xlu0 %v5376_v55 }
0x2505   :  { %v5392_v25 = vsub.f32 %v5362_v12, %v5386_v47  ;;  %v5403_v3 = vsel %vm242_vm2, %v5397_v14, 0.0 }
0x2506   :  { %5106 = vadd.xlane.f32.xlu1 %v5105_v31 }
0x2507   :  { %v5398_v22 = vmul.f32 %v5392_v25, %v5392_v25 }
0x2508   :  { %5109 = vadd.xlane.f32.xlu0 %v5108_v4 }
0x2509   :  { %v5406_v8 = vsel %vm242_vm2, %v5398_v22, 0.0 }
0x250a   :  { %5404 = vadd.xlane.f32.xlu1 %v5403_v3 }
0x250c   :  { %5407 = vadd.xlane.f32.xlu0 %v5406_v8 }
0x258f   :  { %v5375_v51 = vpop.xlane.xlu1 %5374 }
0x2590   :  { %v5387_v9 = vmul.f32 0.03125, %v5375_v51 }
0x2591   :  { %v5378_v16 = vpop.xlane.xlu0 %5377 }
0x2592   :  { %v5393_v32 = vsub.f32 %v5363_v20, %v5387_v9  ;;  %v5388_v17 = vmul.f32 0.03125, %v5378_v16 }
0x2593   :  { %v5107_v35 = vpop.xlane.xlu1 %5106 }
0x2594   :  { %v5394_v61 = vsub.f32 %v5364_v26, %v5388_v17  ;;  %v5115_v29 = vmul.f32 0.03125, %v5107_v35  ;;  %v5399_v1 = vmul.f32 %v5393_v32, %v5393_v32 }
0x2595   :  { %v5110_v42 = vpop.xlane.xlu0 %5109 }
0x2596   :  { %v5121_v19 = vadd.f32 1e-05, %v5115_v29  ;;  %v5116_v54 = vmul.f32 0.03125, %v5110_v42  ;;  %v5409_v7 = vsel %vm242_vm2, %v5399_v1, 0.0  ;;  %v5400_v15 = vmul.f32 %v5394_v61, %v5394_v61  ;;  %v11305_v42 = vld [vmem:[%s10659_s20 + $0x1] ss:$0 sm:$0xff] }
0x2597   :  { %5410 = vadd.xlane.f32.xlu1 %v5409_v7  ;;  %v5405_v56 = vpop.xlane.xlu1 %5404 }
0x2598   :  { %9509 = vrsqrt.f32 %v5121_v19  ;;  %v5122_v46 = vadd.f32 1e-05, %v5116_v54  ;;  %v5421_v52 = vmul.f32 0.03125, %v5405_v56  ;;  %v5412_v30 = vsel %vm242_vm2, %v5400_v15, 0.0 }
0x2599   :  { %5413 = vadd.xlane.f32.xlu0 %v5412_v30  ;;  %v5408_v45 = vpop.xlane.xlu0 %5407 }
0x259a   :  { %9511 = vrsqrt.f32 %v5122_v46  ;;  %v5427_v12 = vadd.f32 1e-05, %v5421_v52  ;;  %v5422_v11 = vmul.f32 0.03125, %v5408_v45 }
0x259c   :  { %9513 = vrsqrt.f32 %v5427_v12  ;;  %v5428_v57 = vadd.f32 1e-05, %v5422_v11 }
0x259e   :  { %9515 = vrsqrt.f32 %v5428_v57 }
0x25a2   :  { %v9510_v58 = vpop.eup %9509 }
0x25a3   :  { %v5133_v48 = vmul.f32 %v9510_v58, %v11230_v43 }
0x25a4   :  { %v9512_v27 = vpop.eup %9511 }
0x25a5   :  { %v5134_v53 = vmul.f32 %v9512_v27, %v5086_v37  ;;  %v5143_v50 = vmul.f32 %v11122_v0, %v5133_v48 }
0x25a6   :  { %v9514_v63 = vpop.eup %9513 }
0x25a7   :  { %v5144_v13 = vmul.f32 %v11122_v0, %v5134_v53  ;;  %v5439_v20 = vmul.f32 %v9514_v63, %v11235_v18  ;;  %v11262_v2 = vadd.f32 %v11127_v23, %v5143_v50  ;;  %v11272_v0 = vrot.slane %v11118_v60, %v10198_v6 }
0x25a8   :  { %v9516_v5 = vpop.eup %9515 }
0x25a9   :  { %v5440_v28 = vmul.f32 %v9516_v5, %v5392_v25  ;;  %v11265_v43 = vadd.f32 %v11127_v23, %v5144_v13  ;;  %v5449_v26 = vmul.f32 %v11258_v36, %v5439_v20 }
0x25ab   :  { %v5450_v37 = vmul.f32 %v11258_v36, %v5440_v28  ;;  %v5161_v41 = vpack.c.bf16 %v11265_v43, %v11262_v2  ;;  %v11282_v23 = vadd.f32 %v11272_v0, %v5449_v26 }
0x25ad   :  { %8742 = vmatmul.mubr.msk.bf16.gmra.mrb[128].mxu1 %vm242_vm2, %v5161_v41  ;;  %v11279_v18 = vadd.f32 %v11272_v0, %v5450_v37 }
0x25ae   :  { %8769 = vmatprep.mubr.msk.bf16.mxu1 %vm9654_vm3, %v9653_v21 }
0x25af   :  { %v5479_v10 = vpack.c.bf16 %v11279_v18, %v11282_v23 }
0x25b5   :  { %8770 = vmatmul.mubr.msk.bf16.vlgmr.msra.gmra.mrb[132].mxu1 %vm242_vm2, %v5479_v10 }
0x25b6   :  { %8773 = vmatprep.mubr.msk.bf16.mxu1 %vm9654_vm3, %v9653_v21 }
0x2624   :  { %v5411_v60 = vpop.xlane.xlu1 %5410 }
0x2625   :  { %v5423_v62 = vmul.f32 0.03125, %v5411_v60 }
0x2626   :  { %v5414_v40 = vpop.xlane.xlu0 %5413 }
0x2627   :  { %v5429_v47 = vadd.f32 1e-05, %v5423_v62  ;;  %v5424_v55 = vmul.f32 0.03125, %v5414_v40 }
0x2629   :  { %9517 = vrsqrt.f32 %v5429_v47  ;;  %v5430_v49 = vadd.f32 1e-05, %v5424_v55 }
0x262b   :  { %9519 = vrsqrt.f32 %v5430_v49 }
0x2633   :  { %v9518_v25 = vpop.eup %9517 }
0x2634   :  { %v5441_v31 = vmul.f32 %v9518_v25, %v5393_v32 }
0x2635   :  { %v9520_v14 = vpop.eup %9519 }
0x2636   :  { %v5442_v4 = vmul.f32 %v9520_v14, %v5394_v61  ;;  %v5451_v22 = vmul.f32 %v11258_v36, %v5441_v31 }
0x2638   :  { %v5452_v3 = vmul.f32 %v11258_v36, %v5442_v4  ;;  %v11292_v8 = vadd.f32 %v11272_v0, %v5451_v22 }
0x263a   :  { %v11295_v39 = vadd.f32 %v11272_v0, %v5452_v3 }
0x263c   :  { %v5480_v44 = vpack.c.bf16 %v11295_v39, %v11292_v8 }
0x263e   :  { %8774 = vmatmul.mubr.msk.bf16.gmra.mrb[136].mxu1 %vm242_vm2, %v5480_v44  ;;  %v11351_v44 = vld [vmem:[%s10715_s3] ss:$0 sm:$0xff] }
0x263f   :  { %8777 = vmatprep.mubr.msk.bf16.mxu1 %vm9654_vm3, %v9653_v21 }
0x2680   :  { %v5240_v51 = vpop.f32.mrb[128].mxu1 }
0x2681   :  { %v5241_v9 = vadd.f32 %v11198_v38, %v5240_v51  ;;  %v8743_v16 = vpop.f32.mrb[129].mxu1 }
0x2682   :  { %v5243_v32 = vpop.f32.mrb[130].mxu1 }
0x2683   :  { %v5244_v17 = vadd.f32 %v11198_v38, %v5243_v32  ;;  %v8744_v35 = vpop.f32.mrb[131].mxu1  ;;  %v5251_v61 = vmax.f32 %v5241_v9, 0.0 }
0x2685   :  { %v5252_v29 = vmax.f32 %v5244_v17, 0.0 }
0x2687   :  { %v5263_v1 = vpack.c.bf16 %v5252_v29, %v5251_v61 }
0x2688   :  { %v5543_v19 = vpop.f32.mrb[132].mxu1 }
0x2689   :  { %8762 = vmatmul.mubr.msk.bf16.gmra.mrb[144].mxu0 %vm1658_vm7, %v5263_v1  ;;  %v8771_v54 = vpop.f32.mrb[133].mxu1  ;;  %v5544_v15 = vadd.f32 %v11305_v42, %v5543_v19 }
0x268a   :  { %v5546_v7 = vpop.f32.mrb[134].mxu1 }
0x268b   :  { %v5547_v56 = vadd.f32 %v11305_v42, %v5546_v7  ;;  %v8772_v46 = vpop.f32.mrb[135].mxu1 }
0x268d   :  { %v11310_v52 = vpack.c.bf16 %v5547_v56, %v5544_v15 }
0x268f   :  { %5571 = vrot.lane.b32.xlu1 %v11310_v52, %s9656_s23  ;;  %8785 = vmatprep.mubr.msk.bf16.mxu0 %vm303_vm4, %v11310_v52 }
0x2693   :  { %5742 = vrot.lane.b32.xlu1 %v11310_v52, %s9658_s25 }
0x2701   :  { %v5572_v38 = vpop.permute.xlu1 %5571 }
0x2702   :  { %9002 = vmatprep.subr.msk.bf16.mxu0 %vm303_vm4, %v5572_v38  ;;  %v5582_v30 = vsel %vm303_vm4, %v5572_v38, 0 }
0x2703   :  { %8782 = vmatpush3.bf16.xpose.msra.mxu0 %v5582_v30 }
0x2705   :  { %v5743_v62 = vpop.permute.xlu1 %5742 }
0x2711   :  { %v5551_v45 = vpop.f32.mrb[136].mxu1 }
0x2712   :  { %v8775_v12 = vpop.f32.mrb[137].mxu1  ;;  %v5552_v57 = vadd.f32 %v11305_v42, %v5551_v45 }
0x2713   :  { %v5554_v11 = vpop.f32.mrb[138].mxu1 }
0x2714   :  { %v5555_v58 = vadd.f32 %v11305_v42, %v5554_v11  ;;  %v8776_v48 = vpop.f32.mrb[139].mxu1 }
0x2716   :  { %v11322_v27 = vpack.c.bf16 %v5555_v58, %v5552_v57 }
0x2718   :  { %5744 = vrot.lane.b32.xlu1 %v11322_v27, %s9658_s25  ;;  %5573 = vrot.lane.b32.xlu0 %v11322_v27, %s9656_s23 }
0x271c   :  { %5740 = vrot.lane.b32.xlu1 %v11322_v27, %s9655_s22  ;;  %5738 = vrot.lane.b32.xlu0 %v11310_v52, %s9655_s22 }
0x275c   :  { %v5354_v53 = vpop.f32.mrb[144].mxu0 }
0x275d   :  { %v5355_v50 = vadd.f32 %v11222_v59, %v5354_v53  ;;  %v8763_v63 = vpop.f32.mrb[145].mxu0 }
0x275e   :  { %v5357_v13 = vpop.f32.mrb[146].mxu0 }
0x275f   :  { %v5365_v5 = vadd.f32 %v5355_v50, %v11262_v2  ;;  %v5358_v20 = vadd.f32 %v11222_v59, %v5357_v13  ;;  %v8764_v28 = vpop.f32.mrb[147].mxu0  ;;  %v5753_v59 = vsel %vm303_vm4, %v5743_v62, 0 }
0x2761   :  { %v5366_v37 = vadd.f32 %v5358_v20, %v11265_v43  ;;  %v5379_v41 = vsel %vm242_vm2, %v5365_v5, 0.0 }
0x2762   :  { %5380 = vadd.xlane.f32.xlu0 %v5379_v41 }
0x2763   :  { %v5382_v26 = vsel %vm242_vm2, %v5366_v37, 0.0 }
0x2764   :  { %5383 = vadd.xlane.f32.xlu1 %v5382_v26 }
0x278a   :  { %v5574_v10 = vpop.permute.xlu0 %5573  ;;  %v5745_v43 = vpop.permute.xlu1 %5744 }
0x278b   :  { %9003 = vmatprep.subr.msk.bf16.mxu0 %vm303_vm4, %v5574_v10  ;;  %v5585_v60 = vsel %vm303_vm4, %v5574_v10, 0  ;;  %v5756_v40 = vsel %vm303_vm4, %v5745_v43, 0 }
0x278c   :  { %8784 = vmatpush3.bf16.xpose.msra.mxu0 %v5585_v60 }
0x278d   :  { %9005 = vmatprep.subr.msk.bf16.mxu0 %vm303_vm4, %v5743_v62 }
0x278e   :  { %v5739_v2 = vpop.permute.xlu0 %5738  ;;  %v5741_v47 = vpop.permute.xlu1 %5740 }
0x2793   :  { %8786 = vmatmul.mubr.msk.bf16.vlgmr.msra.gmra.mrb[148].mxu0 %vm303_vm4, %v11322_v27 }
0x2794   :  { %8798 = vmatpush3.bf16.xpose.msra.mxu0 %v5753_v59  ;;  %8801 = vmatprep.mubr.msk.bf16.mxu0 %vm303_vm4, %v5739_v2 }
0x2795   :  { %9006 = vmatprep.subr.msk.bf16.mxu0 %vm303_vm4, %v5745_v43 }
0x279c   :  { %8800 = vmatpush3.bf16.xpose.msra.mxu0 %v5756_v40 }
0x27a3   :  { %8802 = vmatmul.mubr.msk.bf16.vlgmr.msra.gmra.mrb[152].mxu0 %vm303_vm4, %v5741_v47 }
0x27ef   :  { %v5381_v55 = vpop.xlane.xlu0 %5380 }
0x27f0   :  { %v5389_v49 = vmul.f32 0.03125, %v5381_v55 }
0x27f1   :  { %v5384_v54 = vpop.xlane.xlu1 %5383 }
0x27f2   :  { %v11348_v31 = vsub.f32 %v5365_v5, %v5389_v49  ;;  %v5390_v56 = vmul.f32 0.03125, %v5384_v54 }
0x27f4   :  { %v5401_v35 = vmul.f32 %v11348_v31, %v11348_v31  ;;  %v5396_v57 = vsub.f32 %v5366_v37, %v5390_v56 }
0x27f6   :  { %v5415_v1 = vsel %vm242_vm2, %v5401_v35, 0.0  ;;  %v5402_v13 = vmul.f32 %v5396_v57, %v5396_v57 }
0x27f8   :  { %v5418_v5 = vsel %vm242_vm2, %v5402_v13, 0.0 }
0x2866   :  { %v8787_v25 = vpop.f32.mrb[148].mxu0 }
0x2867   :  { %v5637_v14 = vmul.f32 0.35355338, %v8787_v25  ;;  %v5621_v4 = vpop.f32.mrb[149].mxu0 }
0x2868   :  { %v5635_v22 = vmul.f32 0.35355338, %v5621_v4  ;;  %v8788_v3 = vpop.f32.mrb[150].mxu0 }
0x2869   :  { %v5640_v51 = vadd.f32 %v11351_v44, %v5637_v14  ;;  %v5624_v9 = vpop.f32.mrb[151].mxu0 }
0x286a   :  { %v5638_v16 = vadd.f32 %v11351_v44, %v5635_v22  ;;  %v5636_v32 = vmul.f32 0.35355338, %v5624_v9 }
0x286b   :  { %v5647_v17 = vsel %vm835_vm6, %v5640_v51, -inf }
0x286c   :  { %v5639_v61 = vadd.f32 %v11351_v44, %v5636_v32  ;;  %5648 = vmax.xlane.f32.xlu1 %v5647_v17  ;;  %v5641_v29 = vsel %vm835_vm6, %v5638_v16, -inf }
0x286d   :  { %5642 = vmax.xlane.f32.xlu0 %v5641_v29 }
0x286e   :  { %v5644_v19 = vsel %vm835_vm6, %v5639_v61, -inf }
0x2870   :  { %5416 = vadd.xlane.f32.xlu1 %v5415_v1 }
0x2871   :  { %5645 = vmax.xlane.f32.xlu0 %v5644_v19 }
0x2876   :  { %v8803_v7 = vpop.f32.mrb[152].mxu0 }
0x2877   :  { %v5792_v15 = vpop.f32.mrb[153].mxu0  ;;  %v5808_v46 = vmul.f32 0.35355338, %v8803_v7 }
0x2878   :  { %v5806_v38 = vmul.f32 0.35355338, %v5792_v15  ;;  %v8804_v30 = vpop.f32.mrb[154].mxu0 }
0x2879   :  { %v5795_v45 = vpop.f32.mrb[155].mxu0  ;;  %v11366_v58 = vadd.f32 %v11351_v44, %v5808_v46 }
0x287a   :  { %v11363_v12 = vadd.f32 %v11351_v44, %v5806_v38  ;;  %v5807_v11 = vmul.f32 0.35355338, %v5795_v45 }
0x287b   :  { %v5818_v63 = vsel %vm835_vm6, %v11366_v58, -inf }
0x287c   :  { %v5810_v48 = vadd.f32 %v11351_v44, %v5807_v11  ;;  %v5812_v53 = vsel %vm835_vm6, %v11363_v12, -inf }
0x287d   :  { %5813 = vmax.xlane.f32.xlu0 %v5812_v53 }
0x287e   :  { %v5815_v50 = vsel %vm835_vm6, %v5810_v48, -inf }
0x287f   :  { %5816 = vmax.xlane.f32.xlu1 %v5815_v50 }
0x2881   :  { %5819 = vmax.xlane.f32.xlu0 %v5818_v63 }
0x2885   :  { %5419 = vadd.xlane.f32.xlu0 %v5418_v5 }
0x2890   :  { %5676 = vrot.lane.b32.xlu1 %v11310_v52, %s9662_s29 }
0x28f9   :  { %v5649_v20 = vpop.xlane.xlu1 %5648 }
0x28fa   :  { %v5652_v28 = vsub.f32 %v5640_v51, %v5649_v20  ;;  %v5643_v37 = vpop.xlane.xlu0 %5642 }
0x28fb   :  { %v5650_v41 = vsub.f32 %v5638_v16, %v5643_v37 }
0x28fc   :  { %v5657_v26 = vmul.f32 1.442695, %v5652_v28 }
0x28fd   :  { %v5653_v10 = vmul.f32 1.442695, %v5650_v41  ;;  %v5417_v59 = vpop.xlane.xlu1 %5416 }
0x28fe   :  { %9521 = vpow2.f32 %v5657_v26  ;;  %v5646_v60 = vpop.xlane.xlu0 %5645  ;;  %v5425_v40 = vmul.f32 0.03125, %v5417_v59 }
0x28ff   :  { %v5651_v62 = vsub.f32 %v5639_v61, %v5646_v60  ;;  %9523 = vpow2.f32 %v5653_v10 }
0x2900   :  { %v5431_v4 = vadd.f32 1e-05, %v5425_v40 }
0x2901   :  { %v5655_v2 = vmul.f32 1.442695, %v5651_v62 }
0x2903   :  { %9525 = vpow2.f32 %v5655_v2 }
0x2904   :  { %9527 = vrsqrt.f32 %v5431_v4 }
0x2908   :  { %v11377_v43 = vpop.eup %9521 }
0x2909   :  { %v5665_v47 = vsel %vm835_vm6, %v11377_v43, 0.0  ;;  %v11381_v55 = vpop.eup %9523 }
0x290a   :  { %5666 = vadd.xlane.f32.xlu1 %v5665_v47  ;;  %v5814_v49 = vpop.xlane.xlu0 %5813  ;;  %v5659_v22 = vsel %vm835_vm6, %v11381_v55, 0.0 }
0x290c   :  { %v5817_v25 = vpop.xlane.xlu1 %5816 }
0x290d   :  { %v11383_v14 = vpop.eup %9525  ;;  %v5822_v56 = vsub.f32 %v5810_v48, %v5817_v25 }
0x290e   :  { %5660 = vadd.xlane.f32.xlu1 %v5659_v22  ;;  %v5820_v3 = vpop.xlane.xlu0 %5819  ;;  %v5662_v51 = vsel %vm835_vm6, %v11383_v14, 0.0  ;;  %v9528_v35 = vpop.eup %9527 }
0x290f   :  { %5663 = vadd.xlane.f32.xlu0 %v5662_v51  ;;  %v5443_v61 = vmul.f32 %v9528_v35, %v11348_v31  ;;  %v5823_v46 = vsub.f32 %v11366_v58, %v5820_v3  ;;  %v5826_v38 = vmul.f32 1.442695, %v5822_v56 }
0x2910   :  { %v5677_v9 = vpop.permute.xlu1 %5676 }
0x2911   :  { %8789 = vmatprep.subr.bf16.mxu1 %v5677_v9  ;;  %v5453_v19 = vmul.f32 %v11258_v36, %v5443_v61  ;;  %v5828_v30 = vmul.f32 1.442695, %v5823_v46 }
0x2912   :  { %8790 = vmatpush3.bf16.msra.mxu1 %v5677_v9  ;;  %v5420_v16 = vpop.xlane.xlu0 %5419 }
0x2913   :  { %v5426_v32 = vmul.f32 0.03125, %v5420_v16  ;;  %v11397_v7 = vadd.f32 %v11272_v0, %v5453_v19 }
0x2915   :  { %v5432_v17 = vadd.f32 1e-05, %v5426_v32 }
0x2917   :  { %9529 = vrsqrt.f32 %v5432_v17 }
0x2918   :  { %9531 = vpow2.f32 %v5826_v38 }
0x2919   :  { %9533 = vpow2.f32 %v5828_v30 }
0x291f   :  { %5847 = vrot.lane.b32.xlu1 %v11310_v52, %s9665_s5 }
0x2921   :  { %v9530_v29 = vpop.eup %9529 }
0x2922   :  { %v5444_v1 = vmul.f32 %v9530_v29, %v5396_v57  ;;  %v9532_v11 = vpop.eup %9531 }
0x2923   :  { %v9534_v57 = vpop.eup %9533 }
0x2924   :  { %v5454_v54 = vmul.f32 %v11258_v36, %v5444_v1  ;;  %v5821_v36 = vsub.f32 %v11363_v12, %v5814_v49  ;;  %v5836_v53 = vsel %vm835_vm6, %v9534_v57, 0.0 }
0x2925   :  { %5678 = vrot.lane.b32.xlu0 %v11322_v27, %s9662_s29 }
0x2926   :  { %v11400_v15 = vadd.f32 %v11272_v0, %v5454_v54  ;;  %v5824_v45 = vmul.f32 1.442695, %v5821_v36  ;;  %v5833_v0 = vsel %vm835_vm6, %v9532_v11, 0.0 }
0x2928   :  { %v5481_v31 = vpack.c.bf16 %v11400_v15, %v11397_v7  ;;  %9535 = vpow2.f32 %v5824_v45 }
0x292a   :  { %8778 = vmatmul.mubr.msk.bf16.gmra.mrb[140].mxu1 %vm242_vm2, %v5481_v31 }
0x2932   :  { %v9536_v50 = vpop.eup %9535 }
0x2933   :  { %v5830_v48 = vsel %vm835_vm6, %v9536_v50, 0.0 }
0x2943   :  { %5834 = vadd.xlane.f32.xlu1 %v5833_v0 }
0x2944   :  { %5837 = vadd.xlane.f32.xlu0 %v5836_v53 }
0x2948   :  { %5831 = vadd.xlane.f32.xlu0 %v5830_v48 }
0x2954   :  { %5849 = vrot.lane.b32.xlu1 %v11322_v27, %s9665_s5 }
0x2958   :  { %5915 = vrot.lane.b32.xlu1 %v11322_v27, %s9657_s24 }
0x295c   :  { %5911 = vrot.lane.b32.xlu1 %v11322_v27, %s9660_s27 }
0x295e   :  { %5913 = vrot.lane.b32.xlu0 %v11310_v52, %s9657_s24 }
0x2962   :  { %5909 = vrot.lane.b32.xlu0 %v11310_v52, %s9660_s27 }
0x2997   :  { %v5667_v12 = vpop.xlane.xlu1 %5666 }
0x2998   :  { %9537 = vrcp.f32 %v5667_v12 }
0x299b   :  { %v5661_v58 = vpop.xlane.xlu1 %5660 }
0x299c   :  { %9539 = vrcp.f32 %v5661_v58  ;;  %v5664_v63 = vpop.xlane.xlu0 %5663 }
0x299d   :  { %9541 = vrcp.f32 %v5664_v63 }
0x299f   :  { %v5848_v20 = vpop.permute.xlu1 %5847 }
0x29a0   :  { %v5679_v13 = vpop.permute.xlu0 %5678 }
0x29a1   :  { %9004 = vmatprep.subr.msk.bf16.mxu1 %vm3622_vm10, %v5679_v13  ;;  %v5688_v5 = vsel %vm3622_vm10, %v5679_v13, 0 }
0x29a2   :  { %8792 = vmatpush3.bf16.msra.mxu1 %v5688_v5  ;;  %v9538_v28 = vpop.eup %9537 }
0x29a3   :  { %8805 = vmatprep.subr.bf16.mxu1 %v5848_v20  ;;  %v5673_v26 = vmul.f32 %v9538_v28, %v11377_v43 }
0x29a5   :  { %v5675_v2 = vpack.c.bf16 %v5673_v26, %v5673_v26 }
0x29a6   :  { %v9540_v37 = vpop.eup %9539 }
0x29a7   :  { %v9542_v41 = vpop.eup %9541  ;;  %v5671_v10 = vmul.f32 %v9540_v37, %v11381_v55 }
0x29a8   :  { %v5672_v60 = vmul.f32 %v9542_v41, %v11383_v14 }
0x29aa   :  { %v5674_v62 = vpack.c.bf16 %v5672_v60, %v5671_v10 }
0x29ac   :  { %8793 = vmatprep.mubr.msk.bf16.mxu1 %vm835_vm6, %v5674_v62 }
0x29ad   :  { %8794 = vmatmul.mubr.msk.bf16.vlgmr.msra.gmra.mrb[144].mxu1 %vm835_vm6, %v5675_v2 }
0x29ae   :  { %8806 = vmatpush3.bf16.msra.mxu1 %v5848_v20 }
0x29d0   :  { %v5835_v59 = vpop.xlane.xlu1 %5834 }
0x29d1   :  { %v5838_v40 = vpop.xlane.xlu0 %5837 }
0x29d2   :  { %9543 = vrcp.f32 %v5838_v40 }
0x29d3   :  { %9545 = vrcp.f32 %v5835_v59 }
0x29d4   :  { %v5850_v47 = vpop.permute.xlu1 %5849 }
0x29d5   :  { %9007 = vmatprep.subr.msk.bf16.mxu1 %vm3622_vm10, %v5850_v47  ;;  %v5832_v49 = vpop.xlane.xlu0 %5831  ;;  %v5859_v43 = vsel %vm3622_vm10, %v5850_v47, 0 }
0x29d6   :  { %9547 = vrcp.f32 %v5832_v49  ;;  %8808 = vmatpush3.bf16.msra.mxu1 %v5859_v43 }
0x29d8   :  { %v5916_v35 = vpop.permute.xlu1 %5915 }
0x29d9   :  { %v5914_v55 = vpop.permute.xlu0 %5913  ;;  %v5927_v61 = vsel %vm303_vm4, %v5916_v35, 0 }
0x29da   :  { %9008 = vmatprep.subr.msk.bf16.mxu1 %vm303_vm4, %v5914_v55  ;;  %v5924_v17 = vsel %vm303_vm4, %v5914_v55, 0 }
0x29dc   :  { %v9544_v25 = vpop.eup %9543  ;;  %v5912_v29 = vpop.permute.xlu1 %5911 }
0x29dd   :  { %v9546_v14 = vpop.eup %9545  ;;  %v5844_v22 = vmul.f32 %v9544_v25, %v9534_v57  ;;  %v5910_v32 = vpop.permute.xlu0 %5909 }
0x29de   :  { %v5843_v51 = vmul.f32 %v9546_v14, %v9532_v11 }
0x29df   :  { %v5846_v16 = vpack.c.bf16 %v5844_v22, %v5844_v22 }
0x29e0   :  { %v9548_v4 = vpop.eup %9547 }
0x29e1   :  { %v5842_v3 = vmul.f32 %v9548_v4, %v9536_v50 }
0x29e3   :  { %v5845_v9 = vpack.c.bf16 %v5843_v51, %v5842_v3 }
0x29e5   :  { %8809 = vmatprep.mubr.msk.bf16.mxu1 %vm835_vm6, %v5845_v9 }
0x29e6   :  { %8810 = vmatmul.mubr.msk.bf16.vlgmr.msra.gmra.mrb[148].mxu1 %vm835_vm6, %v5846_v16 }
0x29e7   :  { %8814 = vmatpush3.bf16.xpose.msra.mxu1 %v5924_v17  ;;  %8817 = vmatprep.mubr.msk.bf16.mxu1 %vm303_vm4, %v5910_v32 }
0x29e8   :  { %9009 = vmatprep.subr.msk.bf16.mxu1 %vm303_vm4, %v5916_v35 }
0x29ef   :  { %8816 = vmatpush3.bf16.xpose.msra.mxu1 %v5927_v61 }
0x29f6   :  { %8818 = vmatmul.mubr.msk.bf16.vlgmr.msra.gmra.mrb[152].mxu1 %vm303_vm4, %v5912_v29 }
0x29fd   :  { %v5559_v1 = vpop.f32.mrb[140].mxu1 }
0x29fe   :  { %v8779_v19 = vpop.f32.mrb[141].mxu1  ;;  %v11438_v31 = vadd.f32 %v11305_v42, %v5559_v1 }
0x29ff   :  { %v5562_v54 = vpop.f32.mrb[142].mxu1 }
0x2a00   :  { %v11441_v56 = vadd.f32 %v11305_v42, %v5562_v54  ;;  %v8780_v46 = vpop.f32.mrb[143].mxu1 }
0x2a02   :  { %v5568_v38 = vpack.c.bf16 %v11441_v56, %v11438_v31 }
0x2a80   :  { %v11445_v36 = vpop.f32.mrb[144].mxu1 }
0x2a81   :  { %v11447_v30 = vpop.f32.mrb[145].mxu1 }
0x2a82   :  { %v8796_v45 = vpop.f32.mrb[146].mxu1 }
0x2a83   :  { %v11449_v11 = vpop.f32.mrb[147].mxu1 }
0x2ab9   :  { %v11451_v57 = vpop.f32.mrb[148].mxu1 }
0x2aba   :  { %v11453_v0 = vpop.f32.mrb[149].mxu1 }
0x2abb   :  { %v8812_v53 = vpop.f32.mrb[150].mxu1 }
0x2abc   :  { %v11455_v50 = vpop.f32.mrb[151].mxu1 }
0x2abd   :  { %v9178_v42 = vpack.i.bf16 %v11455_v50, %v11453_v0 }
0x2ac9   :  { %v8819_v48 = vpop.f32.mrb[152].mxu1 }
0x2aca   :  { %v5963_v12 = vpop.f32.mrb[153].mxu1  ;;  %v5979_v58 = vmul.f32 0.35355338, %v8819_v48 }
0x2acb   :  { %v5977_v63 = vmul.f32 0.35355338, %v5963_v12  ;;  %v8820_v13 = vpop.f32.mrb[154].mxu1 }
0x2acc   :  { %v5966_v5 = vpop.f32.mrb[155].mxu1  ;;  %v5982_v37 = vadd.f32 %v11351_v44, %v5979_v58 }
0x2acd   :  { %v5980_v20 = vadd.f32 %v11351_v44, %v5977_v63  ;;  %v5978_v28 = vmul.f32 0.35355338, %v5966_v5 }
0x2ace   :  { %v5989_v60 = vsel %vm835_vm6, %v5982_v37, -inf }
0x2acf   :  { %v5981_v41 = vadd.f32 %v11351_v44, %v5978_v28  ;;  %v5983_v26 = vsel %vm835_vm6, %v5980_v20, -inf }
0x2ad0   :  { %5984 = vmax.xlane.f32.xlu0 %v5983_v26 }
0x2ad1   :  { %v5986_v10 = vsel %vm835_vm6, %v5981_v41, -inf }
0x2ad2   :  { %5987 = vmax.xlane.f32.xlu1 %v5986_v10 }
0x2ad4   :  { %5990 = vmax.xlane.f32.xlu0 %v5989_v60 }
0x2ae3   :  { %6018 = vrot.lane.b32.xlu1 %v11310_v52, %s9664_s4 }
0x2b5d   :  { %v5985_v62 = vpop.xlane.xlu0 %5984 }
0x2b5e   :  { %v5992_v59 = vsub.f32 %v5980_v20, %v5985_v62 }
0x2b5f   :  { %v5988_v2 = vpop.xlane.xlu1 %5987 }
0x2b60   :  { %v5993_v40 = vsub.f32 %v5981_v41, %v5988_v2  ;;  %v5995_v25 = vmul.f32 1.442695, %v5992_v59 }
0x2b61   :  { %v5991_v47 = vpop.xlane.xlu0 %5990 }
0x2b62   :  { %v5997_v49 = vmul.f32 1.442695, %v5993_v40  ;;  %v5994_v43 = vsub.f32 %v5982_v37, %v5991_v47 }
0x2b63   :  { %v6019_v55 = vpop.permute.xlu1 %6018 }
0x2b64   :  { %9549 = vpow2.f32 %v5997_v49  ;;  %v5999_v14 = vmul.f32 1.442695, %v5994_v43  ;;  %8821 = vmatprep.subr.bf16.mxu0 %v6019_v55 }
0x2b65   :  { %8822 = vmatpush3.bf16.msra.mxu0 %v6019_v55 }
0x2b66   :  { %9551 = vpow2.f32 %v5999_v14 }
0x2b67   :  { %9553 = vpow2.f32 %v5995_v25 }
0x2b6e   :  { %v9550_v4 = vpop.eup %9549 }
0x2b6f   :  { %v6004_v22 = vsel %vm835_vm6, %v9550_v4, 0.0 }
0x2b70   :  { %v9552_v3 = vpop.eup %9551  ;;  %6005 = vadd.xlane.f32.xlu1 %v6004_v22 }
0x2b71   :  { %v6007_v51 = vsel %vm835_vm6, %v9552_v3, 0.0  ;;  %v9554_v9 = vpop.eup %9553 }
0x2b72   :  { %6008 = vadd.xlane.f32.xlu0 %v6007_v51  ;;  %v6001_v16 = vsel %vm835_vm6, %v9554_v9, 0.0 }
0x2b76   :  { %6002 = vadd.xlane.f32.xlu0 %v6001_v16 }
0x2b81   :  { %6084 = vrot.lane.b32.xlu1 %v11310_v52, %s9659_s26 }
0x2b85   :  { %6086 = vrot.lane.b32.xlu1 %v11322_v27, %s9659_s26 }
0x2b89   :  { %6082 = vrot.lane.b32.xlu1 %v11322_v27, %s9661_s28 }
0x2b8c   :  { %6020 = vrot.lane.b32.xlu0 %v11322_v27, %s9664_s4 }
0x2b90   :  { %6080 = vrot.lane.b32.xlu0 %v11310_v52, %s9661_s28 }
0x2bfd   :  { %v6006_v32 = vpop.xlane.xlu1 %6005 }
0x2bff   :  { %v6009_v17 = vpop.xlane.xlu0 %6008 }
0x2c00   :  { %9555 = vrcp.f32 %v6009_v17 }
0x2c01   :  { %9557 = vrcp.f32 %v6006_v32  ;;  %v6085_v1 = vpop.permute.xlu1 %6084 }
0x2c02   :  { %v6095_v63 = vsel %vm303_vm4, %v6085_v1, 0 }
0x2c03   :  { %v6003_v35 = vpop.xlane.xlu0 %6002 }
0x2c04   :  { %9559 = vrcp.f32 %v6003_v35 }
0x2c05   :  { %v6087_v5 = vpop.permute.xlu1 %6086 }
0x2c06   :  { %v6098_v20 = vsel %vm303_vm4, %v6087_v5, 0 }
0x2c07   :  { %v6021_v61 = vpop.permute.xlu0 %6020 }
0x2c08   :  { %v6030_v29 = vsel %vm3622_vm10, %v6021_v61, 0  ;;  %9010 = vmatprep.subr.msk.bf16.mxu0 %vm3622_vm10, %v6021_v61 }
0x2c09   :  { %8824 = vmatpush3.bf16.msra.mxu0 %v6030_v29  ;;  %v6083_v28 = vpop.permute.xlu1 %6082 }
0x2c0a   :  { %9011 = vmatprep.subr.msk.bf16.mxu0 %vm303_vm4, %v6085_v1  ;;  %v9556_v19 = vpop.eup %9555 }
0x2c0b   :  { %v9558_v54 = vpop.eup %9557  ;;  %v6015_v45 = vmul.f32 %v9556_v19, %v9552_v3  ;;  %v6081_v13 = vpop.permute.xlu0 %6080 }
0x2c0c   :  { %v6014_v48 = vmul.f32 %v9558_v54, %v9550_v4 }
0x2c0d   :  { %v6017_v58 = vpack.c.bf16 %v6015_v45, %v6015_v45 }
0x2c0e   :  { %v9560_v46 = vpop.eup %9559 }
0x2c0f   :  { %v6013_v53 = vmul.f32 %v9560_v46, %v9554_v9 }
0x2c11   :  { %v6016_v12 = vpack.c.bf16 %v6014_v48, %v6013_v53 }
0x2c13   :  { %8825 = vmatprep.mubr.msk.bf16.mxu0 %vm835_vm6, %v6016_v12  ;;  %v11512_v12 = vrot.slane %v5568_v38, 4 }
0x2c14   :  { %8826 = vmatmul.mubr.msk.bf16.vlgmr.msra.gmra.mrb[156].mxu0 %vm835_vm6, %v6017_v58  ;;  %v6297_v58 = vrot.slane %v11322_v27, 4 }
0x2c15   :  { %8830 = vmatpush3.bf16.xpose.msra.mxu0 %v6095_v63  ;;  %8833 = vmatprep.mubr.msk.bf16.mxu0 %vm303_vm4, %v6081_v13 }
0x2c16   :  { %9012 = vmatprep.subr.msk.bf16.mxu0 %vm303_vm4, %v6087_v5  ;;  %v11517_v63 = vsel %vm3622_vm10, %v6297_v58, %v11512_v12 }
0x2c1d   :  { %8832 = vmatpush3.bf16.xpose.msra.mxu0 %v6098_v20 }
0x2c24   :  { %8834 = vmatmul.mubr.msk.bf16.vlgmr.msra.gmra.mrb[160].mxu0 %vm303_vm4, %v6083_v28 }
0x2ce7   :  { %v11490_v37 = vpop.f32.mrb[156].mxu0 }
0x2ce8   :  { %v11492_v41 = vpop.f32.mrb[157].mxu0 }
0x2ce9   :  { %v8828_v26 = vpop.f32.mrb[158].mxu0 }
0x2cea   :  { %v11494_v10 = vpop.f32.mrb[159].mxu0 }
0x2ceb   :  { %v9183_v60 = vpack.i.bf16 %v11494_v10, %v11492_v41 }
0x2cf7   :  { %v8835_v62 = vpop.f32.mrb[160].mxu0 }
0x2cf8   :  { %v6134_v2 = vpop.f32.mrb[161].mxu0  ;;  %v6150_v59 = vmul.f32 0.35355338, %v8835_v62 }
0x2cf9   :  { %v6148_v40 = vmul.f32 0.35355338, %v6134_v2  ;;  %v8836_v47 = vpop.f32.mrb[162].mxu0 }
0x2cfa   :  { %v6137_v49 = vpop.f32.mrb[163].mxu0  ;;  %v6153_v25 = vadd.f32 %v11351_v44, %v6150_v59 }
0x2cfb   :  { %v6151_v43 = vadd.f32 %v11351_v44, %v6148_v40  ;;  %v6149_v55 = vmul.f32 0.35355338, %v6137_v49 }
0x2cfc   :  { %v6160_v3 = vsel %vm835_vm6, %v6153_v25, -inf }
0x2cfd   :  { %v6152_v14 = vadd.f32 %v11351_v44, %v6149_v55  ;;  %v6154_v4 = vsel %vm835_vm6, %v6151_v43, -inf }
0x2cfe   :  { %6155 = vmax.xlane.f32.xlu0 %v6154_v4 }
0x2cff   :  { %v6157_v22 = vsel %vm835_vm6, %v6152_v14, -inf }
0x2d00   :  { %6158 = vmax.xlane.f32.xlu1 %v6157_v22 }
0x2d02   :  { %6161 = vmax.xlane.f32.xlu0 %v6160_v3 }
0x2d11   :  { %6189 = vrot.lane.b32.xlu1 %v11310_v52, %s9666_s6 }
0x2d8b   :  { %v6156_v51 = vpop.xlane.xlu0 %6155 }
0x2d8c   :  { %v6163_v16 = vsub.f32 %v6151_v43, %v6156_v51 }
0x2d8d   :  { %v6159_v9 = vpop.xlane.xlu1 %6158 }
0x2d8e   :  { %v6164_v32 = vsub.f32 %v6152_v14, %v6159_v9  ;;  %v6166_v1 = vmul.f32 1.442695, %v6163_v16 }
0x2d8f   :  { %v6162_v17 = vpop.xlane.xlu0 %6161 }
0x2d90   :  { %v6168_v35 = vmul.f32 1.442695, %v6164_v32  ;;  %v6165_v61 = vsub.f32 %v6153_v25, %v6162_v17 }
0x2d91   :  { %v6190_v29 = vpop.permute.xlu1 %6189 }
0x2d92   :  { %9561 = vpow2.f32 %v6168_v35  ;;  %v6170_v19 = vmul.f32 1.442695, %v6165_v61  ;;  %8837 = vmatprep.subr.bf16.mxu1 %v6190_v29 }
0x2d93   :  { %8838 = vmatpush3.bf16.msra.mxu1 %v6190_v29 }
0x2d94   :  { %9563 = vpow2.f32 %v6170_v19 }
0x2d95   :  { %9565 = vpow2.f32 %v6166_v1 }
0x2d9c   :  { %v9562_v54 = vpop.eup %9561 }
0x2d9d   :  { %v6175_v46 = vsel %vm835_vm6, %v9562_v54, 0.0 }
0x2d9e   :  { %v9564_v45 = vpop.eup %9563  ;;  %6176 = vadd.xlane.f32.xlu1 %v6175_v46 }
0x2d9f   :  { %v6178_v52 = vsel %vm835_vm6, %v9564_v45, 0.0  ;;  %v9566_v53 = vpop.eup %9565 }
0x2da0   :  { %6179 = vadd.xlane.f32.xlu0 %v6178_v52  ;;  %v6172_v48 = vsel %vm835_vm6, %v9566_v53, 0.0 }
0x2da4   :  { %6173 = vadd.xlane.f32.xlu0 %v6172_v48 }
0x2daf   :  { %6300 = vrot.lane.b32.xlu1 %v11517_v63, %s9656_s23 }
0x2db3   :  { %6302 = vrot.lane.b32.xlu1 %v11512_v12, %s9656_s23 }
0x2dba   :  { %6191 = vrot.lane.b32.xlu0 %v11322_v27, %s9666_s6 }
0x2e2b   :  { %v6177_v13 = vpop.xlane.xlu1 %6176 }
0x2e2d   :  { %v6180_v5 = vpop.xlane.xlu0 %6179 }
0x2e2e   :  { %9567 = vrcp.f32 %v6180_v5 }
0x2e2f   :  { %9569 = vrcp.f32 %v6177_v13  ;;  %v6301_v20 = vpop.permute.xlu1 %6300 }
0x2e30   :  { %v6311_v49 = vsel %vm303_vm4, %v6301_v20, 0 }
0x2e31   :  { %v6174_v31 = vpop.xlane.xlu0 %6173 }
0x2e32   :  { %9571 = vrcp.f32 %v6174_v31 }
0x2e33   :  { %v6303_v43 = vpop.permute.xlu1 %6302 }
0x2e34   :  { %v6314_v55 = vsel %vm303_vm4, %v6303_v43, 0 }
0x2e35   :  { %v6192_v56 = vpop.permute.xlu0 %6191 }
0x2e36   :  { %v6201_v38 = vsel %vm3622_vm10, %v6192_v56, 0  ;;  %9013 = vmatprep.subr.msk.bf16.mxu1 %vm3622_vm10, %v6192_v56 }
0x2e37   :  { %8840 = vmatpush3.bf16.msra.mxu1 %v6201_v38 }
0x2e38   :  { %9014 = vmatprep.subr.msk.bf16.mxu1 %vm303_vm4, %v6301_v20  ;;  %v9568_v28 = vpop.eup %9567 }
0x2e39   :  { %v9570_v26 = vpop.eup %9569  ;;  %v6186_v2 = vmul.f32 %v9568_v28, %v9564_v45 }
0x2e3a   :  { %v6185_v59 = vmul.f32 %v9570_v26, %v9562_v54 }
0x2e3b   :  { %v6188_v47 = vpack.c.bf16 %v6186_v2, %v6186_v2 }
0x2e3c   :  { %v9572_v62 = vpop.eup %9571 }
0x2e3d   :  { %v6184_v27 = vmul.f32 %v9572_v62, %v9566_v53 }
0x2e3f   :  { %v6187_v40 = vpack.c.bf16 %v6185_v59, %v6184_v27 }
0x2e41   :  { %8841 = vmatprep.mubr.msk.bf16.mxu1 %vm835_vm6, %v6187_v40 }
0x2e42   :  { %8842 = vmatmul.mubr.msk.bf16.vlgmr.msra.gmra.mrb[156].mxu1 %vm835_vm6, %v6188_v47 }
0x2e43   :  { %8846 = vmatpush3.bf16.xpose.msra.mxu1 %v6311_v49  ;;  %8849 = vmatprep.mubr.msk.bf16.mxu1 %vm303_vm4, %v11517_v63 }
0x2e44   :  { %9015 = vmatprep.subr.msk.bf16.mxu1 %vm303_vm4, %v6303_v43 }
0x2e4b   :  { %8848 = vmatpush3.bf16.xpose.msra.mxu1 %v6314_v55 }
0x2e52   :  { %8850 = vmatmul.mubr.msk.bf16.vlgmr.msra.gmra.mrb[160].mxu1 %vm303_vm4, %v11512_v12 }
0x2f15   :  { %v11537_v25 = vpop.f32.mrb[156].mxu1 }
0x2f16   :  { %v11539_v14 = vpop.f32.mrb[157].mxu1 }
0x2f17   :  { %v8844_v4 = vpop.f32.mrb[158].mxu1 }
0x2f18   :  { %v11541_v22 = vpop.f32.mrb[159].mxu1 }
0x2f19   :  { %v9188_v3 = vpack.i.bf16 %v11541_v22, %v11539_v14 }
0x2f25   :  { %v8851_v51 = vpop.f32.mrb[160].mxu1 }
0x2f26   :  { %v6350_v9 = vpop.f32.mrb[161].mxu1  ;;  %v6366_v16 = vmul.f32 0.35355338, %v8851_v51 }
0x2f27   :  { %v6364_v32 = vmul.f32 0.35355338, %v6350_v9  ;;  %v8852_v17 = vpop.f32.mrb[162].mxu1 }
0x2f28   :  { %v6353_v35 = vpop.f32.mrb[163].mxu1  ;;  %v6369_v1 = vadd.f32 %v11351_v44, %v6366_v16 }
0x2f29   :  { %v6367_v61 = vadd.f32 %v11351_v44, %v6364_v32  ;;  %v6365_v29 = vmul.f32 0.35355338, %v6353_v35 }
0x2f2a   :  { %v6376_v45 = vsel %vm835_vm6, %v6369_v1, -inf }
0x2f2b   :  { %v6368_v19 = vadd.f32 %v11351_v44, %v6365_v29  ;;  %v6370_v54 = vsel %vm835_vm6, %v6367_v61, -inf }
0x2f2c   :  { %6371 = vmax.xlane.f32.xlu0 %v6370_v54 }
0x2f2d   :  { %v6373_v46 = vsel %vm835_vm6, %v6368_v19, -inf }
0x2f2e   :  { %6374 = vmax.xlane.f32.xlu1 %v6373_v46 }
0x2f30   :  { %6377 = vmax.xlane.f32.xlu0 %v6376_v45 }
0x2f3f   :  { %6405 = vrot.lane.b32.xlu1 %v11517_v63, %s9662_s29 }
0x2fb9   :  { %v6372_v52 = vpop.xlane.xlu0 %6371 }
0x2fba   :  { %v6379_v48 = vsub.f32 %v6367_v61, %v6372_v52 }
0x2fbb   :  { %v6375_v53 = vpop.xlane.xlu1 %6374 }
0x2fbc   :  { %v6380_v58 = vsub.f32 %v6368_v19, %v6375_v53  ;;  %v6382_v38 = vmul.f32 1.442695, %v6379_v48 }
0x2fbd   :  { %v6378_v13 = vpop.xlane.xlu0 %6377 }
0x2fbe   :  { %v6384_v5 = vmul.f32 1.442695, %v6380_v58  ;;  %v6381_v31 = vsub.f32 %v6369_v1, %v6378_v13 }
0x2fbf   :  { %v6406_v56 = vpop.permute.xlu1 %6405 }
0x2fc0   :  { %9573 = vpow2.f32 %v6384_v5  ;;  %v6386_v20 = vmul.f32 1.442695, %v6381_v31  ;;  %8853 = vmatprep.subr.bf16.mxu0 %v6406_v56 }
0x2fc1   :  { %8854 = vmatpush3.bf16.msra.mxu0 %v6406_v56 }
0x2fc2   :  { %9575 = vpow2.f32 %v6386_v20 }
0x2fc3   :  { %9577 = vpow2.f32 %v6382_v38 }
0x2fca   :  { %v9574_v28 = vpop.eup %9573 }
0x2fcb   :  { %v6391_v26 = vsel %vm835_vm6, %v9574_v28, 0.0 }
0x2fcc   :  { %v9576_v62 = vpop.eup %9575  ;;  %6392 = vadd.xlane.f32.xlu1 %v6391_v26 }
0x2fcd   :  { %v6394_v2 = vsel %vm835_vm6, %v9576_v62, 0.0  ;;  %v9578_v27 = vpop.eup %9577 }
0x2fce   :  { %6395 = vadd.xlane.f32.xlu0 %v6394_v2  ;;  %v6388_v59 = vsel %vm835_vm6, %v9578_v27, 0.0 }
0x2fd2   :  { %6389 = vadd.xlane.f32.xlu0 %v6388_v59 }
0x2fdd   :  { %6471 = vrot.lane.b32.xlu1 %v11517_v63, %s9658_s25 }
0x2fe1   :  { %6473 = vrot.lane.b32.xlu1 %v11512_v12, %s9658_s25 }
0x2fe5   :  { %6469 = vrot.lane.b32.xlu1 %v11512_v12, %s9655_s22 }
0x2fe8   :  { %6407 = vrot.lane.b32.xlu0 %v11512_v12, %s9662_s29 }
0x2fec   :  { %6467 = vrot.lane.b32.xlu0 %v11517_v63, %s9655_s22  ;;  %s9688_s22 = smov 5  }
0x2fed   :  { %s7725_s25 = sld [smem:[%s11941_s0 + %s9688_s22]]  }
0x3059   :  { %v6393_v40 = vpop.xlane.xlu1 %6392 }
0x305b   :  { %v6396_v47 = vpop.xlane.xlu0 %6395 }
0x305c   :  { %9579 = vrcp.f32 %v6396_v47 }
0x305d   :  { %9581 = vrcp.f32 %v6393_v40  ;;  %v6472_v4 = vpop.permute.xlu1 %6471 }
0x305e   :  { %v6482_v1 = vsel %vm303_vm4, %v6472_v4, 0 }
0x305f   :  { %v6390_v49 = vpop.xlane.xlu0 %6389 }
0x3060   :  { %9583 = vrcp.f32 %v6390_v49 }
0x3061   :  { %v6474_v54 = vpop.permute.xlu1 %6473 }
0x3062   :  { %v6485_v46 = vsel %vm303_vm4, %v6474_v54, 0 }
0x3063   :  { %v6408_v43 = vpop.permute.xlu0 %6407 }
0x3064   :  { %v6417_v55 = vsel %vm3622_vm10, %v6408_v43, 0  ;;  %9016 = vmatprep.subr.msk.bf16.mxu0 %vm3622_vm10, %v6408_v43 }
0x3065   :  { %8856 = vmatpush3.bf16.msra.mxu0 %v6417_v55  ;;  %v6470_v45 = vpop.permute.xlu1 %6469 }
0x3066   :  { %9017 = vmatprep.subr.msk.bf16.mxu0 %vm303_vm4, %v6472_v4  ;;  %v9580_v51 = vpop.eup %9579 }
0x3067   :  { %v9582_v9 = vpop.eup %9581  ;;  %v6402_v32 = vmul.f32 %v9580_v51, %v9576_v62  ;;  %v6468_v19 = vpop.permute.xlu0 %6467 }
0x3068   :  { %v6401_v35 = vmul.f32 %v9582_v9, %v9574_v28 }
0x3069   :  { %v6404_v29 = vpack.c.bf16 %v6402_v32, %v6402_v32 }
0x306a   :  { %v9584_v16 = vpop.eup %9583 }
0x306b   :  { %v6400_v17 = vmul.f32 %v9584_v16, %v9578_v27 }
0x306d   :  { %v6403_v61 = vpack.c.bf16 %v6401_v35, %v6400_v17 }
0x306f   :  { %8857 = vmatprep.mubr.msk.bf16.mxu0 %vm835_vm6, %v6403_v61 }
0x3070   :  { %8858 = vmatmul.mubr.msk.bf16.vlgmr.msra.gmra.mrb[164].mxu0 %vm835_vm6, %v6404_v29 }
0x3071   :  { %8862 = vmatpush3.bf16.xpose.msra.mxu0 %v6482_v1  ;;  %8865 = vmatprep.mubr.msk.bf16.mxu0 %vm303_vm4, %v6468_v19 }
0x3072   :  { %9018 = vmatprep.subr.msk.bf16.mxu0 %vm303_vm4, %v6474_v54 }
0x3079   :  { %8864 = vmatpush3.bf16.xpose.msra.mxu0 %v6485_v46 }
0x3080   :  { %8866 = vmatmul.mubr.msk.bf16.vlgmr.msra.gmra.mrb[168].mxu0 %vm303_vm4, %v6470_v45 }
0x3143   :  { %v11576_v52 = vpop.f32.mrb[164].mxu0 }
0x3144   :  { %v11578_v53 = vpop.f32.mrb[165].mxu0 }
0x3145   :  { %v8860_v48 = vpop.f32.mrb[166].mxu0 }
0x3146   :  { %v11580_v58 = vpop.f32.mrb[167].mxu0 }
0x3153   :  { %v8867_v13 = vpop.f32.mrb[168].mxu0 }
0x3154   :  { %v6521_v5 = vpop.f32.mrb[169].mxu0  ;;  %v6537_v31 = vmul.f32 0.35355338, %v8867_v13 }
0x3155   :  { %v6535_v56 = vmul.f32 0.35355338, %v6521_v5  ;;  %v8868_v38 = vpop.f32.mrb[170].mxu0 }
0x3156   :  { %v6524_v20 = vpop.f32.mrb[171].mxu0  ;;  %v6540_v62 = vadd.f32 %v11351_v44, %v6537_v31 }
0x3157   :  { %v6538_v28 = vadd.f32 %v11351_v44, %v6535_v56  ;;  %v6536_v26 = vmul.f32 0.35355338, %v6524_v20 }
0x3158   :  { %v6547_v40 = vsel %vm835_vm6, %v6540_v62, -inf }
0x3159   :  { %v6539_v2 = vadd.f32 %v11351_v44, %v6536_v26  ;;  %v6541_v27 = vsel %vm835_vm6, %v6538_v28, -inf }
0x315a   :  { %6542 = vmax.xlane.f32.xlu0 %v6541_v27 }
0x315b   :  { %v6544_v59 = vsel %vm835_vm6, %v6539_v2, -inf }
0x315c   :  { %6545 = vmax.xlane.f32.xlu1 %v6544_v59 }
0x315e   :  { %6548 = vmax.xlane.f32.xlu0 %v6547_v40 }
0x316d   :  { %6576 = vrot.lane.b32.xlu1 %v11517_v63, %s9665_s5 }
0x31e7   :  { %v6543_v47 = vpop.xlane.xlu0 %6542 }
0x31e8   :  { %v6550_v43 = vsub.f32 %v6538_v28, %v6543_v47 }
0x31e9   :  { %v6546_v49 = vpop.xlane.xlu1 %6545 }
0x31ea   :  { %v6551_v55 = vsub.f32 %v6539_v2, %v6546_v49  ;;  %v6553_v16 = vmul.f32 1.442695, %v6550_v43 }
0x31eb   :  { %v6549_v4 = vpop.xlane.xlu0 %6548 }
0x31ec   :  { %v6555_v51 = vmul.f32 1.442695, %v6551_v55  ;;  %v6552_v9 = vsub.f32 %v6540_v62, %v6549_v4 }
0x31ed   :  { %v6577_v44 = vpop.permute.xlu1 %6576 }
0x31ee   :  { %9585 = vpow2.f32 %v6555_v51  ;;  %v6557_v32 = vmul.f32 1.442695, %v6552_v9  ;;  %8869 = vmatprep.subr.bf16.mxu1 %v6577_v44 }
0x31ef   :  { %8870 = vmatpush3.bf16.msra.mxu1 %v6577_v44 }
0x31f0   :  { %9587 = vpow2.f32 %v6557_v32 }
0x31f1   :  { %9589 = vpow2.f32 %v6553_v16 }
0x31f8   :  { %v9586_v17 = vpop.eup %9585 }
0x31f9   :  { %v6562_v35 = vsel %vm835_vm6, %v9586_v17, 0.0 }
0x31fa   :  { %v9588_v61 = vpop.eup %9587  ;;  %6563 = vadd.xlane.f32.xlu1 %v6562_v35 }
0x31fb   :  { %v6565_v29 = vsel %vm835_vm6, %v9588_v61, 0.0  ;;  %v9590_v1 = vpop.eup %9589 }
0x31fc   :  { %6566 = vadd.xlane.f32.xlu0 %v6565_v29  ;;  %v6559_v19 = vsel %vm835_vm6, %v9590_v1, 0.0 }
0x3200   :  { %6560 = vadd.xlane.f32.xlu0 %v6559_v19 }
0x320b   :  { %6642 = vrot.lane.b32.xlu1 %v11517_v63, %s9657_s24 }
0x320f   :  { %6644 = vrot.lane.b32.xlu1 %v11512_v12, %s9657_s24 }
0x3213   :  { %6640 = vrot.lane.b32.xlu1 %v11512_v12, %s9660_s27 }
0x3216   :  { %6578 = vrot.lane.b32.xlu0 %v11512_v12, %s9665_s5 }
0x321a   :  { %6638 = vrot.lane.b32.xlu0 %v11517_v63, %s9660_s27 }
0x3287   :  { %v6564_v54 = vpop.xlane.xlu1 %6563 }
0x3289   :  { %v6567_v46 = vpop.xlane.xlu0 %6566 }
0x328a   :  { %9591 = vrcp.f32 %v6567_v46 }
0x328b   :  { %9593 = vrcp.f32 %v6564_v54  ;;  %v6643_v5 = vpop.permute.xlu1 %6642 }
0x328c   :  { %v6653_v27 = vsel %vm303_vm4, %v6643_v5, 0 }
0x328d   :  { %v6561_v45 = vpop.xlane.xlu0 %6560 }
0x328e   :  { %9595 = vrcp.f32 %v6561_v45 }
0x328f   :  { %v6645_v40 = vpop.permute.xlu1 %6644 }
0x3290   :  { %v6656_v47 = vsel %vm303_vm4, %v6645_v40, 0 }
0x3291   :  { %v6579_v48 = vpop.permute.xlu0 %6578 }
0x3292   :  { %v6588_v13 = vsel %vm3622_vm10, %v6579_v48, 0  ;;  %9019 = vmatprep.subr.msk.bf16.mxu1 %vm3622_vm10, %v6579_v48 }
0x3293   :  { %8872 = vmatpush3.bf16.msra.mxu1 %v6588_v13  ;;  %v6641_v49 = vpop.permute.xlu1 %6640 }
0x3294   :  { %9020 = vmatprep.subr.msk.bf16.mxu1 %vm303_vm4, %v6643_v5  ;;  %v9592_v31 = vpop.eup %9591 }
0x3295   :  { %v9594_v56 = vpop.eup %9593  ;;  %v6573_v20 = vmul.f32 %v9592_v31, %v9588_v61  ;;  %v6639_v59 = vpop.permute.xlu0 %6638 }
0x3296   :  { %v6572_v26 = vmul.f32 %v9594_v56, %v9586_v17 }
0x3297   :  { %v6575_v2 = vpack.c.bf16 %v6573_v20, %v6573_v20 }
0x3298   :  { %v9596_v38 = vpop.eup %9595 }
0x3299   :  { %v6571_v28 = vmul.f32 %v9596_v38, %v9590_v1  ;;  %v11624_v1 = vld [vmem:[%s10715_s3] ss:$0 sm:$0xff]  ;;  %s9692_s3 = smov 28  }
0x329b   :  { %v6574_v62 = vpack.c.bf16 %v6572_v26, %v6571_v28 }
0x329d   :  { %8873 = vmatprep.mubr.msk.bf16.mxu1 %vm835_vm6, %v6574_v62 }
0x329e   :  { %8874 = vmatmul.mubr.msk.bf16.vlgmr.msra.gmra.mrb[164].mxu1 %vm835_vm6, %v6575_v2 }
0x329f   :  { %8878 = vmatpush3.bf16.xpose.msra.mxu1 %v6653_v27  ;;  %8881 = vmatprep.mubr.msk.bf16.mxu1 %vm303_vm4, %v6639_v59 }
0x32a0   :  { %9021 = vmatprep.subr.msk.bf16.mxu1 %vm303_vm4, %v6645_v40 }
0x32a7   :  { %8880 = vmatpush3.bf16.xpose.msra.mxu1 %v6656_v47 }
0x32ae   :  { %8882 = vmatmul.mubr.msk.bf16.vlgmr.msra.gmra.mrb[168].mxu1 %vm303_vm4, %v6641_v49 }
0x3371   :  { %v11613_v43 = vpop.f32.mrb[164].mxu1 }
0x3372   :  { %v11615_v55 = vpop.f32.mrb[165].mxu1 }
0x3373   :  { %v9193_v4 = vpack.i.bf16 %v11615_v55, %v11451_v57  ;;  %v8876_v51 = vpop.f32.mrb[166].mxu1 }
0x3374   :  { %v11619_v9 = vpop.f32.mrb[167].mxu1 }
0x3375   :  { %v9208_v44 = vpack.i.bf16 %v11613_v43, %v11619_v9 }
0x3381   :  { %v8883_v16 = vpop.f32.mrb[168].mxu1 }
0x3382   :  { %v6692_v32 = vpop.f32.mrb[169].mxu1  ;;  %v6708_v17 = vmul.f32 0.35355338, %v8883_v16 }
0x3383   :  { %v6706_v35 = vmul.f32 0.35355338, %v6692_v32  ;;  %v8884_v61 = vpop.f32.mrb[170].mxu1 }
0x3384   :  { %v6695_v29 = vpop.f32.mrb[171].mxu1  ;;  %v6711_v46 = vadd.f32 %v11624_v1, %v6708_v17 }
0x3385   :  { %v6709_v19 = vadd.f32 %v11624_v1, %v6706_v35  ;;  %v6707_v54 = vmul.f32 0.35355338, %v6695_v29 }
0x3386   :  { %v6718_v5 = vsel %vm835_vm6, %v6711_v46, -inf }
0x3387   :  { %v6710_v45 = vadd.f32 %v11624_v1, %v6707_v54  ;;  %v6712_v48 = vsel %vm835_vm6, %v6709_v19, -inf }
0x3388   :  { %6713 = vmax.xlane.f32.xlu0 %v6712_v48 }
0x3389   :  { %v6715_v13 = vsel %vm835_vm6, %v6710_v45, -inf }
0x338a   :  { %6716 = vmax.xlane.f32.xlu1 %v6715_v13 }
0x338c   :  { %6719 = vmax.xlane.f32.xlu0 %v6718_v5 }
0x339b   :  { %6747 = vrot.lane.b32.xlu1 %v11517_v63, %s9664_s4 }
0x3415   :  { %v6714_v31 = vpop.xlane.xlu0 %6713 }
0x3416   :  { %v6721_v38 = vsub.f32 %v6709_v19, %v6714_v31 }
0x3417   :  { %v6717_v56 = vpop.xlane.xlu1 %6716 }
0x3418   :  { %v6722_v20 = vsub.f32 %v6710_v45, %v6717_v56  ;;  %v6724_v27 = vmul.f32 1.442695, %v6721_v38 }
0x3419   :  { %v6720_v28 = vpop.xlane.xlu0 %6719 }
0x341a   :  { %v6726_v26 = vmul.f32 1.442695, %v6722_v20  ;;  %v6723_v62 = vsub.f32 %v6711_v46, %v6720_v28 }
0x341b   :  { %v6748_v2 = vpop.permute.xlu1 %6747 }
0x341c   :  { %9597 = vpow2.f32 %v6726_v26  ;;  %v6728_v59 = vmul.f32 1.442695, %v6723_v62  ;;  %8885 = vmatprep.subr.bf16.mxu0 %v6748_v2 }
0x341d   :  { %8886 = vmatpush3.bf16.msra.mxu0 %v6748_v2 }
0x341e   :  { %9599 = vpow2.f32 %v6728_v59 }
0x341f   :  { %9601 = vpow2.f32 %v6724_v27 }
0x3426   :  { %v9598_v40 = vpop.eup %9597 }
0x3427   :  { %v6733_v47 = vsel %vm835_vm6, %v9598_v40, 0.0 }
0x3428   :  { %v9600_v49 = vpop.eup %9599  ;;  %6734 = vadd.xlane.f32.xlu1 %v6733_v47 }
0x3429   :  { %v6736_v51 = vsel %vm835_vm6, %v9600_v49, 0.0  ;;  %v9602_v16 = vpop.eup %9601 }
0x342a   :  { %6737 = vadd.xlane.f32.xlu0 %v6736_v51  ;;  %v6730_v32 = vsel %vm835_vm6, %v9602_v16, 0.0 }
0x342e   :  { %6731 = vadd.xlane.f32.xlu0 %v6730_v32 }
0x3439   :  { %6813 = vrot.lane.b32.xlu1 %v11517_v63, %s9659_s26 }
0x343d   :  { %6815 = vrot.lane.b32.xlu1 %v11512_v12, %s9659_s26  ;;  %s9689_s26 = smov 27  }
0x343e   :  { %s7747_s29 = sld [smem:[%s11941_s0 + %s9689_s26]]  }
0x3441   :  { %6811 = vrot.lane.b32.xlu1 %v11512_v12, %s9661_s28 }
0x3444   :  { %6749 = vrot.lane.b32.xlu0 %v11512_v12, %s9664_s4  ;;  %s9690_s4 = smov 29  }
0x3448   :  { %6809 = vrot.lane.b32.xlu0 %v11517_v63, %s9661_s28 }
0x34b5   :  { %v6735_v17 = vpop.xlane.xlu1 %6734 }
0x34b7   :  { %v6738_v35 = vpop.xlane.xlu0 %6737 }
0x34b8   :  { %9603 = vrcp.f32 %v6738_v35 }
0x34b9   :  { %9605 = vrcp.f32 %v6735_v17  ;;  %v6814_v54 = vpop.permute.xlu1 %6813 }
0x34ba   :  { %v6824_v20 = vsel %vm303_vm4, %v6814_v54, 0 }
0x34bb   :  { %v6732_v61 = vpop.xlane.xlu0 %6731 }
0x34bc   :  { %9607 = vrcp.f32 %v6732_v61 }
0x34bd   :  { %v6816_v26 = vpop.permute.xlu1 %6815 }
0x34be   :  { %v6827_v62 = vsel %vm303_vm4, %v6816_v26, 0 }
0x34bf   :  { %v6750_v29 = vpop.permute.xlu0 %6749 }
0x34c0   :  { %v6759_v19 = vsel %vm3622_vm10, %v6750_v29, 0  ;;  %9022 = vmatprep.subr.msk.bf16.mxu0 %vm3622_vm10, %v6750_v29 }
0x34c1   :  { %8888 = vmatpush3.bf16.msra.mxu0 %v6759_v19  ;;  %v6812_v2 = vpop.permute.xlu1 %6811 }
0x34c2   :  { %9023 = vmatprep.subr.msk.bf16.mxu0 %vm303_vm4, %v6814_v54  ;;  %v9604_v46 = vpop.eup %9603 }
0x34c3   :  { %v9606_v45 = vpop.eup %9605  ;;  %v6744_v13 = vmul.f32 %v9604_v46, %v9600_v49  ;;  %v6810_v28 = vpop.permute.xlu0 %6809 }
0x34c4   :  { %v6743_v31 = vmul.f32 %v9606_v45, %v9598_v40 }
0x34c5   :  { %v6746_v38 = vpack.c.bf16 %v6744_v13, %v6744_v13 }
0x34c6   :  { %v9608_v48 = vpop.eup %9607 }
0x34c7   :  { %v6742_v5 = vmul.f32 %v9608_v48, %v9602_v16 }
0x34c9   :  { %v6745_v56 = vpack.c.bf16 %v6743_v31, %v6742_v5 }
0x34cb   :  { %8889 = vmatprep.mubr.msk.bf16.mxu0 %vm835_vm6, %v6745_v56 }
0x34cc   :  { %8890 = vmatmul.mubr.msk.bf16.vlgmr.msra.gmra.mrb[172].mxu0 %vm835_vm6, %v6746_v38 }
0x34cd   :  { %8894 = vmatpush3.bf16.xpose.msra.mxu0 %v6824_v20  ;;  %8897 = vmatprep.mubr.msk.bf16.mxu0 %vm303_vm4, %v6810_v28 }
0x34ce   :  { %9024 = vmatprep.subr.msk.bf16.mxu0 %vm303_vm4, %v6816_v26 }
0x34d5   :  { %8896 = vmatpush3.bf16.xpose.msra.mxu0 %v6827_v62 }
0x34d6   :  { %8925 = vmatprep.subr.bf16.mxu0 %v9653_v21 }
0x34dc   :  { %8898 = vmatmul.mubr.msk.bf16.vlgmr.msra.gmra.mrb[176].mxu0 %vm303_vm4, %v6812_v2 }
0x34dd   :  { %8929 = vmatprep.mubr.msk.bf16.mxu0 %vm9654_vm3, %v9653_v21 }
0x359f   :  { %v11660_v27 = vpop.f32.mrb[172].mxu0 }
0x35a0   :  { %v6795_v59 = vpop.f32.mrb[173].mxu0 }
0x35a1   :  { %v9198_v40 = vpack.i.bf16 %v6795_v59, %v11490_v37  ;;  %v8892_v47 = vpop.f32.mrb[174].mxu0 }
0x35a2   :  { %v11663_v49 = vpop.f32.mrb[175].mxu0 }
0x35a3   :  { %v9213_v51 = vpack.i.bf16 %v11660_v27, %v11663_v49 }
0x35af   :  { %v8899_v16 = vpop.f32.mrb[176].mxu0 }
0x35b0   :  { %v6863_v32 = vpop.f32.mrb[177].mxu0  ;;  %v6879_v17 = vmul.f32 0.35355338, %v8899_v16 }
0x35b1   :  { %v6877_v35 = vmul.f32 0.35355338, %v6863_v32  ;;  %v8900_v61 = vpop.f32.mrb[178].mxu0 }
0x35b2   :  { %v6866_v29 = vpop.f32.mrb[179].mxu0  ;;  %v6882_v46 = vadd.f32 %v11624_v1, %v6879_v17 }
0x35b3   :  { %v6880_v19 = vadd.f32 %v11624_v1, %v6877_v35  ;;  %v6878_v54 = vmul.f32 0.35355338, %v6866_v29 }
0x35b4   :  { %v6889_v13 = vsel %vm835_vm6, %v6882_v46, -inf }
0x35b5   :  { %v6881_v45 = vadd.f32 %v11624_v1, %v6878_v54  ;;  %v6883_v37 = vsel %vm835_vm6, %v6880_v19, -inf }
0x35b6   :  { %6884 = vmax.xlane.f32.xlu0 %v6883_v37 }
0x35b7   :  { %v6886_v48 = vsel %vm835_vm6, %v6881_v45, -inf }
0x35b8   :  { %6887 = vmax.xlane.f32.xlu1 %v6886_v48 }
0x35ba   :  { %6890 = vmax.xlane.f32.xlu0 %v6889_v13 }
0x3643   :  { %v6885_v5 = vpop.xlane.xlu0 %6884 }
0x3644   :  { %v6892_v56 = vsub.f32 %v6880_v19, %v6885_v5 }
0x3645   :  { %v6888_v31 = vpop.xlane.xlu1 %6887 }
0x3646   :  { %v6893_v38 = vsub.f32 %v6881_v45, %v6888_v31  ;;  %v6895_v62 = vmul.f32 1.442695, %v6892_v56  ;;  %v9258_v31 = vld [vmem:[%s11023_s1 + $0x18] sm:$0xff]  }
0x3647   :  { %v6891_v20 = vpop.xlane.xlu0 %6890 }
0x3648   :  { %v6897_v28 = vmul.f32 1.442695, %v6893_v38  ;;  %v6894_v26 = vsub.f32 %v6882_v46, %v6891_v20 }
0x364a   :  { %9609 = vpow2.f32 %v6897_v28  ;;  %v6899_v2 = vmul.f32 1.442695, %v6894_v26 }
0x364c   :  { %9611 = vpow2.f32 %v6899_v2 }
0x364d   :  { %9613 = vpow2.f32 %v6895_v62 }
0x3654   :  { %v9610_v1 = vpop.eup %9609 }
0x3655   :  { %v6904_v59 = vsel %vm835_vm6, %v9610_v1, 0.0 }
0x3656   :  { %v9612_v47 = vpop.eup %9611  ;;  %6905 = vadd.xlane.f32.xlu1 %v6904_v59 }
0x3657   :  { %v6907_v16 = vsel %vm835_vm6, %v9612_v47, 0.0  ;;  %v9614_v32 = vpop.eup %9613 }
0x3658   :  { %6908 = vadd.xlane.f32.xlu0 %v6907_v16  ;;  %v6901_v17 = vsel %vm835_vm6, %v9614_v32, 0.0  ;;  %v11731_v16 = vld [vmem:[%s11055_s15 + $0x1] ss:$0 sm:$0xff] }
0x365c   :  { %6902 = vadd.xlane.f32.xlu0 %v6901_v17 }
0x3667   :  { %6918 = vrot.lane.b32.xlu1 %v11517_v63, %s9666_s6 }
0x366b   :  { %9179 = vrot.lane.b32.xlu1 %v9178_v42, %s9668_s11 }
0x366f   :  { %9184 = vrot.lane.b32.xlu1 %v9183_v60, %s9667_s7 }
0x3672   :  { %6920 = vrot.lane.b32.xlu0 %v11512_v12, %s9666_s6 }
0x3673   :  { %9194 = vrot.lane.b32.xlu1 %v9193_v4, %s9668_s11 }
0x3676   :  { %9189 = vrot.lane.b32.xlu0 %v9188_v3, %s9669_s12 }
0x367a   :  { %9199 = vrot.lane.b32.xlu0 %v9198_v40, %s9667_s7 }
0x367e   :  { %9209 = vrot.lane.b32.xlu0 %v9208_v44, %s9668_s11  ;;  %s9691_s11 = smov 30  }
0x367f   :  { %s7750_s20 = sld [smem:[%s11941_s0 + %s9691_s11]]  }
0x36e3   :  { %v6906_v0 = vpop.xlane.xlu1 %6905 }
0x36e5   :  { %v6909_v50 = vpop.xlane.xlu0 %6908 }
0x36e6   :  { %9615 = vrcp.f32 %v6909_v50 }
0x36e7   :  { %v6919_v42 = vpop.permute.xlu1 %6918  ;;  %9617 = vrcp.f32 %v6906_v0 }
0x36e8   :  { %8901 = vmatprep.subr.bf16.mxu1 %v6919_v42 }
0x36e9   :  { %v6903_v57 = vpop.xlane.xlu0 %6902  ;;  %8902 = vmatpush3.bf16.msra.mxu1 %v6919_v42 }
0x36ea   :  { %9619 = vrcp.f32 %v6903_v57 }
0x36eb   :  { %v9180_v41 = vpop.permute.xlu1 %9179 }
0x36ec   :  { %v9182_v10 = vunpack.i.h.bf16 %v9180_v41  ;;  %v9181_v60 = vunpack.i.l.bf16 %v9180_v41 }
0x36ed   :  { %v6921_v12 = vpop.permute.xlu0 %6920 }
0x36ee   :  { %v6930_v63 = vsel %vm3622_vm10, %v6921_v12, 0  ;;  %9025 = vmatprep.subr.msk.bf16.mxu1 %vm3622_vm10, %v6921_v12  ;;  %v6288_v55 = vsel %vm303_vm4, %v11449_v11, %v9182_v10  ;;  %v6287_v4 = vsel %vm303_vm4, %v11447_v30, %v9181_v60  ;;  %v9257_v30 = vld [vmem:[%s11023_s1 + $0x10] sm:$0xff]  }
0x36ef   :  { %8904 = vmatpush3.bf16.msra.mxu1 %v6930_v63  ;;  %v9185_v14 = vpop.permute.xlu1 %9184 }
0x36f0   :  { %v9187_v22 = vunpack.i.h.bf16 %v9185_v14  ;;  %v9186_v3 = vunpack.i.l.bf16 %v9185_v14  ;;  %8909 = vmatprep.subr.bf16.mxu1 %v9653_v21  ;;  %v9616_v43 = vpop.eup %9615 }
0x36f1   :  { %v9190_v9 = vpop.permute.xlu0 %9189  ;;  %v9618_v44 = vpop.eup %9617  ;;  %v6915_v54 = vmul.f32 %v9616_v43, %v9612_v47 }
0x36f2   :  { %v6290_v40 = vsel %vm361_vm5, %v6287_v4, %v9186_v3  ;;  %v6291_v35 = vsel %vm361_vm5, %v6288_v55, %v9187_v22  ;;  %v9192_v61 = vunpack.i.h.bf16 %v9190_v9  ;;  %v9191_v29 = vunpack.i.l.bf16 %v9190_v9 }
0x36f3   :  { %v6914_v48 = vmul.f32 %v9618_v44, %v9610_v1  ;;  %v6917_v5 = vpack.c.bf16 %v6915_v54, %v6915_v54 }
0x36f4   :  { %v9620_v19 = vpop.eup %9619  ;;  %v6293_v46 = vsel %vm835_vm6, %v6290_v40, %v9191_v29  ;;  %v6294_v45 = vsel %vm835_vm6, %v6291_v35, %v9192_v61 }
0x36f5   :  { %v7025_v11 = vpack.c.bf16 %v6294_v45, %v6293_v46  ;;  %v6913_v37 = vmul.f32 %v9620_v19, %v9614_v32  ;;  %v9200_v50 = vpop.permute.xlu0 %9199 }
0x36f6   :  { %v9202_v41 = vunpack.i.h.bf16 %v9200_v50  ;;  %v9201_v10 = vunpack.i.l.bf16 %v9200_v50 }
0x36f7   :  { %v6916_v13 = vpack.c.bf16 %v6914_v48, %v6913_v37 }
0x36f9   :  { %8905 = vmatprep.mubr.msk.bf16.mxu1 %vm835_vm6, %v6916_v13  ;;  %v9210_v12 = vpop.permute.xlu0 %9209 }
0x36fa   :  { %8906 = vmatmul.mubr.msk.bf16.vlgmr.msra.gmra.mrb[172].mxu1 %vm835_vm6, %v6917_v5  ;;  %v9212_v43 = vunpack.i.h.bf16 %v9210_v12  ;;  %v9211_v55 = vunpack.i.l.bf16 %v9210_v12 }
0x36fb   :  { %8910 = vmatpush3.bf16.msra.mxu1 %v9257_v30  ;;  %8913 = vmatprep.mubr.msk.bf16.mxu1 %vm9654_vm3, %v9653_v21 }
0x36fc   :  { %8911 = vmatprep.subr.bf16.mxu1 %v9653_v21  ;;  %v7017_v29 = vsel %vm303_vm4, %v11580_v58, %v9211_v55 }
0x36ff   :  { %8912 = vmatpush3.bf16.msra.mxu1 %v9258_v31 }
0x3700   :  { %8941 = vmatprep.subr.bf16.mxu1 %v9653_v21 }
0x3702   :  { %8914 = vmatmul.mubr.msk.bf16.vlgmr.msra.gmra.mrb[176].mxu1 %vm242_vm2, %v7025_v11 }
0x3703   :  { %8917 = vmatprep.mubr.msk.bf16.mxu1 %vm9654_vm3, %v9653_v21 }
0x37cd   :  { %v8907_v56 = vpop.f32.mrb[172].mxu1 }
0x37ce   :  { %v6966_v38 = vpop.f32.mrb[173].mxu1 }
0x37cf   :  { %v9203_v20 = vpack.i.bf16 %v6966_v38, %v11537_v25  ;;  %v8908_v28 = vpop.f32.mrb[174].mxu1 }
0x37d0   :  { %v6969_v26 = vpop.f32.mrb[175].mxu1 }
0x37d1   :  { %v9218_v62 = vpack.i.bf16 %v8907_v56, %v6969_v26  ;;  %9204 = vrot.lane.b32.xlu1 %v9203_v20, %s9669_s12 }
0x37d3   :  { %9219 = vrot.lane.b32.xlu0 %v9218_v62, %s9669_s12 }
0x37d5   :  { %9214 = vrot.lane.b32.xlu1 %v9213_v51, %s9667_s7  ;;  %v7089_v2 = vpop.f32.mrb[176].mxu1  ;;  %v9195_v51 = vpop.permute.xlu1 %9194  ;;  %s7749_s7 = sld [smem:[%s11941_s0 + %s9690_s4]]  }
0x37d6   :  { %v8915_v1 = vpop.f32.mrb[177].mxu1  ;;  %v7090_v17 = vadd.f32 %v11731_v16, %v7089_v2  ;;  %v9197_v42 = vunpack.i.h.bf16 %v9195_v51  ;;  %v9196_v57 = vunpack.i.l.bf16 %v9195_v51 }
0x37d7   :  { %v7092_v59 = vpop.f32.mrb[178].mxu1 }
0x37d8   :  { %v8916_v47 = vpop.f32.mrb[179].mxu1  ;;  %v7093_v25 = vadd.f32 %v11731_v16, %v7092_v59  ;;  %v7114_v27 = vadd.f32 %v7090_v17, %v11282_v23  ;;  %v6289_v60 = vsel %vm303_vm4, %v11445_v36, %v9196_v57  ;;  %v7018_v36 = vsel %vm303_vm4, %v11576_v52, %v9212_v43 }
0x37d9   :  { %v6292_v23 = vsel %vm361_vm5, %v6289_v60, %v9201_v10 }
0x37da   :  { %v11735_v32 = vadd.f32 %v7093_v25, %v11279_v18  ;;  %v7120_v49 = vsel %vm242_vm2, %v7114_v27, 0.0  ;;  %v7016_v18 = vsel %vm303_vm4, %v11578_v53, %v9197_v42 }
0x37db   :  { %v7019_v3 = vsel %vm361_vm5, %v7016_v18, %v9202_v41 }
0x37dc   :  { %v7123_v0 = vsel %vm242_vm2, %v11735_v32, 0.0 }
0x37f2   :  { %7124 = vadd.xlane.f32.xlu0 %v7123_v0 }
0x37f9   :  { %7121 = vadd.xlane.f32.xlu1 %v7120_v49 }
0x3843   :  { %v9205_v63 = vpop.permute.xlu1 %9204 }
0x3844   :  { %v9207_v14 = vunpack.i.h.bf16 %v9205_v63  ;;  %v9206_v22 = vunpack.i.l.bf16 %v9205_v63 }
0x3845   :  { %v9220_v44 = vpop.permute.xlu0 %9219 }
0x3846   :  { %v6295_v4 = vsel %vm835_vm6, %v6292_v23, %v9206_v22  ;;  %v7022_v9 = vsel %vm835_vm6, %v7019_v3, %v9207_v14  ;;  %v9222_v19 = vunpack.i.h.bf16 %v9220_v44  ;;  %v9221_v54 = vunpack.i.l.bf16 %v9220_v44 }
0x3847   :  { %v7026_v40 = vpack.c.bf16 %v7022_v9, %v6295_v4  ;;  %v9215_v53 = vpop.permute.xlu1 %9214 }
0x3848   :  { %v9217_v35 = vunpack.i.h.bf16 %v9215_v53  ;;  %v9216_v61 = vunpack.i.l.bf16 %v9215_v53 }
0x3849   :  { %8918 = vmatmul.mubr.msk.bf16.gmra.mrb[180].mxu1 %vm242_vm2, %v7026_v40 }
0x384a   :  { %v7021_v46 = vsel %vm361_vm5, %v7018_v36, %v9217_v35  ;;  %v7020_v45 = vsel %vm361_vm5, %v7017_v29, %v9216_v61  ;;  %8921 = vmatprep.mubr.msk.bf16.mxu1 %vm9654_vm3, %v9653_v21 }
0x384b   :  { %v7023_v11 = vsel %vm835_vm6, %v7020_v45, %v9221_v54  ;;  %v7024_v37 = vsel %vm835_vm6, %v7021_v46, %v9222_v19 }
0x384c   :  { %v7027_v48 = vpack.c.bf16 %v7024_v37, %v7023_v11 }
0x3851   :  { %8922 = vmatmul.mubr.msk.bf16.gmra.mrb[184].mxu1 %vm242_vm2, %v7027_v48  ;;  %v11804_v48 = vld [vmem:[%s11111_s18 + $0x4] sm:$0xf]  ;;  %s9693_s18 = smov 31  }
0x3852   :  { %8949 = vmatprep.mubr.msk.bf16.mxu1 %vm9654_vm3, %v9653_v21  ;;  %s7751_s19 = sld [smem:[%s11941_s0 + %s9693_s18]]  }
0x387f   :  { %v7125_v20 = vpop.xlane.xlu0 %7124 }
0x3880   :  { %v7139_v2 = vmul.f32 0.03125, %v7125_v20 }
0x3882   :  { %v7145_v0 = vsub.f32 %v11735_v32, %v7139_v2  ;;  %v9264_v2 = vld [vmem:[%s11156_s16 + $0x38] sm:$0xff]  }
0x3884   :  { %v7151_v41 = vmul.f32 %v7145_v0, %v7145_v0 }
0x3886   :  { %v7122_v30 = vpop.xlane.xlu1 %7121  ;;  %v7159_v32 = vsel %vm242_vm2, %v7151_v41, 0.0 }
0x3887   :  { %v7138_v28 = vmul.f32 0.03125, %v7122_v30 }
0x3889   :  { %v7144_v47 = vsub.f32 %v7114_v27, %v7138_v28 }
0x388b   :  { %v7150_v57 = vmul.f32 %v7144_v47, %v7144_v47 }
0x388d   :  { %v7156_v10 = vsel %vm242_vm2, %v7150_v57, 0.0 }
0x391c   :  { %v7097_v52 = vpop.f32.mrb[180].mxu1 }
0x391d   :  { %v7098_v58 = vadd.f32 %v11731_v16, %v7097_v52  ;;  %v8919_v13 = vpop.f32.mrb[181].mxu1  ;;  %v7201_v52 = vrot.slane %v11804_v48, %v10142_v33  ;;  %v9261_v33 = vld [vmem:[%s11156_s16 + $0x20] sm:$0xff]  }
0x391e   :  { %v7100_v5 = vpop.f32.mrb[182].mxu1  ;;  %8942 = vmatpush3.bf16.msra.mxu1 %v9261_v33 }
0x391f   :  { %v7116_v31 = vadd.f32 %v7098_v58, %v11292_v8  ;;  %v7101_v56 = vadd.f32 %v11731_v16, %v7100_v5  ;;  %v8920_v38 = vpop.f32.mrb[183].mxu1  ;;  %8943 = vmatprep.subr.bf16.mxu1 %v9653_v21 }
0x3921   :  { %v7117_v26 = vadd.f32 %v7101_v56, %v11295_v39  ;;  %v7126_v62 = vsel %vm242_vm2, %v7116_v31, 0.0  ;;  %v7211_v56 = vrot.slane %v11804_v48, %v10148_v34  ;;  %v9263_v34 = vld [vmem:[%s11156_s16 + $0x30] sm:$0xff]  }
0x3922   :  { %7127 = vadd.xlane.f32.xlu0 %v7126_v62  ;;  %v9262_v62 = vld [vmem:[%s11156_s16 + $0x28] sm:$0xff]  }
0x3923   :  { %v7129_v1 = vsel %vm242_vm2, %v7117_v26, 0.0  ;;  %8944 = vmatpush3.bf16.msra.mxu1 %v9262_v62 }
0x3924   :  { %7130 = vadd.xlane.f32.xlu1 %v7129_v1  ;;  %v7105_v59 = vpop.f32.mrb[184].mxu1  ;;  %8945 = vmatprep.subr.bf16.mxu1 %v9653_v21 }
0x3925   :  { %v7106_v25 = vadd.f32 %v11731_v16, %v7105_v59  ;;  %v8923_v17 = vpop.f32.mrb[185].mxu1 }
0x3926   :  { %v7108_v8 = vpop.f32.mrb[186].mxu1 }
0x3927   :  { %v7118_v49 = vadd.f32 %v7106_v25, %v11397_v7  ;;  %v7109_v39 = vadd.f32 %v11731_v16, %v7108_v8  ;;  %v8924_v51 = vpop.f32.mrb[187].mxu1  ;;  %v9259_v7 = vld [vmem:[%s11096_s13 + $0x10] sm:$0xff]   ;;  %v9260_v16 = vld [vmem:[%s11096_s13 + $0x18] sm:$0xff]   ;;  %8946 = vmatpush3.bf16.msra.mxu1 %v9263_v34  ;;  %s7748_s13 = sld [smem:[%s11941_s0 + %s9692_s3]]  }
0x3928   :  { %8926 = vmatpush3.bf16.msra.mxu0 %v9259_v7  ;;  %8947 = vmatprep.subr.bf16.mxu1 %v9653_v21 }
0x3929   :  { %v7119_v50 = vadd.f32 %v7109_v39, %v11400_v15  ;;  %v7132_v42 = vsel %vm242_vm2, %v7118_v49, 0.0  ;;  %8927 = vmatprep.subr.bf16.mxu0 %v9653_v21 }
0x392a   :  { %7133 = vadd.xlane.f32.xlu0 %v7132_v42 }
0x392b   :  { %v7135_v27 = vsel %vm242_vm2, %v7119_v50, 0.0  ;;  %8948 = vmatpush3.bf16.msra.mxu1 %v9264_v2 }
0x392c   :  { %7136 = vadd.xlane.f32.xlu1 %v7135_v27  ;;  %8928 = vmatpush3.bf16.msra.mxu0 %v9260_v16 }
0x392d   :  { %8961 = vmatprep.subr.bf16.mxu0 %v9653_v21 }
0x392e   :  { %7157 = vadd.xlane.f32.xlu0 %v7156_v10 }
0x3930   :  { %7160 = vadd.xlane.f32.xlu1 %v7159_v32 }
0x39af   :  { %v7128_v15 = vpop.xlane.xlu0 %7127 }
0x39b0   :  { %v7140_v18 = vmul.f32 0.03125, %v7128_v15 }
0x39b1   :  { %v7131_v60 = vpop.xlane.xlu1 %7130 }
0x39b2   :  { %v11783_v12 = vsub.f32 %v7116_v31, %v7140_v18  ;;  %v7141_v63 = vmul.f32 0.03125, %v7131_v60 }
0x39b4   :  { %v11785_v14 = vsub.f32 %v7117_v26, %v7141_v63  ;;  %v7152_v22 = vmul.f32 %v11783_v12, %v11783_v12 }
0x39b6   :  { %v7162_v23 = vsel %vm242_vm2, %v7152_v22, 0.0  ;;  %v7153_v3 = vmul.f32 %v11785_v14, %v11785_v14 }
0x39b7   :  { %7163 = vadd.xlane.f32.xlu0 %v7162_v23  ;;  %v7134_v43 = vpop.xlane.xlu0 %7133 }
0x39b8   :  { %v7142_v55 = vmul.f32 0.03125, %v7134_v43  ;;  %v7165_v4 = vsel %vm242_vm2, %v7153_v3, 0.0 }
0x39b9   :  { %7166 = vadd.xlane.f32.xlu1 %v7165_v4  ;;  %v7137_v9 = vpop.xlane.xlu1 %7136  ;;  %v7979_v4 = vld [vmem:[%s11195_s21 + $0x1] ss:$0 sm:$0xff] }
0x39ba   :  { %v11793_v44 = vsub.f32 %v7118_v49, %v7142_v55  ;;  %v7143_v40 = vmul.f32 0.03125, %v7137_v9 }
0x39bb   :  { %v7158_v53 = vpop.xlane.xlu0 %7157 }
0x39bc   :  { %v11795_v35 = vsub.f32 %v7119_v50, %v7143_v40  ;;  %v7174_v61 = vmul.f32 0.03125, %v7158_v53  ;;  %v7154_v36 = vmul.f32 %v11793_v44, %v11793_v44 }
0x39bd   :  { %v7161_v29 = vpop.xlane.xlu1 %7160 }
0x39be   :  { %v7180_v19 = vadd.f32 1e-05, %v7174_v61  ;;  %v7175_v54 = vmul.f32 0.03125, %v7161_v29  ;;  %v7168_v46 = vsel %vm242_vm2, %v7154_v36, 0.0  ;;  %v7155_v45 = vmul.f32 %v11795_v35, %v11795_v35 }
0x39bf   :  { %7169 = vadd.xlane.f32.xlu0 %v7168_v46 }
0x39c0   :  { %9621 = vrsqrt.f32 %v7180_v19  ;;  %v7181_v11 = vadd.f32 1e-05, %v7175_v54  ;;  %v7171_v37 = vsel %vm242_vm2, %v7155_v45, 0.0 }
0x39c1   :  { %7172 = vadd.xlane.f32.xlu1 %v7171_v37 }
0x39c2   :  { %9623 = vrsqrt.f32 %v7181_v11 }
0x39ca   :  { %v9622_v58 = vpop.eup %9621 }
0x39cb   :  { %v7192_v13 = vmul.f32 %v9622_v58, %v7144_v47 }
0x39cc   :  { %v9624_v30 = vpop.eup %9623 }
0x39cd   :  { %v7202_v5 = vmul.f32 %v7201_v52, %v7192_v13  ;;  %v7193_v31 = vmul.f32 %v9624_v30, %v7145_v0 }
0x39cf   :  { %v7203_v38 = vmul.f32 %v7201_v52, %v7193_v31  ;;  %v11810_v20 = vadd.f32 %v7211_v56, %v7202_v5 }
0x39d1   :  { %v11812_v28 = vadd.f32 %v7211_v56, %v7203_v38 }
0x39d3   :  { %v7223_v26 = vpack.c.bf16 %v11812_v28, %v11810_v20 }
0x39d5   :  { %8930 = vmatmul.mubr.msk.bf16.vlgmr.msra.gmra.mrb[180].mxu0 %vm242_vm2, %v7223_v26 }
0x39d6   :  { %8933 = vmatprep.mubr.msk.bf16.mxu0 %vm9654_vm3, %v9653_v21 }
0x3a44   :  { %v7164_v1 = vpop.xlane.xlu0 %7163 }
0x3a45   :  { %v7176_v59 = vmul.f32 0.03125, %v7164_v1  ;;  %v7994_v1 = vld [vmem:[%s11219_s2 + $0x1] ss:$0 sm:$0xff] }
0x3a46   :  { %v7167_v47 = vpop.xlane.xlu1 %7166 }
0x3a47   :  { %v7182_v25 = vadd.f32 1e-05, %v7176_v59  ;;  %v7177_v17 = vmul.f32 0.03125, %v7167_v47 }
0x3a49   :  { %9625 = vrsqrt.f32 %v7182_v25  ;;  %v7183_v8 = vadd.f32 1e-05, %v7177_v17 }
0x3a4b   :  { %9627 = vrsqrt.f32 %v7183_v8 }
0x3a4c   :  { %v7170_v0 = vpop.xlane.xlu0 %7169 }
0x3a4d   :  { %v7178_v49 = vmul.f32 0.03125, %v7170_v0 }
0x3a4e   :  { %v7173_v39 = vpop.xlane.xlu1 %7172 }
0x3a4f   :  { %v7184_v51 = vadd.f32 1e-05, %v7178_v49  ;;  %v7179_v50 = vmul.f32 0.03125, %v7173_v39 }
0x3a51   :  { %9629 = vrsqrt.f32 %v7184_v51  ;;  %v7185_v42 = vadd.f32 1e-05, %v7179_v50 }
0x3a53   :  { %v9626_v57 = vpop.eup %9625  ;;  %9631 = vrsqrt.f32 %v7185_v42 }
0x3a54   :  { %v7194_v27 = vmul.f32 %v9626_v57, %v11783_v12 }
0x3a55   :  { %v9628_v41 = vpop.eup %9627 }
0x3a56   :  { %v7195_v10 = vmul.f32 %v9628_v41, %v11785_v14  ;;  %v7204_v32 = vmul.f32 %v7201_v52, %v7194_v27 }
0x3a58   :  { %v7205_v7 = vmul.f32 %v7201_v52, %v7195_v10  ;;  %v11828_v16 = vadd.f32 %v7211_v56, %v7204_v32 }
0x3a5a   :  { %v11830_v15 = vadd.f32 %v7211_v56, %v7205_v7 }
0x3a5b   :  { %v9630_v18 = vpop.eup %9629 }
0x3a5c   :  { %v7196_v60 = vmul.f32 %v9630_v18, %v11793_v44  ;;  %v7224_v63 = vpack.c.bf16 %v11830_v15, %v11828_v16 }
0x3a5d   :  { %v9632_v22 = vpop.eup %9631 }
0x3a5e   :  { %v7197_v23 = vmul.f32 %v9632_v22, %v11795_v35  ;;  %8934 = vmatmul.mubr.msk.bf16.gmra.mrb[184].mxu0 %vm242_vm2, %v7224_v63  ;;  %v7206_v12 = vmul.f32 %v7201_v52, %v7196_v60 }
0x3a5f   :  { %8937 = vmatprep.mubr.msk.bf16.mxu0 %vm9654_vm3, %v9653_v21 }
0x3a60   :  { %v7207_v14 = vmul.f32 %v7201_v52, %v7197_v23  ;;  %v11839_v3 = vadd.f32 %v7211_v56, %v7206_v12 }
0x3a62   :  { %v11841_v43 = vadd.f32 %v7211_v56, %v7207_v14 }
0x3a64   :  { %v7225_v55 = vpack.c.bf16 %v11841_v43, %v11839_v3 }
0x3a66   :  { %8938 = vmatmul.mubr.msk.bf16.gmra.mrb[188].mxu0 %vm242_vm2, %v7225_v55 }
0x3a67   :  { %8965 = vmatprep.mubr.msk.bf16.mxu0 %vm9654_vm3, %v9653_v21 }
0x3aa8   :  { %v7289_v9 = vpop.f32.mrb[180].mxu0 }
0x3aa9   :  { %v7290_v44 = vadd.f32 %v7979_v4, %v7289_v9  ;;  %v8931_v40 = vpop.f32.mrb[181].mxu0 }
0x3aaa   :  { %v7292_v53 = vpop.f32.mrb[182].mxu0 }
0x3aab   :  { %v7293_v35 = vadd.f32 %v7979_v4, %v7292_v53  ;;  %v8932_v61 = vpop.f32.mrb[183].mxu0  ;;  %v7312_v36 = vmax.f32 %v7290_v44, 0.0 }
0x3aad   :  { %v7313_v29 = vmax.f32 %v7293_v35, 0.0 }
0x3aaf   :  { %v7327_v19 = vpack.c.bf16 %v7313_v29, %v7312_v36 }
0x3ab1   :  { %8950 = vmatmul.mubr.msk.bf16.vlgmr.msra.gmra.mrb[188].mxu1 %vm1658_vm7, %v7327_v19  ;;  %v7533_v19 = vld [vmem:[%s7725_s25 + $0x8] sm:$0xff] }
0x3ab2   :  { %8953 = vmatprep.mubr.msk.bf16.mxu1 %vm9654_vm3, %v9653_v21 }
0x3b31   :  { %v7297_v54 = vpop.f32.mrb[184].mxu0 }
0x3b32   :  { %v7298_v46 = vadd.f32 %v7979_v4, %v7297_v54  ;;  %v8935_v45 = vpop.f32.mrb[185].mxu0 }
0x3b33   :  { %v7300_v11 = vpop.f32.mrb[186].mxu0 }
0x3b34   :  { %v7301_v37 = vadd.f32 %v7979_v4, %v7300_v11  ;;  %v8936_v52 = vpop.f32.mrb[187].mxu0  ;;  %v7314_v58 = vmax.f32 %v7298_v46, 0.0 }
0x3b36   :  { %v7315_v13 = vmax.f32 %v7301_v37, 0.0 }
0x3b38   :  { %v7328_v30 = vpack.c.bf16 %v7315_v13, %v7314_v58 }
0x3b39   :  { %v7305_v5 = vpop.f32.mrb[188].mxu0 }
0x3b3a   :  { %v7306_v31 = vadd.f32 %v7979_v4, %v7305_v5  ;;  %v8939_v56 = vpop.f32.mrb[189].mxu0  ;;  %8954 = vmatmul.mubr.msk.bf16.gmra.mrb[192].mxu1 %vm1658_vm7, %v7328_v30 }
0x3b3b   :  { %v7308_v38 = vpop.f32.mrb[190].mxu0  ;;  %8957 = vmatprep.mubr.msk.bf16.mxu1 %vm9654_vm3, %v9653_v21 }
0x3b3c   :  { %v7309_v26 = vadd.f32 %v7979_v4, %v7308_v38  ;;  %v8940_v33 = vpop.f32.mrb[191].mxu0  ;;  %v7316_v62 = vmax.f32 %v7306_v31, 0.0 }
0x3b3e   :  { %v7317_v34 = vmax.f32 %v7309_v26, 0.0 }
0x3b40   :  { %v7329_v2 = vpack.c.bf16 %v7317_v34, %v7316_v62 }
0x3b42   :  { %8958 = vmatmul.mubr.msk.bf16.gmra.mrb[196].mxu1 %vm1658_vm7, %v7329_v2 }
0x3b84   :  { %v7405_v59 = vpop.f32.mrb[188].mxu1 }
0x3b85   :  { %v7406_v47 = vadd.f32 %v7994_v1, %v7405_v59  ;;  %v8951_v25 = vpop.f32.mrb[189].mxu1 }
0x3b86   :  { %v7408_v17 = vpop.f32.mrb[190].mxu1  ;;  %v7532_v25 = vld [vmem:[%s7725_s25] sm:$0xff] }
0x3b87   :  { %v7428_v8 = vadd.f32 %v7406_v47, %v11810_v20  ;;  %v7409_v0 = vadd.f32 %v7994_v1, %v7408_v17  ;;  %v8952_v49 = vpop.f32.mrb[191].mxu1  ;;  %v7534_v47 = vld [vmem:[%s7725_s25 + $0x10] sm:$0xff]  ;;  %v9265_v17 = vld [vmem:[%s7747_s29] sm:$0xff]  }
0x3b88   :  { %8962 = vmatpush3.bf16.msra.mxu0 %v9265_v17 }
0x3b89   :  { %v7429_v39 = vadd.f32 %v7409_v0, %v11812_v28  ;;  %v7434_v51 = vsel %vm242_vm2, %v7428_v8, 0.0  ;;  %8963 = vmatprep.subr.bf16.mxu0 %v9653_v21 }
0x3b8a   :  { %7435 = vadd.xlane.f32.xlu0 %v7434_v51 }
0x3b8b   :  { %v7437_v50 = vsel %vm242_vm2, %v7429_v39, 0.0 }
0x3b8c   :  { %7438 = vadd.xlane.f32.xlu1 %v7437_v50 }
0x3c0d   :  { %v7413_v42 = vpop.f32.mrb[192].mxu1 }
0x3c0e   :  { %v8955_v57 = vpop.f32.mrb[193].mxu1  ;;  %v7414_v41 = vadd.f32 %v7994_v1, %v7413_v42 }
0x3c0f   :  { %v7416_v27 = vpop.f32.mrb[194].mxu1 }
0x3c10   :  { %v7417_v10 = vadd.f32 %v7994_v1, %v7416_v27  ;;  %v8956_v32 = vpop.f32.mrb[195].mxu1  ;;  %v7430_v20 = vadd.f32 %v7414_v41, %v11828_v16 }
0x3c12   :  { %v7431_v7 = vadd.f32 %v7417_v10, %v11830_v15  ;;  %v7440_v9 = vsel %vm242_vm2, %v7430_v20, 0.0 }
0x3c14   :  { %v7443_v18 = vsel %vm242_vm2, %v7431_v7, 0.0 }
0x3c15   :  { %7444 = vadd.xlane.f32.xlu0 %v7443_v18  ;;  %v7421_v28 = vpop.f32.mrb[196].mxu1 }
0x3c16   :  { %v7422_v60 = vadd.f32 %v7994_v1, %v7421_v28  ;;  %v8959_v63 = vpop.f32.mrb[197].mxu1 }
0x3c17   :  { %v7436_v22 = vpop.xlane.xlu0 %7435  ;;  %v7424_v23 = vpop.f32.mrb[198].mxu1 }
0x3c18   :  { %v7432_v12 = vadd.f32 %v7422_v60, %v11839_v3  ;;  %v7452_v14 = vmul.f32 0.03125, %v7436_v22  ;;  %v7425_v55 = vadd.f32 %v7994_v1, %v7424_v23  ;;  %v8960_v4 = vpop.f32.mrb[199].mxu1  ;;  %v7515_v23 = vrot.slane %v11804_v48, %v10195_v24 }
0x3c19   :  { %v7439_v44 = vpop.xlane.xlu1 %7438  ;;  %7441 = vadd.xlane.f32.xlu0 %v7440_v9 }
0x3c1a   :  { %v11866_v15 = vsub.f32 %v7428_v8, %v7452_v14  ;;  %v7433_v16 = vadd.f32 %v7425_v55, %v11841_v43  ;;  %v7453_v40 = vmul.f32 0.03125, %v7439_v44  ;;  %v7446_v53 = vsel %vm242_vm2, %v7432_v12, 0.0  ;;  %v9266_v8 = vld [vmem:[%s7747_s29 + $0x8] sm:$0xff]  }
0x3c1b   :  { %7447 = vadd.xlane.f32.xlu1 %v7446_v53  ;;  %8964 = vmatpush3.bf16.msra.mxu0 %v9266_v8 }
0x3c1c   :  { %v11870_v35 = vsub.f32 %v7429_v39, %v7453_v40  ;;  %v7464_v3 = vmul.f32 %v11866_v15, %v11866_v15  ;;  %v7449_v36 = vsel %vm242_vm2, %v7433_v16, 0.0  ;;  %8969 = vmatprep.subr.bf16.mxu0 %v9653_v21 }
0x3c1e   :  { %v7470_v61 = vsel %vm242_vm2, %v7464_v3, 0.0  ;;  %v7465_v29 = vmul.f32 %v11870_v35, %v11870_v35 }
0x3c1f   :  { %7471 = vadd.xlane.f32.xlu0 %v7470_v61  ;;  %7450 = vadd.xlane.f32.xlu1 %v7449_v36 }
0x3c20   :  { %v7473_v43 = vsel %vm242_vm2, %v7465_v29, 0.0 }
0x3c23   :  { %7474 = vadd.xlane.f32.xlu1 %v7473_v43 }
0x3c34   :  { %7542 = vperm.xlu1 %9101, %v7533_v19  }
0x3ca2   :  { %v7445_v54 = vpop.xlane.xlu0 %7444 }
0x3ca3   :  { %v7455_v46 = vmul.f32 0.03125, %v7445_v54 }
0x3ca5   :  { %v11882_v52 = vsub.f32 %v7431_v7, %v7455_v46 }
0x3ca6   :  { %v7442_v45 = vpop.xlane.xlu0 %7441 }
0x3ca7   :  { %v7454_v11 = vmul.f32 0.03125, %v7442_v45  ;;  %v7467_v33 = vmul.f32 %v11882_v52, %v11882_v52 }
0x3ca8   :  { %v7448_v37 = vpop.xlane.xlu1 %7447 }
0x3ca9   :  { %v11884_v58 = vsub.f32 %v7430_v20, %v7454_v11  ;;  %v7456_v13 = vmul.f32 0.03125, %v7448_v37  ;;  %v7479_v2 = vsel %vm242_vm2, %v7467_v33, 0.0 }
0x3cab   :  { %v11886_v30 = vsub.f32 %v7432_v12, %v7456_v13  ;;  %v7466_v5 = vmul.f32 %v11884_v58, %v11884_v58 }
0x3cac   :  { %v7451_v31 = vpop.xlane.xlu1 %7450  ;;  %v7472_v49 = vpop.xlane.xlu0 %7471 }
0x3cad   :  { %v7457_v56 = vmul.f32 0.03125, %v7451_v31  ;;  %v7476_v38 = vsel %vm242_vm2, %v7466_v5, 0.0  ;;  %v7468_v26 = vmul.f32 %v11886_v30, %v11886_v30  ;;  %v7488_v51 = vmul.f32 0.03125, %v7472_v49 }
0x3cae   :  { %7477 = vadd.xlane.f32.xlu0 %v7476_v38 }
0x3caf   :  { %v11895_v62 = vsub.f32 %v7433_v16, %v7457_v56  ;;  %v7482_v34 = vsel %vm242_vm2, %v7468_v26, 0.0  ;;  %v7494_v42 = vadd.f32 1e-05, %v7488_v51  ;;  %v7525_v16 = vrot.slane %v11804_v48, %v10198_v6 }
0x3cb0   :  { %7483 = vadd.xlane.f32.xlu1 %v7482_v34  ;;  %v7475_v0 = vpop.xlane.xlu1 %7474 }
0x3cb1   :  { %v7469_v1 = vmul.f32 %v11895_v62, %v11895_v62  ;;  %v7489_v39 = vmul.f32 0.03125, %v7475_v0 }
0x3cb2   :  { %7480 = vadd.xlane.f32.xlu0 %v7479_v2 }
0x3cb3   :  { %v7485_v59 = vsel %vm242_vm2, %v7469_v1, 0.0  ;;  %v7495_v50 = vadd.f32 1e-05, %v7489_v39 }
0x3cb4   :  { %7486 = vadd.xlane.f32.xlu1 %v7485_v59  ;;  %v7543_v57 = vpop.permute.xlu1 %7542 }
0x3cb5   :  { %9633 = vrsqrt.f32 %v7495_v50 }
0x3cb6   :  { %9635 = vrsqrt.f32 %v7494_v42 }
0x3cbf   :  { %v9634_v10 = vpop.eup %9633 }
0x3cc0   :  { %v9636_v7 = vpop.eup %9635  ;;  %v7507_v60 = vmul.f32 %v9634_v10, %v11870_v35 }
0x3cc1   :  { %v7506_v14 = vmul.f32 %v9636_v7, %v11866_v15 }
0x3cc2   :  { %v7517_v9 = vmul.f32 %v7515_v23, %v7507_v60  ;;  %v9267_v60 = vld [vmem:[%s7749_s7] sm:$0xff]  }
0x3cc3   :  { %v7516_v40 = vmul.f32 %v7515_v23, %v7506_v14 }
0x3cc4   :  { %v7527_v53 = vadd.f32 %v7525_v16, %v7517_v9 }
0x3cc5   :  { %7547 = vperm.xlu1 %9101, %v7534_v47   ;;  %v7526_v3 = vadd.f32 %v7525_v16, %v7516_v40 }
0x3cc6   :  { %v7551_v15 = vmul.f32 %v7543_v57, %v7527_v53 }
0x3cc8   :  { %7537 = vperm.xlu0 %9102, %v7532_v25   ;;  %v7554_v37 = vsel %vm242_vm2, %v7551_v15, 0.0 }
0x3d3b   :  { %v7478_v27 = vpop.xlane.xlu0 %7477 }
0x3d3c   :  { %v7490_v41 = vmul.f32 0.03125, %v7478_v27 }
0x3d3d   :  { %v7484_v32 = vpop.xlane.xlu1 %7483 }
0x3d3e   :  { %v7496_v20 = vadd.f32 1e-05, %v7490_v41  ;;  %v7492_v18 = vmul.f32 0.03125, %v7484_v32 }
0x3d3f   :  { %v7481_v28 = vpop.xlane.xlu0 %7480 }
0x3d40   :  { %9637 = vrsqrt.f32 %v7496_v20  ;;  %v7498_v63 = vadd.f32 1e-05, %v7492_v18  ;;  %v7491_v22 = vmul.f32 0.03125, %v7481_v28 }
0x3d41   :  { %v7487_v12 = vpop.xlane.xlu1 %7486 }
0x3d42   :  { %9639 = vrsqrt.f32 %v7498_v63  ;;  %v7497_v55 = vadd.f32 1e-05, %v7491_v22  ;;  %v7493_v4 = vmul.f32 0.03125, %v7487_v12  ;;  %v9268_v63 = vld [vmem:[%s7749_s7 + $0x8] sm:$0xff]   ;;  %v68_v22 = vstv %s7750_s20 }
0x3d43   :  { %69 = vst [vmem:[#allocation2] sm:$0x1] %v68_v22 }
0x3d44   :  { %9641 = vrsqrt.f32 %v7497_v55  ;;  %v7499_v44 = vadd.f32 1e-05, %v7493_v4 }
0x3d45   :  { %v7548_v13 = vpop.permute.xlu1 %7547 }
0x3d46   :  { %9643 = vrsqrt.f32 %v7499_v44 }
0x3d47   :  { %v7538_v35 = vpop.permute.xlu0 %7537 }
0x3d48   :  { %v7550_v36 = vmul.f32 %v7538_v35, %v7526_v3 }
0x3d4a   :  { %v9638_v61 = vpop.eup %9637  ;;  %v7553_v6 = vsel %vm242_vm2, %v7550_v36, 0.0 }
0x3d4b   :  { %v7508_v24 = vmul.f32 %v9638_v61, %v11884_v58  ;;  %v7555_v38 = vadd.f32 %v7554_v37, %v7553_v6 }
0x3d4c   :  { %v9640_v29 = vpop.eup %9639 }
0x3d4d   :  { %v7518_v43 = vmul.f32 %v7515_v23, %v7508_v24  ;;  %v7510_v19 = vmul.f32 %v9640_v29, %v11886_v30 }
0x3d4e   :  { %v9642_v54 = vpop.eup %9641 }
0x3d4f   :  { %v7528_v46 = vadd.f32 %v7525_v16, %v7518_v43  ;;  %v7509_v45 = vmul.f32 %v9642_v54, %v11882_v52  ;;  %v7520_v11 = vmul.f32 %v7515_v23, %v7510_v19 }
0x3d50   :  { %v9644_v48 = vpop.eup %9643 }
0x3d51   :  { %v7511_v5 = vmul.f32 %v9644_v48, %v11895_v62  ;;  %v7552_v58 = vmul.f32 %v7548_v13, %v7528_v46  ;;  %v7519_v31 = vmul.f32 %v7515_v23, %v7509_v45  ;;  %v7530_v56 = vadd.f32 %v7525_v16, %v7520_v11 }
0x3d53   :  { %v7521_v26 = vmul.f32 %v7515_v23, %v7511_v5  ;;  %v7556_v30 = vsel %vm242_vm2, %v7552_v58, 0.0  ;;  %v7529_v33 = vadd.f32 %v7525_v16, %v7519_v31  ;;  %v7565_v34 = vmul.f32 %v7543_v57, %v7530_v56  ;;  %v8002_v23 = vld [vmem:[%s7748_s13] ss:$0 sm:$0xff] }
0x3d54   :  { %v7557_v2 = vadd.f32 %v7556_v30, %v7555_v38 }
0x3d55   :  { %v7531_v52 = vadd.f32 %v7525_v16, %v7521_v26  ;;  %v7564_v1 = vmul.f32 %v7538_v35, %v7529_v33  ;;  %v7568_v17 = vsel %vm242_vm2, %v7565_v34, 0.0  ;;  %v8006_v16 = vld [vmem:[#allocation2] ss:$0 sm:$0xff] }
0x3d56   :  { %v7558_v59 = vrot.slane %v7557_v2, 4 }
0x3d57   :  { %v7566_v47 = vmul.f32 %v7548_v13, %v7531_v52  ;;  %v7567_v25 = vsel %vm242_vm2, %v7564_v1, 0.0 }
0x3d58   :  { %v7559_v8 = vadd.f32 %v7558_v59, %v7557_v2  ;;  %v7569_v62 = vadd.f32 %v7568_v17, %v7567_v25 }
0x3d59   :  { %v7570_v0 = vsel %vm242_vm2, %v7566_v47, 0.0 }
0x3d5a   :  { %v7560_v49 = vrot.slane %v7559_v8, 2  ;;  %v7571_v39 = vadd.f32 %v7570_v0, %v7569_v62 }
0x3d5c   :  { %v7572_v51 = vrot.slane %v7571_v39, 4  ;;  %v7561_v50 = vadd.f32 %v7560_v49, %v7559_v8 }
0x3d5e   :  { %v7573_v42 = vadd.f32 %v7572_v51, %v7571_v39  ;;  %v7562_v57 = vrot.slane %v7561_v50, 1 }
0x3d60   :  { %v7574_v27 = vrot.slane %v7573_v42, 2  ;;  %v7563_v32 = vadd.f32 %v7562_v57, %v7561_v50 }
0x3d62   :  { %v7575_v41 = vadd.f32 %v7574_v27, %v7573_v42 }
0x3d64   :  { %v7576_v10 = vrot.slane %v7575_v41, 1 }
0x3d66   :  { %v7577_v7 = vadd.f32 %v7576_v10, %v7575_v41 }
0x3d68   :  { %v7578_v20 = vsel %vm159_vm0, %v7563_v32, %v7577_v7 }
0x3d69   :  { %v7579_v18 = vmul.f32 0.055555556, %v7578_v20 }
0x3d6b   :  { %v7584_v28 = vpack.c.bf16 %v7579_v18, %v7579_v18 }
0x3d6d   :  { %8966 = vmatmul.mubr.msk.bf16.vlgmr.msra.gmra.mrb[192].mxu0 %vm242_vm2, %v7584_v28 }
0x3d6e   :  { %8973 = vmatprep.mubr.msk.bf16.mxu0 %vm9654_vm3, %v9653_v21  ;;  %8970 = vmatpush3.bf16.msra.mxu0 %v9267_v60 }
0x3d6f   :  { %8971 = vmatprep.subr.bf16.mxu0 %v9653_v21 }
0x3d72   :  { %8972 = vmatpush3.bf16.msra.mxu0 %v9268_v63 }
0x3e40   :  { %v7641_v12 = vpop.f32.mrb[192].mxu0 }
0x3e41   :  { %v7642_v14 = vadd.f32 %v8002_v23, %v7641_v12  ;;  %v8967_v55 = vpop.f32.mrb[193].mxu0 }
0x3e42   :  { %v7644_v4 = vpop.f32.mrb[194].mxu0 }
0x3e43   :  { %v7647_v21 = vmax.f32 %v7642_v14, 0.0  ;;  %v8968_v9 = vpop.f32.mrb[195].mxu0 }
0x3e45   :  { %v7652_v44 = vpack.c.bf16 %v7647_v21, %v7647_v21 }
0x3e47   :  { %8974 = vmatmul.mubr.msk.bf16.vlgmr.msra.gmra.mrb[196].mxu0 %vm242_vm2, %v7652_v44 }
0x3f1a   :  { %v7709_v40 = vpop.f32.mrb[196].mxu0 }
0x3f1b   :  { %v7710_v53 = vadd.f32 %v8006_v16, %v7709_v40  ;;  %v8975_v35 = vpop.f32.mrb[197].mxu0 }
0x3f1c   :  { %v7712_v3 = vpop.f32.mrb[198].mxu0 }
0x3f1d   :  { %7716 = vst.msk [vmem:[%s7751_s19] sm:$0x3] %vm7715_vm11, %v7710_v53  ;;  %v8976_v61 = vpop.f32.mrb[199].mxu0 }

</bundles_post_ra>
